<compile_context>
chip_gen: v7x
topology: tpu7x:2x2x1
jax: 0.10.0
libtpu: 0.0.40
codegen_flags: <defaults>
</compile_context>

<pallas_src>
import jax
import jax.numpy as jnp
from jax import lax
from jax.experimental import pallas as pl
from jax.experimental.pallas import tpu as pltpu

EPS_BN = 1e-5


# ---------------------------------------------------------------------------
# Fused kernel: LSTM + (fc folded into conv1) + BN/PReLU x2 + conv3 + tanh
# ---------------------------------------------------------------------------
def _taps3(x):
    """(B, T, C) -> (B, T, 3C): [x[t-1] | x[t] | x[t+1]] with zero padding at the edges."""
    B, T, C = x.shape
    z = jnp.zeros((B, 1, C), x.dtype)
    left = jnp.concatenate([z, x[:, :T - 1, :]], axis=1)    # x[t-1]
    right = jnp.concatenate([x[:, 1:, :], z], axis=1)       # x[t+1]
    return jnp.concatenate([left, x, right], axis=-1)


def generator_kernel(x_ref, wih_ref, whh_ref, b_ref,
                     wf1_ref, bc1_ref, c10_ref, c12_ref, g1_ref, be1_ref,
                     w2_ref, b2_ref, g2_ref, be2_ref,
                     w3_ref, b3_ref,
                     alpha_ref,
                     out_ref):
    B, T, D = x_ref.shape
    H = whh_ref.shape[0]
    C1 = wf1_ref.shape[1]          # 128
    C2 = w2_ref.shape[1]           # 64
    O = w3_ref.shape[1]

    # -------------------- LSTM (gate order permuted to [i, f, o, g]) -----------------
    whh = whh_ref[...]                                                     # (H, 4H)
    x = x_ref[...].astype(jnp.float32)                                     # (B, T, D)
    # Hoisted input projection + bias: one (B*T, D) @ (D, 4H) matmul outside the loop.
    gx = jnp.dot(x.reshape(B * T, D), wih_ref[...],
                 preferred_element_type=jnp.float32)
    gx = gx.reshape(B, T, 4 * H) + b_ref[...][None]                        # (B, T, 4H)

    h = jnp.zeros((B, H), jnp.float32)
    c = jnp.zeros((B, H), jnp.float32)
    hs_list = []
    # Static Python loop: T is small and static -> fully unrolled with constant
    # indices, giving the scheduler cross-iteration visibility (MXU/EUP overlap).
    for t in range(T):
        g = gx[:, t, :] + jnp.dot(h, whh, preferred_element_type=jnp.float32)
        s = jax.nn.sigmoid(g[:, :3 * H])                                   # i|f|o in one shot
        i_g = s[:, :H]
        f_g = s[:, H:2 * H]
        o_g = s[:, 2 * H:3 * H]
        gg = jnp.tanh(g[:, 3 * H:])
        c = f_g * c + i_g * gg
        h = o_g * jnp.tanh(c)
        hs_list.append(h)
    hs = jnp.stack(hs_list, axis=1)                                        # (B, T, H)

    # -------------------- fc folded into conv1 ---------------------------------------
    # y1[t] = sum_k hs_pad[t+k-1] @ (wfc @ w1[k])  +  (bfc @ sum_k w1[k] + b1)
    # minus the bfc@w1[k] terms that the zero-padded edge rows must not receive.
    y1 = jnp.dot(_taps3(hs).reshape(B * T, 3 * H), wf1_ref[...],
                 preferred_element_type=jnp.float32).reshape(B, T, C1)
    y1 = y1 + bc1_ref[...][None]
    row = lax.broadcasted_iota(jnp.int32, (B, T, C1), 1)
    y1 = y1 - jnp.where(row == 0, c10_ref[...][None], 0.0)        # tap k=0 hits padding
    y1 = y1 - jnp.where(row == T - 1, c12_ref[...][None], 0.0)    # tap k=2 hits padding

    def bn(v, g_ref2, be_ref2):
        m = jnp.mean(v, axis=(0, 1), keepdims=True)
        var = jnp.mean((v - m) ** 2, axis=(0, 1), keepdims=True)
        return (v - m) * lax.rsqrt(var + EPS_BN) * g_ref2[...][None] + be_ref2[...][None]

    def prelu(v, a):                                                        # a: SMEM scalar
        return jnp.where(v > 0, v, a * v)

    x1 = prelu(bn(y1, g1_ref, be1_ref), alpha_ref[0])                       # (B, T, 128)

    # -------------------- conv2 + BN + PReLU ------------------------------------------
    y2 = jnp.dot(_taps3(x1).reshape(B * T, 3 * C1), w2_ref[...],
                 preferred_element_type=jnp.float32).reshape(B, T, C2) + b2_ref[...][None]
    x2 = prelu(bn(y2, g2_ref, be2_ref), alpha_ref[1])                       # (B, T, 64)

    # -------------------- conv3 + tanh -------------------------------------------------
    y3 = jnp.dot(_taps3(x2).reshape(B * T, 3 * C2), w3_ref[...],
                 preferred_element_type=jnp.float32).reshape(B, T, O) + b3_ref[...][None]
    out_ref[...] = jnp.tanh(y3)


def generator_forward(z, kp):
    # z: (B, seq_len, generator_input_dim) -> (B, seq_len, output_dim)
    B, T, D = z.shape
    O = kp["w3s"].shape[1]
    args = (z, kp["wih"], kp["whh"], kp["blstm"],
            kp["wf1s"], kp["bc1"], kp["c10"], kp["c12"], kp["g1"], kp["be1"],
            kp["w2s"], kp["b2"], kp["g2"], kp["be2"],
            kp["w3s"], kp["b3"], kp["alphas"])
    vmem = lambda: pl.BlockSpec(memory_space=pltpu.MemorySpace.VMEM)
    in_specs = [vmem() for _ in range(len(args) - 1)]
    in_specs.append(pl.BlockSpec(memory_space=pltpu.MemorySpace.SMEM))      # PReLU alphas
    return pl.pallas_call(
        generator_kernel,
        out_shape=jax.ShapeDtypeStruct((B, T, O), jnp.float32),
        in_specs=in_specs,
        out_specs=pl.BlockSpec(memory_space=pltpu.MemorySpace.VMEM),
    )(*args)


# ---------------------------------------------------------------------------
# Parameters: synthetic PyTorch-layout params + host-side prep for the kernel.
# ---------------------------------------------------------------------------
def init_params(key, D, O, H=256):
    ks = jax.random.split(key, 12)

    def u(k, shape, s):
        return jax.random.uniform(k, shape, jnp.float32, -s, s)

    s_l = 1.0 / jnp.sqrt(H)
    p = {
        "wih": u(ks[0], (D, 4 * H), s_l),                   # weight_ih_l0.T  (gate order i,f,g,o)
        "whh": u(ks[1], (H, 4 * H), s_l),                   # weight_hh_l0.T
        "blstm": u(ks[2], (1, 4 * H), s_l) + u(ks[3], (1, 4 * H), s_l),  # b_ih + b_hh
        "wfc": u(ks[4], (H, O), s_l),                       # fc.weight.T
        "bfc": u(ks[5], (1, O), s_l),
    }

    def conv_init(kw, kb, cin, cout):
        s = 1.0 / jnp.sqrt(cin * 3)
        # w[k, c, o] == W_torch[o, c, k]
        return u(kw, (3, cin, cout), s), u(kb, (1, cout), s)

    p["w1"], p["b1"] = conv_init(ks[6], ks[7], O, 128)
    p["w2"], p["b2"] = conv_init(ks[8], ks[9], 128, 64)
    p["w3"], p["b3"] = conv_init(ks[10], ks[11], 64, O)
    p["g1"], p["be1"] = jnp.ones((1, 128), jnp.float32), jnp.zeros((1, 128), jnp.float32)
    p["g2"], p["be2"] = jnp.ones((1, 64), jnp.float32), jnp.zeros((1, 64), jnp.float32)
    p["a1"] = jnp.full((1, 1), 0.25, jnp.float32)           # PReLU default init
    p["a2"] = jnp.full((1, 1), 0.25, jnp.float32)
    return p


def prepare_kernel_params(p):
    """One-time host-side prep: gate-column permutation, fc->conv1 weight fusion,
    tap stacking, SMEM alpha packing.  Pure XLA ops outside the kernel."""
    H = p["whh"].shape[0]
    C1 = p["w1"].shape[2]
    C2 = p["w2"].shape[2]
    O = p["w3"].shape[2]

    def perm_gates(w):   # PyTorch [i|f|g|o] -> kernel [i|f|o|g]
        return jnp.concatenate([w[..., :2 * H], w[..., 3 * H:4 * H], w[..., 2 * H:3 * H]],
                               axis=-1)

    wf1 = jnp.einsum("ho,koc->khc", p["wfc"], p["w1"])       # (3, H, 128): wfc @ w1[k]
    bck = jnp.einsum("xo,koc->kxc", p["bfc"], p["w1"])       # (3, 1, 128): bfc @ w1[k]

    return dict(
        wih=perm_gates(p["wih"]),
        whh=perm_gates(p["whh"]),
        blstm=perm_gates(p["blstm"]),
        wf1s=wf1.reshape(3 * H, C1),
        bc1=bck.sum(0) + p["b1"],                            # full fused bias
        c10=bck[0],                                          # edge fix-up, row 0
        c12=bck[2],                                          # edge fix-up, row T-1
        g1=p["g1"], be1=p["be1"],
        w2s=p["w2"].reshape(3 * C1, C2), b2=p["b2"], g2=p["g2"], be2=p["be2"],
        w3s=p["w3"].reshape(3 * C2, O), b3=p["b3"],
        alphas=jnp.concatenate([p["a1"].reshape(1), p["a2"].reshape(1)]),   # (2,) SMEM
    )


# ---------------------------------------------------------------------------
# Pure-JAX reference (original unfused PyTorch-layout math) for correctness.
# ---------------------------------------------------------------------------
def reference_forward(z, p):
    B, T, D = z.shape
    H = p["whh"].shape[0]

    def step(carry, xt):
        h, c = carry
        g = xt @ p["wih"] + h @ p["whh"] + p["blstm"][0]
        i = jax.nn.sigmoid(g[:, :H])
        f = jax.nn.sigmoid(g[:, H:2 * H])
        gg = jnp.tanh(g[:, 2 * H:3 * H])
        o = jax.nn.sigmoid(g[:, 3 * H:])
        c = f * c + i * gg
        h = o * jnp.tanh(c)
        return (h, c), h

    init = (jnp.zeros((B, H), jnp.float32), jnp.zeros((B, H), jnp.float32))
    _, hs = lax.scan(step, init, jnp.swapaxes(z, 0, 1))
    hs = jnp.swapaxes(hs, 0, 1)
    proj = hs @ p["wfc"] + p["bfc"][0]

    def conv(xv, w, b):
        L = xv.shape[1]
        xp = jnp.pad(xv, ((0, 0), (1, 1), (0, 0)))
        return sum(jnp.einsum("blc,co->blo", xp[:, k:k + L, :], w[k]) for k in range(3)) + b[0]

    def bn(xv, g, be):
        m = jnp.mean(xv, axis=(0, 1), keepdims=True)
        v = jnp.mean((xv - m) ** 2, axis=(0, 1), keepdims=True)
        return (xv - m) / jnp.sqrt(v + EPS_BN) * g[0] + be[0]

    def prelu(xv, a):
        return jnp.where(xv > 0, xv, a[0, 0] * xv)

    x = prelu(bn(conv(proj, p["w1"], p["b1"]), p["g1"], p["be1"]), p["a1"])
    x = prelu(bn(conv(x, p["w2"], p["b2"]), p["g2"], p["be2"]), p["a2"])
    x = conv(x, p["w3"], p["b3"])
    return jnp.tanh(x)


if __name__ == "__main__":
    B, T, D, O, H = 2, 8, 16, 8, 256   # batch, seq_len, generator_input_dim, output_dim, lstm_hidden
    key = jax.random.PRNGKey(0)
    kx, kparam = jax.random.split(key)
    z = jax.random.normal(kx, (B, T, D), jnp.float32)
    params = init_params(kparam, D, O, H)
    kparams = prepare_kernel_params(params)

    out = generator_forward(z, kparams)
    out = jax.block_until_ready(out)
    ref = reference_forward(z, params)

    assert out.shape == (B, T, O), out.shape
    assert bool(jnp.all(jnp.isfinite(out)))
    max_err = float(jnp.max(jnp.abs(out - ref)))
    assert bool(jnp.allclose(out, ref, atol=1e-2, rtol=1e-2)), max_err
    print("KERNEL_OK")
</pallas_src>

<mosaic_0001>
module attributes {stable_mosaic.version = 11 : i64} {
  func.func @generator_kernel(%arg0: memref<2x8x16xf32, #tpu.memory_space<vmem>>, %arg1: memref<16x1024xf32, #tpu.memory_space<vmem>>, %arg2: memref<256x1024xf32, #tpu.memory_space<vmem>>, %arg3: memref<1x1024xf32, #tpu.memory_space<vmem>>, %arg4: memref<768x128xf32, #tpu.memory_space<vmem>>, %arg5: memref<1x128xf32, #tpu.memory_space<vmem>>, %arg6: memref<1x128xf32, #tpu.memory_space<vmem>>, %arg7: memref<1x128xf32, #tpu.memory_space<vmem>>, %arg8: memref<1x128xf32, #tpu.memory_space<vmem>>, %arg9: memref<1x128xf32, #tpu.memory_space<vmem>>, %arg10: memref<384x64xf32, #tpu.memory_space<vmem>>, %arg11: memref<1x64xf32, #tpu.memory_space<vmem>>, %arg12: memref<1x64xf32, #tpu.memory_space<vmem>>, %arg13: memref<1x64xf32, #tpu.memory_space<vmem>>, %arg14: memref<192x8xf32, #tpu.memory_space<vmem>>, %arg15: memref<1x8xf32, #tpu.memory_space<vmem>>, %arg16: memref<2xf32, #tpu.memory_space<smem>>, %arg17: memref<2x8x8xf32, #tpu.memory_space<vmem>>) attributes {dimension_semantics = [], scalar_prefetch = 0 : i64, scratch_operands = 0 : i64, tpu.core_type = #tpu.core_type<tc>} {
    %c0 = arith.constant 0 : index
    %c0_0 = arith.constant 0 : index
    %0 = vector.load %arg2[%c0, %c0_0] : memref<256x1024xf32, #tpu.memory_space<vmem>>, vector<256x1024xf32>
    %c0_1 = arith.constant 0 : index
    %c0_2 = arith.constant 0 : index
    %c0_3 = arith.constant 0 : index
    %1 = vector.load %arg0[%c0_1, %c0_2, %c0_3] : memref<2x8x16xf32, #tpu.memory_space<vmem>>, vector<2x8x16xf32>
    %2 = vector.shape_cast %1 : vector<2x8x16xf32> to vector<16x16xf32>
    %c0_4 = arith.constant 0 : index
    %c0_5 = arith.constant 0 : index
    %3 = vector.load %arg1[%c0_4, %c0_5] : memref<16x1024xf32, #tpu.memory_space<vmem>>, vector<16x1024xf32>
    %cst = arith.constant dense<0.000000e+00> : vector<16x1024xf32>
    %4 = tpu.matmul %2, %3, %cst {dimension_numbers = #tpu.dot_dimension_numbers<[1], [0], [0], [1], [0, 0, 1, 1], [], []>} : vector<16x16xf32>, vector<16x1024xf32>, vector<16x1024xf32> -> vector<16x1024xf32>
    %5 = vector.shape_cast %4 : vector<16x1024xf32> to vector<2x8x1024xf32>
    %c0_6 = arith.constant 0 : index
    %c0_7 = arith.constant 0 : index
    %6 = vector.load %arg3[%c0_6, %c0_7] : memref<1x1024xf32, #tpu.memory_space<vmem>>, vector<1x1024xf32>
    %7 = vector.shape_cast %6 : vector<1x1024xf32> to vector<1x1x1024xf32>
    %8 = vector.broadcast %7 : vector<1x1x1024xf32> to vector<2x8x1024xf32>
    %9 = arith.addf %5, %8 : vector<2x8x1024xf32>
    %cst_8 = arith.constant 0.000000e+00 : f32
    %10 = vector.broadcast %cst_8 : f32 to vector<2x256xf32>
    %cst_9 = arith.constant 0.000000e+00 : f32
    %11 = vector.broadcast %cst_9 : f32 to vector<2x256xf32>
    %12 = vector.extract_strided_slice %9 {offsets = [0, 0, 0], sizes = [2, 1, 1024], strides = [1, 1, 1]} : vector<2x8x1024xf32> to vector<2x1x1024xf32>
    %13 = vector.shape_cast %12 : vector<2x1x1024xf32> to vector<2x1024xf32>
    %cst_10 = arith.constant dense<0.000000e+00> : vector<2x1024xf32>
    %14 = tpu.matmul %10, %0, %cst_10 {dimension_numbers = #tpu.dot_dimension_numbers<[1], [0], [0], [1], [0, 0, 1, 1], [], []>} : vector<2x256xf32>, vector<256x1024xf32>, vector<2x1024xf32> -> vector<2x1024xf32>
    %15 = arith.addf %13, %14 : vector<2x1024xf32>
    %16 = vector.extract_strided_slice %15 {offsets = [0, 0], sizes = [2, 768], strides = [1, 1]} : vector<2x1024xf32> to vector<2x768xf32>
    %17 = arith.negf %16 : vector<2x768xf32>
    %18 = math.exp %17 : vector<2x768xf32>
    %cst_11 = arith.constant 1.000000e+00 : f32
    %19 = vector.broadcast %cst_11 : f32 to vector<2x768xf32>
    %20 = arith.addf %19, %18 : vector<2x768xf32>
    %21 = arith.divf %19, %20 : vector<2x768xf32>
    %22 = vector.extract_strided_slice %21 {offsets = [0, 0], sizes = [2, 256], strides = [1, 1]} : vector<2x768xf32> to vector<2x256xf32>
    %23 = vector.extract_strided_slice %21 {offsets = [0, 256], sizes = [2, 256], strides = [1, 1]} : vector<2x768xf32> to vector<2x256xf32>
    %24 = vector.extract_strided_slice %21 {offsets = [0, 512], sizes = [2, 256], strides = [1, 1]} : vector<2x768xf32> to vector<2x256xf32>
    %25 = vector.extract_strided_slice %15 {offsets = [0, 768], sizes = [2, 256], strides = [1, 1]} : vector<2x1024xf32> to vector<2x256xf32>
    %26 = math.tanh %25 : vector<2x256xf32>
    %27 = arith.mulf %23, %11 : vector<2x256xf32>
    %28 = arith.mulf %22, %26 : vector<2x256xf32>
    %29 = arith.addf %27, %28 : vector<2x256xf32>
    %30 = math.tanh %29 : vector<2x256xf32>
    %31 = arith.mulf %24, %30 : vector<2x256xf32>
    %32 = vector.extract_strided_slice %9 {offsets = [0, 1, 0], sizes = [2, 1, 1024], strides = [1, 1, 1]} : vector<2x8x1024xf32> to vector<2x1x1024xf32>
    %33 = vector.shape_cast %32 : vector<2x1x1024xf32> to vector<2x1024xf32>
    %cst_12 = arith.constant dense<0.000000e+00> : vector<2x1024xf32>
    %34 = tpu.matmul %31, %0, %cst_12 {dimension_numbers = #tpu.dot_dimension_numbers<[1], [0], [0], [1], [0, 0, 1, 1], [], []>} : vector<2x256xf32>, vector<256x1024xf32>, vector<2x1024xf32> -> vector<2x1024xf32>
    %35 = arith.addf %33, %34 : vector<2x1024xf32>
    %36 = vector.extract_strided_slice %35 {offsets = [0, 0], sizes = [2, 768], strides = [1, 1]} : vector<2x1024xf32> to vector<2x768xf32>
    %37 = arith.negf %36 : vector<2x768xf32>
    %38 = math.exp %37 : vector<2x768xf32>
    %cst_13 = arith.constant 1.000000e+00 : f32
    %39 = vector.broadcast %cst_13 : f32 to vector<2x768xf32>
    %40 = arith.addf %39, %38 : vector<2x768xf32>
    %41 = arith.divf %39, %40 : vector<2x768xf32>
    %42 = vector.extract_strided_slice %41 {offsets = [0, 0], sizes = [2, 256], strides = [1, 1]} : vector<2x768xf32> to vector<2x256xf32>
    %43 = vector.extract_strided_slice %41 {offsets = [0, 256], sizes = [2, 256], strides = [1, 1]} : vector<2x768xf32> to vector<2x256xf32>
    %44 = vector.extract_strided_slice %41 {offsets = [0, 512], sizes = [2, 256], strides = [1, 1]} : vector<2x768xf32> to vector<2x256xf32>
    %45 = vector.extract_strided_slice %35 {offsets = [0, 768], sizes = [2, 256], strides = [1, 1]} : vector<2x1024xf32> to vector<2x256xf32>
    %46 = math.tanh %45 : vector<2x256xf32>
    %47 = arith.mulf %43, %29 : vector<2x256xf32>
    %48 = arith.mulf %42, %46 : vector<2x256xf32>
    %49 = arith.addf %47, %48 : vector<2x256xf32>
    %50 = math.tanh %49 : vector<2x256xf32>
    %51 = arith.mulf %44, %50 : vector<2x256xf32>
    %52 = vector.extract_strided_slice %9 {offsets = [0, 2, 0], sizes = [2, 1, 1024], strides = [1, 1, 1]} : vector<2x8x1024xf32> to vector<2x1x1024xf32>
    %53 = vector.shape_cast %52 : vector<2x1x1024xf32> to vector<2x1024xf32>
    %cst_14 = arith.constant dense<0.000000e+00> : vector<2x1024xf32>
    %54 = tpu.matmul %51, %0, %cst_14 {dimension_numbers = #tpu.dot_dimension_numbers<[1], [0], [0], [1], [0, 0, 1, 1], [], []>} : vector<2x256xf32>, vector<256x1024xf32>, vector<2x1024xf32> -> vector<2x1024xf32>
    %55 = arith.addf %53, %54 : vector<2x1024xf32>
    %56 = vector.extract_strided_slice %55 {offsets = [0, 0], sizes = [2, 768], strides = [1, 1]} : vector<2x1024xf32> to vector<2x768xf32>
    %57 = arith.negf %56 : vector<2x768xf32>
    %58 = math.exp %57 : vector<2x768xf32>
    %cst_15 = arith.constant 1.000000e+00 : f32
    %59 = vector.broadcast %cst_15 : f32 to vector<2x768xf32>
    %60 = arith.addf %59, %58 : vector<2x768xf32>
    %61 = arith.divf %59, %60 : vector<2x768xf32>
    %62 = vector.extract_strided_slice %61 {offsets = [0, 0], sizes = [2, 256], strides = [1, 1]} : vector<2x768xf32> to vector<2x256xf32>
    %63 = vector.extract_strided_slice %61 {offsets = [0, 256], sizes = [2, 256], strides = [1, 1]} : vector<2x768xf32> to vector<2x256xf32>
    %64 = vector.extract_strided_slice %61 {offsets = [0, 512], sizes = [2, 256], strides = [1, 1]} : vector<2x768xf32> to vector<2x256xf32>
    %65 = vector.extract_strided_slice %55 {offsets = [0, 768], sizes = [2, 256], strides = [1, 1]} : vector<2x1024xf32> to vector<2x256xf32>
    %66 = math.tanh %65 : vector<2x256xf32>
    %67 = arith.mulf %63, %49 : vector<2x256xf32>
    %68 = arith.mulf %62, %66 : vector<2x256xf32>
    %69 = arith.addf %67, %68 : vector<2x256xf32>
    %70 = math.tanh %69 : vector<2x256xf32>
    %71 = arith.mulf %64, %70 : vector<2x256xf32>
    %72 = vector.extract_strided_slice %9 {offsets = [0, 3, 0], sizes = [2, 1, 1024], strides = [1, 1, 1]} : vector<2x8x1024xf32> to vector<2x1x1024xf32>
    %73 = vector.shape_cast %72 : vector<2x1x1024xf32> to vector<2x1024xf32>
    %cst_16 = arith.constant dense<0.000000e+00> : vector<2x1024xf32>
    %74 = tpu.matmul %71, %0, %cst_16 {dimension_numbers = #tpu.dot_dimension_numbers<[1], [0], [0], [1], [0, 0, 1, 1], [], []>} : vector<2x256xf32>, vector<256x1024xf32>, vector<2x1024xf32> -> vector<2x1024xf32>
    %75 = arith.addf %73, %74 : vector<2x1024xf32>
    %76 = vector.extract_strided_slice %75 {offsets = [0, 0], sizes = [2, 768], strides = [1, 1]} : vector<2x1024xf32> to vector<2x768xf32>
    %77 = arith.negf %76 : vector<2x768xf32>
    %78 = math.exp %77 : vector<2x768xf32>
    %cst_17 = arith.constant 1.000000e+00 : f32
    %79 = vector.broadcast %cst_17 : f32 to vector<2x768xf32>
    %80 = arith.addf %79, %78 : vector<2x768xf32>
    %81 = arith.divf %79, %80 : vector<2x768xf32>
    %82 = vector.extract_strided_slice %81 {offsets = [0, 0], sizes = [2, 256], strides = [1, 1]} : vector<2x768xf32> to vector<2x256xf32>
    %83 = vector.extract_strided_slice %81 {offsets = [0, 256], sizes = [2, 256], strides = [1, 1]} : vector<2x768xf32> to vector<2x256xf32>
    %84 = vector.extract_strided_slice %81 {offsets = [0, 512], sizes = [2, 256], strides = [1, 1]} : vector<2x768xf32> to vector<2x256xf32>
    %85 = vector.extract_strided_slice %75 {offsets = [0, 768], sizes = [2, 256], strides = [1, 1]} : vector<2x1024xf32> to vector<2x256xf32>
    %86 = math.tanh %85 : vector<2x256xf32>
    %87 = arith.mulf %83, %69 : vector<2x256xf32>
    %88 = arith.mulf %82, %86 : vector<2x256xf32>
    %89 = arith.addf %87, %88 : vector<2x256xf32>
    %90 = math.tanh %89 : vector<2x256xf32>
    %91 = arith.mulf %84, %90 : vector<2x256xf32>
    %92 = vector.extract_strided_slice %9 {offsets = [0, 4, 0], sizes = [2, 1, 1024], strides = [1, 1, 1]} : vector<2x8x1024xf32> to vector<2x1x1024xf32>
    %93 = vector.shape_cast %92 : vector<2x1x1024xf32> to vector<2x1024xf32>
    %cst_18 = arith.constant dense<0.000000e+00> : vector<2x1024xf32>
    %94 = tpu.matmul %91, %0, %cst_18 {dimension_numbers = #tpu.dot_dimension_numbers<[1], [0], [0], [1], [0, 0, 1, 1], [], []>} : vector<2x256xf32>, vector<256x1024xf32>, vector<2x1024xf32> -> vector<2x1024xf32>
    %95 = arith.addf %93, %94 : vector<2x1024xf32>
    %96 = vector.extract_strided_slice %95 {offsets = [0, 0], sizes = [2, 768], strides = [1, 1]} : vector<2x1024xf32> to vector<2x768xf32>
    %97 = arith.negf %96 : vector<2x768xf32>
    %98 = math.exp %97 : vector<2x768xf32>
    %cst_19 = arith.constant 1.000000e+00 : f32
    %99 = vector.broadcast %cst_19 : f32 to vector<2x768xf32>
    %100 = arith.addf %99, %98 : vector<2x768xf32>
    %101 = arith.divf %99, %100 : vector<2x768xf32>
    %102 = vector.extract_strided_slice %101 {offsets = [0, 0], sizes = [2, 256], strides = [1, 1]} : vector<2x768xf32> to vector<2x256xf32>
    %103 = vector.extract_strided_slice %101 {offsets = [0, 256], sizes = [2, 256], strides = [1, 1]} : vector<2x768xf32> to vector<2x256xf32>
    %104 = vector.extract_strided_slice %101 {offsets = [0, 512], sizes = [2, 256], strides = [1, 1]} : vector<2x768xf32> to vector<2x256xf32>
    %105 = vector.extract_strided_slice %95 {offsets = [0, 768], sizes = [2, 256], strides = [1, 1]} : vector<2x1024xf32> to vector<2x256xf32>
    %106 = math.tanh %105 : vector<2x256xf32>
    %107 = arith.mulf %103, %89 : vector<2x256xf32>
    %108 = arith.mulf %102, %106 : vector<2x256xf32>
    %109 = arith.addf %107, %108 : vector<2x256xf32>
    %110 = math.tanh %109 : vector<2x256xf32>
    %111 = arith.mulf %104, %110 : vector<2x256xf32>
    %112 = vector.extract_strided_slice %9 {offsets = [0, 5, 0], sizes = [2, 1, 1024], strides = [1, 1, 1]} : vector<2x8x1024xf32> to vector<2x1x1024xf32>
    %113 = vector.shape_cast %112 : vector<2x1x1024xf32> to vector<2x1024xf32>
    %cst_20 = arith.constant dense<0.000000e+00> : vector<2x1024xf32>
    %114 = tpu.matmul %111, %0, %cst_20 {dimension_numbers = #tpu.dot_dimension_numbers<[1], [0], [0], [1], [0, 0, 1, 1], [], []>} : vector<2x256xf32>, vector<256x1024xf32>, vector<2x1024xf32> -> vector<2x1024xf32>
    %115 = arith.addf %113, %114 : vector<2x1024xf32>
    %116 = vector.extract_strided_slice %115 {offsets = [0, 0], sizes = [2, 768], strides = [1, 1]} : vector<2x1024xf32> to vector<2x768xf32>
    %117 = arith.negf %116 : vector<2x768xf32>
    %118 = math.exp %117 : vector<2x768xf32>
    %cst_21 = arith.constant 1.000000e+00 : f32
    %119 = vector.broadcast %cst_21 : f32 to vector<2x768xf32>
    %120 = arith.addf %119, %118 : vector<2x768xf32>
    %121 = arith.divf %119, %120 : vector<2x768xf32>
    %122 = vector.extract_strided_slice %121 {offsets = [0, 0], sizes = [2, 256], strides = [1, 1]} : vector<2x768xf32> to vector<2x256xf32>
    %123 = vector.extract_strided_slice %121 {offsets = [0, 256], sizes = [2, 256], strides = [1, 1]} : vector<2x768xf32> to vector<2x256xf32>
    %124 = vector.extract_strided_slice %121 {offsets = [0, 512], sizes = [2, 256], strides = [1, 1]} : vector<2x768xf32> to vector<2x256xf32>
    %125 = vector.extract_strided_slice %115 {offsets = [0, 768], sizes = [2, 256], strides = [1, 1]} : vector<2x1024xf32> to vector<2x256xf32>
    %126 = math.tanh %125 : vector<2x256xf32>
    %127 = arith.mulf %123, %109 : vector<2x256xf32>
    %128 = arith.mulf %122, %126 : vector<2x256xf32>
    %129 = arith.addf %127, %128 : vector<2x256xf32>
    %130 = math.tanh %129 : vector<2x256xf32>
    %131 = arith.mulf %124, %130 : vector<2x256xf32>
    %132 = vector.extract_strided_slice %9 {offsets = [0, 6, 0], sizes = [2, 1, 1024], strides = [1, 1, 1]} : vector<2x8x1024xf32> to vector<2x1x1024xf32>
    %133 = vector.shape_cast %132 : vector<2x1x1024xf32> to vector<2x1024xf32>
    %cst_22 = arith.constant dense<0.000000e+00> : vector<2x1024xf32>
    %134 = tpu.matmul %131, %0, %cst_22 {dimension_numbers = #tpu.dot_dimension_numbers<[1], [0], [0], [1], [0, 0, 1, 1], [], []>} : vector<2x256xf32>, vector<256x1024xf32>, vector<2x1024xf32> -> vector<2x1024xf32>
    %135 = arith.addf %133, %134 : vector<2x1024xf32>
    %136 = vector.extract_strided_slice %135 {offsets = [0, 0], sizes = [2, 768], strides = [1, 1]} : vector<2x1024xf32> to vector<2x768xf32>
    %137 = arith.negf %136 : vector<2x768xf32>
    %138 = math.exp %137 : vector<2x768xf32>
    %cst_23 = arith.constant 1.000000e+00 : f32
    %139 = vector.broadcast %cst_23 : f32 to vector<2x768xf32>
    %140 = arith.addf %139, %138 : vector<2x768xf32>
    %141 = arith.divf %139, %140 : vector<2x768xf32>
    %142 = vector.extract_strided_slice %141 {offsets = [0, 0], sizes = [2, 256], strides = [1, 1]} : vector<2x768xf32> to vector<2x256xf32>
    %143 = vector.extract_strided_slice %141 {offsets = [0, 256], sizes = [2, 256], strides = [1, 1]} : vector<2x768xf32> to vector<2x256xf32>
    %144 = vector.extract_strided_slice %141 {offsets = [0, 512], sizes = [2, 256], strides = [1, 1]} : vector<2x768xf32> to vector<2x256xf32>
    %145 = vector.extract_strided_slice %135 {offsets = [0, 768], sizes = [2, 256], strides = [1, 1]} : vector<2x1024xf32> to vector<2x256xf32>
    %146 = math.tanh %145 : vector<2x256xf32>
    %147 = arith.mulf %143, %129 : vector<2x256xf32>
    %148 = arith.mulf %142, %146 : vector<2x256xf32>
    %149 = arith.addf %147, %148 : vector<2x256xf32>
    %150 = math.tanh %149 : vector<2x256xf32>
    %151 = arith.mulf %144, %150 : vector<2x256xf32>
    %152 = vector.extract_strided_slice %9 {offsets = [0, 7, 0], sizes = [2, 1, 1024], strides = [1, 1, 1]} : vector<2x8x1024xf32> to vector<2x1x1024xf32>
    %153 = vector.shape_cast %152 : vector<2x1x1024xf32> to vector<2x1024xf32>
    %cst_24 = arith.constant dense<0.000000e+00> : vector<2x1024xf32>
    %154 = tpu.matmul %151, %0, %cst_24 {dimension_numbers = #tpu.dot_dimension_numbers<[1], [0], [0], [1], [0, 0, 1, 1], [], []>} : vector<2x256xf32>, vector<256x1024xf32>, vector<2x1024xf32> -> vector<2x1024xf32>
    %155 = arith.addf %153, %154 : vector<2x1024xf32>
    %156 = vector.extract_strided_slice %155 {offsets = [0, 0], sizes = [2, 768], strides = [1, 1]} : vector<2x1024xf32> to vector<2x768xf32>
    %157 = arith.negf %156 : vector<2x768xf32>
    %158 = math.exp %157 : vector<2x768xf32>
    %cst_25 = arith.constant 1.000000e+00 : f32
    %159 = vector.broadcast %cst_25 : f32 to vector<2x768xf32>
    %160 = arith.addf %159, %158 : vector<2x768xf32>
    %161 = arith.divf %159, %160 : vector<2x768xf32>
    %162 = vector.extract_strided_slice %161 {offsets = [0, 0], sizes = [2, 256], strides = [1, 1]} : vector<2x768xf32> to vector<2x256xf32>
    %163 = vector.extract_strided_slice %161 {offsets = [0, 256], sizes = [2, 256], strides = [1, 1]} : vector<2x768xf32> to vector<2x256xf32>
    %164 = vector.extract_strided_slice %161 {offsets = [0, 512], sizes = [2, 256], strides = [1, 1]} : vector<2x768xf32> to vector<2x256xf32>
    %165 = vector.extract_strided_slice %155 {offsets = [0, 768], sizes = [2, 256], strides = [1, 1]} : vector<2x1024xf32> to vector<2x256xf32>
    %166 = math.tanh %165 : vector<2x256xf32>
    %167 = arith.mulf %163, %149 : vector<2x256xf32>
    %168 = arith.mulf %162, %166 : vector<2x256xf32>
    %169 = arith.addf %167, %168 : vector<2x256xf32>
    %170 = math.tanh %169 : vector<2x256xf32>
    %171 = arith.mulf %164, %170 : vector<2x256xf32>
    %172 = vector.shape_cast %31 : vector<2x256xf32> to vector<2x1x256xf32>
    %173 = vector.shape_cast %51 : vector<2x256xf32> to vector<2x1x256xf32>
    %174 = vector.shape_cast %71 : vector<2x256xf32> to vector<2x1x256xf32>
    %175 = vector.shape_cast %91 : vector<2x256xf32> to vector<2x1x256xf32>
    %176 = vector.shape_cast %111 : vector<2x256xf32> to vector<2x1x256xf32>
    %177 = vector.shape_cast %131 : vector<2x256xf32> to vector<2x1x256xf32>
    %178 = vector.shape_cast %151 : vector<2x256xf32> to vector<2x1x256xf32>
    %179 = vector.shape_cast %171 : vector<2x256xf32> to vector<2x1x256xf32>
    %180 = tpu.concatenate %172, %173, %174, %175, %176, %177, %178, %179 in 1 : vector<2x1x256xf32>, vector<2x1x256xf32>, vector<2x1x256xf32>, vector<2x1x256xf32>, vector<2x1x256xf32>, vector<2x1x256xf32>, vector<2x1x256xf32>, vector<2x1x256xf32> -> vector<2x8x256xf32>
    %cst_26 = arith.constant 0.000000e+00 : f32
    %181 = vector.broadcast %cst_26 : f32 to vector<2x1x256xf32>
    %182 = vector.extract_strided_slice %180 {offsets = [0, 0, 0], sizes = [2, 7, 256], strides = [1, 1, 1]} : vector<2x8x256xf32> to vector<2x7x256xf32>
    %183 = tpu.concatenate %181, %182 in 1 : vector<2x1x256xf32>, vector<2x7x256xf32> -> vector<2x8x256xf32>
    %184 = vector.extract_strided_slice %180 {offsets = [0, 1, 0], sizes = [2, 7, 256], strides = [1, 1, 1]} : vector<2x8x256xf32> to vector<2x7x256xf32>
    %185 = tpu.concatenate %184, %181 in 1 : vector<2x7x256xf32>, vector<2x1x256xf32> -> vector<2x8x256xf32>
    %186 = tpu.concatenate %183, %180, %185 in 2 : vector<2x8x256xf32>, vector<2x8x256xf32>, vector<2x8x256xf32> -> vector<2x8x768xf32>
    %187 = vector.shape_cast %186 : vector<2x8x768xf32> to vector<16x768xf32>
    %c0_27 = arith.constant 0 : index
    %c0_28 = arith.constant 0 : index
    %188 = vector.load %arg4[%c0_27, %c0_28] : memref<768x128xf32, #tpu.memory_space<vmem>>, vector<768x128xf32>
    %cst_29 = arith.constant dense<0.000000e+00> : vector<16x128xf32>
    %189 = tpu.matmul %187, %188, %cst_29 {dimension_numbers = #tpu.dot_dimension_numbers<[1], [0], [0], [1], [0, 0, 1, 1], [], []>} : vector<16x768xf32>, vector<768x128xf32>, vector<16x128xf32> -> vector<16x128xf32>
    %190 = vector.shape_cast %189 : vector<16x128xf32> to vector<2x8x128xf32>
    %c0_30 = arith.constant 0 : index
    %c0_31 = arith.constant 0 : index
    %191 = vector.load %arg5[%c0_30, %c0_31] : memref<1x128xf32, #tpu.memory_space<vmem>>, vector<1x128xf32>
    %192 = vector.shape_cast %191 : vector<1x128xf32> to vector<1x1x128xf32>
    %193 = vector.broadcast %192 : vector<1x1x128xf32> to vector<2x8x128xf32>
    %194 = arith.addf %190, %193 : vector<2x8x128xf32>
    %195 = tpu.iota {dimensions = array<i32: 1>} : vector<2x8x128xi32>
    %c0_i32 = arith.constant 0 : i32
    %196 = vector.broadcast %c0_i32 : i32 to vector<2x8x128xi32>
    %197 = arith.cmpi eq, %195, %196 : vector<2x8x128xi32>
    %c0_32 = arith.constant 0 : index
    %c0_33 = arith.constant 0 : index
    %198 = vector.load %arg6[%c0_32, %c0_33] : memref<1x128xf32, #tpu.memory_space<vmem>>, vector<1x128xf32>
    %199 = vector.shape_cast %198 : vector<1x128xf32> to vector<1x1x128xf32>
    %cst_34 = arith.constant 0.000000e+00 : f32
    %200 = vector.shape_cast %199 : vector<1x1x128xf32> to vector<1x1x128xf32>
    %201 = vector.broadcast %200 : vector<1x1x128xf32> to vector<2x8x128xf32>
    %202 = vector.broadcast %cst_34 : f32 to vector<2x8x128xf32>
    %203 = arith.select %197, %201, %202 : vector<2x8x128xi1>, vector<2x8x128xf32>
    %204 = arith.subf %194, %203 : vector<2x8x128xf32>
    %c7_i32 = arith.constant 7 : i32
    %205 = vector.broadcast %c7_i32 : i32 to vector<2x8x128xi32>
    %206 = arith.cmpi eq, %195, %205 : vector<2x8x128xi32>
    %c0_35 = arith.constant 0 : index
    %c0_36 = arith.constant 0 : index
    %207 = vector.load %arg7[%c0_35, %c0_36] : memref<1x128xf32, #tpu.memory_space<vmem>>, vector<1x128xf32>
    %208 = vector.shape_cast %207 : vector<1x128xf32> to vector<1x1x128xf32>
    %cst_37 = arith.constant 0.000000e+00 : f32
    %209 = vector.shape_cast %208 : vector<1x1x128xf32> to vector<1x1x128xf32>
    %210 = vector.broadcast %209 : vector<1x1x128xf32> to vector<2x8x128xf32>
    %211 = vector.broadcast %cst_37 : f32 to vector<2x8x128xf32>
    %212 = arith.select %206, %210, %211 : vector<2x8x128xi1>, vector<2x8x128xf32>
    %213 = arith.subf %204, %212 : vector<2x8x128xf32>
    %cst_38 = arith.constant dense<0.000000e+00> : vector<128xf32>
    %214 = vector.multi_reduction <add>, %213, %cst_38 [0, 1] : vector<2x8x128xf32> to vector<128xf32>
    %215 = vector.shape_cast %214 : vector<128xf32> to vector<1x1x128xf32>
    %cst_39 = arith.constant 1.600000e+01 : f32
    %216 = vector.broadcast %cst_39 : f32 to vector<1x1x128xf32>
    %217 = arith.divf %215, %216 : vector<1x1x128xf32>
    %218 = vector.broadcast %217 : vector<1x1x128xf32> to vector<2x8x128xf32>
    %219 = arith.subf %213, %218 : vector<2x8x128xf32>
    %220 = arith.mulf %219, %219 : vector<2x8x128xf32>
    %cst_40 = arith.constant dense<0.000000e+00> : vector<128xf32>
    %221 = vector.multi_reduction <add>, %220, %cst_40 [0, 1] : vector<2x8x128xf32> to vector<128xf32>
    %222 = vector.shape_cast %221 : vector<128xf32> to vector<1x1x128xf32>
    %cst_41 = arith.constant 1.600000e+01 : f32
    %223 = vector.broadcast %cst_41 : f32 to vector<1x1x128xf32>
    %224 = arith.divf %222, %223 : vector<1x1x128xf32>
    %225 = vector.broadcast %217 : vector<1x1x128xf32> to vector<2x8x128xf32>
    %226 = arith.subf %213, %225 : vector<2x8x128xf32>
    %cst_42 = arith.constant 9.99999974E-6 : f32
    %227 = vector.broadcast %cst_42 : f32 to vector<1x1x128xf32>
    %228 = arith.addf %224, %227 : vector<1x1x128xf32>
    %229 = math.rsqrt %228 : vector<1x1x128xf32>
    %230 = vector.broadcast %229 : vector<1x1x128xf32> to vector<2x8x128xf32>
    %231 = arith.mulf %226, %230 : vector<2x8x128xf32>
    %c0_43 = arith.constant 0 : index
    %c0_44 = arith.constant 0 : index
    %232 = vector.load %arg8[%c0_43, %c0_44] : memref<1x128xf32, #tpu.memory_space<vmem>>, vector<1x128xf32>
    %233 = vector.shape_cast %232 : vector<1x128xf32> to vector<1x1x128xf32>
    %234 = vector.broadcast %233 : vector<1x1x128xf32> to vector<2x8x128xf32>
    %235 = arith.mulf %231, %234 : vector<2x8x128xf32>
    %c0_45 = arith.constant 0 : index
    %c0_46 = arith.constant 0 : index
    %236 = vector.load %arg9[%c0_45, %c0_46] : memref<1x128xf32, #tpu.memory_space<vmem>>, vector<1x128xf32>
    %237 = vector.shape_cast %236 : vector<1x128xf32> to vector<1x1x128xf32>
    %238 = vector.broadcast %237 : vector<1x1x128xf32> to vector<2x8x128xf32>
    %239 = arith.addf %235, %238 : vector<2x8x128xf32>
    %c0_47 = arith.constant 0 : index
    %240 = memref.load %arg16[%c0_47] : memref<2xf32, #tpu.memory_space<smem>>
    %cst_48 = arith.constant 0.000000e+00 : f32
    %241 = vector.broadcast %cst_48 : f32 to vector<2x8x128xf32>
    %242 = arith.cmpf ogt, %239, %241 : vector<2x8x128xf32>
    %243 = vector.broadcast %240 : f32 to vector<2x8x128xf32>
    %244 = arith.mulf %243, %239 : vector<2x8x128xf32>
    %245 = arith.select %242, %239, %244 : vector<2x8x128xi1>, vector<2x8x128xf32>
    %cst_49 = arith.constant 0.000000e+00 : f32
    %246 = vector.broadcast %cst_49 : f32 to vector<2x1x128xf32>
    %247 = vector.extract_strided_slice %245 {offsets = [0, 0, 0], sizes = [2, 7, 128], strides = [1, 1, 1]} : vector<2x8x128xf32> to vector<2x7x128xf32>
    %248 = tpu.concatenate %246, %247 in 1 : vector<2x1x128xf32>, vector<2x7x128xf32> -> vector<2x8x128xf32>
    %249 = vector.extract_strided_slice %245 {offsets = [0, 1, 0], sizes = [2, 7, 128], strides = [1, 1, 1]} : vector<2x8x128xf32> to vector<2x7x128xf32>
    %250 = tpu.concatenate %249, %246 in 1 : vector<2x7x128xf32>, vector<2x1x128xf32> -> vector<2x8x128xf32>
    %251 = tpu.concatenate %248, %245, %250 in 2 : vector<2x8x128xf32>, vector<2x8x128xf32>, vector<2x8x128xf32> -> vector<2x8x384xf32>
    %252 = vector.shape_cast %251 : vector<2x8x384xf32> to vector<16x384xf32>
    %c0_50 = arith.constant 0 : index
    %c0_51 = arith.constant 0 : index
    %253 = vector.load %arg10[%c0_50, %c0_51] : memref<384x64xf32, #tpu.memory_space<vmem>>, vector<384x64xf32>
    %cst_52 = arith.constant dense<0.000000e+00> : vector<16x64xf32>
    %254 = tpu.matmul %252, %253, %cst_52 {dimension_numbers = #tpu.dot_dimension_numbers<[1], [0], [0], [1], [0, 0, 1, 1], [], []>} : vector<16x384xf32>, vector<384x64xf32>, vector<16x64xf32> -> vector<16x64xf32>
    %255 = vector.shape_cast %254 : vector<16x64xf32> to vector<2x8x64xf32>
    %c0_53 = arith.constant 0 : index
    %c0_54 = arith.constant 0 : index
    %256 = vector.load %arg11[%c0_53, %c0_54] : memref<1x64xf32, #tpu.memory_space<vmem>>, vector<1x64xf32>
    %257 = vector.shape_cast %256 : vector<1x64xf32> to vector<1x1x64xf32>
    %258 = vector.broadcast %257 : vector<1x1x64xf32> to vector<2x8x64xf32>
    %259 = arith.addf %255, %258 : vector<2x8x64xf32>
    %cst_55 = arith.constant dense<0.000000e+00> : vector<64xf32>
    %260 = vector.multi_reduction <add>, %259, %cst_55 [0, 1] : vector<2x8x64xf32> to vector<64xf32>
    %261 = vector.shape_cast %260 : vector<64xf32> to vector<1x1x64xf32>
    %cst_56 = arith.constant 1.600000e+01 : f32
    %262 = vector.broadcast %cst_56 : f32 to vector<1x1x64xf32>
    %263 = arith.divf %261, %262 : vector<1x1x64xf32>
    %264 = vector.broadcast %263 : vector<1x1x64xf32> to vector<2x8x64xf32>
    %265 = arith.subf %259, %264 : vector<2x8x64xf32>
    %266 = arith.mulf %265, %265 : vector<2x8x64xf32>
    %cst_57 = arith.constant dense<0.000000e+00> : vector<64xf32>
    %267 = vector.multi_reduction <add>, %266, %cst_57 [0, 1] : vector<2x8x64xf32> to vector<64xf32>
    %268 = vector.shape_cast %267 : vector<64xf32> to vector<1x1x64xf32>
    %cst_58 = arith.constant 1.600000e+01 : f32
    %269 = vector.broadcast %cst_58 : f32 to vector<1x1x64xf32>
    %270 = arith.divf %268, %269 : vector<1x1x64xf32>
    %271 = vector.broadcast %263 : vector<1x1x64xf32> to vector<2x8x64xf32>
    %272 = arith.subf %259, %271 : vector<2x8x64xf32>
    %cst_59 = arith.constant 9.99999974E-6 : f32
    %273 = vector.broadcast %cst_59 : f32 to vector<1x1x64xf32>
    %274 = arith.addf %270, %273 : vector<1x1x64xf32>
    %275 = math.rsqrt %274 : vector<1x1x64xf32>
    %276 = vector.broadcast %275 : vector<1x1x64xf32> to vector<2x8x64xf32>
    %277 = arith.mulf %272, %276 : vector<2x8x64xf32>
    %c0_60 = arith.constant 0 : index
    %c0_61 = arith.constant 0 : index
    %278 = vector.load %arg12[%c0_60, %c0_61] : memref<1x64xf32, #tpu.memory_space<vmem>>, vector<1x64xf32>
    %279 = vector.shape_cast %278 : vector<1x64xf32> to vector<1x1x64xf32>
    %280 = vector.broadcast %279 : vector<1x1x64xf32> to vector<2x8x64xf32>
    %281 = arith.mulf %277, %280 : vector<2x8x64xf32>
    %c0_62 = arith.constant 0 : index
    %c0_63 = arith.constant 0 : index
    %282 = vector.load %arg13[%c0_62, %c0_63] : memref<1x64xf32, #tpu.memory_space<vmem>>, vector<1x64xf32>
    %283 = vector.shape_cast %282 : vector<1x64xf32> to vector<1x1x64xf32>
    %284 = vector.broadcast %283 : vector<1x1x64xf32> to vector<2x8x64xf32>
    %285 = arith.addf %281, %284 : vector<2x8x64xf32>
    %c1 = arith.constant 1 : index
    %286 = memref.load %arg16[%c1] : memref<2xf32, #tpu.memory_space<smem>>
    %cst_64 = arith.constant 0.000000e+00 : f32
    %287 = vector.broadcast %cst_64 : f32 to vector<2x8x64xf32>
    %288 = arith.cmpf ogt, %285, %287 : vector<2x8x64xf32>
    %289 = vector.broadcast %286 : f32 to vector<2x8x64xf32>
    %290 = arith.mulf %289, %285 : vector<2x8x64xf32>
    %291 = arith.select %288, %285, %290 : vector<2x8x64xi1>, vector<2x8x64xf32>
    %cst_65 = arith.constant 0.000000e+00 : f32
    %292 = vector.broadcast %cst_65 : f32 to vector<2x1x64xf32>
    %293 = vector.extract_strided_slice %291 {offsets = [0, 0, 0], sizes = [2, 7, 64], strides = [1, 1, 1]} : vector<2x8x64xf32> to vector<2x7x64xf32>
    %294 = tpu.concatenate %292, %293 in 1 : vector<2x1x64xf32>, vector<2x7x64xf32> -> vector<2x8x64xf32>
    %295 = vector.extract_strided_slice %291 {offsets = [0, 1, 0], sizes = [2, 7, 64], strides = [1, 1, 1]} : vector<2x8x64xf32> to vector<2x7x64xf32>
    %296 = tpu.concatenate %295, %292 in 1 : vector<2x7x64xf32>, vector<2x1x64xf32> -> vector<2x8x64xf32>
    %297 = tpu.concatenate %294, %291, %296 in 2 : vector<2x8x64xf32>, vector<2x8x64xf32>, vector<2x8x64xf32> -> vector<2x8x192xf32>
    %298 = vector.shape_cast %297 : vector<2x8x192xf32> to vector<16x192xf32>
    %c0_66 = arith.constant 0 : index
    %c0_67 = arith.constant 0 : index
    %299 = vector.load %arg14[%c0_66, %c0_67] : memref<192x8xf32, #tpu.memory_space<vmem>>, vector<192x8xf32>
    %cst_68 = arith.constant dense<0.000000e+00> : vector<16x8xf32>
    %300 = tpu.matmul %298, %299, %cst_68 {dimension_numbers = #tpu.dot_dimension_numbers<[1], [0], [0], [1], [0, 0, 1, 1], [], []>} : vector<16x192xf32>, vector<192x8xf32>, vector<16x8xf32> -> vector<16x8xf32>
    %301 = vector.shape_cast %300 : vector<16x8xf32> to vector<2x8x8xf32>
    %c0_69 = arith.constant 0 : index
    %c0_70 = arith.constant 0 : index
    %302 = vector.load %arg15[%c0_69, %c0_70] : memref<1x8xf32, #tpu.memory_space<vmem>>, vector<1x8xf32>
    %303 = vector.shape_cast %302 : vector<1x8xf32> to vector<1x1x8xf32>
    %304 = vector.broadcast %303 : vector<1x1x8xf32> to vector<2x8x8xf32>
    %305 = arith.addf %301, %304 : vector<2x8x8xf32>
    %306 = math.tanh %305 : vector<2x8x8xf32>
    %c0_71 = arith.constant 0 : index
    %c0_72 = arith.constant 0 : index
    %c0_73 = arith.constant 0 : index
    %307 = vector.load %arg17[%c0_71, %c0_72, %c0_73] : memref<2x8x8xf32, #tpu.memory_space<vmem>>, vector<2x8x8xf32>
    tpu.vector_store %arg17[%c0_71, %c0_72, %c0_73], %306 {strides = array<i32>} : memref<2x8x8xf32, #tpu.memory_space<vmem>>, vector<2x8x8xf32>,
    return
  }
}

</mosaic_0001>

<bundles_post_ra>
// kernel: tpu_custom_call.1
= control target key start
LH: loop header
LB: loop body
LE: loop exit
PB: predicated region body
PF: predicated region fallthrough
CT: control target
= control target key end

     0   :  { %s11128_s0 = inlined_call_operand.vmem [shape: f32[2,8,16], index: 0, kind: input, shape index: {}]   ;;  %s11129_s1 = inlined_call_operand.hbm [shape: f32[16,1024], index: 1, kind: input, shape index: {}]   ;;  %s11130_s2 = inlined_call_operand.hbm [shape: f32[256,1024], index: 2, kind: input, shape index: {}]   ;;  %s11131_s3 = inlined_call_operand.vmem [shape: f32[1,1024], index: 3, kind: input, shape index: {}]   ;;  %s11132_s4 = inlined_call_operand.vmem [shape: f32[768,128], index: 4, kind: input, shape index: {}]   ;;  %s11133_s5 = inlined_call_operand.vmem [shape: f32[1,128], index: 5, kind: input, shape index: {}]   ;;  %s11134_s6 = inlined_call_operand.vmem [shape: f32[1,128], index: 6, kind: input, shape index: {}]   ;;  %s11135_s7 = inlined_call_operand.vmem [shape: f32[1,128], index: 7, kind: input, shape index: {}]   ;;  %s11136_s8 = inlined_call_operand.vmem [shape: f32[1,128], index: 8, kind: input, shape index: {}]   ;;  %s11137_s9 = inlined_call_operand.vmem [shape: f32[1,128], index: 9, kind: input, shape index: {}]   ;;  %s11138_s10 = inlined_call_operand.vmem [shape: f32[384,64], index: 10, kind: input, shape index: {}]   ;;  %s11139_s11 = inlined_call_operand.vmem [shape: f32[1,64], index: 11, kind: input, shape index: {}]   ;;  %s11140_s12 = inlined_call_operand.vmem [shape: f32[1,64], index: 12, kind: input, shape index: {}]   ;;  %s11141_s13 = inlined_call_operand.vmem [shape: f32[1,64], index: 13, kind: input, shape index: {}]   ;;  %s11142_s14 = inlined_call_operand.vmem [shape: f32[192,8], index: 14, kind: input, shape index: {}]   ;;  %s11143_s15 = inlined_call_operand.vmem [shape: f32[1,8], index: 15, kind: input, shape index: {}]   ;;  %s11144_s16 = inlined_call_operand.vmem [shape: f32[2], index: 16, kind: input, shape index: {}]   ;;  %s11145_s17 = inlined_call_operand.hbm [shape: f32[2,8,8], index: 17, kind: output, shape index: {}]  }
   0x1   :  { %11459 = sst [smem:[#allocation161_spill]] %s11128_s0 }
   0x2   :  { %11460 = sst [smem:[#allocation162_spill]] %s11129_s1 }
   0x3   :  { %11461 = sst [smem:[#allocation163_spill]] %s11141_s13 }
   0x4   :  { %11462 = sst [smem:[#allocation164_spill]] %s11143_s15 }
   0x5   :  { %11463 = sst [smem:[#allocation165_spill]] %s11145_s17 }
   0x6   :  { %22 = vsyncpa [#allocation3], 0 }
   0x7   :  { %23 = vsyncpa [#allocation7], 0 }
   0x8   :  { %24 = vsyncpa [#allocation5], 0 }
   0x9   :  { %25 = vsyncpa [#allocation4], 0  ;;  %s8501_s24 = smov [#allocation2]   ;;  %s11464_s28 = sld [smem:[#allocation162_spill]] }
   0xa   :  { %s33_s25 = sshll.u32 %s8501_s24, 4  ;;  %s34_s25 = int_to_ptr.vmem [resolvable:$true] %s33_s25 }
   0xf   :  { %s8415_s29 = scalar_lea.hbm %s11464_s28, 2048 }
  0x10   :  { %p8416_p0 = scmp.ne.s32.totalorder %s11464_s28, %s8415_s29  ;;  %p8419_p1 = scmp.lt.u32.totalorder %s8415_s29, %s11464_s28 }
  0x12   :  { %p8421_p2 = pnand %p8419_p1, %p8416_p0 }
  0x14   :  { %8424 = shalt.err (!%p8421_p2)
}
  0x15   :  { %s8425_s1 = scalar_lea.vmem %s34_s25, 2048  ;;  %p8430_p4 = scmp.lt.s32.totalorder %s34_s25, %s34_s25 }
  0x16   :  { %p8426_p3 = scmp.ne.s32.totalorder %s34_s25, %s8425_s1  ;;  %p8431_p5 = scmp.lt.s32.totalorder %s8425_s1, %s8425_s1 }
  0x18   :  { %p8432_p6 = por %p8431_p5, %p8430_p4 }
  0x1a   :  { %p8433_p7 = pnand %p8432_p6, %p8426_p3 }
  0x1c   :  { %8436 = shalt.err (!%p8433_p7)
}
  0x1d   :  { %s8502_s20 = smov 1024   ;;  %s8503_s21 = smov 64  }
  0x1e   :  { %39 = dma.hbm_to_vmem [thread:$0]  %s11464_s28, 2048, %s34_s25, [#allocation3], %s8502_s20, %s8502_s20, %s8503_s21  }
  0x1f   :  { %s8504_s24 = smov [#allocation6]   ;;  %s84_s0 = sshll.u32 %s11144_s16, 4  ;;  %s85_s0 = int_to_ptr.vmem [resolvable:$true] %s84_s0 }
  0x20   :  { %s45_s26 = sshll.u32 %s8504_s24, 4  ;;  %s8437_s19 = scalar_lea.hbm %s11130_s2, 32768  ;;  %s46_s26 = int_to_ptr.vmem [resolvable:$true] %s45_s26 }
  0x21   :  { %p8438_p8 = scmp.ne.s32.totalorder %s11130_s2, %s8437_s19  ;;  %p8441_p9 = scmp.lt.u32.totalorder %s8437_s19, %s11130_s2 }
  0x23   :  { %p8443_p10 = pnand %p8441_p9, %p8438_p8 }
  0x25   :  { %8446 = shalt.err (!%p8443_p10)
}
  0x26   :  { %s8447_s25 = scalar_lea.vmem %s46_s26, 32768  ;;  %p8452_p12 = scmp.lt.s32.totalorder %s46_s26, %s46_s26 }
  0x27   :  { %p8448_p11 = scmp.ne.s32.totalorder %s46_s26, %s8447_s25  ;;  %p8453_p13 = scmp.lt.s32.totalorder %s8447_s25, %s8447_s25 }
  0x29   :  { %p8454_p0 = por %p8453_p13, %p8452_p12 }
  0x2b   :  { %p8455_p1 = pnand %p8454_p0, %p8448_p11 }
  0x2d   :  { %8458 = shalt.err (!%p8455_p1)
}
  0x2e   :  { %51 = dma.hbm_to_vmem [thread:$0]  %s11130_s2, 32768, %s46_s26, [#allocation7], %s8502_s20, %s8502_s20, %s8503_s21  }
  0x2f   :  { %s8459_s17 = scalar_lea.vmem %s85_s0, 16  ;;  %p8464_p3 = scmp.lt.s32.totalorder %s85_s0, %s85_s0 }
  0x30   :  { %p8460_p2 = scmp.ne.s32.totalorder %s85_s0, %s8459_s17  ;;  %p8465_p4 = scmp.lt.s32.totalorder %s8459_s17, %s8459_s17 }
  0x32   :  { %p8466_p5 = por %p8465_p4, %p8464_p3 }
  0x34   :  { %p8467_p6 = pnand %p8466_p5, %p8460_p2 }
  0x36   :  { %8470 = shalt.err (!%p8467_p6)
}
  0x37   :  { %s8505_s13 = smov [#allocation8]  }
  0x38   :  { %87 = dma.vmem_to_smem %s85_s0, 16, %s8505_s13, [#allocation5]  }
  0x39   :  { %8493 = dma.done.wait [#allocation3], 2048  }
  0x3a   :  { %8494 = vsyncadd [#allocation3], 4294965248 }
  0x3b   :  { %8495 = dma.done.wait [#allocation7], 32768  }
  0x3c   :  { %8496 = vsyncadd [#allocation7], 4294934528 }
  0x3d   :  { %8497 = dma.done.wait [#allocation5], 16  }
  0x3e   :  { %8498 = vsyncadd [#allocation5], 4294967280 }
  0x3f   :  { %97 = sfence }
  0x40   :  { %v357_v0 = vld [vmem:[#allocation2 + $0x8] sm:$0xff]  ;;  %v363_v2 = vld [vmem:[#allocation2 + $0x38] sm:$0xff]  ;;  %v356_v5 = vld [vmem:[#allocation2] sm:$0xff]  ;;  %v11149_v7 = vmov 0.0   ;;  %s11465_s20 = sld [smem:[#allocation161_spill]]  ;;  %vm372_vm0 = vcmask 130048  }
  0x41   :  { %v365_v1 = vld [vmem:[#allocation2 + $0x48] sm:$0xff]  ;;  %v371_v4 = vld [vmem:[#allocation2 + $0x78] sm:$0xff]  ;;  %v364_v6 = vld [vmem:[#allocation2 + $0x40] sm:$0xff]  ;;  %443 = vmatprep.mubr.f32.mxu0 %v11149_v7  ;;  %674 = vmatprep.mubr.f32.mxu1 %v11149_v7  ;;  %vm1178_vm1 = vcmask 1041409   ;;  %vm4382_vm2 = vcmask 1040384   ;;  %vm4387_vm3 = vcmask 1041408  }
  0x42   :  { %v5625_v3 = vpack.c.bf16 %v365_v1, %v357_v0  ;;  %v5637_v8 = vpack.c.bf16 %v371_v4, %v363_v2  ;;  %v5627_v9 = vpack.c.bf16 %v364_v6, %v356_v5  ;;  %v362_v10 = vld [vmem:[#allocation2 + $0x30] sm:$0xff]  ;;  %v359_v14 = vld [vmem:[#allocation2 + $0x18] sm:$0xff]  ;;  %v361_v31 = vld [vmem:[#allocation2 + $0x28] sm:$0xff]  ;;  %vm4392_vm4 = vcmask 1042432   ;;  %s12330_s16 = sld [smem:[#allocation163_spill]] }
  0x43   :  { %v370_v11 = vld [vmem:[#allocation2 + $0x70] sm:$0xff]  ;;  %v367_v15 = vld [vmem:[#allocation2 + $0x58] sm:$0xff]  ;;  %v369_v32 = vld [vmem:[#allocation2 + $0x68] sm:$0xff]  ;;  %vm4397_vm5 = vcmask 1043456   ;;  %vm4402_vm6 = vcmask 1044480   ;;  %vm4407_vm7 = vcmask 1045504  }
  0x44   :  { %5626 = vmatprep.subr.bf16.mxu0 %v5625_v3  ;;  %v5639_v13 = vpack.c.bf16 %v370_v11, %v362_v10  ;;  %v101_v16 = vld [vmem:[#allocation6 + $0x18] sm:$0xff]  ;;  %5638 = vmatprep.subr.bf16.mxu1 %v5637_v8  ;;  %v5629_v17 = vpack.c.bf16 %v367_v15, %v359_v14  ;;  %v358_v19 = vld [vmem:[#allocation2 + $0x10] sm:$0xff]  ;;  %v5633_v34 = vpack.c.bf16 %v369_v32, %v361_v31  ;;  %v360_v38 = vld [vmem:[#allocation2 + $0x20] sm:$0xff]  ;;  %vm4412_vm8 = vcmask 1046528  }
  0x45   :  { %5628 = vmatpush1.bf16.msra.mxu0 %v5627_v9  ;;  %v109_v18 = vld [vmem:[#allocation6 + $0x58] sm:$0xff]  ;;  %v366_v20 = vld [vmem:[#allocation2 + $0x50] sm:$0xff]  ;;  %v368_v39 = vld [vmem:[#allocation2 + $0x60] sm:$0xff]  ;;  %vm5071_vm14 = vcmask 523264  }
  0x46   :  { %v8635_v12 = vld [vmem:[%s11465_s20] sm:$0xff]  ;;  %5640 = vmatpush1.bf16.msra.mxu1 %v5639_v13  ;;  %v8637_v21 = vpack.c.bf16 %v109_v18, %v101_v16  ;;  %v5631_v22 = vpack.c.bf16 %v366_v20, %v358_v19  ;;  %v100_v23 = vld [vmem:[#allocation6 + $0x10] sm:$0xff]  ;;  %5630 = vmatprep.subr.bf16.mxu0 %v5629_v17  ;;  %v117_v26 = vld [vmem:[#allocation6 + $0x98] sm:$0xff]  ;;  %v5635_v47 = vpack.c.bf16 %v368_v39, %v360_v38 }
  0x47   :  { %v108_v24 = vld [vmem:[#allocation6 + $0x50] sm:$0xff]  ;;  %v125_v27 = vld [vmem:[#allocation6 + $0xd8] sm:$0xff]  ;;  %v8651_v33 = vld [vmem:[%s11465_s20 + $0x8] sm:$0xff] }
  0x48   :  { %11466 = vst [vmem:[#allocation14_spill] sm:$0xff] %v8637_v21  ;;  %v8639_v25 = vpack.c.bf16 %v108_v24, %v100_v23  ;;  %v116_v28 = vld [vmem:[#allocation6 + $0x90] sm:$0xff]  ;;  %5286 = vmatmul.mubr.msk.f32.vlgmr.msra.gmra.mrb[0].mxu0 %vm372_vm0, %v8635_v12  ;;  %5706 = vmatprep.subr.bf16.mxu1 %v8637_v21  ;;  %v8644_v29 = vpack.c.bf16 %v125_v27, %v117_v26  ;;  %v133_v35 = vld [vmem:[#allocation6 + $0x118] sm:$0xff]  ;;  %v99_v45 = vld [vmem:[#allocation6 + $0x8] sm:$0xff] }
  0x49   :  { %v124_v30 = vld [vmem:[#allocation6 + $0xd0] sm:$0xff]  ;;  %5632 = vmatpush1.bf16.msra.mxu0 %v5631_v22  ;;  %5292 = vmatmul.mubr.msk.f32.vlgmr.msra.gmra.mrb[0].mxu1 %vm372_vm0, %v8635_v12  ;;  %v141_v36 = vld [vmem:[#allocation6 + $0x158] sm:$0xff]  ;;  %v107_v46 = vld [vmem:[#allocation6 + $0x48] sm:$0xff] }
  0x4a   :  { %11467 = vst [vmem:[#allocation15_spill] sm:$0xff] %v8639_v25  ;;  %11468 = vst [vmem:[#allocation16_spill] sm:$0xff] %v8644_v29  ;;  %5708 = vmatpush1.bf16.msra.mxu1 %v8639_v25  ;;  %449 = vmatprep.mubr.f32.mxu0 %v11149_v7  ;;  %v8655_v37 = vpack.c.bf16 %v124_v30, %v116_v28  ;;  %v8658_v40 = vpack.c.bf16 %v141_v36, %v133_v35  ;;  %v132_v41 = vld [vmem:[#allocation6 + $0x110] sm:$0xff]  ;;  %v149_v43 = vld [vmem:[#allocation6 + $0x198] sm:$0xff] }
  0x4b   :  { %5710 = vmatprep.subr.bf16.mxu1 %v8644_v29  ;;  %5634 = vmatprep.subr.bf16.mxu0 %v5633_v34  ;;  %v140_v42 = vld [vmem:[#allocation6 + $0x150] sm:$0xff]  ;;  %v157_v44 = vld [vmem:[#allocation6 + $0x1d8] sm:$0xff]  ;;  %v8669_v49 = vpack.c.bf16 %v107_v46, %v99_v45  ;;  %v98_v56 = vld [vmem:[#allocation6] sm:$0xff] }
  0x4c   :  { %11469 = vst [vmem:[#allocation17_spill] sm:$0xff] %v8655_v37  ;;  %11470 = vst [vmem:[#allocation18_spill] sm:$0xff] %v8658_v40  ;;  %5287 = vmatmul.mubr.msk.f32.gmra.mrb[2].mxu0 %vm372_vm0, %v8651_v33  ;;  %680 = vmatprep.mubr.f32.mxu1 %v11149_v7  ;;  %v8667_v48 = vpack.c.bf16 %v140_v42, %v132_v41  ;;  %v8673_v50 = vpack.c.bf16 %v157_v44, %v149_v43  ;;  %v148_v51 = vld [vmem:[#allocation6 + $0x190] sm:$0xff]  ;;  %v165_v53 = vld [vmem:[#allocation6 + $0x218] sm:$0xff] }
  0x4d   :  { %520 = vmatprep.mubr.f32.mxu0 %v11149_v7  ;;  %5293 = vmatmul.mubr.msk.f32.gmra.mrb[2].mxu1 %vm372_vm0, %v8651_v33  ;;  %11472 = vst [vmem:[#allocation20_spill] sm:$0xff] %v8669_v49  ;;  %v156_v52 = vld [vmem:[#allocation6 + $0x1d0] sm:$0xff]  ;;  %v173_v54 = vld [vmem:[#allocation6 + $0x258] sm:$0xff]  ;;  %v106_v57 = vld [vmem:[#allocation6 + $0x40] sm:$0xff] }
  0x4e   :  { %5712 = vmatpush1.bf16.msra.mxu1 %v8655_v37  ;;  %11471 = vst [vmem:[#allocation19_spill] sm:$0xff] %v8667_v48  ;;  %880 = vmatprep.mubr.f32.mxu1 %v11149_v7  ;;  %11473 = vst [vmem:[#allocation21_spill] sm:$0xff] %v8673_v50  ;;  %v8679_v55 = vpack.c.bf16 %v156_v52, %v148_v51  ;;  %v164_v58 = vld [vmem:[#allocation6 + $0x210] sm:$0xff]  ;;  %v8683_v59 = vpack.c.bf16 %v173_v54, %v165_v53  ;;  %v115_v61 = vld [vmem:[#allocation6 + $0x88] sm:$0xff] }
  0x4f   :  { %5714 = vmatprep.subr.bf16.mxu1 %v8658_v40  ;;  %v172_v60 = vld [vmem:[#allocation6 + $0x250] sm:$0xff]  ;;  %v123_v62 = vld [vmem:[#allocation6 + $0xc8] sm:$0xff]  ;;  %v181_v63 = vld [vmem:[#allocation6 + $0x298] sm:$0xff]  ;;  %v8688_v1 = vpack.c.bf16 %v106_v57, %v98_v56 }
  0x50   :  { %5288 = vmatmul.mubr.msk.f32.vlgmr.msra.gmra.mrb[4].mxu0 %vm372_vm0, %v8635_v12  ;;  %11474 = vst [vmem:[#allocation22_spill] sm:$0xff] %v8679_v55  ;;  %11475 = vst [vmem:[#allocation23_spill] sm:$0xff] %v8683_v59  ;;  %v189_v0 = vld [vmem:[#allocation6 + $0x2d8] sm:$0xff]  ;;  %v8691_v2 = vpack.c.bf16 %v172_v60, %v164_v58  ;;  %v8693_v3 = vpack.c.bf16 %v123_v62, %v115_v61  ;;  %v114_v4 = vld [vmem:[#allocation6 + $0x80] sm:$0xff] }
  0x51   :  { %5636 = vmatpush1.bf16.msra.mxu0 %v5635_v47  ;;  %526 = vmatprep.mubr.f32.mxu0 %v11149_v7  ;;  %11476 = vst [vmem:[#allocation24_spill] sm:$0xff] %v8688_v1  ;;  %v122_v5 = vld [vmem:[#allocation6 + $0xc0] sm:$0xff]  ;;  %v180_v6 = vld [vmem:[#allocation6 + $0x290] sm:$0xff]  ;;  %v8696_v8 = vpack.c.bf16 %v189_v0, %v181_v63  ;;  %v131_v10 = vld [vmem:[#allocation6 + $0x108] sm:$0xff] }
  0x52   :  { %5716 = vmatpush1.bf16.msra.mxu1 %v8667_v48  ;;  %5642 = vmatprep.subr.bf16.mxu0 %v8669_v49  ;;  %11477 = vst [vmem:[#allocation25_spill] sm:$0xff] %v8691_v2  ;;  %11478 = vst [vmem:[#allocation26_spill] sm:$0xff] %v8693_v3  ;;  %v188_v9 = vld [vmem:[#allocation6 + $0x2d0] sm:$0xff]  ;;  %v139_v11 = vld [vmem:[#allocation6 + $0x148] sm:$0xff]  ;;  %v8701_v15 = vpack.c.bf16 %v122_v5, %v114_v4 }
  0x53   :  { %5718 = vmatprep.subr.bf16.mxu1 %v8673_v50  ;;  %11479 = vst [vmem:[#allocation27_spill] sm:$0xff] %v8696_v8  ;;  %v197_v13 = vld [vmem:[#allocation6 + $0x318] sm:$0xff]  ;;  %v8706_v16 = vpack.c.bf16 %v188_v9, %v180_v6  ;;  %v8708_v17 = vpack.c.bf16 %v139_v11, %v131_v10  ;;  %v130_v18 = vld [vmem:[#allocation6 + $0x100] sm:$0xff]  ;;  %v196_v20 = vld [vmem:[#allocation6 + $0x310] sm:$0xff] }
  0x54   :  { %5289 = vmatmul.mubr.msk.f32.gmra.mrb[6].mxu0 %vm372_vm0, %v8651_v33  ;;  %v205_v14 = vld [vmem:[#allocation6 + $0x358] sm:$0xff]  ;;  %11480 = vst [vmem:[#allocation28_spill] sm:$0xff] %v8701_v15  ;;  %v138_v19 = vld [vmem:[#allocation6 + $0x140] sm:$0xff]  ;;  %v204_v22 = vld [vmem:[#allocation6 + $0x350] sm:$0xff] }
  0x55   :  { %597 = vmatprep.mubr.f32.mxu0 %v11149_v7  ;;  %11481 = vst [vmem:[#allocation29_spill] sm:$0xff] %v8706_v16  ;;  %11482 = vst [vmem:[#allocation30_spill] sm:$0xff] %v8708_v17  ;;  %v147_v23 = vld [vmem:[#allocation6 + $0x188] sm:$0xff]  ;;  %v213_v26 = vld [vmem:[#allocation6 + $0x398] sm:$0xff]  ;;  %v8716_v28 = vpack.c.bf16 %v138_v19, %v130_v18  ;;  %v8721_v30 = vpack.c.bf16 %v204_v22, %v196_v20 }
  0x56   :  { %5720 = vmatpush1.bf16.msra.mxu1 %v8679_v55  ;;  %v155_v24 = vld [vmem:[#allocation6 + $0x1c8] sm:$0xff]  ;;  %v221_v27 = vld [vmem:[#allocation6 + $0x3d8] sm:$0xff]  ;;  %v146_v32 = vld [vmem:[#allocation6 + $0x180] sm:$0xff] }
  0x57   :  { %5722 = vmatprep.subr.bf16.mxu1 %v8683_v59  ;;  %11484 = vst [vmem:[#allocation32_spill] sm:$0xff] %v8716_v28  ;;  %11485 = vst [vmem:[#allocation33_spill] sm:$0xff] %v8721_v30  ;;  %v8723_v31 = vpack.c.bf16 %v155_v24, %v147_v23  ;;  %v154_v34 = vld [vmem:[#allocation6 + $0x1c0] sm:$0xff]  ;;  %v212_v35 = vld [vmem:[#allocation6 + $0x390] sm:$0xff] }
  0x58   :  { %5290 = vmatmul.mubr.msk.f32.vlgmr.msra.gmra.mrb[8].mxu0 %vm372_vm0, %v8635_v12  ;;  %v8711_v12 = vpack.c.bf16 %v205_v14, %v197_v13  ;;  %v220_v36 = vld [vmem:[#allocation6 + $0x3d0] sm:$0xff]  ;;  %v163_v38 = vld [vmem:[#allocation6 + $0x208] sm:$0xff]  ;;  %v229_v41 = vld [vmem:[#allocation6 + $0x418] sm:$0xff]  ;;  %v8729_v43 = vpack.c.bf16 %v154_v34, %v146_v32 }
  0x59   :  { %5644 = vmatpush1.bf16.msra.mxu0 %v8688_v1  ;;  %603 = vmatprep.mubr.f32.mxu0 %v11149_v7  ;;  %11486 = vst [vmem:[#allocation34_spill] sm:$0xff] %v8723_v31  ;;  %v171_v39 = vld [vmem:[#allocation6 + $0x248] sm:$0xff]  ;;  %v237_v42 = vld [vmem:[#allocation6 + $0x458] sm:$0xff]  ;;  %v8733_v44 = vpack.c.bf16 %v220_v36, %v212_v35  ;;  %v162_v46 = vld [vmem:[#allocation6 + $0x200] sm:$0xff] }
  0x5a   :  { %5724 = vmatpush1.bf16.msra.mxu1 %v8691_v2  ;;  %5646 = vmatprep.subr.bf16.mxu0 %v8693_v3  ;;  %11483 = vst [vmem:[#allocation31_spill] sm:$0xff] %v8711_v12  ;;  %11488 = vst [vmem:[#allocation36_spill] sm:$0xff] %v8729_v43  ;;  %v8735_v45 = vpack.c.bf16 %v171_v39, %v163_v38  ;;  %v170_v47 = vld [vmem:[#allocation6 + $0x240] sm:$0xff]  ;;  %v228_v51 = vld [vmem:[#allocation6 + $0x410] sm:$0xff]  ;;  %v8738_v52 = vpack.c.bf16 %v237_v42, %v229_v41 }
  0x5b   :  { %5726 = vmatprep.subr.bf16.mxu1 %v8696_v8  ;;  %11489 = vst [vmem:[#allocation37_spill] sm:$0xff] %v8733_v44  ;;  %v236_v53 = vld [vmem:[#allocation6 + $0x450] sm:$0xff]  ;;  %v179_v54 = vld [vmem:[#allocation6 + $0x288] sm:$0xff]  ;;  %v245_v57 = vld [vmem:[#allocation6 + $0x498] sm:$0xff]  ;;  %v8741_v60 = vpack.c.bf16 %v170_v47, %v162_v46 }
  0x5c   :  { %5291 = vmatmul.mubr.msk.f32.gmra.mrb[10].mxu0 %vm372_vm0, %v8651_v33  ;;  %v8726_v33 = vpack.c.bf16 %v221_v27, %v213_v26  ;;  %11490 = vst [vmem:[#allocation38_spill] sm:$0xff] %v8735_v45  ;;  %11491 = vst [vmem:[#allocation39_spill] sm:$0xff] %v8738_v52  ;;  %v187_v56 = vld [vmem:[#allocation6 + $0x2c8] sm:$0xff]  ;;  %v253_v58 = vld [vmem:[#allocation6 + $0x4d8] sm:$0xff]  ;;  %v8745_v61 = vpack.c.bf16 %v236_v53, %v228_v51 }
  0x5d   :  { %5648 = vmatpush1.bf16.msra.mxu0 %v8701_v15  ;;  %809 = vmatprep.mubr.f32.mxu0 %v11149_v7  ;;  %11492 = vst [vmem:[#allocation40_spill] sm:$0xff] %v8741_v60  ;;  %v8747_v62 = vpack.c.bf16 %v187_v56, %v179_v54  ;;  %v178_v63 = vld [vmem:[#allocation6 + $0x280] sm:$0xff]  ;;  %v244_v4 = vld [vmem:[#allocation6 + $0x490] sm:$0xff]  ;;  %v8750_v5 = vpack.c.bf16 %v253_v58, %v245_v57  ;;  %v195_v9 = vld [vmem:[#allocation6 + $0x308] sm:$0xff] }
  0x5e   :  { %5728 = vmatpush1.bf16.msra.mxu1 %v8706_v16  ;;  %5650 = vmatprep.subr.bf16.mxu0 %v8708_v17  ;;  %11487 = vst [vmem:[#allocation35_spill] sm:$0xff] %v8726_v33  ;;  %11493 = vst [vmem:[#allocation41_spill] sm:$0xff] %v8745_v61  ;;  %v186_v0 = vld [vmem:[#allocation6 + $0x2c0] sm:$0xff]  ;;  %v252_v6 = vld [vmem:[#allocation6 + $0x4d0] sm:$0xff] }
  0x5f   :  { %5730 = vmatprep.subr.bf16.mxu1 %v8711_v12  ;;  %11494 = vst [vmem:[#allocation42_spill] sm:$0xff] %v8747_v62  ;;  %11495 = vst [vmem:[#allocation43_spill] sm:$0xff] %v8750_v5  ;;  %v203_v10 = vld [vmem:[#allocation6 + $0x348] sm:$0xff]  ;;  %v261_v11 = vld [vmem:[#allocation6 + $0x518] sm:$0xff]  ;;  %v8753_v14 = vpack.c.bf16 %v186_v0, %v178_v63  ;;  %v8757_v18 = vpack.c.bf16 %v252_v6, %v244_v4 }
  0x60   :  { %v269_v13 = vld [vmem:[#allocation6 + $0x558] sm:$0xff]  ;;  %v8759_v19 = vpack.c.bf16 %v203_v10, %v195_v9  ;;  %v194_v20 = vld [vmem:[#allocation6 + $0x300] sm:$0xff]  ;;  %v260_v23 = vld [vmem:[#allocation6 + $0x510] sm:$0xff] }
  0x61   :  { %5652 = vmatpush1.bf16.msra.mxu0 %v8716_v28  ;;  %11496 = vst [vmem:[#allocation44_spill] sm:$0xff] %v8753_v14  ;;  %11497 = vst [vmem:[#allocation45_spill] sm:$0xff] %v8757_v18  ;;  %v202_v22 = vld [vmem:[#allocation6 + $0x340] sm:$0xff]  ;;  %v8762_v24 = vpack.c.bf16 %v269_v13, %v261_v11  ;;  %v268_v26 = vld [vmem:[#allocation6 + $0x550] sm:$0xff] }
  0x62   :  { %5732 = vmatpush1.bf16.msra.mxu1 %v8721_v30  ;;  %5654 = vmatprep.subr.bf16.mxu0 %v8723_v31  ;;  %11498 = vst [vmem:[#allocation46_spill] sm:$0xff] %v8759_v19  ;;  %v211_v27 = vld [vmem:[#allocation6 + $0x388] sm:$0xff]  ;;  %v277_v34 = vld [vmem:[#allocation6 + $0x598] sm:$0xff]  ;;  %v8765_v36 = vpack.c.bf16 %v202_v22, %v194_v20  ;;  %v8769_v38 = vpack.c.bf16 %v268_v26, %v260_v23  ;;  %v210_v41 = vld [vmem:[#allocation6 + $0x380] sm:$0xff] }
  0x63   :  { %5734 = vmatprep.subr.bf16.mxu1 %v8726_v33  ;;  %11499 = vst [vmem:[#allocation47_spill] sm:$0xff] %v8762_v24  ;;  %v219_v32 = vld [vmem:[#allocation6 + $0x3c8] sm:$0xff]  ;;  %v285_v35 = vld [vmem:[#allocation6 + $0x5d8] sm:$0xff]  ;;  %v218_v42 = vld [vmem:[#allocation6 + $0x3c0] sm:$0xff] }
  0x64   :  { %11500 = vst [vmem:[#allocation48_spill] sm:$0xff] %v8765_v36  ;;  %11501 = vst [vmem:[#allocation49_spill] sm:$0xff] %v8769_v38  ;;  %v8771_v39 = vpack.c.bf16 %v219_v32, %v211_v27  ;;  %v276_v46 = vld [vmem:[#allocation6 + $0x590] sm:$0xff]  ;;  %v8774_v47 = vpack.c.bf16 %v285_v35, %v277_v34  ;;  %v227_v53 = vld [vmem:[#allocation6 + $0x408] sm:$0xff]  ;;  %v8777_v58 = vpack.c.bf16 %v218_v42, %v210_v41 }
  0x65   :  { %5656 = vmatpush1.bf16.msra.mxu0 %v8729_v43  ;;  %v284_v51 = vld [vmem:[#allocation6 + $0x5d0] sm:$0xff]  ;;  %v235_v54 = vld [vmem:[#allocation6 + $0x448] sm:$0xff]  ;;  %v293_v56 = vld [vmem:[#allocation6 + $0x618] sm:$0xff] }
  0x66   :  { %5736 = vmatpush1.bf16.msra.mxu1 %v8733_v44  ;;  %5658 = vmatprep.subr.bf16.mxu0 %v8735_v45  ;;  %11502 = vst [vmem:[#allocation50_spill] sm:$0xff] %v8771_v39  ;;  %11503 = vst [vmem:[#allocation51_spill] sm:$0xff] %v8774_v47  ;;  %v301_v57 = vld [vmem:[#allocation6 + $0x658] sm:$0xff]  ;;  %v8781_v63 = vpack.c.bf16 %v284_v51, %v276_v46  ;;  %v8783_v0 = vpack.c.bf16 %v235_v54, %v227_v53  ;;  %v226_v4 = vld [vmem:[#allocation6 + $0x400] sm:$0xff] }
  0x67   :  { %5738 = vmatprep.subr.bf16.mxu1 %v8738_v52  ;;  %11504 = vst [vmem:[#allocation52_spill] sm:$0xff] %v8777_v58  ;;  %v234_v6 = vld [vmem:[#allocation6 + $0x440] sm:$0xff]  ;;  %v292_v9 = vld [vmem:[#allocation6 + $0x610] sm:$0xff]  ;;  %v8786_v10 = vpack.c.bf16 %v301_v57, %v293_v56  ;;  %v243_v13 = vld [vmem:[#allocation6 + $0x488] sm:$0xff] }
  0x68   :  { %11505 = vst [vmem:[#allocation53_spill] sm:$0xff] %v8781_v63  ;;  %11506 = vst [vmem:[#allocation54_spill] sm:$0xff] %v8783_v0  ;;  %v300_v11 = vld [vmem:[#allocation6 + $0x650] sm:$0xff]  ;;  %v251_v20 = vld [vmem:[#allocation6 + $0x4c8] sm:$0xff]  ;;  %v8789_v26 = vpack.c.bf16 %v234_v6, %v226_v4 }
  0x69   :  { %5660 = vmatpush1.bf16.msra.mxu0 %v8741_v60  ;;  %11507 = vst [vmem:[#allocation55_spill] sm:$0xff] %v8786_v10  ;;  %v309_v22 = vld [vmem:[#allocation6 + $0x698] sm:$0xff]  ;;  %v8793_v27 = vpack.c.bf16 %v300_v11, %v292_v9  ;;  %v8795_v32 = vpack.c.bf16 %v251_v20, %v243_v13  ;;  %v242_v34 = vld [vmem:[#allocation6 + $0x480] sm:$0xff]  ;;  %v308_v41 = vld [vmem:[#allocation6 + $0x690] sm:$0xff] }
  0x6a   :  { %5740 = vmatpush1.bf16.msra.mxu1 %v8745_v61  ;;  %5662 = vmatprep.subr.bf16.mxu0 %v8747_v62  ;;  %v317_v23 = vld [vmem:[#allocation6 + $0x6d8] sm:$0xff]  ;;  %11508 = vst [vmem:[#allocation56_spill] sm:$0xff] %v8789_v26  ;;  %v250_v35 = vld [vmem:[#allocation6 + $0x4c0] sm:$0xff]  ;;  %v316_v46 = vld [vmem:[#allocation6 + $0x6d0] sm:$0xff] }
  0x6b   :  { %5742 = vmatprep.subr.bf16.mxu1 %v8750_v5  ;;  %11509 = vst [vmem:[#allocation57_spill] sm:$0xff] %v8793_v27  ;;  %11510 = vst [vmem:[#allocation58_spill] sm:$0xff] %v8795_v32  ;;  %v8798_v42 = vpack.c.bf16 %v317_v23, %v309_v22  ;;  %v259_v51 = vld [vmem:[#allocation6 + $0x508] sm:$0xff]  ;;  %v325_v54 = vld [vmem:[#allocation6 + $0x718] sm:$0xff]  ;;  %v8801_v57 = vpack.c.bf16 %v250_v35, %v242_v34  ;;  %v8805_v4 = vpack.c.bf16 %v316_v46, %v308_v41 }
  0x6c   :  { %v267_v53 = vld [vmem:[#allocation6 + $0x548] sm:$0xff]  ;;  %v333_v56 = vld [vmem:[#allocation6 + $0x758] sm:$0xff]  ;;  %v258_v9 = vld [vmem:[#allocation6 + $0x500] sm:$0xff] }
  0x6d   :  { %5664 = vmatpush1.bf16.msra.mxu0 %v8753_v14  ;;  %11511 = vst [vmem:[#allocation59_spill] sm:$0xff] %v8798_v42  ;;  %11512 = vst [vmem:[#allocation60_spill] sm:$0xff] %v8801_v57  ;;  %v8807_v6 = vpack.c.bf16 %v267_v53, %v259_v51  ;;  %v266_v11 = vld [vmem:[#allocation6 + $0x540] sm:$0xff]  ;;  %v324_v13 = vld [vmem:[#allocation6 + $0x710] sm:$0xff]  ;;  %v8810_v20 = vpack.c.bf16 %v333_v56, %v325_v54 }
  0x6e   :  { %5744 = vmatpush1.bf16.msra.mxu1 %v8757_v18  ;;  %5666 = vmatprep.subr.bf16.mxu0 %v8759_v19  ;;  %11513 = vst [vmem:[#allocation61_spill] sm:$0xff] %v8805_v4  ;;  %v332_v22 = vld [vmem:[#allocation6 + $0x750] sm:$0xff]  ;;  %v275_v23 = vld [vmem:[#allocation6 + $0x588] sm:$0xff]  ;;  %v341_v34 = vld [vmem:[#allocation6 + $0x798] sm:$0xff] }
  0x6f   :  { %5746 = vmatprep.subr.bf16.mxu1 %v8762_v24  ;;  %11514 = vst [vmem:[#allocation62_spill] sm:$0xff] %v8807_v6  ;;  %11515 = vst [vmem:[#allocation63_spill] sm:$0xff] %v8810_v20  ;;  %v283_v7 = vld [vmem:[#allocation6 + $0x5c8] sm:$0xff]  ;;  %v349_v35 = vld [vmem:[#allocation6 + $0x7d8] sm:$0xff]  ;;  %v8817_v41 = vpack.c.bf16 %v332_v22, %v324_v13 }
  0x70   :  { %v8819_v46 = vpack.c.bf16 %v283_v7, %v275_v23  ;;  %v274_v51 = vld [vmem:[#allocation6 + $0x580] sm:$0xff]  ;;  %v340_v54 = vld [vmem:[#allocation6 + $0x790] sm:$0xff]  ;;  %v8822_v56 = vpack.c.bf16 %v349_v35, %v341_v34  ;;  %vm10744_vm9 = vmneg %vm4382_vm2 }
  0x71   :  { %5668 = vmatpush1.bf16.msra.mxu0 %v8765_v36  ;;  %11517 = vst [vmem:[#allocation65_spill] sm:$0xff] %v8817_v41  ;;  %v282_v53 = vld [vmem:[#allocation6 + $0x5c0] sm:$0xff]  ;;  %v104_v34 = vld [vmem:[#allocation6 + $0x30] sm:$0xff] }
  0x72   :  { %5748 = vmatpush1.bf16.msra.mxu1 %v8769_v38  ;;  %5670 = vmatprep.subr.bf16.mxu0 %v8771_v39  ;;  %11518 = vst [vmem:[#allocation66_spill] sm:$0xff] %v8819_v46  ;;  %11519 = vst [vmem:[#allocation67_spill] sm:$0xff] %v8822_v56  ;;  %v290_v22 = vld [vmem:[#allocation6 + $0x600] sm:$0xff] }
  0x73   :  { %5750 = vmatprep.subr.bf16.mxu1 %v8774_v47  ;;  %v298_v23 = vld [vmem:[#allocation6 + $0x640] sm:$0xff] }
  0x75   :  { %5672 = vmatpush1.bf16.msra.mxu0 %v8777_v58 }
  0x76   :  { %5752 = vmatpush1.bf16.msra.mxu1 %v8781_v63  ;;  %5674 = vmatprep.subr.bf16.mxu0 %v8783_v0 }
  0x77   :  { %5754 = vmatprep.subr.bf16.mxu1 %v8786_v10 }
  0x79   :  { %5676 = vmatpush1.bf16.msra.mxu0 %v8789_v26  ;;  %v347_v26 = vld [vmem:[#allocation6 + $0x7c8] sm:$0xff] }
  0x7a   :  { %5756 = vmatpush1.bf16.msra.mxu1 %v8793_v27  ;;  %5678 = vmatprep.subr.bf16.mxu0 %v8795_v32  ;;  %v8813_v27 = vpack.c.bf16 %v266_v11, %v258_v9  ;;  %v291_v32 = vld [vmem:[#allocation6 + $0x608] sm:$0xff]  ;;  %v105_v9 = vld [vmem:[#allocation6 + $0x38] sm:$0xff] }
  0x7b   :  { %5758 = vmatprep.subr.bf16.mxu1 %v8798_v42  ;;  %v348_v42 = vld [vmem:[#allocation6 + $0x7d0] sm:$0xff]  ;;  %v113_v11 = vld [vmem:[#allocation6 + $0x78] sm:$0xff] }
  0x7c   :  { %11516 = vst [vmem:[#allocation64_spill] sm:$0xff] %v8813_v27  ;;  %v8829_v7 = vpack.c.bf16 %v348_v42, %v340_v54  ;;  %v8834_v35 = vpack.c.bf16 %v113_v11, %v105_v9  ;;  %v314_v54 = vld [vmem:[#allocation6 + $0x6c0] sm:$0xff]  ;;  %v120_v9 = vld [vmem:[#allocation6 + $0xb0] sm:$0xff] }
  0x7d   :  { %5680 = vmatpush1.bf16.msra.mxu0 %v8801_v57  ;;  %v299_v57 = vld [vmem:[#allocation6 + $0x648] sm:$0xff] }
  0x7e   :  { %5760 = vmatpush1.bf16.msra.mxu1 %v8805_v4  ;;  %5682 = vmatprep.subr.bf16.mxu0 %v8807_v6  ;;  %v8825_v4 = vpack.c.bf16 %v282_v53, %v274_v51  ;;  %11521 = vst [vmem:[#allocation69_spill] sm:$0xff] %v8829_v7  ;;  %v8831_v13 = vpack.c.bf16 %v299_v57, %v291_v32  ;;  %11523 = vst [vmem:[#allocation71_spill] sm:$0xff] %v8834_v35  ;;  %v307_v6 = vld [vmem:[#allocation6 + $0x688] sm:$0xff]  ;;  %v121_v51 = vld [vmem:[#allocation6 + $0xb8] sm:$0xff] }
  0x7f   :  { %5762 = vmatprep.subr.bf16.mxu1 %v8810_v20  ;;  %v112_v20 = vld [vmem:[#allocation6 + $0x70] sm:$0xff]  ;;  %v129_v53 = vld [vmem:[#allocation6 + $0xf8] sm:$0xff]  ;;  %v306_v57 = vld [vmem:[#allocation6 + $0x680] sm:$0xff] }
  0x80   :  { %11520 = vst [vmem:[#allocation68_spill] sm:$0xff] %v8825_v4  ;;  %11522 = vst [vmem:[#allocation70_spill] sm:$0xff] %v8831_v13  ;;  %v8841_v32 = vpack.c.bf16 %v112_v20, %v104_v34  ;;  %v8846_v11 = vpack.c.bf16 %v129_v53, %v121_v51  ;;  %v8850_v20 = vpack.c.bf16 %v314_v54, %v306_v57  ;;  %v322_v34 = vld [vmem:[#allocation6 + $0x700] sm:$0xff]  ;;  %v136_v53 = vld [vmem:[#allocation6 + $0x130] sm:$0xff] }
  0x81   :  { %5684 = vmatpush1.bf16.msra.mxu0 %v8813_v27  ;;  %v315_v27 = vld [vmem:[#allocation6 + $0x6c8] sm:$0xff]  ;;  %v330_v51 = vld [vmem:[#allocation6 + $0x740] sm:$0xff]  ;;  %v153_v57 = vld [vmem:[#allocation6 + $0x1b8] sm:$0xff] }
  0x82   :  { %5764 = vmatpush1.bf16.msra.mxu1 %v8817_v41  ;;  %5686 = vmatprep.subr.bf16.mxu0 %v8819_v46  ;;  %v8837_v41 = vpack.c.bf16 %v298_v23, %v290_v22  ;;  %11525 = vst [vmem:[#allocation73_spill] sm:$0xff] %v8841_v32  ;;  %v8843_v42 = vpack.c.bf16 %v315_v27, %v307_v6  ;;  %11527 = vst [vmem:[#allocation75_spill] sm:$0xff] %v8846_v11  ;;  %v323_v46 = vld [vmem:[#allocation6 + $0x708] sm:$0xff]  ;;  %v137_v22 = vld [vmem:[#allocation6 + $0x138] sm:$0xff] }
  0x83   :  { %5766 = vmatprep.subr.bf16.mxu1 %v8822_v56  ;;  %v128_v56 = vld [vmem:[#allocation6 + $0xf0] sm:$0xff]  ;;  %v145_v23 = vld [vmem:[#allocation6 + $0x178] sm:$0xff]  ;;  %11529 = vst [vmem:[#allocation76_spill] sm:$0xff] %v8850_v20 }
  0x84   :  { %11524 = vst [vmem:[#allocation72_spill] sm:$0xff] %v8837_v41  ;;  %11526 = vst [vmem:[#allocation74_spill] sm:$0xff] %v8843_v42  ;;  %v8854_v27 = vpack.c.bf16 %v128_v56, %v120_v9  ;;  %v161_v54 = vld [vmem:[#allocation6 + $0x1f8] sm:$0xff]  ;;  %v8863_v56 = vpack.c.bf16 %v330_v51, %v322_v34  ;;  %v338_v9 = vld [vmem:[#allocation6 + $0x780] sm:$0xff] }
  0x85   :  { %5688 = vmatpush1.bf16.msra.mxu0 %v8825_v4  ;;  %v331_v4 = vld [vmem:[#allocation6 + $0x748] sm:$0xff]  ;;  %v169_v34 = vld [vmem:[#allocation6 + $0x238] sm:$0xff] }
  0x86   :  { %5768 = vmatpush1.bf16.msra.mxu1 %v8829_v7  ;;  %5690 = vmatprep.subr.bf16.mxu0 %v8831_v13  ;;  %v11528_v7 = vmov 0.0   ;;  %11530 = vst [vmem:[#allocation77_spill] sm:$0xff] %v8854_v27  ;;  %v8856_v6 = vpack.c.bf16 %v331_v4, %v323_v46  ;;  %v339_v13 = vld [vmem:[#allocation6 + $0x788] sm:$0xff]  ;;  %11533 = vst [vmem:[#allocation80_spill] sm:$0xff] %v8863_v56  ;;  %v177_v51 = vld [vmem:[#allocation6 + $0x278] sm:$0xff] }
  0x87   :  { %5834 = vmatprep.subr.bf16.mxu1 %v8834_v35  ;;  %v8859_v35 = vpack.c.bf16 %v145_v23, %v137_v22  ;;  %v8869_v46 = vpack.c.bf16 %v347_v26, %v339_v13  ;;  %v346_v22 = vld [vmem:[#allocation6 + $0x7c0] sm:$0xff]  ;;  %v152_v23 = vld [vmem:[#allocation6 + $0x1b0] sm:$0xff] }
  0x88   :  { %11531 = vst [vmem:[#allocation78_spill] sm:$0xff] %v8856_v6  ;;  %v102_v13 = vld [vmem:[#allocation6 + $0x20] sm:$0xff] }
  0x89   :  { %5692 = vmatpush1.bf16.msra.mxu0 %v8837_v41  ;;  %881 = vmatmul.mubr.f32.vlgmr.msra.gmra.mrb[4].mxu1 %v11528_v7  ;;  %11532 = vst [vmem:[#allocation79_spill] sm:$0xff] %v8859_v35  ;;  %v144_v41 = vld [vmem:[#allocation6 + $0x170] sm:$0xff]  ;;  %11535 = vst [vmem:[#allocation82_spill] sm:$0xff] %v8869_v46 }
  0x8a   :  { %5836 = vmatpush1.bf16.msra.mxu1 %v8841_v32  ;;  %5694 = vmatprep.subr.bf16.mxu0 %v8843_v42  ;;  %v8867_v4 = vpack.c.bf16 %v144_v41, %v136_v53  ;;  %v160_v32 = vld [vmem:[#allocation6 + $0x1f0] sm:$0xff]  ;;  %v103_v42 = vld [vmem:[#allocation6 + $0x28] sm:$0xff]  ;;  %v110_v53 = vld [vmem:[#allocation6 + $0x60] sm:$0xff] }
  0x8b   :  { %5838 = vmatprep.subr.bf16.mxu1 %v8846_v11  ;;  %1022 = vmatprep.mubr.f32.mxu1 %v11528_v7  ;;  %v8872_v11 = vpack.c.bf16 %v161_v54, %v153_v57  ;;  %v8879_v26 = vpack.c.bf16 %v160_v32, %v152_v23  ;;  %v168_v57 = vld [vmem:[#allocation6 + $0x230] sm:$0xff]  ;;  %v8884_v54 = vpack.c.bf16 %v177_v51, %v169_v34  ;;  %v126_v23 = vld [vmem:[#allocation6 + $0xe0] sm:$0xff] }
  0x8c   :  { %11534 = vst [vmem:[#allocation81_spill] sm:$0xff] %v8867_v4  ;;  %v184_v34 = vld [vmem:[#allocation6 + $0x2b0] sm:$0xff] }
  0x8d   :  { %5696 = vmatpush1.bf16.msra.mxu0 %v8850_v20  ;;  %11536 = vst [vmem:[#allocation83_spill] sm:$0xff] %v8872_v11  ;;  %v111_v20 = vld [vmem:[#allocation6 + $0x68] sm:$0xff]  ;;  %11538 = vst [vmem:[#allocation85_spill] sm:$0xff] %v8879_v26 }
  0x8e   :  { %5840 = vmatpush1.bf16.msra.mxu1 %v8854_v27  ;;  %5698 = vmatprep.subr.bf16.mxu0 %v8856_v6  ;;  %v8875_v27 = vpack.c.bf16 %v346_v22, %v338_v9  ;;  %v8881_v41 = vpack.c.bf16 %v111_v20, %v103_v42  ;;  %11540 = vst [vmem:[#allocation87_spill] sm:$0xff] %v8884_v54  ;;  %v119_v6 = vld [vmem:[#allocation6 + $0xa8] sm:$0xff]  ;;  %v185_v9 = vld [vmem:[#allocation6 + $0x2b8] sm:$0xff]  ;;  %v118_v20 = vld [vmem:[#allocation6 + $0xa0] sm:$0xff] }
  0x8f   :  { %5842 = vmatprep.subr.bf16.mxu1 %v8859_v35  ;;  %v176_v35 = vld [vmem:[#allocation6 + $0x270] sm:$0xff]  ;;  %v193_v22 = vld [vmem:[#allocation6 + $0x2f8] sm:$0xff] }
  0x90   :  { %11537 = vst [vmem:[#allocation84_spill] sm:$0xff] %v8875_v27  ;;  %11539 = vst [vmem:[#allocation86_spill] sm:$0xff] %v8881_v41  ;;  %v8891_v32 = vpack.c.bf16 %v176_v35, %v168_v57  ;;  %v8896_v51 = vpack.c.bf16 %v193_v22, %v185_v9  ;;  %v8900_v35 = vpack.c.bf16 %v126_v23, %v118_v20  ;;  %v134_v57 = vld [vmem:[#allocation6 + $0x120] sm:$0xff]  ;;  %v200_v22 = vld [vmem:[#allocation6 + $0x330] sm:$0xff] }
  0x91   :  { %5700 = vmatpush1.bf16.msra.mxu0 %v8863_v56  ;;  %v127_v56 = vld [vmem:[#allocation6 + $0xe8] sm:$0xff]  ;;  %v142_v9 = vld [vmem:[#allocation6 + $0x160] sm:$0xff] }
  0x92   :  { %5844 = vmatpush1.bf16.msra.mxu1 %v8867_v4  ;;  %5702 = vmatprep.subr.bf16.mxu0 %v8869_v46  ;;  %v8887_v4 = vpack.c.bf16 %v110_v53, %v102_v13  ;;  %11542 = vst [vmem:[#allocation89_spill] sm:$0xff] %v8891_v32  ;;  %v8893_v42 = vpack.c.bf16 %v127_v56, %v119_v6  ;;  %11544 = vst [vmem:[#allocation91_spill] sm:$0xff] %v8896_v51  ;;  %v135_v46 = vld [vmem:[#allocation6 + $0x128] sm:$0xff]  ;;  %v201_v13 = vld [vmem:[#allocation6 + $0x338] sm:$0xff] }
  0x93   :  { %5846 = vmatprep.subr.bf16.mxu1 %v8872_v11  ;;  %v192_v11 = vld [vmem:[#allocation6 + $0x2f0] sm:$0xff]  ;;  %v209_v53 = vld [vmem:[#allocation6 + $0x378] sm:$0xff]  ;;  %11545 = vst [vmem:[#allocation92_spill] sm:$0xff] %v8900_v35  ;;  %v151_v20 = vld [vmem:[#allocation6 + $0x1a8] sm:$0xff] }
  0x94   :  { %11541 = vst [vmem:[#allocation88_spill] sm:$0xff] %v8887_v4  ;;  %11543 = vst [vmem:[#allocation90_spill] sm:$0xff] %v8893_v42  ;;  %v8905_v6 = vpack.c.bf16 %v192_v11, %v184_v34  ;;  %v159_v23 = vld [vmem:[#allocation6 + $0x1e8] sm:$0xff]  ;;  %v158_v34 = vld [vmem:[#allocation6 + $0x1e0] sm:$0xff] }
  0x95   :  { %5704 = vmatpush1.bf16.msra.mxu0 %v8875_v27  ;;  %v143_v27 = vld [vmem:[#allocation6 + $0x168] sm:$0xff] }
  0x96   :  { %5848 = vmatpush1.bf16.msra.mxu1 %v8879_v26  ;;  %5770 = vmatprep.subr.bf16.mxu0 %v8881_v41  ;;  %11546 = vst [vmem:[#allocation93_spill] sm:$0xff] %v8905_v6  ;;  %v8907_v56 = vpack.c.bf16 %v143_v27, %v135_v46  ;;  %v208_v26 = vld [vmem:[#allocation6 + $0x370] sm:$0xff]  ;;  %v225_v41 = vld [vmem:[#allocation6 + $0x3f8] sm:$0xff]  ;;  %v8919_v27 = vpack.c.bf16 %v159_v23, %v151_v20  ;;  %v150_v46 = vld [vmem:[#allocation6 + $0x1a0] sm:$0xff] }
  0x97   :  { %5850 = vmatprep.subr.bf16.mxu1 %v8884_v54  ;;  %v8910_v54 = vpack.c.bf16 %v209_v53, %v201_v13  ;;  %v8917_v11 = vpack.c.bf16 %v208_v26, %v200_v22  ;;  %v216_v13 = vld [vmem:[#allocation6 + $0x3b0] sm:$0xff]  ;;  %v166_v20 = vld [vmem:[#allocation6 + $0x220] sm:$0xff] }
  0x98   :  { %810 = vmatmul.mubr.f32.vlgmr.msra.gmra.mrb[12].mxu0 %v11528_v7  ;;  %11547 = vst [vmem:[#allocation94_spill] sm:$0xff] %v8907_v56  ;;  %11551 = vst [vmem:[#allocation98_spill] sm:$0xff] %v8919_v27 }
  0x99   :  { %5772 = vmatpush1.bf16.msra.mxu0 %v8887_v4  ;;  %951 = vmatprep.mubr.f32.mxu0 %v11528_v7  ;;  %11548 = vst [vmem:[#allocation95_spill] sm:$0xff] %v8910_v54  ;;  %v217_v4 = vld [vmem:[#allocation6 + $0x3b8] sm:$0xff]  ;;  %11550 = vst [vmem:[#allocation97_spill] sm:$0xff] %v8917_v11 }
  0x9a   :  { %5852 = vmatpush1.bf16.msra.mxu1 %v8891_v32  ;;  %5774 = vmatprep.subr.bf16.mxu0 %v8893_v42  ;;  %v8913_v32 = vpack.c.bf16 %v142_v9, %v134_v57  ;;  %v8922_v53 = vpack.c.bf16 %v225_v41, %v217_v4  ;;  %v167_v42 = vld [vmem:[#allocation6 + $0x228] sm:$0xff]  ;;  %v233_v57 = vld [vmem:[#allocation6 + $0x438] sm:$0xff]  ;;  %v174_v4 = vld [vmem:[#allocation6 + $0x260] sm:$0xff] }
  0x9b   :  { %5854 = vmatprep.subr.bf16.mxu1 %v8896_v51  ;;  %v224_v51 = vld [vmem:[#allocation6 + $0x3f0] sm:$0xff]  ;;  %v241_v9 = vld [vmem:[#allocation6 + $0x478] sm:$0xff] }
  0x9c   :  { %11549 = vst [vmem:[#allocation96_spill] sm:$0xff] %v8913_v32  ;;  %11552 = vst [vmem:[#allocation99_spill] sm:$0xff] %v8922_v53  ;;  %v8929_v26 = vpack.c.bf16 %v224_v51, %v216_v13  ;;  %v232_v41 = vld [vmem:[#allocation6 + $0x430] sm:$0xff]  ;;  %v8934_v23 = vpack.c.bf16 %v241_v9, %v233_v57  ;;  %v190_v13 = vld [vmem:[#allocation6 + $0x2e0] sm:$0xff] }
  0x9d   :  { %5776 = vmatpush1.bf16.msra.mxu0 %v8900_v35  ;;  %v175_v35 = vld [vmem:[#allocation6 + $0x268] sm:$0xff]  ;;  %v248_v57 = vld [vmem:[#allocation6 + $0x4b0] sm:$0xff] }
  0x9e   :  { %5856 = vmatpush1.bf16.msra.mxu1 %v8905_v6  ;;  %5778 = vmatprep.subr.bf16.mxu0 %v8907_v56  ;;  %v8925_v6 = vpack.c.bf16 %v158_v34, %v150_v46  ;;  %11554 = vst [vmem:[#allocation101_spill] sm:$0xff] %v8929_v26  ;;  %v8931_v22 = vpack.c.bf16 %v175_v35, %v167_v42  ;;  %11556 = vst [vmem:[#allocation103_spill] sm:$0xff] %v8934_v23  ;;  %v183_v56 = vld [vmem:[#allocation6 + $0x2a8] sm:$0xff]  ;;  %v249_v46 = vld [vmem:[#allocation6 + $0x4b8] sm:$0xff] }
  0x9f   :  { %5858 = vmatprep.subr.bf16.mxu1 %v8910_v54  ;;  %v240_v54 = vld [vmem:[#allocation6 + $0x470] sm:$0xff]  ;;  %v257_v34 = vld [vmem:[#allocation6 + $0x4f8] sm:$0xff]  ;;  %v182_v35 = vld [vmem:[#allocation6 + $0x2a0] sm:$0xff] }
  0xa0   :  { %11553 = vst [vmem:[#allocation100_spill] sm:$0xff] %v8925_v6  ;;  %11555 = vst [vmem:[#allocation102_spill] sm:$0xff] %v8931_v22  ;;  %v8941_v42 = vpack.c.bf16 %v240_v54, %v232_v41  ;;  %v8946_v9 = vpack.c.bf16 %v257_v34, %v249_v46  ;;  %v206_v41 = vld [vmem:[#allocation6 + $0x360] sm:$0xff]  ;;  %v264_v46 = vld [vmem:[#allocation6 + $0x530] sm:$0xff] }
  0xa1   :  { %5780 = vmatpush1.bf16.msra.mxu0 %v8913_v32  ;;  %v191_v32 = vld [vmem:[#allocation6 + $0x2e8] sm:$0xff] }
  0xa2   :  { %5860 = vmatpush1.bf16.msra.mxu1 %v8917_v11  ;;  %5782 = vmatprep.subr.bf16.mxu0 %v8919_v27  ;;  %v8937_v11 = vpack.c.bf16 %v174_v4, %v166_v20  ;;  %11558 = vst [vmem:[#allocation105_spill] sm:$0xff] %v8941_v42  ;;  %v8943_v51 = vpack.c.bf16 %v191_v32, %v183_v56  ;;  %11560 = vst [vmem:[#allocation107_spill] sm:$0xff] %v8946_v9  ;;  %v199_v27 = vld [vmem:[#allocation6 + $0x328] sm:$0xff]  ;;  %v265_v20 = vld [vmem:[#allocation6 + $0x538] sm:$0xff] }
  0xa3   :  { %5862 = vmatprep.subr.bf16.mxu1 %v8922_v53  ;;  %v256_v53 = vld [vmem:[#allocation6 + $0x4f0] sm:$0xff]  ;;  %v273_v4 = vld [vmem:[#allocation6 + $0x578] sm:$0xff]  ;;  %v198_v56 = vld [vmem:[#allocation6 + $0x320] sm:$0xff] }
  0xa4   :  { %11557 = vst [vmem:[#allocation104_spill] sm:$0xff] %v8937_v11  ;;  %11559 = vst [vmem:[#allocation106_spill] sm:$0xff] %v8943_v51  ;;  %v8953_v54 = vpack.c.bf16 %v256_v53, %v248_v57  ;;  %v8958_v34 = vpack.c.bf16 %v273_v4, %v265_v20  ;;  %v214_v53 = vld [vmem:[#allocation6 + $0x3a0] sm:$0xff]  ;;  %v280_v20 = vld [vmem:[#allocation6 + $0x5b0] sm:$0xff] }
  0xa5   :  { %5784 = vmatpush1.bf16.msra.mxu0 %v8925_v6  ;;  %v207_v6 = vld [vmem:[#allocation6 + $0x368] sm:$0xff]  ;;  %v222_v57 = vld [vmem:[#allocation6 + $0x3e0] sm:$0xff] }
  0xa6   :  { %5864 = vmatpush1.bf16.msra.mxu1 %v8929_v26  ;;  %5786 = vmatprep.subr.bf16.mxu0 %v8931_v22  ;;  %v8949_v26 = vpack.c.bf16 %v190_v13, %v182_v35  ;;  %11562 = vst [vmem:[#allocation109_spill] sm:$0xff] %v8953_v54  ;;  %v8955_v32 = vpack.c.bf16 %v207_v6, %v199_v27  ;;  %11564 = vst [vmem:[#allocation111_spill] sm:$0xff] %v8958_v34  ;;  %v215_v22 = vld [vmem:[#allocation6 + $0x3a8] sm:$0xff]  ;;  %v281_v35 = vld [vmem:[#allocation6 + $0x5b8] sm:$0xff] }
  0xa7   :  { %5866 = vmatprep.subr.bf16.mxu1 %v8934_v23  ;;  %v272_v23 = vld [vmem:[#allocation6 + $0x570] sm:$0xff]  ;;  %v289_v13 = vld [vmem:[#allocation6 + $0x5f8] sm:$0xff] }
  0xa8   :  { %11561 = vst [vmem:[#allocation108_spill] sm:$0xff] %v8949_v26  ;;  %11563 = vst [vmem:[#allocation110_spill] sm:$0xff] %v8955_v32  ;;  %v8965_v6 = vpack.c.bf16 %v272_v23, %v264_v46  ;;  %v8970_v4 = vpack.c.bf16 %v289_v13, %v281_v35  ;;  %v230_v23 = vld [vmem:[#allocation6 + $0x420] sm:$0xff]  ;;  %v296_v35 = vld [vmem:[#allocation6 + $0x630] sm:$0xff] }
  0xa9   :  { %5788 = vmatpush1.bf16.msra.mxu0 %v8937_v11  ;;  %v223_v11 = vld [vmem:[#allocation6 + $0x3e8] sm:$0xff]  ;;  %v238_v46 = vld [vmem:[#allocation6 + $0x460] sm:$0xff] }
  0xaa   :  { %5868 = vmatpush1.bf16.msra.mxu1 %v8941_v42  ;;  %5790 = vmatprep.subr.bf16.mxu0 %v8943_v51  ;;  %v8961_v42 = vpack.c.bf16 %v206_v41, %v198_v56  ;;  %11566 = vst [vmem:[#allocation113_spill] sm:$0xff] %v8965_v6  ;;  %v8967_v27 = vpack.c.bf16 %v223_v11, %v215_v22  ;;  %11568 = vst [vmem:[#allocation115_spill] sm:$0xff] %v8970_v4  ;;  %v231_v51 = vld [vmem:[#allocation6 + $0x428] sm:$0xff]  ;;  %v297_v56 = vld [vmem:[#allocation6 + $0x638] sm:$0xff] }
  0xab   :  { %5870 = vmatprep.subr.bf16.mxu1 %v8946_v9  ;;  %v288_v9 = vld [vmem:[#allocation6 + $0x5f0] sm:$0xff]  ;;  %v305_v41 = vld [vmem:[#allocation6 + $0x678] sm:$0xff] }
  0xac   :  { %11565 = vst [vmem:[#allocation112_spill] sm:$0xff] %v8961_v42  ;;  %11567 = vst [vmem:[#allocation114_spill] sm:$0xff] %v8967_v27  ;;  %v8977_v11 = vpack.c.bf16 %v288_v9, %v280_v20  ;;  %v8982_v13 = vpack.c.bf16 %v305_v41, %v297_v56  ;;  %v246_v9 = vld [vmem:[#allocation6 + $0x4a0] sm:$0xff]  ;;  %v312_v56 = vld [vmem:[#allocation6 + $0x6b0] sm:$0xff] }
  0xad   :  { %5792 = vmatpush1.bf16.msra.mxu0 %v8949_v26  ;;  %v239_v26 = vld [vmem:[#allocation6 + $0x468] sm:$0xff]  ;;  %v254_v20 = vld [vmem:[#allocation6 + $0x4e0] sm:$0xff] }
  0xae   :  { %5872 = vmatpush1.bf16.msra.mxu1 %v8953_v54  ;;  %5794 = vmatprep.subr.bf16.mxu0 %v8955_v32  ;;  %v8973_v54 = vpack.c.bf16 %v222_v57, %v214_v53  ;;  %11570 = vst [vmem:[#allocation117_spill] sm:$0xff] %v8977_v11  ;;  %v8979_v22 = vpack.c.bf16 %v239_v26, %v231_v51  ;;  %11572 = vst [vmem:[#allocation119_spill] sm:$0xff] %v8982_v13  ;;  %v247_v32 = vld [vmem:[#allocation6 + $0x4a8] sm:$0xff]  ;;  %v313_v53 = vld [vmem:[#allocation6 + $0x6b8] sm:$0xff] }
  0xaf   :  { %5874 = vmatprep.subr.bf16.mxu1 %v8958_v34  ;;  %v304_v34 = vld [vmem:[#allocation6 + $0x670] sm:$0xff]  ;;  %v321_v57 = vld [vmem:[#allocation6 + $0x6f8] sm:$0xff] }
  0xb0   :  { %11569 = vst [vmem:[#allocation116_spill] sm:$0xff] %v8973_v54  ;;  %11571 = vst [vmem:[#allocation118_spill] sm:$0xff] %v8979_v22  ;;  %v8989_v26 = vpack.c.bf16 %v304_v34, %v296_v35  ;;  %v8994_v41 = vpack.c.bf16 %v321_v57, %v313_v53  ;;  %v262_v34 = vld [vmem:[#allocation6 + $0x520] sm:$0xff]  ;;  %v328_v53 = vld [vmem:[#allocation6 + $0x730] sm:$0xff] }
  0xb1   :  { %5796 = vmatpush1.bf16.msra.mxu0 %v8961_v42  ;;  %v255_v42 = vld [vmem:[#allocation6 + $0x4e8] sm:$0xff]  ;;  %v270_v35 = vld [vmem:[#allocation6 + $0x560] sm:$0xff] }
  0xb2   :  { %5876 = vmatpush1.bf16.msra.mxu1 %v8965_v6  ;;  %5798 = vmatprep.subr.bf16.mxu0 %v8967_v27  ;;  %v8985_v6 = vpack.c.bf16 %v238_v46, %v230_v23  ;;  %11574 = vst [vmem:[#allocation121_spill] sm:$0xff] %v8989_v26  ;;  %v8991_v51 = vpack.c.bf16 %v255_v42, %v247_v32  ;;  %11576 = vst [vmem:[#allocation123_spill] sm:$0xff] %v8994_v41  ;;  %v263_v27 = vld [vmem:[#allocation6 + $0x528] sm:$0xff]  ;;  %v329_v23 = vld [vmem:[#allocation6 + $0x738] sm:$0xff] }
  0xb3   :  { %5878 = vmatprep.subr.bf16.mxu1 %v8970_v4  ;;  %v320_v4 = vld [vmem:[#allocation6 + $0x6f0] sm:$0xff]  ;;  %v337_v46 = vld [vmem:[#allocation6 + $0x778] sm:$0xff] }
  0xb4   :  { %11573 = vst [vmem:[#allocation120_spill] sm:$0xff] %v8985_v6  ;;  %11575 = vst [vmem:[#allocation122_spill] sm:$0xff] %v8991_v51  ;;  %v9001_v42 = vpack.c.bf16 %v320_v4, %v312_v56  ;;  %v9006_v57 = vpack.c.bf16 %v337_v46, %v329_v23  ;;  %v278_v4 = vld [vmem:[#allocation6 + $0x5a0] sm:$0xff]  ;;  %v344_v23 = vld [vmem:[#allocation6 + $0x7b0] sm:$0xff] }
  0xb5   :  { %5800 = vmatpush1.bf16.msra.mxu0 %v8973_v54  ;;  %v271_v54 = vld [vmem:[#allocation6 + $0x568] sm:$0xff]  ;;  %v286_v56 = vld [vmem:[#allocation6 + $0x5e0] sm:$0xff] }
  0xb6   :  { %5880 = vmatpush1.bf16.msra.mxu1 %v8977_v11  ;;  %5802 = vmatprep.subr.bf16.mxu0 %v8979_v22  ;;  %v8997_v11 = vpack.c.bf16 %v254_v20, %v246_v9  ;;  %11578 = vst [vmem:[#allocation125_spill] sm:$0xff] %v9001_v42  ;;  %v9003_v32 = vpack.c.bf16 %v271_v54, %v263_v27  ;;  %11580 = vst [vmem:[#allocation127_spill] sm:$0xff] %v9006_v57  ;;  %v279_v22 = vld [vmem:[#allocation6 + $0x5a8] sm:$0xff]  ;;  %v345_v9 = vld [vmem:[#allocation6 + $0x7b8] sm:$0xff] }
  0xb7   :  { %5882 = vmatprep.subr.bf16.mxu1 %v8982_v13  ;;  %v336_v13 = vld [vmem:[#allocation6 + $0x770] sm:$0xff]  ;;  %v353_v20 = vld [vmem:[#allocation6 + $0x7f8] sm:$0xff] }
  0xb8   :  { %11577 = vst [vmem:[#allocation124_spill] sm:$0xff] %v8997_v11  ;;  %11579 = vst [vmem:[#allocation126_spill] sm:$0xff] %v9003_v32  ;;  %v9013_v54 = vpack.c.bf16 %v336_v13, %v328_v53  ;;  %v9018_v46 = vpack.c.bf16 %v353_v20, %v345_v9  ;;  %v294_v13 = vld [vmem:[#allocation6 + $0x620] sm:$0xff]  ;;  %v311_v53 = vld [vmem:[#allocation6 + $0x6a8] sm:$0xff] }
  0xb9   :  { %5804 = vmatpush1.bf16.msra.mxu0 %v8985_v6  ;;  %v287_v6 = vld [vmem:[#allocation6 + $0x5e8] sm:$0xff] }
  0xba   :  { %5884 = vmatpush1.bf16.msra.mxu1 %v8989_v26  ;;  %5806 = vmatprep.subr.bf16.mxu0 %v8991_v51  ;;  %v9009_v26 = vpack.c.bf16 %v270_v35, %v262_v34  ;;  %11582 = vst [vmem:[#allocation129_spill] sm:$0xff] %v9013_v54  ;;  %v9015_v27 = vpack.c.bf16 %v287_v6, %v279_v22  ;;  %11584 = vst [vmem:[#allocation131_spill] sm:$0xff] %v9018_v46  ;;  %v295_v51 = vld [vmem:[#allocation6 + $0x628] sm:$0xff]  ;;  %v302_v35 = vld [vmem:[#allocation6 + $0x660] sm:$0xff] }
  0xbb   :  { %5886 = vmatprep.subr.bf16.mxu1 %v8994_v41  ;;  %v352_v41 = vld [vmem:[#allocation6 + $0x7f0] sm:$0xff]  ;;  %v9021_v34 = vpack.c.bf16 %v286_v56, %v278_v4  ;;  %v319_v9 = vld [vmem:[#allocation6 + $0x6e8] sm:$0xff]  ;;  %v9031_v20 = vpack.c.bf16 %v302_v35, %v294_v13  ;;  %v318_v56 = vld [vmem:[#allocation6 + $0x6e0] sm:$0xff] }
  0xbc   :  { %11581 = vst [vmem:[#allocation128_spill] sm:$0xff] %v9009_v26  ;;  %11583 = vst [vmem:[#allocation130_spill] sm:$0xff] %v9015_v27  ;;  %v9025_v6 = vpack.c.bf16 %v352_v41, %v344_v23  ;;  %v9035_v4 = vpack.c.bf16 %v319_v9, %v311_v53  ;;  %v310_v41 = vld [vmem:[#allocation6 + $0x6a0] sm:$0xff]  ;;  %v343_v53 = vld [vmem:[#allocation6 + $0x7a8] sm:$0xff] }
  0xbd   :  { %5808 = vmatpush1.bf16.msra.mxu0 %v8997_v11  ;;  %v303_v11 = vld [vmem:[#allocation6 + $0x668] sm:$0xff]  ;;  %11585 = vst [vmem:[#allocation132_spill] sm:$0xff] %v9021_v34  ;;  %11588 = vst [vmem:[#allocation135_spill] sm:$0xff] %v9031_v20  ;;  %v9040_v23 = vpack.c.bf16 %v318_v56, %v310_v41  ;;  %v326_v35 = vld [vmem:[#allocation6 + $0x720] sm:$0xff] }
  0xbe   :  { %5888 = vmatpush1.bf16.msra.mxu1 %v9001_v42  ;;  %5810 = vmatprep.subr.bf16.mxu0 %v9003_v32  ;;  %11586 = vst [vmem:[#allocation133_spill] sm:$0xff] %v9025_v6  ;;  %v9027_v22 = vpack.c.bf16 %v303_v11, %v295_v51  ;;  %11589 = vst [vmem:[#allocation136_spill] sm:$0xff] %v9035_v4  ;;  %v327_v11 = vld [vmem:[#allocation6 + $0x728] sm:$0xff]  ;;  %v342_v56 = vld [vmem:[#allocation6 + $0x7a0] sm:$0xff] }
  0xbf   :  { %5890 = vmatprep.subr.bf16.mxu1 %v9006_v57  ;;  %v335_v51 = vld [vmem:[#allocation6 + $0x768] sm:$0xff]  ;;  %11590 = vst [vmem:[#allocation137_spill] sm:$0xff] %v9040_v23 }
  0xc0   :  { %11587 = vst [vmem:[#allocation134_spill] sm:$0xff] %v9027_v22  ;;  %v9043_v13 = vpack.c.bf16 %v335_v51, %v327_v11  ;;  %v351_v9 = vld [vmem:[#allocation6 + $0x7e8] sm:$0xff]  ;;  %v11598_v51 = vld [vmem:[#allocation59_spill] sm:$0xff] }
  0xc1   :  { %5812 = vmatpush1.bf16.msra.mxu0 %v9009_v26  ;;  %v9051_v41 = vpack.c.bf16 %v351_v9, %v343_v53  ;;  %v11600_v53 = vld [vmem:[#allocation62_spill] sm:$0xff]  ;;  %v11601_v9 = vld [vmem:[#allocation61_spill] sm:$0xff] }
  0xc2   :  { %5892 = vmatpush1.bf16.msra.mxu1 %v9013_v54  ;;  %5814 = vmatprep.subr.bf16.mxu0 %v9015_v27  ;;  %11591 = vst [vmem:[#allocation138_spill] sm:$0xff] %v9043_v13 }
  0xc3   :  { %5894 = vmatprep.subr.bf16.mxu1 %v9018_v46  ;;  %11593 = vst [vmem:[#allocation140_spill] sm:$0xff] %v9051_v41  ;;  %v350_v46 = vld [vmem:[#allocation6 + $0x7e0] sm:$0xff] }
  0xc4   :  { %v9056_v11 = vpack.c.bf16 %v350_v46, %v342_v56  ;;  %v11596_v46 = vld [vmem:[#allocation58_spill] sm:$0xff]  ;;  %v11602_v56 = vld [vmem:[#allocation63_spill] sm:$0xff] }
  0xc5   :  { %5816 = vmatpush1.bf16.msra.mxu0 %v9021_v34 }
  0xc6   :  { %5896 = vmatpush1.bf16.msra.mxu1 %v9025_v6  ;;  %5818 = vmatprep.subr.bf16.mxu0 %v9027_v22  ;;  %v334_v6 = vld [vmem:[#allocation6 + $0x760] sm:$0xff]  ;;  %11594 = vst [vmem:[#allocation141_spill] sm:$0xff] %v9056_v11 }
  0xc7   :  { %5962 = vmatprep.subr.bf16.mxu1 %v8637_v21  ;;  %v9048_v21 = vpack.c.bf16 %v334_v6, %v326_v35  ;;  %v11597_v6 = vld [vmem:[#allocation57_spill] sm:$0xff]  ;;  %v11599_v35 = vld [vmem:[#allocation60_spill] sm:$0xff] }
  0xc9   :  { %5820 = vmatpush1.bf16.msra.mxu0 %v9031_v20  ;;  %1023 = vmatmul.mubr.f32.vlgmr.msra.gmra.mrb[6].mxu1 %v11528_v7  ;;  %11592 = vst [vmem:[#allocation139_spill] sm:$0xff] %v9048_v21 }
  0xca   :  { %5822 = vmatprep.subr.bf16.mxu0 %v9035_v4  ;;  %5964 = vmatpush1.bf16.msra.mxu1 %v8639_v25 }
  0xcb   :  { %5966 = vmatprep.subr.bf16.mxu1 %v8644_v29 }
  0xcd   :  { %5824 = vmatpush1.bf16.msra.mxu0 %v9040_v23 }
  0xce   :  { %5826 = vmatprep.subr.bf16.mxu0 %v9043_v13  ;;  %5968 = vmatpush1.bf16.msra.mxu1 %v8655_v37 }
  0xcf   :  { %5970 = vmatprep.subr.bf16.mxu1 %v8658_v40 }
  0xd1   :  { %5828 = vmatpush1.bf16.msra.mxu0 %v9048_v21 }
  0xd2   :  { %5830 = vmatprep.subr.bf16.mxu0 %v9051_v41  ;;  %5972 = vmatpush1.bf16.msra.mxu1 %v8667_v48 }
  0xd3   :  { %5974 = vmatprep.subr.bf16.mxu1 %v8673_v50 }
  0xd5   :  { %5832 = vmatpush1.bf16.msra.mxu0 %v9056_v11 }
  0xd6   :  { %5898 = vmatprep.subr.bf16.mxu0 %v8669_v49  ;;  %5976 = vmatpush1.bf16.msra.mxu1 %v8679_v55 }
  0xd7   :  { %5978 = vmatprep.subr.bf16.mxu1 %v8683_v59 }
  0xd8   :  { %952 = vmatmul.mubr.f32.vlgmr.msra.gmra.mrb[14].mxu0 %v11528_v7  ;;  %v11595_v7 = vld [vmem:[#allocation56_spill] sm:$0xff] }
  0xd9   :  { %5900 = vmatpush1.bf16.msra.mxu0 %v8688_v1 }
  0xda   :  { %5902 = vmatprep.subr.bf16.mxu0 %v8693_v3  ;;  %5980 = vmatpush1.bf16.msra.mxu1 %v8691_v2 }
  0xdb   :  { %5982 = vmatprep.subr.bf16.mxu1 %v8696_v8 }
  0xdd   :  { %5904 = vmatpush1.bf16.msra.mxu0 %v8701_v15 }
  0xde   :  { %5906 = vmatprep.subr.bf16.mxu0 %v8708_v17  ;;  %5984 = vmatpush1.bf16.msra.mxu1 %v8706_v16 }
  0xdf   :  { %5986 = vmatprep.subr.bf16.mxu1 %v8711_v12  ;;  %v9145_v12 = vld [vmem:[%s11131_s3] sm:$0xff] }
  0xe1   :  { %5908 = vmatpush1.bf16.msra.mxu0 %v8716_v28 }
  0xe2   :  { %5910 = vmatprep.subr.bf16.mxu0 %v8723_v31  ;;  %5988 = vmatpush1.bf16.msra.mxu1 %v8721_v30 }
  0xe3   :  { %5990 = vmatprep.subr.bf16.mxu1 %v8726_v33  ;;  %v689_v33 = vlaneseq }
  0xe5   :  { %5912 = vmatpush1.bf16.msra.mxu0 %v8729_v43 }
  0xe6   :  { %5914 = vmatprep.subr.bf16.mxu0 %v8735_v45  ;;  %5992 = vmatpush1.bf16.msra.mxu1 %v8733_v44 }
  0xe7   :  { %5994 = vmatprep.subr.bf16.mxu1 %v8738_v52 }
  0xe9   :  { %5916 = vmatpush1.bf16.msra.mxu0 %v8741_v60 }
  0xea   :  { %5918 = vmatprep.subr.bf16.mxu0 %v8747_v62  ;;  %5996 = vmatpush1.bf16.msra.mxu1 %v8745_v61 }
  0xeb   :  { %5998 = vmatprep.subr.bf16.mxu1 %v8750_v5 }
  0xed   :  { %5920 = vmatpush1.bf16.msra.mxu0 %v8753_v14 }
  0xee   :  { %5922 = vmatprep.subr.bf16.mxu0 %v8759_v19  ;;  %6000 = vmatpush1.bf16.msra.mxu1 %v8757_v18  ;;  %v11610_v18 = vld [vmem:[#allocation71_spill] sm:$0xff] }
  0xef   :  { %6002 = vmatprep.subr.bf16.mxu1 %v8762_v24  ;;  %v11607_v24 = vld [vmem:[#allocation68_spill] sm:$0xff] }
  0xf1   :  { %5924 = vmatpush1.bf16.msra.mxu0 %v8765_v36 }
  0xf2   :  { %5926 = vmatprep.subr.bf16.mxu0 %v8771_v39  ;;  %6004 = vmatpush1.bf16.msra.mxu1 %v8769_v38  ;;  %v11606_v38 = vld [vmem:[#allocation67_spill] sm:$0xff]  ;;  %v9138_v39 = vshrl.u32 %v689_v33, 7 }
  0xf3   :  { %6006 = vmatprep.subr.bf16.mxu1 %v8774_v47  ;;  %v11603_v47 = vld [vmem:[#allocation64_spill] sm:$0xff] }
  0xf4   :  { %11619 = vst [vmem:[#allocation142_spill] sm:$0xff] %v9138_v39  ;;  %v699_v30 = vsub.s32 2, %v9138_v39  ;;  %v703_v36 = vsub.s32 3, %v9138_v39  ;;  %v691_v19 = vsub.s32 0, %v9138_v39  ;;  %v695_v8 = vsub.s32 1, %v9138_v39 }
  0xf5   :  { %5928 = vmatpush1.bf16.msra.mxu0 %v8777_v58 }
  0xf6   :  { %5930 = vmatprep.subr.bf16.mxu0 %v8783_v0  ;;  %6008 = vmatpush1.bf16.msra.mxu1 %v8781_v63  ;;  %v11604_v63 = vld [vmem:[#allocation66_spill] sm:$0xff]  ;;  %v700_v16 = vrot.slane %v9145_v12, %v699_v30  ;;  %v704_v14 = vrot.slane %v9145_v12, %v703_v36  ;;  %v692_v33 = vrot.slane %v9145_v12, %v691_v19 }
  0xf7   :  { %6010 = vmatprep.subr.bf16.mxu1 %v8786_v10  ;;  %v11605_v10 = vld [vmem:[#allocation65_spill] sm:$0xff]  ;;  %v696_v45 = vrot.slane %v9145_v12, %v695_v8 }
  0xf9   :  { %5932 = vmatpush1.bf16.msra.mxu0 %v11595_v7 }
  0xfa   :  { %5934 = vmatprep.subr.bf16.mxu0 %v11596_v46  ;;  %6012 = vmatpush1.bf16.msra.mxu1 %v11597_v6  ;;  %v11608_v6 = vld [vmem:[#allocation70_spill] sm:$0xff] }
  0xfb   :  { %6014 = vmatprep.subr.bf16.mxu1 %v11598_v51  ;;  %v11609_v51 = vld [vmem:[#allocation69_spill] sm:$0xff] }
  0xfd   :  { %5936 = vmatpush1.bf16.msra.mxu0 %v11599_v35 }
  0xfe   :  { %5938 = vmatprep.subr.bf16.mxu0 %v11600_v53  ;;  %6016 = vmatpush1.bf16.msra.mxu1 %v11601_v9  ;;  %v11611_v53 = vld [vmem:[#allocation72_spill] sm:$0xff]  ;;  %v11612_v9 = vld [vmem:[#allocation74_spill] sm:$0xff] }
  0xff   :  { %6018 = vmatprep.subr.bf16.mxu1 %v11602_v56  ;;  %v11613_v56 = vld [vmem:[#allocation76_spill] sm:$0xff] }
 0x101   :  { %5940 = vmatpush1.bf16.msra.mxu0 %v11603_v47  ;;  %v11614_v47 = vld [vmem:[#allocation78_spill] sm:$0xff] }
 0x102   :  { %5942 = vmatprep.subr.bf16.mxu0 %v11604_v63  ;;  %6020 = vmatpush1.bf16.msra.mxu1 %v11605_v10  ;;  %v11615_v63 = vld [vmem:[#allocation80_spill] sm:$0xff]  ;;  %v11616_v10 = vld [vmem:[#allocation82_spill] sm:$0xff] }
 0x103   :  { %6022 = vmatprep.subr.bf16.mxu1 %v11606_v38  ;;  %v11617_v38 = vld [vmem:[#allocation84_spill] sm:$0xff] }
 0x105   :  { %5944 = vmatpush1.bf16.msra.mxu0 %v11607_v24  ;;  %v11618_v24 = vld [vmem:[#allocation86_spill] sm:$0xff] }
 0x106   :  { %5946 = vmatprep.subr.bf16.mxu0 %v11608_v6  ;;  %6024 = vmatpush1.bf16.msra.mxu1 %v11609_v51 }
 0x107   :  { %6090 = vmatprep.subr.bf16.mxu1 %v11610_v18 }
 0x109   :  { %5948 = vmatpush1.bf16.msra.mxu0 %v11611_v53 }
 0x10a   :  { %5950 = vmatprep.subr.bf16.mxu0 %v11612_v9 }
 0x10d   :  { %5952 = vmatpush1.bf16.msra.mxu0 %v11613_v56 }
 0x10e   :  { %5954 = vmatprep.subr.bf16.mxu0 %v11614_v47 }
 0x111   :  { %5956 = vmatpush1.bf16.msra.mxu0 %v11615_v63 }
 0x112   :  { %5958 = vmatprep.subr.bf16.mxu0 %v11616_v10 }
 0x115   :  { %5960 = vmatpush1.bf16.msra.mxu0 %v11617_v38 }
 0x116   :  { %6026 = vmatprep.subr.bf16.mxu0 %v11618_v24 }
 0x11b   :  { %v445_v6 = vpop.f32.mrb[0].mxu0 }
 0x11c   :  { %v447_v51 = vpop.f32.mrb[1].mxu0  ;;  %v9122_v35 = vpop.f32.mrb[0].mxu1  ;;  %v9163_v31 = vadd.f32 %v692_v33, %v445_v6 }
 0x11d   :  { %v9124_v18 = vpop.f32.mrb[1].mxu1  ;;  %v9169_v28 = vadd.f32 %v696_v45, %v447_v51 }
 0x11e   :  { %11624 = vst [vmem:[#allocation147_spill] sm:$0xff] %v9163_v31 }
 0x11f   :  { %v451_v53 = vpop.f32.mrb[2].mxu0  ;;  %11626 = vst [vmem:[#allocation149_spill] sm:$0xff] %v9169_v28 }
 0x120   :  { %v453_v9 = vpop.f32.mrb[3].mxu0  ;;  %v9126_v5 = vpop.f32.mrb[2].mxu1 }
 0x121   :  { %v9128_v56 = vpop.f32.mrb[3].mxu1 }
 0x123   :  { %v522_v47 = vpop.f32.mrb[4].mxu0 }
 0x124   :  { %v524_v63 = vpop.f32.mrb[5].mxu0  ;;  %v9152_v62 = vadd.f32 %v700_v16, %v522_v47  ;;  %v9166_v47 = vadd.f32 %v692_v33, %v451_v53 }
 0x125   :  { %v9154_v60 = vadd.f32 %v704_v14, %v524_v63 }
 0x126   :  { %11620 = vst [vmem:[#allocation143_spill] sm:$0xff] %v9152_v62  ;;  %11625 = vst [vmem:[#allocation148_spill] sm:$0xff] %v9166_v47 }
 0x127   :  { %v528_v46 = vpop.f32.mrb[6].mxu0  ;;  %11621 = vst [vmem:[#allocation144_spill] sm:$0xff] %v9154_v60 }
 0x128   :  { %v530_v10 = vpop.f32.mrb[7].mxu0  ;;  %v9157_v55 = vadd.f32 %v700_v16, %v528_v46 }
 0x129   :  { %v9160_v50 = vadd.f32 %v704_v14, %v530_v10 }
 0x12a   :  { %11622 = vst [vmem:[#allocation145_spill] sm:$0xff] %v9157_v55 }
 0x12b   :  { %v9130_v61 = vpop.f32.mrb[8].mxu0  ;;  %11623 = vst [vmem:[#allocation146_spill] sm:$0xff] %v9160_v50 }
 0x12c   :  { %v9132_v38 = vpop.f32.mrb[9].mxu0 }
 0x12f   :  { %v9134_v24 = vpop.f32.mrb[10].mxu0 }
 0x130   :  { %v9136_v7 = vpop.f32.mrb[11].mxu0 }
 0x15c   :  { %v882_v52 = vpop.f32.mrb[4].mxu1 }
 0x15d   :  { %v884_v0 = vpop.f32.mrb[5].mxu1  ;;  %v1039_v2 = vrot.slane %v882_v52, 1  ;;  %v1063_v43 = vadd.f32 %v882_v52, %v9152_v62  ;;  %v9172_v52 = vadd.f32 %v696_v45, %v453_v9 }
 0x15e   :  { %v1040_v59 = vrot.slane %v884_v0, 1  ;;  %v1064_v30 = vadd.f32 %v884_v0, %v9154_v60 }
 0x15f   :  { %v1071_v19 = vadd.f32 %v1039_v2, %v9157_v55  ;;  %v5296_v8 = vmul.f32 -1.442695, %v1063_v43  ;;  %11627 = vst [vmem:[#allocation150_spill] sm:$0xff] %v9172_v52 }
 0x160   :  { %v1072_v63 = vadd.f32 %v1040_v59, %v9160_v50  ;;  %v5297_v14 = vmul.f32 -1.442695, %v1064_v30 }
 0x161   :  { %v5302_v10 = vmul.f32 -1.442695, %v1071_v19  ;;  %7895 = vpow2.f32 %v5296_v8 }
 0x162   :  { %v5303_v6 = vmul.f32 -1.442695, %v1072_v63  ;;  %7897 = vpow2.f32 %v5297_v14 }
 0x163   :  { %7899 = vpow2.f32 %v5302_v10 }
 0x164   :  { %7901 = vpow2.f32 %v5303_v6 }
 0x16b   :  { %v811_v44 = vpop.f32.mrb[12].mxu0 }
 0x16c   :  { %v813_v58 = vpop.f32.mrb[13].mxu0  ;;  %v1037_v36 = vrot.slane %v811_v44, 1  ;;  %v1061_v16 = vadd.f32 %v811_v44, %v9163_v31  ;;  %v7896_v44 = vpop.eup %7895 }
 0x16d   :  { %v1038_v48 = vrot.slane %v813_v58, 1  ;;  %v1062_v46 = vadd.f32 %v813_v58, %v9169_v28  ;;  %v7898_v45 = vpop.eup %7897  ;;  %v715_v58 = vsub.s32 6, %v9138_v39  ;;  %v1115_v30 = vadd.f32 1.0, %v7896_v44 }
 0x16e   :  { %v1069_v0 = vadd.f32 %v1037_v36, %v9166_v47  ;;  %v5294_v53 = vmul.f32 -1.442695, %v1061_v16  ;;  %v7900_v9 = vpop.eup %7899  ;;  %v719_v36 = vsub.s32 7, %v9138_v39  ;;  %v1116_v19 = vadd.f32 1.0, %v7898_v45 }
 0x16f   :  { %v1070_v2 = vadd.f32 %v1038_v48, %v9172_v52  ;;  %v5295_v51 = vmul.f32 -1.442695, %v1062_v46  ;;  %v7902_v33 = vpop.eup %7901  ;;  %v1121_v8 = vadd.f32 1.0, %v7900_v9  ;;  %v716_v10 = vrot.slane %v9145_v12, %v715_v58 }
 0x170   :  { %v5300_v59 = vmul.f32 -1.442695, %v1069_v0  ;;  %7903 = vpow2.f32 %v5294_v53  ;;  %v1122_v14 = vadd.f32 1.0, %v7902_v33  ;;  %v720_v6 = vrot.slane %v9145_v12, %v719_v36 }
 0x171   :  { %v5301_v43 = vmul.f32 -1.442695, %v1070_v2  ;;  %v9188_v45 = vadd.f32 %v716_v10, %v9126_v5 }
 0x172   :  { %7905 = vpow2.f32 %v5300_v59 }
 0x173   :  { %7907 = vpow2.f32 %v5295_v51  ;;  %v9182_v51 = vadd.f32 %v716_v10, %v9122_v35  ;;  %11630 = vst [vmem:[#allocation153_spill] sm:$0xff] %v9188_v45 }
 0x174   :  { %7909 = vpow2.f32 %v5301_v43  ;;  %v9185_v43 = vadd.f32 %v720_v6, %v9124_v18 }
 0x175   :  { %7911 = vrcp.f32 %v1115_v30  ;;  %11628 = vst [vmem:[#allocation151_spill] sm:$0xff] %v9182_v51  ;;  %v9192_v30 = vadd.f32 %v720_v6, %v9128_v56 }
 0x176   :  { %7913 = vrcp.f32 %v1116_v19  ;;  %11629 = vst [vmem:[#allocation152_spill] sm:$0xff] %v9185_v43  ;;  %v707_v19 = vsub.s32 4, %v9138_v39 }
 0x177   :  { %7915 = vrcp.f32 %v1121_v8  ;;  %11631 = vst [vmem:[#allocation154_spill] sm:$0xff] %v9192_v30  ;;  %v711_v8 = vsub.s32 5, %v9138_v39 }
 0x178   :  { %7917 = vrcp.f32 %v1122_v14 }
 0x17a   :  { %v7904_v48 = vpop.eup %7903 }
 0x17b   :  { %v1113_v46 = vadd.f32 1.0, %v7904_v48 }
 0x17c   :  { %v7906_v63 = vpop.eup %7905 }
 0x17d   :  { %v7908_v16 = vpop.eup %7907  ;;  %v1119_v2 = vadd.f32 1.0, %v7906_v63  ;;  %7919 = vrcp.f32 %v1113_v46  ;;  %v712_v46 = vrot.slane %v9145_v12, %v711_v8 }
 0x17e   :  { %v7910_v0 = vpop.eup %7909  ;;  %v1114_v53 = vadd.f32 1.0, %v7908_v16 }
 0x17f   :  { %v1120_v59 = vadd.f32 1.0, %v7910_v0  ;;  %7921 = vrcp.f32 %v1119_v2  ;;  %v7912_v5 = vpop.eup %7911  ;;  %v708_v0 = vrot.slane %v9145_v12, %v707_v19 }
 0x180   :  { %7923 = vrcp.f32 %v1114_v53  ;;  %v7914_v63 = vpop.eup %7913 }
 0x181   :  { %7925 = vrcp.f32 %v1120_v59  ;;  %v7916_v56 = vpop.eup %7915  ;;  %v9202_v59 = vadd.f32 %v708_v0, %v9130_v61 }
 0x182   :  { %v7918_v16 = vpop.eup %7917 }
 0x183   :  { %v1156_v19 = vmul.f32 0.0, %v7918_v16 }
 0x187   :  { %v7920_v14 = vpop.eup %7919 }
 0x189   :  { %v7922_v10 = vpop.eup %7921 }
 0x18a   :  { %v7924_v6 = vpop.eup %7923 }
 0x18b   :  { %v7926_v2 = vpop.eup %7925 }
 0x19c   :  { %v1024_v44 = vpop.f32.mrb[6].mxu1 }
 0x19d   :  { %v1043_v9 = vrot.slane %v1024_v44, 1  ;;  %v1067_v33 = vadd.f32 %v1024_v44, %v9182_v51  ;;  %v1026_v58 = vpop.f32.mrb[7].mxu1 }
 0x19e   :  { %v1044_v35 = vrot.slane %v1026_v58, 1  ;;  %v1068_v48 = vadd.f32 %v1026_v58, %v9185_v43  ;;  %v9208_v58 = vadd.f32 %v708_v0, %v9134_v24 }
 0x19f   :  { %v1075_v18 = vadd.f32 %v1043_v9, %v9188_v45  ;;  %7927 = vtanh.f32 %v1067_v33  ;;  %v9205_v9 = vadd.f32 %v712_v46, %v9132_v38  ;;  %v1153_v33 = vmul.f32 0.0, %v7912_v5 }
 0x1a0   :  { %v1076_v36 = vadd.f32 %v1044_v35, %v9192_v30  ;;  %7929 = vtanh.f32 %v1068_v48  ;;  %11632 = vst [vmem:[#allocation155_spill] sm:$0xff] %v9208_v58 }
 0x1a1   :  { %7931 = vtanh.f32 %v1075_v18  ;;  %v1155_v18 = vmul.f32 0.0, %v7916_v56  ;;  %v9217_v56 = vadd.f32 %v712_v46, %v9136_v7 }
 0x1a2   :  { %7933 = vtanh.f32 %v1076_v36  ;;  %v1154_v36 = vmul.f32 0.0, %v7914_v63 }
 0x1a3   :  { %11633 = vst [vmem:[#allocation156_spill] sm:$0xff] %v9217_v56 }
 0x1a9   :  { %v7928_v53 = vpop.eup %7927 }
 0x1aa   :  { %v7930_v44 = vpop.eup %7929  ;;  %v1157_v35 = vmul.f32 %v7928_v53, %v7920_v14 }
 0x1ab   :  { %v7932_v48 = vpop.eup %7931  ;;  %v1158_v12 = vmul.f32 %v7930_v44, %v7924_v6  ;;  %v953_v8 = vpop.f32.mrb[14].mxu0 }
 0x1ac   :  { %v7934_v39 = vpop.eup %7933  ;;  %v1159_v43 = vmul.f32 %v7932_v48, %v7922_v10  ;;  %v9210_v51 = vadd.f32 %v1157_v35, %v1153_v33  ;;  %v1041_v61 = vrot.slane %v953_v8, 1  ;;  %v1065_v30 = vadd.f32 %v953_v8, %v9202_v59  ;;  %v955_v38 = vpop.f32.mrb[15].mxu0 }
 0x1ad   :  { %v1160_v45 = vmul.f32 %v7934_v39, %v7926_v2  ;;  %v9213_v5 = vadd.f32 %v1158_v12, %v1154_v36  ;;  %v1042_v24 = vrot.slane %v955_v38, 1  ;;  %v1066_v14 = vadd.f32 %v955_v38, %v9205_v9 }
 0x1ae   :  { %v9219_v63 = vadd.f32 %v1159_v43, %v1155_v18  ;;  %v1073_v16 = vadd.f32 %v1041_v61, %v9208_v58  ;;  %v5298_v10 = vmul.f32 -1.442695, %v1065_v30 }
 0x1af   :  { %v9222_v0 = vadd.f32 %v1160_v45, %v1156_v19  ;;  %v1074_v53 = vadd.f32 %v1042_v24, %v9217_v56  ;;  %v5299_v44 = vmul.f32 -1.442695, %v1066_v14 }
 0x1b0   :  { %v5304_v6 = vmul.f32 -1.442695, %v1073_v16  ;;  %7935 = vpow2.f32 %v5298_v10 }
 0x1b1   :  { %v5305_v39 = vmul.f32 -1.442695, %v1074_v53 }
 0x1b2   :  { %7937 = vpow2.f32 %v5304_v6 }
 0x1b3   :  { %7939 = vpow2.f32 %v5299_v44 }
 0x1b4   :  { %7941 = vpow2.f32 %v5305_v39 }
 0x1b5   :  { %7943 = vtanh.f32 %v9210_v51 }
 0x1b6   :  { %7945 = vtanh.f32 %v9213_v5 }
 0x1b7   :  { %7947 = vtanh.f32 %v9219_v63 }
 0x1b8   :  { %7949 = vtanh.f32 %v9222_v0 }
 0x1ba   :  { %v7936_v7 = vpop.eup %7935 }
 0x1bb   :  { %v1117_v45 = vadd.f32 1.0, %v7936_v7  ;;  %v11638_v7 = vld [vmem:[#allocation88_spill] sm:$0xff] }
 0x1bc   :  { %v7938_v43 = vpop.eup %7937 }
 0x1bd   :  { %v7940_v46 = vpop.eup %7939  ;;  %v1123_v30 = vadd.f32 1.0, %v7938_v43  ;;  %7951 = vrcp.f32 %v1117_v45  ;;  %v11639_v43 = vld [vmem:[#allocation73_spill] sm:$0xff]  ;;  %v11640_v45 = vld [vmem:[#allocation90_spill] sm:$0xff] }
 0x1be   :  { %v7942_v2 = vpop.eup %7941  ;;  %v1118_v33 = vadd.f32 1.0, %v7940_v46  ;;  %v11641_v46 = vld [vmem:[#allocation75_spill] sm:$0xff] }
 0x1bf   :  { %7953 = vrcp.f32 %v1123_v30  ;;  %v1124_v35 = vadd.f32 1.0, %v7942_v2  ;;  %v7944_v48 = vpop.eup %7943  ;;  %v11642_v30 = vld [vmem:[#allocation92_spill] sm:$0xff]  ;;  %v11643_v2 = vld [vmem:[#allocation77_spill] sm:$0xff] }
 0x1c0   :  { %7955 = vrcp.f32 %v1118_v33  ;;  %v7946_v18 = vpop.eup %7945  ;;  %v11644_v33 = vld [vmem:[#allocation94_spill] sm:$0xff] }
 0x1c1   :  { %7957 = vrcp.f32 %v1124_v35  ;;  %v7948_v36 = vpop.eup %7947  ;;  %v11645_v35 = vld [vmem:[#allocation79_spill] sm:$0xff] }
 0x1c2   :  { %v7950_v19 = vpop.eup %7949 }
 0x1c7   :  { %v7952_v12 = vpop.eup %7951 }
 0x1c8   :  { %v9229_v61 = vmul.f32 %v7952_v12, %v7944_v48  ;;  %v11646_v48 = vld [vmem:[#allocation96_spill] sm:$0xff] }
 0x1c9   :  { %v7954_v8 = vpop.eup %7953  ;;  %v11650_v12 = vld [vmem:[#allocation100_spill] sm:$0xff] }
 0x1ca   :  { %11634 = vst [vmem:[#allocation157_spill] sm:$0xff] %v9229_v61  ;;  %v7956_v38 = vpop.eup %7955  ;;  %v9231_v24 = vmul.f32 %v7954_v8, %v7948_v36  ;;  %v11648_v36 = vld [vmem:[#allocation98_spill] sm:$0xff]  ;;  %v11651_v8 = vld [vmem:[#allocation85_spill] sm:$0xff] }
 0x1cb   :  { %v7958_v14 = vpop.eup %7957  ;;  %v9233_v16 = vmul.f32 %v7956_v38, %v7946_v18  ;;  %v11647_v18 = vld [vmem:[#allocation81_spill] sm:$0xff]  ;;  %v11652_v38 = vld [vmem:[#allocation102_spill] sm:$0xff] }
 0x1cc   :  { %11635 = vst [vmem:[#allocation158_spill] sm:$0xff] %v9231_v24  ;;  %v9235_v10 = vmul.f32 %v7958_v14, %v7950_v19  ;;  %v1177_v6 = vrot.slane %v9231_v24, 7  ;;  %v11649_v19 = vld [vmem:[#allocation83_spill] sm:$0xff]  ;;  %v11659_v24 = vld [vmem:[#allocation93_spill] sm:$0xff] }
 0x1cd   :  { %11636 = vst [vmem:[#allocation159_spill] sm:$0xff] %v9233_v16  ;;  %v11653_v14 = vld [vmem:[#allocation87_spill] sm:$0xff] }
 0x1ce   :  { %11637 = vst [vmem:[#allocation160_spill] sm:$0xff] %v9235_v10  ;;  %v1180_v53 = vrot.slane %v9235_v10, 7  ;;  %v9243_v39 = vsel %vm1178_vm1, %v1177_v6, %v9229_v61  ;;  %v11654_v6 = vld [vmem:[#allocation104_spill] sm:$0xff]  ;;  %v11657_v10 = vld [vmem:[#allocation91_spill] sm:$0xff]  ;;  %v11660_v61 = vld [vmem:[#allocation110_spill] sm:$0xff] }
 0x1d0   :  { %v1181_v44 = vsel %vm1178_vm1, %v1180_v53, %v9233_v16  ;;  %v11655_v53 = vld [vmem:[#allocation89_spill] sm:$0xff]  ;;  %v11658_v16 = vld [vmem:[#allocation108_spill] sm:$0xff] }
 0x1d1   :  { %1248 = vmatprep.mubr.f32.mxu0 %v1181_v44  ;;  %1319 = vmatprep.mubr.f32.mxu1 %v1181_v44 }
 0x1d2   :  { %1249 = vmatmul.mubr.f32.vlgmr.msra.gmra.mrb[16].mxu0 %v9243_v39  ;;  %1320 = vmatmul.mubr.f32.vlgmr.msra.gmra.mrb[8].mxu1 %v9243_v39 }
 0x1d3   :  { %6028 = vmatpush1.bf16.msra.mxu0 %v11638_v7  ;;  %6092 = vmatpush1.bf16.msra.mxu1 %v11639_v43 }
 0x1d4   :  { %1390 = vmatprep.mubr.f32.mxu0 %v1181_v44  ;;  %1461 = vmatprep.mubr.f32.mxu1 %v1181_v44  ;;  %v11656_v44 = vld [vmem:[#allocation106_spill] sm:$0xff] }
 0x1d5   :  { %6030 = vmatprep.subr.bf16.mxu0 %v11640_v45  ;;  %6094 = vmatprep.subr.bf16.mxu1 %v11641_v46 }
 0x1d7   :  { %6032 = vmatpush1.bf16.msra.mxu0 %v11642_v30  ;;  %6096 = vmatpush1.bf16.msra.mxu1 %v11643_v2 }
 0x1d8   :  { %6034 = vmatprep.subr.bf16.mxu0 %v11644_v33  ;;  %6098 = vmatprep.subr.bf16.mxu1 %v11645_v35 }
 0x1db   :  { %6036 = vmatpush1.bf16.msra.mxu0 %v11646_v48  ;;  %6100 = vmatpush1.bf16.msra.mxu1 %v11647_v18 }
 0x1dc   :  { %6038 = vmatprep.subr.bf16.mxu0 %v11648_v36  ;;  %6102 = vmatprep.subr.bf16.mxu1 %v11649_v19 }
 0x1df   :  { %6040 = vmatpush1.bf16.msra.mxu0 %v11650_v12  ;;  %6104 = vmatpush1.bf16.msra.mxu1 %v11651_v8  ;;  %v11661_v12 = vld [vmem:[#allocation95_spill] sm:$0xff]  ;;  %v11662_v8 = vld [vmem:[#allocation112_spill] sm:$0xff] }
 0x1e0   :  { %6042 = vmatprep.subr.bf16.mxu0 %v11652_v38  ;;  %6106 = vmatprep.subr.bf16.mxu1 %v11653_v14  ;;  %v11663_v38 = vld [vmem:[#allocation97_spill] sm:$0xff]  ;;  %v11664_v14 = vld [vmem:[#allocation114_spill] sm:$0xff] }
 0x1e3   :  { %6044 = vmatpush1.bf16.msra.mxu0 %v11654_v6  ;;  %6108 = vmatpush1.bf16.msra.mxu1 %v11655_v53  ;;  %v11665_v6 = vld [vmem:[#allocation99_spill] sm:$0xff]  ;;  %v11666_v53 = vld [vmem:[#allocation116_spill] sm:$0xff] }
 0x1e4   :  { %6046 = vmatprep.subr.bf16.mxu0 %v11656_v44  ;;  %6110 = vmatprep.subr.bf16.mxu1 %v11657_v10  ;;  %v11667_v44 = vld [vmem:[#allocation101_spill] sm:$0xff]  ;;  %v11668_v10 = vld [vmem:[#allocation118_spill] sm:$0xff] }
 0x1e7   :  { %6048 = vmatpush1.bf16.msra.mxu0 %v11658_v16  ;;  %6112 = vmatpush1.bf16.msra.mxu1 %v11659_v24  ;;  %v11669_v16 = vld [vmem:[#allocation103_spill] sm:$0xff]  ;;  %v11670_v24 = vld [vmem:[#allocation120_spill] sm:$0xff] }
 0x1e8   :  { %6050 = vmatprep.subr.bf16.mxu0 %v11660_v61  ;;  %6114 = vmatprep.subr.bf16.mxu1 %v11661_v12  ;;  %v11671_v61 = vld [vmem:[#allocation105_spill] sm:$0xff]  ;;  %v11672_v12 = vld [vmem:[#allocation122_spill] sm:$0xff] }
 0x1eb   :  { %6052 = vmatpush1.bf16.msra.mxu0 %v11662_v8  ;;  %6116 = vmatpush1.bf16.msra.mxu1 %v11663_v38  ;;  %v11673_v8 = vld [vmem:[#allocation107_spill] sm:$0xff]  ;;  %v11674_v38 = vld [vmem:[#allocation124_spill] sm:$0xff] }
 0x1ec   :  { %6054 = vmatprep.subr.bf16.mxu0 %v11664_v14  ;;  %6118 = vmatprep.subr.bf16.mxu1 %v11665_v6  ;;  %v11675_v14 = vld [vmem:[#allocation109_spill] sm:$0xff] }
 0x1ef   :  { %6056 = vmatpush1.bf16.msra.mxu0 %v11666_v53  ;;  %6120 = vmatpush1.bf16.msra.mxu1 %v11667_v44  ;;  %v11676_v53 = vld [vmem:[#allocation111_spill] sm:$0xff] }
 0x1f0   :  { %6058 = vmatprep.subr.bf16.mxu0 %v11668_v10  ;;  %6122 = vmatprep.subr.bf16.mxu1 %v11669_v16  ;;  %v11677_v10 = vld [vmem:[#allocation113_spill] sm:$0xff] }
 0x1f3   :  { %6060 = vmatpush1.bf16.msra.mxu0 %v11670_v24  ;;  %6124 = vmatpush1.bf16.msra.mxu1 %v11671_v61  ;;  %v11678_v24 = vld [vmem:[#allocation115_spill] sm:$0xff] }
 0x1f4   :  { %6062 = vmatprep.subr.bf16.mxu0 %v11672_v12  ;;  %6126 = vmatprep.subr.bf16.mxu1 %v11673_v8  ;;  %v11679_v12 = vld [vmem:[#allocation117_spill] sm:$0xff] }
 0x1f7   :  { %6064 = vmatpush1.bf16.msra.mxu0 %v11674_v38  ;;  %6128 = vmatpush1.bf16.msra.mxu1 %v11675_v14  ;;  %v11680_v38 = vld [vmem:[#allocation119_spill] sm:$0xff] }
 0x1f8   :  { %6066 = vmatprep.subr.bf16.mxu0 %v9003_v32  ;;  %6130 = vmatprep.subr.bf16.mxu1 %v11676_v53  ;;  %v11681_v32 = vld [vmem:[#allocation121_spill] sm:$0xff] }
 0x1fb   :  { %6068 = vmatpush1.bf16.msra.mxu0 %v9009_v26  ;;  %6132 = vmatpush1.bf16.msra.mxu1 %v11677_v10  ;;  %v11682_v26 = vld [vmem:[#allocation123_spill] sm:$0xff] }
 0x1fc   :  { %6070 = vmatprep.subr.bf16.mxu0 %v9015_v27  ;;  %6134 = vmatprep.subr.bf16.mxu1 %v11678_v24 }
 0x1ff   :  { %6072 = vmatpush1.bf16.msra.mxu0 %v9021_v34  ;;  %6136 = vmatpush1.bf16.msra.mxu1 %v11679_v12 }
 0x200   :  { %6074 = vmatprep.subr.bf16.mxu0 %v9027_v22  ;;  %6138 = vmatprep.subr.bf16.mxu1 %v11680_v38 }
 0x203   :  { %6076 = vmatpush1.bf16.msra.mxu0 %v9031_v20  ;;  %6140 = vmatpush1.bf16.msra.mxu1 %v11681_v32  ;;  %v11683_v20 = vld [vmem:[#allocation131_spill] sm:$0xff] }
 0x204   :  { %6078 = vmatprep.subr.bf16.mxu0 %v9035_v4  ;;  %6142 = vmatprep.subr.bf16.mxu1 %v11682_v26  ;;  %v11684_v4 = vld [vmem:[#allocation133_spill] sm:$0xff] }
 0x207   :  { %6080 = vmatpush1.bf16.msra.mxu0 %v9040_v23  ;;  %6144 = vmatpush1.bf16.msra.mxu1 %v9001_v42  ;;  %v11685_v23 = vld [vmem:[#allocation14_spill] sm:$0xff] }
 0x208   :  { %6082 = vmatprep.subr.bf16.mxu0 %v9043_v13  ;;  %6146 = vmatprep.subr.bf16.mxu1 %v9006_v57 }
 0x20b   :  { %6084 = vmatpush1.bf16.msra.mxu0 %v9048_v21  ;;  %6148 = vmatpush1.bf16.msra.mxu1 %v9013_v54 }
 0x20c   :  { %6086 = vmatprep.subr.bf16.mxu0 %v9051_v41  ;;  %6150 = vmatprep.subr.bf16.mxu1 %v11683_v20 }
 0x20f   :  { %6088 = vmatpush1.bf16.msra.mxu0 %v9056_v11  ;;  %6152 = vmatpush1.bf16.msra.mxu1 %v11684_v4 }
 0x210   :  { %6154 = vmatprep.subr.bf16.mxu0 %v8669_v49  ;;  %6218 = vmatprep.subr.bf16.mxu1 %v11685_v23  ;;  %v11686_v23 = vld [vmem:[#allocation32_spill] sm:$0xff]  ;;  %v11687_v49 = vld [vmem:[#allocation19_spill] sm:$0xff] }
 0x212   :  { %1391 = vmatmul.mubr.f32.vlgmr.msra.gmra.mrb[18].mxu0 %v9243_v39  ;;  %1462 = vmatmul.mubr.f32.vlgmr.msra.gmra.mrb[10].mxu1 %v9243_v39  ;;  %v11688_v39 = vld [vmem:[#allocation34_spill] sm:$0xff] }
 0x213   :  { %6156 = vmatpush1.bf16.msra.mxu0 %v8688_v1  ;;  %6220 = vmatpush1.bf16.msra.mxu1 %v8639_v25  ;;  %v11689_v1 = vld [vmem:[#allocation21_spill] sm:$0xff]  ;;  %v11690_v25 = vld [vmem:[#allocation36_spill] sm:$0xff] }
 0x214   :  { %6158 = vmatprep.subr.bf16.mxu0 %v8693_v3  ;;  %6222 = vmatprep.subr.bf16.mxu1 %v8644_v29  ;;  %v11691_v3 = vld [vmem:[#allocation22_spill] sm:$0xff] }
 0x215   :  { %v11692_v29 = vld [vmem:[#allocation38_spill] sm:$0xff] }
 0x217   :  { %6160 = vmatpush1.bf16.msra.mxu0 %v8701_v15  ;;  %6224 = vmatpush1.bf16.msra.mxu1 %v8655_v37  ;;  %v11693_v15 = vld [vmem:[#allocation23_spill] sm:$0xff]  ;;  %v11694_v37 = vld [vmem:[#allocation40_spill] sm:$0xff] }
 0x218   :  { %6162 = vmatprep.subr.bf16.mxu0 %v8708_v17  ;;  %6226 = vmatprep.subr.bf16.mxu1 %v8658_v40  ;;  %v11695_v17 = vld [vmem:[#allocation25_spill] sm:$0xff]  ;;  %v11696_v40 = vld [vmem:[#allocation42_spill] sm:$0xff] }
 0x21b   :  { %6164 = vmatpush1.bf16.msra.mxu0 %v11686_v23  ;;  %6228 = vmatpush1.bf16.msra.mxu1 %v11687_v49  ;;  %v11697_v23 = vld [vmem:[#allocation27_spill] sm:$0xff]  ;;  %v11698_v49 = vld [vmem:[#allocation44_spill] sm:$0xff] }
 0x21c   :  { %6166 = vmatprep.subr.bf16.mxu0 %v11688_v39  ;;  %6230 = vmatprep.subr.bf16.mxu1 %v11689_v1  ;;  %v11699_v39 = vld [vmem:[#allocation29_spill] sm:$0xff]  ;;  %v11700_v1 = vld [vmem:[#allocation46_spill] sm:$0xff] }
 0x21f   :  { %6168 = vmatpush1.bf16.msra.mxu0 %v11690_v25  ;;  %6232 = vmatpush1.bf16.msra.mxu1 %v11691_v3  ;;  %v11701_v25 = vld [vmem:[#allocation31_spill] sm:$0xff]  ;;  %v11702_v3 = vld [vmem:[#allocation48_spill] sm:$0xff] }
 0x220   :  { %6170 = vmatprep.subr.bf16.mxu0 %v11692_v29  ;;  %6234 = vmatprep.subr.bf16.mxu1 %v11693_v15  ;;  %v11703_v29 = vld [vmem:[#allocation33_spill] sm:$0xff]  ;;  %v11704_v15 = vld [vmem:[#allocation50_spill] sm:$0xff] }
 0x223   :  { %6172 = vmatpush1.bf16.msra.mxu0 %v11694_v37  ;;  %6236 = vmatpush1.bf16.msra.mxu1 %v11695_v17  ;;  %v11705_v37 = vld [vmem:[#allocation35_spill] sm:$0xff]  ;;  %v11706_v17 = vld [vmem:[#allocation52_spill] sm:$0xff] }
 0x224   :  { %6174 = vmatprep.subr.bf16.mxu0 %v11696_v40  ;;  %6238 = vmatprep.subr.bf16.mxu1 %v11697_v23  ;;  %v11707_v40 = vld [vmem:[#allocation37_spill] sm:$0xff]  ;;  %v11708_v23 = vld [vmem:[#allocation54_spill] sm:$0xff] }
 0x227   :  { %6176 = vmatpush1.bf16.msra.mxu0 %v11698_v49  ;;  %6240 = vmatpush1.bf16.msra.mxu1 %v11699_v39  ;;  %v11709_v49 = vld [vmem:[#allocation39_spill] sm:$0xff]  ;;  %v11710_v39 = vld [vmem:[#allocation56_spill] sm:$0xff] }
 0x228   :  { %6178 = vmatprep.subr.bf16.mxu0 %v11700_v1  ;;  %6242 = vmatprep.subr.bf16.mxu1 %v11701_v25  ;;  %v11711_v1 = vld [vmem:[#allocation41_spill] sm:$0xff]  ;;  %v11712_v25 = vld [vmem:[#allocation58_spill] sm:$0xff] }
 0x22b   :  { %6180 = vmatpush1.bf16.msra.mxu0 %v11702_v3  ;;  %6244 = vmatpush1.bf16.msra.mxu1 %v11703_v29  ;;  %v11713_v3 = vld [vmem:[#allocation43_spill] sm:$0xff]  ;;  %v11714_v29 = vld [vmem:[#allocation60_spill] sm:$0xff] }
 0x22c   :  { %6182 = vmatprep.subr.bf16.mxu0 %v11704_v15  ;;  %6246 = vmatprep.subr.bf16.mxu1 %v11705_v37  ;;  %v11715_v15 = vld [vmem:[#allocation45_spill] sm:$0xff]  ;;  %v11716_v37 = vld [vmem:[#allocation62_spill] sm:$0xff] }
 0x22f   :  { %6184 = vmatpush1.bf16.msra.mxu0 %v11706_v17  ;;  %6248 = vmatpush1.bf16.msra.mxu1 %v11707_v40  ;;  %v11717_v17 = vld [vmem:[#allocation47_spill] sm:$0xff]  ;;  %v11718_v40 = vld [vmem:[#allocation64_spill] sm:$0xff] }
 0x230   :  { %6186 = vmatprep.subr.bf16.mxu0 %v11708_v23  ;;  %6250 = vmatprep.subr.bf16.mxu1 %v11709_v49  ;;  %v11719_v23 = vld [vmem:[#allocation49_spill] sm:$0xff]  ;;  %v11720_v49 = vld [vmem:[#allocation66_spill] sm:$0xff] }
 0x233   :  { %6188 = vmatpush1.bf16.msra.mxu0 %v11710_v39  ;;  %6252 = vmatpush1.bf16.msra.mxu1 %v11711_v1  ;;  %v11721_v39 = vld [vmem:[#allocation51_spill] sm:$0xff]  ;;  %v11722_v1 = vld [vmem:[#allocation68_spill] sm:$0xff] }
 0x234   :  { %6190 = vmatprep.subr.bf16.mxu0 %v11712_v25  ;;  %6254 = vmatprep.subr.bf16.mxu1 %v11713_v3  ;;  %v11723_v25 = vld [vmem:[#allocation53_spill] sm:$0xff]  ;;  %v11724_v3 = vld [vmem:[#allocation70_spill] sm:$0xff] }
 0x237   :  { %6192 = vmatpush1.bf16.msra.mxu0 %v11714_v29  ;;  %6256 = vmatpush1.bf16.msra.mxu1 %v11715_v15  ;;  %v11725_v29 = vld [vmem:[#allocation55_spill] sm:$0xff]  ;;  %v11726_v15 = vld [vmem:[#allocation72_spill] sm:$0xff] }
 0x238   :  { %6194 = vmatprep.subr.bf16.mxu0 %v11716_v37  ;;  %6258 = vmatprep.subr.bf16.mxu1 %v11717_v17  ;;  %v11727_v37 = vld [vmem:[#allocation57_spill] sm:$0xff]  ;;  %v11728_v17 = vld [vmem:[#allocation74_spill] sm:$0xff] }
 0x23b   :  { %6196 = vmatpush1.bf16.msra.mxu0 %v11718_v40  ;;  %6260 = vmatpush1.bf16.msra.mxu1 %v11719_v23  ;;  %v11729_v40 = vld [vmem:[#allocation59_spill] sm:$0xff]  ;;  %v11730_v23 = vld [vmem:[#allocation76_spill] sm:$0xff] }
 0x23c   :  { %6198 = vmatprep.subr.bf16.mxu0 %v11720_v49  ;;  %6262 = vmatprep.subr.bf16.mxu1 %v11721_v39  ;;  %v11731_v49 = vld [vmem:[#allocation61_spill] sm:$0xff]  ;;  %v11732_v39 = vld [vmem:[#allocation78_spill] sm:$0xff] }
 0x23f   :  { %6200 = vmatpush1.bf16.msra.mxu0 %v11722_v1  ;;  %6264 = vmatpush1.bf16.msra.mxu1 %v11723_v25  ;;  %v11733_v1 = vld [vmem:[#allocation63_spill] sm:$0xff]  ;;  %v11734_v25 = vld [vmem:[#allocation80_spill] sm:$0xff] }
 0x240   :  { %6202 = vmatprep.subr.bf16.mxu0 %v11724_v3  ;;  %6266 = vmatprep.subr.bf16.mxu1 %v11725_v29  ;;  %v11735_v3 = vld [vmem:[#allocation65_spill] sm:$0xff]  ;;  %v11736_v29 = vld [vmem:[#allocation82_spill] sm:$0xff] }
 0x243   :  { %6204 = vmatpush1.bf16.msra.mxu0 %v11726_v15  ;;  %6268 = vmatpush1.bf16.msra.mxu1 %v11727_v37  ;;  %v11737_v15 = vld [vmem:[#allocation67_spill] sm:$0xff]  ;;  %v11738_v37 = vld [vmem:[#allocation84_spill] sm:$0xff] }
 0x244   :  { %6206 = vmatprep.subr.bf16.mxu0 %v11728_v17  ;;  %6270 = vmatprep.subr.bf16.mxu1 %v11729_v40  ;;  %v11739_v17 = vld [vmem:[#allocation69_spill] sm:$0xff]  ;;  %v11740_v40 = vld [vmem:[#allocation86_spill] sm:$0xff] }
 0x247   :  { %6208 = vmatpush1.bf16.msra.mxu0 %v11730_v23  ;;  %6272 = vmatpush1.bf16.msra.mxu1 %v11731_v49  ;;  %v11741_v23 = vld [vmem:[#allocation71_spill] sm:$0xff] }
 0x248   :  { %6210 = vmatprep.subr.bf16.mxu0 %v11732_v39  ;;  %6274 = vmatprep.subr.bf16.mxu1 %v11733_v1 }
 0x24b   :  { %6212 = vmatpush1.bf16.msra.mxu0 %v11734_v25  ;;  %6276 = vmatpush1.bf16.msra.mxu1 %v11735_v3 }
 0x24c   :  { %6214 = vmatprep.subr.bf16.mxu0 %v11736_v29  ;;  %6278 = vmatprep.subr.bf16.mxu1 %v11737_v15 }
 0x24f   :  { %6216 = vmatpush1.bf16.msra.mxu0 %v11738_v37  ;;  %6280 = vmatpush1.bf16.msra.mxu1 %v11739_v17 }
 0x250   :  { %6282 = vmatprep.subr.bf16.mxu0 %v11740_v40  ;;  %6346 = vmatprep.subr.bf16.mxu1 %v11741_v23 }
 0x2a5   :  { %v1250_v49 = vpop.f32.mrb[16].mxu0  ;;  %v1321_v39 = vpop.f32.mrb[8].mxu1 }
 0x2a6   :  { %v1478_v4 = vrot.slane %v1321_v39, 7  ;;  %v1510_v1 = vadd.f32 %v1321_v39, %v9157_v55  ;;  %v1252_v25 = vpop.f32.mrb[17].mxu0  ;;  %v1323_v11 = vpop.f32.mrb[9].mxu1 }
 0x2a7   :  { %v1479_v3 = vrot.slane %v1323_v11, 7  ;;  %v1511_v37 = vadd.f32 %v1323_v11, %v9160_v50 }
 0x2a8   :  { %v1502_v29 = vadd.f32 %v1478_v4, %v9152_v62  ;;  %v5314_v20 = vmul.f32 -1.442695, %v1510_v1 }
 0x2a9   :  { %v1503_v15 = vadd.f32 %v1479_v3, %v9154_v60  ;;  %v5315_v23 = vmul.f32 -1.442695, %v1511_v37 }
 0x2aa   :  { %v5308_v17 = vmul.f32 -1.442695, %v1502_v29  ;;  %7959 = vpow2.f32 %v5314_v20  ;;  %v1598_v29 = vrot.slane %v9219_v63, 7  ;;  %v1597_v20 = vrot.slane %v9213_v5, 7 }
 0x2ab   :  { %v5309_v40 = vmul.f32 -1.442695, %v1503_v15  ;;  %v1596_v15 = vrot.slane %v9210_v51, 7 }
 0x2ac   :  { %7961 = vpow2.f32 %v5308_v17 }
 0x2ad   :  { %7963 = vpow2.f32 %v5309_v40 }
 0x2ae   :  { %7965 = vpow2.f32 %v5315_v23 }
 0x2b4   :  { %v7960_v41 = vpop.eup %7959 }
 0x2b5   :  { %v1560_v54 = vadd.f32 1.0, %v7960_v41 }
 0x2b6   :  { %v7962_v39 = vpop.eup %7961 }
 0x2b7   :  { %v1554_v55 = vadd.f32 1.0, %v7962_v39  ;;  %7967 = vrcp.f32 %v1560_v54  ;;  %v7964_v21 = vpop.eup %7963  ;;  %v1476_v54 = vrot.slane %v1250_v49, 7 }
 0x2b8   :  { %v7966_v4 = vpop.eup %7965  ;;  %v1555_v1 = vadd.f32 1.0, %v7964_v21  ;;  %v1599_v21 = vrot.slane %v9222_v0, 7 }
 0x2b9   :  { %7969 = vrcp.f32 %v1554_v55  ;;  %v1561_v62 = vadd.f32 1.0, %v7966_v4  ;;  %v1477_v55 = vrot.slane %v1252_v25, 7  ;;  %v1500_v51 = vadd.f32 %v1476_v54, %v9163_v31 }
 0x2ba   :  { %7971 = vrcp.f32 %v1555_v1  ;;  %v1509_v4 = vadd.f32 %v1252_v25, %v9172_v52 }
 0x2bb   :  { %7973 = vrcp.f32 %v1561_v62  ;;  %v1508_v62 = vadd.f32 %v1250_v49, %v9166_v47  ;;  %v1501_v39 = vadd.f32 %v1477_v55, %v9169_v28  ;;  %v5306_v5 = vmul.f32 -1.442695, %v1500_v51 }
 0x2bd   :  { %v5312_v1 = vmul.f32 -1.442695, %v1508_v62 }
 0x2bf   :  { %7975 = vpow2.f32 %v5312_v1 }
 0x2c0   :  { %7977 = vpow2.f32 %v5306_v5 }
 0x2c1   :  { %v7968_v3 = vpop.eup %7967 }
 0x2c2   :  { %v9383_v37 = vmul.f32 %v7968_v3, %v1598_v29  ;;  %v5307_v29 = vmul.f32 -1.442695, %v1501_v39  ;;  %v5313_v3 = vmul.f32 -1.442695, %v1509_v4  ;;  %v11742_v39 = vld [vmem:[#allocation153_spill] sm:$0xff] }
 0x2c3   :  { %v7970_v40 = vpop.eup %7969 }
 0x2c4   :  { %v9385_v17 = vmul.f32 %v7970_v40, %v1596_v15  ;;  %v7972_v23 = vpop.eup %7971  ;;  %7979 = vpow2.f32 %v5307_v29 }
 0x2c5   :  { %v7974_v41 = vpop.eup %7973  ;;  %v9389_v11 = vmul.f32 %v7972_v23, %v1597_v20  ;;  %7981 = vpow2.f32 %v5313_v3 }
 0x2c6   :  { %v9392_v63 = vmul.f32 %v7974_v41, %v1599_v21 }
 0x2c9   :  { %v7976_v0 = vpop.eup %7975 }
 0x2ca   :  { %v7978_v15 = vpop.eup %7977  ;;  %v1558_v20 = vadd.f32 1.0, %v7976_v0 }
 0x2cb   :  { %v1552_v23 = vadd.f32 1.0, %v7978_v15  ;;  %v11743_v15 = vld [vmem:[#allocation154_spill] sm:$0xff] }
 0x2cc   :  { %7983 = vrcp.f32 %v1558_v20 }
 0x2cd   :  { %7985 = vrcp.f32 %v1552_v23  ;;  %v11744_v23 = vld [vmem:[#allocation151_spill] sm:$0xff] }
 0x2ce   :  { %v7980_v40 = vpop.eup %7979 }
 0x2cf   :  { %v7982_v49 = vpop.eup %7981  ;;  %v1553_v21 = vadd.f32 1.0, %v7980_v40 }
 0x2d0   :  { %v1559_v54 = vadd.f32 1.0, %v7982_v49 }
 0x2d1   :  { %7987 = vrcp.f32 %v1553_v21 }
 0x2d2   :  { %7989 = vrcp.f32 %v1559_v54 }
 0x2e5   :  { %v1392_v25 = vpop.f32.mrb[18].mxu0  ;;  %v1463_v55 = vpop.f32.mrb[10].mxu1 }
 0x2e6   :  { %v1480_v41 = vrot.slane %v1392_v25, 7  ;;  %v1512_v62 = vadd.f32 %v1392_v25, %v9208_v58  ;;  %v1482_v51 = vrot.slane %v1463_v55, 7  ;;  %v1514_v4 = vadd.f32 %v1463_v55, %v11742_v39  ;;  %v1394_v1 = vpop.f32.mrb[19].mxu0  ;;  %v1465_v5 = vpop.f32.mrb[11].mxu1  ;;  %v11745_v58 = vld [vmem:[#allocation152_spill] sm:$0xff] }
 0x2e7   :  { %v1481_v29 = vrot.slane %v1394_v1, 7  ;;  %v1513_v3 = vadd.f32 %v1394_v1, %v9217_v56  ;;  %v1483_v0 = vrot.slane %v1465_v5, 7  ;;  %v1515_v40 = vadd.f32 %v1465_v5, %v11743_v15  ;;  %v7984_v1 = vpop.eup %7983 }
 0x2e8   :  { %v1504_v49 = vadd.f32 %v1480_v41, %v9202_v59  ;;  %v5316_v20 = vmul.f32 -1.442695, %v1512_v62  ;;  %v1506_v21 = vadd.f32 %v1482_v51, %v11744_v23  ;;  %7991 = vtanh.f32 %v1514_v4  ;;  %v7986_v56 = vpop.eup %7985 }
 0x2e9   :  { %v1505_v54 = vadd.f32 %v1481_v29, %v9205_v9  ;;  %7993 = vtanh.f32 %v1515_v40  ;;  %v5317_v55 = vmul.f32 -1.442695, %v1513_v3  ;;  %v1507_v52 = vadd.f32 %v1483_v0, %v11745_v58  ;;  %v7988_v5 = vpop.eup %7987 }
 0x2ea   :  { %v5310_v25 = vmul.f32 -1.442695, %v1504_v49  ;;  %7995 = vpow2.f32 %v5316_v20  ;;  %v7990_v41 = vpop.eup %7989 }
 0x2eb   :  { %7997 = vtanh.f32 %v1506_v21  ;;  %v5311_v39 = vmul.f32 -1.442695, %v1505_v54 }
 0x2ec   :  { %7999 = vpow2.f32 %v5310_v25 }
 0x2ed   :  { %8001 = vpow2.f32 %v5311_v39 }
 0x2ee   :  { %8003 = vpow2.f32 %v5317_v55 }
 0x2ef   :  { %8005 = vtanh.f32 %v1507_v52 }
 0x2f2   :  { %v7992_v62 = vpop.eup %7991 }
 0x2f3   :  { %v7994_v51 = vpop.eup %7993  ;;  %v1610_v4 = vmul.f32 %v7992_v62, %v7984_v1 }
 0x2f4   :  { %v7996_v29 = vpop.eup %7995  ;;  %v1611_v40 = vmul.f32 %v7994_v51, %v7990_v41 }
 0x2f5   :  { %v7998_v49 = vpop.eup %7997  ;;  %v1562_v20 = vadd.f32 1.0, %v7996_v29  ;;  %v9406_v3 = vadd.f32 %v1610_v4, %v9383_v37 }
 0x2f6   :  { %v8000_v21 = vpop.eup %7999  ;;  %v1608_v0 = vmul.f32 %v7998_v49, %v7986_v56  ;;  %v9409_v54 = vadd.f32 %v1611_v40, %v9392_v63 }
 0x2f7   :  { %v8002_v39 = vpop.eup %8001  ;;  %v1556_v25 = vadd.f32 1.0, %v8000_v21  ;;  %8007 = vrcp.f32 %v1562_v20 }
 0x2f8   :  { %v8004_v55 = vpop.eup %8003  ;;  %v9412_v52 = vadd.f32 %v1608_v0, %v9385_v17  ;;  %8009 = vtanh.f32 %v9406_v3  ;;  %v1557_v1 = vadd.f32 1.0, %v8002_v39 }
 0x2f9   :  { %v8006_v41 = vpop.eup %8005  ;;  %8011 = vrcp.f32 %v1556_v25  ;;  %v1563_v62 = vadd.f32 1.0, %v8004_v55 }
 0x2fa   :  { %8013 = vtanh.f32 %v9412_v52  ;;  %v1609_v37 = vmul.f32 %v8006_v41, %v7988_v5  ;;  %v11746_v41 = vld [vmem:[#allocation100_spill] sm:$0xff] }
 0x2fb   :  { %8015 = vrcp.f32 %v1557_v1 }
 0x2fc   :  { %8017 = vrcp.f32 %v1563_v62  ;;  %v9417_v56 = vadd.f32 %v1609_v37, %v9389_v11  ;;  %v11747_v62 = vld [vmem:[#allocation85_spill] sm:$0xff]  ;;  %v11748_v37 = vld [vmem:[#allocation102_spill] sm:$0xff] }
 0x2fd   :  { %8019 = vtanh.f32 %v9409_v54 }
 0x2fe   :  { %8021 = vtanh.f32 %v9417_v56 }
 0x301   :  { %v8008_v17 = vpop.eup %8007 }
 0x302   :  { %v8010_v63 = vpop.eup %8009 }
 0x303   :  { %v8012_v51 = vpop.eup %8011  ;;  %v9421_v4 = vmul.f32 %v8010_v63, %v8008_v17  ;;  %v11749_v17 = vld [vmem:[#allocation87_spill] sm:$0xff]  ;;  %v11750_v63 = vld [vmem:[#allocation104_spill] sm:$0xff] }
 0x304   :  { %v8014_v29 = vpop.eup %8013 }
 0x305   :  { %v8016_v40 = vpop.eup %8015  ;;  %v9423_v49 = vmul.f32 %v8014_v29, %v8012_v51  ;;  %v11751_v51 = vld [vmem:[#allocation89_spill] sm:$0xff]  ;;  %v11752_v29 = vld [vmem:[#allocation106_spill] sm:$0xff] }
 0x306   :  { %v8018_v20 = vpop.eup %8017 }
 0x307   :  { %v8020_v5 = vpop.eup %8019  ;;  %v1628_v21 = vrot.slane %v9423_v49, 1 }
 0x308   :  { %v8022_v0 = vpop.eup %8021  ;;  %v9426_v11 = vmul.f32 %v8020_v5, %v8018_v20  ;;  %v11754_v20 = vld [vmem:[#allocation108_spill] sm:$0xff]  ;;  %v11755_v5 = vld [vmem:[#allocation93_spill] sm:$0xff] }
 0x309   :  { %v9428_v39 = vmul.f32 %v8022_v0, %v8016_v40  ;;  %v9432_v25 = vsel %vm1178_vm1, %v9421_v4, %v1628_v21  ;;  %v11753_v40 = vld [vmem:[#allocation91_spill] sm:$0xff]  ;;  %v11756_v21 = vld [vmem:[#allocation110_spill] sm:$0xff] }
 0x30a   :  { %v11757_v0 = vld [vmem:[#allocation95_spill] sm:$0xff] }
 0x30b   :  { %v1630_v55 = vrot.slane %v9428_v39, 1 }
 0x30d   :  { %v1631_v1 = vsel %vm1178_vm1, %v9426_v11, %v1630_v55  ;;  %v11758_v55 = vld [vmem:[#allocation112_spill] sm:$0xff] }
 0x30e   :  { %1698 = vmatprep.mubr.f32.mxu0 %v1631_v1  ;;  %1769 = vmatprep.mubr.f32.mxu1 %v1631_v1 }
 0x30f   :  { %1699 = vmatmul.mubr.f32.vlgmr.msra.gmra.mrb[20].mxu0 %v9432_v25  ;;  %1770 = vmatmul.mubr.f32.vlgmr.msra.gmra.mrb[12].mxu1 %v9432_v25 }
 0x310   :  { %6284 = vmatpush1.bf16.msra.mxu0 %v11638_v7  ;;  %6348 = vmatpush1.bf16.msra.mxu1 %v11639_v43 }
 0x311   :  { %1840 = vmatprep.mubr.f32.mxu0 %v1631_v1  ;;  %1911 = vmatprep.mubr.f32.mxu1 %v1631_v1  ;;  %v11759_v1 = vld [vmem:[#allocation97_spill] sm:$0xff] }
 0x312   :  { %6286 = vmatprep.subr.bf16.mxu0 %v11640_v45  ;;  %6350 = vmatprep.subr.bf16.mxu1 %v11641_v46 }
 0x314   :  { %6288 = vmatpush1.bf16.msra.mxu0 %v11642_v30  ;;  %6352 = vmatpush1.bf16.msra.mxu1 %v11643_v2 }
 0x315   :  { %6290 = vmatprep.subr.bf16.mxu0 %v11644_v33  ;;  %6354 = vmatprep.subr.bf16.mxu1 %v11645_v35 }
 0x318   :  { %6292 = vmatpush1.bf16.msra.mxu0 %v11646_v48  ;;  %6356 = vmatpush1.bf16.msra.mxu1 %v11647_v18 }
 0x319   :  { %6294 = vmatprep.subr.bf16.mxu0 %v11648_v36  ;;  %6358 = vmatprep.subr.bf16.mxu1 %v11649_v19 }
 0x31c   :  { %6296 = vmatpush1.bf16.msra.mxu0 %v11746_v41  ;;  %6360 = vmatpush1.bf16.msra.mxu1 %v11747_v62 }
 0x31d   :  { %6298 = vmatprep.subr.bf16.mxu0 %v11748_v37  ;;  %6362 = vmatprep.subr.bf16.mxu1 %v11749_v17  ;;  %v11760_v17 = vld [vmem:[#allocation114_spill] sm:$0xff] }
 0x320   :  { %6300 = vmatpush1.bf16.msra.mxu0 %v11750_v63  ;;  %6364 = vmatpush1.bf16.msra.mxu1 %v11751_v51  ;;  %v11761_v51 = vld [vmem:[#allocation116_spill] sm:$0xff] }
 0x321   :  { %6302 = vmatprep.subr.bf16.mxu0 %v11752_v29  ;;  %6366 = vmatprep.subr.bf16.mxu1 %v11753_v40  ;;  %v11762_v40 = vld [vmem:[#allocation118_spill] sm:$0xff] }
 0x324   :  { %6304 = vmatpush1.bf16.msra.mxu0 %v11754_v20  ;;  %6368 = vmatpush1.bf16.msra.mxu1 %v11755_v5  ;;  %v11763_v5 = vld [vmem:[#allocation120_spill] sm:$0xff] }
 0x325   :  { %6306 = vmatprep.subr.bf16.mxu0 %v11756_v21  ;;  %6370 = vmatprep.subr.bf16.mxu1 %v11757_v0  ;;  %v11764_v0 = vld [vmem:[#allocation122_spill] sm:$0xff] }
 0x328   :  { %6308 = vmatpush1.bf16.msra.mxu0 %v11758_v55  ;;  %6372 = vmatpush1.bf16.msra.mxu1 %v11759_v1  ;;  %v11765_v1 = vld [vmem:[#allocation124_spill] sm:$0xff] }
 0x329   :  { %6310 = vmatprep.subr.bf16.mxu0 %v11760_v17  ;;  %6374 = vmatprep.subr.bf16.mxu1 %v11665_v6  ;;  %v11766_v6 = vld [vmem:[#allocation126_spill] sm:$0xff] }
 0x32c   :  { %6312 = vmatpush1.bf16.msra.mxu0 %v11761_v51  ;;  %6376 = vmatpush1.bf16.msra.mxu1 %v11667_v44  ;;  %v11767_v44 = vld [vmem:[#allocation128_spill] sm:$0xff] }
 0x32d   :  { %6314 = vmatprep.subr.bf16.mxu0 %v11762_v40  ;;  %6378 = vmatprep.subr.bf16.mxu1 %v11669_v16 }
 0x330   :  { %6316 = vmatpush1.bf16.msra.mxu0 %v11763_v5  ;;  %6380 = vmatpush1.bf16.msra.mxu1 %v11671_v61 }
 0x331   :  { %6318 = vmatprep.subr.bf16.mxu0 %v11764_v0  ;;  %6382 = vmatprep.subr.bf16.mxu1 %v11673_v8 }
 0x334   :  { %6320 = vmatpush1.bf16.msra.mxu0 %v11765_v1  ;;  %6384 = vmatpush1.bf16.msra.mxu1 %v11675_v14  ;;  %v11768_v14 = vld [vmem:[#allocation135_spill] sm:$0xff] }
 0x335   :  { %6322 = vmatprep.subr.bf16.mxu0 %v11766_v6  ;;  %6386 = vmatprep.subr.bf16.mxu1 %v11676_v53  ;;  %v11769_v53 = vld [vmem:[#allocation136_spill] sm:$0xff] }
 0x338   :  { %6324 = vmatpush1.bf16.msra.mxu0 %v11767_v44  ;;  %6388 = vmatpush1.bf16.msra.mxu1 %v11677_v10  ;;  %v11770_v10 = vld [vmem:[#allocation137_spill] sm:$0xff] }
 0x339   :  { %6326 = vmatprep.subr.bf16.mxu0 %v9015_v27  ;;  %6390 = vmatprep.subr.bf16.mxu1 %v11678_v24  ;;  %v11843_v27 = vld [vmem:[#allocation143_spill] sm:$0xff]  ;;  %v11844_v44 = vld [vmem:[#allocation145_spill] sm:$0xff] }
 0x33c   :  { %6328 = vmatpush1.bf16.msra.mxu0 %v9021_v34  ;;  %6392 = vmatpush1.bf16.msra.mxu1 %v11679_v12  ;;  %v11771_v12 = vld [vmem:[#allocation139_spill] sm:$0xff] }
 0x33d   :  { %6330 = vmatprep.subr.bf16.mxu0 %v9027_v22  ;;  %6394 = vmatprep.subr.bf16.mxu1 %v11680_v38  ;;  %v11772_v22 = vld [vmem:[#allocation129_spill] sm:$0xff]  ;;  %v11773_v38 = vld [vmem:[#allocation140_spill] sm:$0xff] }
 0x340   :  { %6332 = vmatpush1.bf16.msra.mxu0 %v11768_v14  ;;  %6396 = vmatpush1.bf16.msra.mxu1 %v11681_v32  ;;  %v11774_v14 = vld [vmem:[#allocation131_spill] sm:$0xff]  ;;  %v11775_v32 = vld [vmem:[#allocation141_spill] sm:$0xff] }
 0x341   :  { %6334 = vmatprep.subr.bf16.mxu0 %v11769_v53  ;;  %6398 = vmatprep.subr.bf16.mxu1 %v11682_v26  ;;  %v11776_v53 = vld [vmem:[#allocation133_spill] sm:$0xff]  ;;  %v11777_v26 = vld [vmem:[#allocation20_spill] sm:$0xff] }
 0x344   :  { %6336 = vmatpush1.bf16.msra.mxu0 %v11770_v10  ;;  %6400 = vmatpush1.bf16.msra.mxu1 %v9001_v42  ;;  %v11778_v10 = vld [vmem:[#allocation14_spill] sm:$0xff] }
 0x345   :  { %6338 = vmatprep.subr.bf16.mxu0 %v9043_v13  ;;  %6402 = vmatprep.subr.bf16.mxu1 %v9006_v57  ;;  %v11779_v57 = vld [vmem:[#allocation24_spill] sm:$0xff]  ;;  %v11788_v13 = vld [vmem:[#allocation19_spill] sm:$0xff] }
 0x348   :  { %6340 = vmatpush1.bf16.msra.mxu0 %v11771_v12  ;;  %6404 = vmatpush1.bf16.msra.mxu1 %v11772_v22  ;;  %v11780_v12 = vld [vmem:[#allocation15_spill] sm:$0xff]  ;;  %v11781_v22 = vld [vmem:[#allocation26_spill] sm:$0xff] }
 0x349   :  { %6342 = vmatprep.subr.bf16.mxu0 %v11773_v38  ;;  %6406 = vmatprep.subr.bf16.mxu1 %v11774_v14  ;;  %v11782_v38 = vld [vmem:[#allocation16_spill] sm:$0xff] }
 0x34a   :  { %v11783_v14 = vld [vmem:[#allocation28_spill] sm:$0xff] }
 0x34c   :  { %6344 = vmatpush1.bf16.msra.mxu0 %v11775_v32  ;;  %6408 = vmatpush1.bf16.msra.mxu1 %v11776_v53  ;;  %v11784_v32 = vld [vmem:[#allocation17_spill] sm:$0xff]  ;;  %v11785_v53 = vld [vmem:[#allocation30_spill] sm:$0xff] }
 0x34d   :  { %6410 = vmatprep.subr.bf16.mxu0 %v11777_v26  ;;  %6474 = vmatprep.subr.bf16.mxu1 %v11778_v10  ;;  %v11786_v26 = vld [vmem:[#allocation18_spill] sm:$0xff]  ;;  %v11787_v10 = vld [vmem:[#allocation32_spill] sm:$0xff] }
 0x34f   :  { %1841 = vmatmul.mubr.f32.vlgmr.msra.gmra.mrb[22].mxu0 %v9432_v25  ;;  %1912 = vmatmul.mubr.f32.vlgmr.msra.gmra.mrb[14].mxu1 %v9432_v25  ;;  %v11789_v25 = vld [vmem:[#allocation34_spill] sm:$0xff] }
 0x350   :  { %6412 = vmatpush1.bf16.msra.mxu0 %v11779_v57  ;;  %6476 = vmatpush1.bf16.msra.mxu1 %v11780_v12  ;;  %v11790_v57 = vld [vmem:[#allocation21_spill] sm:$0xff]  ;;  %v11791_v12 = vld [vmem:[#allocation36_spill] sm:$0xff] }
 0x351   :  { %6414 = vmatprep.subr.bf16.mxu0 %v11781_v22  ;;  %6478 = vmatprep.subr.bf16.mxu1 %v11782_v38  ;;  %v11792_v22 = vld [vmem:[#allocation22_spill] sm:$0xff] }
 0x352   :  { %v11793_v38 = vld [vmem:[#allocation38_spill] sm:$0xff] }
 0x354   :  { %6416 = vmatpush1.bf16.msra.mxu0 %v11783_v14  ;;  %6480 = vmatpush1.bf16.msra.mxu1 %v11784_v32  ;;  %v11794_v14 = vld [vmem:[#allocation23_spill] sm:$0xff]  ;;  %v11795_v32 = vld [vmem:[#allocation40_spill] sm:$0xff] }
 0x355   :  { %6418 = vmatprep.subr.bf16.mxu0 %v11785_v53  ;;  %6482 = vmatprep.subr.bf16.mxu1 %v11786_v26  ;;  %v11796_v53 = vld [vmem:[#allocation25_spill] sm:$0xff]  ;;  %v11797_v26 = vld [vmem:[#allocation42_spill] sm:$0xff] }
 0x358   :  { %6420 = vmatpush1.bf16.msra.mxu0 %v11787_v10  ;;  %6484 = vmatpush1.bf16.msra.mxu1 %v11788_v13  ;;  %v11798_v10 = vld [vmem:[#allocation27_spill] sm:$0xff]  ;;  %v11799_v13 = vld [vmem:[#allocation44_spill] sm:$0xff] }
 0x359   :  { %6422 = vmatprep.subr.bf16.mxu0 %v11789_v25  ;;  %6486 = vmatprep.subr.bf16.mxu1 %v11790_v57  ;;  %v11800_v25 = vld [vmem:[#allocation29_spill] sm:$0xff]  ;;  %v11801_v57 = vld [vmem:[#allocation46_spill] sm:$0xff] }
 0x35c   :  { %6424 = vmatpush1.bf16.msra.mxu0 %v11791_v12  ;;  %6488 = vmatpush1.bf16.msra.mxu1 %v11792_v22  ;;  %v11802_v12 = vld [vmem:[#allocation31_spill] sm:$0xff]  ;;  %v11803_v22 = vld [vmem:[#allocation48_spill] sm:$0xff] }
 0x35d   :  { %6426 = vmatprep.subr.bf16.mxu0 %v11793_v38  ;;  %6490 = vmatprep.subr.bf16.mxu1 %v11794_v14  ;;  %v11804_v38 = vld [vmem:[#allocation33_spill] sm:$0xff]  ;;  %v11805_v14 = vld [vmem:[#allocation50_spill] sm:$0xff] }
 0x360   :  { %6428 = vmatpush1.bf16.msra.mxu0 %v11795_v32  ;;  %6492 = vmatpush1.bf16.msra.mxu1 %v11796_v53  ;;  %v11806_v32 = vld [vmem:[#allocation35_spill] sm:$0xff]  ;;  %v11807_v53 = vld [vmem:[#allocation52_spill] sm:$0xff] }
 0x361   :  { %6430 = vmatprep.subr.bf16.mxu0 %v11797_v26  ;;  %6494 = vmatprep.subr.bf16.mxu1 %v11798_v10  ;;  %v11808_v26 = vld [vmem:[#allocation37_spill] sm:$0xff]  ;;  %v11809_v10 = vld [vmem:[#allocation54_spill] sm:$0xff] }
 0x364   :  { %6432 = vmatpush1.bf16.msra.mxu0 %v11799_v13  ;;  %6496 = vmatpush1.bf16.msra.mxu1 %v11800_v25  ;;  %v11810_v13 = vld [vmem:[#allocation39_spill] sm:$0xff]  ;;  %v11811_v25 = vld [vmem:[#allocation56_spill] sm:$0xff] }
 0x365   :  { %6434 = vmatprep.subr.bf16.mxu0 %v11801_v57  ;;  %6498 = vmatprep.subr.bf16.mxu1 %v11802_v12  ;;  %v11812_v57 = vld [vmem:[#allocation41_spill] sm:$0xff]  ;;  %v11813_v12 = vld [vmem:[#allocation58_spill] sm:$0xff] }
 0x368   :  { %6436 = vmatpush1.bf16.msra.mxu0 %v11803_v22  ;;  %6500 = vmatpush1.bf16.msra.mxu1 %v11804_v38  ;;  %v11814_v22 = vld [vmem:[#allocation43_spill] sm:$0xff]  ;;  %v11815_v38 = vld [vmem:[#allocation60_spill] sm:$0xff] }
 0x369   :  { %6438 = vmatprep.subr.bf16.mxu0 %v11805_v14  ;;  %6502 = vmatprep.subr.bf16.mxu1 %v11806_v32  ;;  %v11816_v14 = vld [vmem:[#allocation45_spill] sm:$0xff]  ;;  %v11817_v32 = vld [vmem:[#allocation62_spill] sm:$0xff] }
 0x36c   :  { %6440 = vmatpush1.bf16.msra.mxu0 %v11807_v53  ;;  %6504 = vmatpush1.bf16.msra.mxu1 %v11808_v26  ;;  %v11818_v53 = vld [vmem:[#allocation47_spill] sm:$0xff]  ;;  %v11819_v26 = vld [vmem:[#allocation64_spill] sm:$0xff] }
 0x36d   :  { %6442 = vmatprep.subr.bf16.mxu0 %v11809_v10  ;;  %6506 = vmatprep.subr.bf16.mxu1 %v11810_v13  ;;  %v11820_v10 = vld [vmem:[#allocation49_spill] sm:$0xff]  ;;  %v11821_v13 = vld [vmem:[#allocation66_spill] sm:$0xff] }
 0x370   :  { %6444 = vmatpush1.bf16.msra.mxu0 %v11811_v25  ;;  %6508 = vmatpush1.bf16.msra.mxu1 %v11812_v57  ;;  %v11822_v25 = vld [vmem:[#allocation51_spill] sm:$0xff]  ;;  %v11823_v57 = vld [vmem:[#allocation68_spill] sm:$0xff] }
 0x371   :  { %6446 = vmatprep.subr.bf16.mxu0 %v11813_v12  ;;  %6510 = vmatprep.subr.bf16.mxu1 %v11814_v22  ;;  %v11824_v12 = vld [vmem:[#allocation53_spill] sm:$0xff]  ;;  %v11825_v22 = vld [vmem:[#allocation70_spill] sm:$0xff] }
 0x374   :  { %6448 = vmatpush1.bf16.msra.mxu0 %v11815_v38  ;;  %6512 = vmatpush1.bf16.msra.mxu1 %v11816_v14  ;;  %v11826_v38 = vld [vmem:[#allocation55_spill] sm:$0xff]  ;;  %v11827_v14 = vld [vmem:[#allocation72_spill] sm:$0xff] }
 0x375   :  { %6450 = vmatprep.subr.bf16.mxu0 %v11817_v32  ;;  %6514 = vmatprep.subr.bf16.mxu1 %v11818_v53  ;;  %v11828_v32 = vld [vmem:[#allocation57_spill] sm:$0xff]  ;;  %v11829_v53 = vld [vmem:[#allocation74_spill] sm:$0xff] }
 0x378   :  { %6452 = vmatpush1.bf16.msra.mxu0 %v11819_v26  ;;  %6516 = vmatpush1.bf16.msra.mxu1 %v11820_v10  ;;  %v11830_v26 = vld [vmem:[#allocation59_spill] sm:$0xff]  ;;  %v11831_v10 = vld [vmem:[#allocation76_spill] sm:$0xff] }
 0x379   :  { %6454 = vmatprep.subr.bf16.mxu0 %v11821_v13  ;;  %6518 = vmatprep.subr.bf16.mxu1 %v11822_v25  ;;  %v11832_v13 = vld [vmem:[#allocation61_spill] sm:$0xff]  ;;  %v11833_v25 = vld [vmem:[#allocation78_spill] sm:$0xff] }
 0x37c   :  { %6456 = vmatpush1.bf16.msra.mxu0 %v11823_v57  ;;  %6520 = vmatpush1.bf16.msra.mxu1 %v11824_v12  ;;  %v11834_v57 = vld [vmem:[#allocation63_spill] sm:$0xff]  ;;  %v11835_v12 = vld [vmem:[#allocation80_spill] sm:$0xff] }
 0x37d   :  { %6458 = vmatprep.subr.bf16.mxu0 %v11825_v22  ;;  %6522 = vmatprep.subr.bf16.mxu1 %v11826_v38  ;;  %v11836_v22 = vld [vmem:[#allocation65_spill] sm:$0xff]  ;;  %v11837_v38 = vld [vmem:[#allocation82_spill] sm:$0xff] }
 0x380   :  { %6460 = vmatpush1.bf16.msra.mxu0 %v11827_v14  ;;  %6524 = vmatpush1.bf16.msra.mxu1 %v11828_v32  ;;  %v11838_v14 = vld [vmem:[#allocation67_spill] sm:$0xff]  ;;  %v11839_v32 = vld [vmem:[#allocation84_spill] sm:$0xff] }
 0x381   :  { %6462 = vmatprep.subr.bf16.mxu0 %v11829_v53  ;;  %6526 = vmatprep.subr.bf16.mxu1 %v11830_v26  ;;  %v11840_v53 = vld [vmem:[#allocation69_spill] sm:$0xff]  ;;  %v11841_v26 = vld [vmem:[#allocation86_spill] sm:$0xff] }
 0x384   :  { %6464 = vmatpush1.bf16.msra.mxu0 %v11831_v10  ;;  %6528 = vmatpush1.bf16.msra.mxu1 %v11832_v13  ;;  %v11842_v10 = vld [vmem:[#allocation71_spill] sm:$0xff] }
 0x385   :  { %6466 = vmatprep.subr.bf16.mxu0 %v11833_v25  ;;  %6530 = vmatprep.subr.bf16.mxu1 %v11834_v57 }
 0x388   :  { %6468 = vmatpush1.bf16.msra.mxu0 %v11835_v12  ;;  %6532 = vmatpush1.bf16.msra.mxu1 %v11836_v22 }
 0x389   :  { %6470 = vmatprep.subr.bf16.mxu0 %v11837_v38  ;;  %6534 = vmatprep.subr.bf16.mxu1 %v11838_v14 }
 0x38c   :  { %6472 = vmatpush1.bf16.msra.mxu0 %v11839_v32  ;;  %6536 = vmatpush1.bf16.msra.mxu1 %v11840_v53 }
 0x38d   :  { %6538 = vmatprep.subr.bf16.mxu0 %v11841_v26  ;;  %6602 = vmatprep.subr.bf16.mxu1 %v11842_v10 }
 0x3e2   :  { %v1700_v13 = vpop.f32.mrb[20].mxu0  ;;  %v1771_v25 = vpop.f32.mrb[12].mxu1 }
 0x3e3   :  { %v1928_v42 = vrot.slane %v1771_v25, 6  ;;  %v1936_v57 = vrot.slane %v1771_v25, 7  ;;  %v1702_v34 = vpop.f32.mrb[21].mxu0  ;;  %v1773_v12 = vpop.f32.mrb[13].mxu1 }
 0x3e4   :  { %v1929_v24 = vrot.slane %v1773_v12, 6  ;;  %v1937_v22 = vrot.slane %v1773_v12, 7 }
 0x3e5   :  { %v1960_v38 = vadd.f32 %v1928_v42, %v11843_v27  ;;  %v1968_v14 = vadd.f32 %v1936_v57, %v11844_v44 }
 0x3e6   :  { %v1961_v32 = vadd.f32 %v1929_v24, %v9154_v60  ;;  %v1969_v26 = vadd.f32 %v1937_v22, %v9160_v50  ;;  %v2054_v22 = vrot.slane %v9412_v52, 7 }
 0x3e7   :  { %v5320_v6 = vmul.f32 -1.442695, %v1960_v38  ;;  %v5326_v53 = vmul.f32 -1.442695, %v1968_v14  ;;  %v1926_v14 = vrot.slane %v1700_v13, 6 }
 0x3e8   :  { %v5321_v10 = vmul.f32 -1.442695, %v1961_v32  ;;  %v5327_v1 = vmul.f32 -1.442695, %v1969_v26  ;;  %v2056_v32 = vrot.slane %v9406_v3, 7 }
 0x3e9   :  { %8023 = vpow2.f32 %v5320_v6  ;;  %v1958_v52 = vadd.f32 %v1926_v14, %v9163_v31 }
 0x3ea   :  { %8025 = vpow2.f32 %v5326_v53  ;;  %v1934_v53 = vrot.slane %v1700_v13, 7 }
 0x3eb   :  { %8027 = vpow2.f32 %v5321_v10 }
 0x3ec   :  { %8029 = vpow2.f32 %v5327_v1  ;;  %v2057_v1 = vrot.slane %v9409_v54, 7  ;;  %v1966_v3 = vadd.f32 %v1934_v53, %v9166_v47 }
 0x3f3   :  { %v8024_v25 = vpop.eup %8023 }
 0x3f4   :  { %v8026_v8 = vpop.eup %8025  ;;  %v2012_v0 = vadd.f32 1.0, %v8024_v25 }
 0x3f5   :  { %v2018_v12 = vadd.f32 1.0, %v8026_v8  ;;  %v8028_v42 = vpop.eup %8027  ;;  %v2055_v8 = vrot.slane %v9417_v56, 7  ;;  %v11845_v56 = vld [vmem:[#allocation150_spill] sm:$0xff] }
 0x3f6   :  { %8031 = vrcp.f32 %v2012_v0  ;;  %v8030_v57 = vpop.eup %8029  ;;  %v2013_v38 = vadd.f32 1.0, %v8028_v42 }
 0x3f7   :  { %8033 = vrcp.f32 %v2018_v12  ;;  %v2019_v44 = vadd.f32 1.0, %v8030_v57  ;;  %v1927_v12 = vrot.slane %v1702_v34, 6  ;;  %v1935_v57 = vrot.slane %v1702_v34, 7 }
 0x3f8   :  { %8035 = vrcp.f32 %v2013_v38 }
 0x3f9   :  { %8037 = vrcp.f32 %v2019_v44  ;;  %v1959_v38 = vadd.f32 %v1927_v12, %v9169_v28  ;;  %v1967_v13 = vadd.f32 %v1935_v57, %v11845_v56 }
 0x3fb   :  { %v5325_v54 = vmul.f32 -1.442695, %v1967_v13 }
 0x400   :  { %v8032_v24 = vpop.eup %8031 }
 0x401   :  { %v8034_v26 = vpop.eup %8033  ;;  %v9575_v10 = vmul.f32 %v8032_v24, %v2054_v22  ;;  %v5318_v22 = vmul.f32 -1.442695, %v1958_v52  ;;  %v5324_v24 = vmul.f32 -1.442695, %v1966_v3 }
 0x402   :  { %v9577_v6 = vmul.f32 %v8034_v26, %v2056_v32  ;;  %v8036_v0 = vpop.eup %8035  ;;  %v5319_v32 = vmul.f32 -1.442695, %v1959_v38 }
 0x403   :  { %v8038_v25 = vpop.eup %8037  ;;  %v9581_v44 = vmul.f32 %v8036_v0, %v2055_v8  ;;  %8039 = vpow2.f32 %v5318_v22 }
 0x404   :  { %v9584_v42 = vmul.f32 %v8038_v25, %v2057_v1  ;;  %8041 = vpow2.f32 %v5324_v24 }
 0x405   :  { %8043 = vpow2.f32 %v5319_v32 }
 0x406   :  { %8045 = vpow2.f32 %v5325_v54 }
 0x40d   :  { %v8040_v26 = vpop.eup %8039 }
 0x40e   :  { %v8042_v8 = vpop.eup %8041  ;;  %v2010_v0 = vadd.f32 1.0, %v8040_v26 }
 0x40f   :  { %v8044_v14 = vpop.eup %8043  ;;  %v2016_v1 = vadd.f32 1.0, %v8042_v8  ;;  %v11846_v8 = vld [vmem:[#allocation155_spill] sm:$0xff] }
 0x410   :  { %v8046_v25 = vpop.eup %8045  ;;  %v2011_v53 = vadd.f32 1.0, %v8044_v14  ;;  %8047 = vrcp.f32 %v2010_v0  ;;  %v11847_v0 = vld [vmem:[#allocation153_spill] sm:$0xff] }
 0x411   :  { %8049 = vrcp.f32 %v2016_v1  ;;  %v2017_v34 = vadd.f32 1.0, %v8046_v25 }
 0x412   :  { %8051 = vrcp.f32 %v2011_v53 }
 0x413   :  { %8053 = vrcp.f32 %v2017_v34 }
 0x422   :  { %v1842_v12 = vpop.f32.mrb[22].mxu0  ;;  %v1913_v52 = vpop.f32.mrb[14].mxu1 }
 0x423   :  { %v1930_v3 = vrot.slane %v1842_v12, 6  ;;  %v1938_v57 = vrot.slane %v1842_v12, 7  ;;  %v1932_v38 = vrot.slane %v1913_v52, 6  ;;  %v1940_v22 = vrot.slane %v1913_v52, 7  ;;  %v1844_v24 = vpop.f32.mrb[23].mxu0  ;;  %v1915_v13 = vpop.f32.mrb[15].mxu1 }
 0x424   :  { %v1931_v32 = vrot.slane %v1844_v24, 6  ;;  %v1939_v54 = vrot.slane %v1844_v24, 7  ;;  %v1933_v56 = vrot.slane %v1915_v13, 6  ;;  %v11848_v12 = vld [vmem:[#allocation156_spill] sm:$0xff]  ;;  %v1941_v52 = vrot.slane %v1915_v13, 7 }
 0x425   :  { %v1962_v26 = vadd.f32 %v1930_v3, %v9202_v59  ;;  %v1970_v28 = vadd.f32 %v1938_v57, %v11846_v8  ;;  %v1964_v14 = vadd.f32 %v1932_v38, %v11744_v23  ;;  %v1972_v1 = vadd.f32 %v1940_v22, %v11847_v0  ;;  %v8048_v38 = vpop.eup %8047 }
 0x426   :  { %v1963_v25 = vadd.f32 %v1931_v32, %v9205_v9  ;;  %v1971_v47 = vadd.f32 %v1939_v54, %v11848_v12  ;;  %v1965_v3 = vadd.f32 %v1933_v56, %v11745_v58  ;;  %v1973_v57 = vadd.f32 %v1941_v52, %v11743_v15  ;;  %v8050_v34 = vpop.eup %8049 }
 0x427   :  { %v5322_v31 = vmul.f32 -1.442695, %v1962_v26  ;;  %v5328_v50 = vmul.f32 -1.442695, %v1970_v28  ;;  %8055 = vtanh.f32 %v1964_v14  ;;  %v8052_v22 = vpop.eup %8051 }
 0x428   :  { %8057 = vtanh.f32 %v1972_v1  ;;  %v5323_v53 = vmul.f32 -1.442695, %v1963_v25  ;;  %v5329_v24 = vmul.f32 -1.442695, %v1971_v47  ;;  %v8054_v13 = vpop.eup %8053 }
 0x429   :  { %8059 = vpow2.f32 %v5322_v31 }
 0x42a   :  { %8061 = vpow2.f32 %v5328_v50 }
 0x42b   :  { %8063 = vpow2.f32 %v5323_v53 }
 0x42c   :  { %8065 = vpow2.f32 %v5329_v24 }
 0x42d   :  { %8067 = vtanh.f32 %v1965_v3 }
 0x42e   :  { %8069 = vtanh.f32 %v1973_v57 }
 0x431   :  { %v8056_v32 = vpop.eup %8055 }
 0x432   :  { %v8058_v28 = vpop.eup %8057  ;;  %v2066_v54 = vmul.f32 %v8056_v32, %v8048_v38 }
 0x433   :  { %v8060_v26 = vpop.eup %8059  ;;  %v2068_v14 = vmul.f32 %v8058_v28, %v8050_v34 }
 0x434   :  { %v8062_v47 = vpop.eup %8061  ;;  %v2014_v31 = vadd.f32 1.0, %v8060_v26  ;;  %v9598_v56 = vadd.f32 %v2066_v54, %v9575_v10 }
 0x435   :  { %v8064_v50 = vpop.eup %8063  ;;  %v2020_v1 = vadd.f32 1.0, %v8062_v47  ;;  %v9601_v25 = vadd.f32 %v2068_v14, %v9577_v6  ;;  %v11849_v14 = vld [vmem:[#allocation157_spill] sm:$0xff] }
 0x436   :  { %v8066_v52 = vpop.eup %8065  ;;  %8071 = vrcp.f32 %v2014_v31  ;;  %v2015_v53 = vadd.f32 1.0, %v8064_v50 }
 0x437   :  { %v8068_v24 = vpop.eup %8067  ;;  %8073 = vrcp.f32 %v2020_v1  ;;  %v2021_v3 = vadd.f32 1.0, %v8066_v52 }
 0x438   :  { %v8070_v57 = vpop.eup %8069  ;;  %8075 = vtanh.f32 %v9598_v56  ;;  %v2067_v38 = vmul.f32 %v8068_v24, %v8052_v22 }
 0x439   :  { %8077 = vtanh.f32 %v9601_v25  ;;  %v2069_v34 = vmul.f32 %v8070_v57, %v8054_v13 }
 0x43a   :  { %8079 = vrcp.f32 %v2015_v53  ;;  %v9606_v10 = vadd.f32 %v2067_v38, %v9581_v44  ;;  %v4383_v44 = vsel %vm4382_vm2, %v11849_v14, %v9423_v49 }
 0x43b   :  { %8081 = vrcp.f32 %v2021_v3  ;;  %v9609_v6 = vadd.f32 %v2069_v34, %v9584_v42  ;;  %v11850_v42 = vld [vmem:[#allocation158_spill] sm:$0xff]  ;;  %v11851_v34 = vld [vmem:[#allocation159_spill] sm:$0xff] }
 0x43c   :  { %8083 = vtanh.f32 %v9606_v10  ;;  %v4385_v50 = vsel %vm4382_vm2, %v11850_v42, %v9421_v4  ;;  %v4384_v49 = vsel %vm4382_vm2, %v11851_v34, %v9428_v39  ;;  %v11852_v4 = vld [vmem:[#allocation160_spill] sm:$0xff]  ;;  %v11854_v39 = vld [vmem:[#allocation89_spill] sm:$0xff]  ;;  %v11857_v42 = vld [vmem:[#allocation95_spill] sm:$0xff] }
 0x43d   :  { %8085 = vtanh.f32 %v9609_v6  ;;  %v11864_v34 = vld [vmem:[#allocation109_spill] sm:$0xff] }
 0x440   :  { %v8072_v32 = vpop.eup %8071 }
 0x441   :  { %v8074_v28 = vpop.eup %8073 }
 0x442   :  { %v8076_v54 = vpop.eup %8075 }
 0x443   :  { %v8078_v22 = vpop.eup %8077  ;;  %v2078_v26 = vmul.f32 %v8076_v54, %v8072_v32  ;;  %v4386_v54 = vsel %vm4382_vm2, %v11852_v4, %v9426_v11  ;;  %v11853_v11 = vld [vmem:[#allocation87_spill] sm:$0xff]  ;;  %v11867_v4 = vld [vmem:[#allocation128_spill] sm:$0xff] }
 0x444   :  { %v8080_v13 = vpop.eup %8079  ;;  %v2080_v47 = vmul.f32 %v8078_v22, %v8074_v28 }
 0x445   :  { %v8082_v31 = vpop.eup %8081  ;;  %v2086_v1 = vrot.slane %v2078_v26, 2  ;;  %v9620_v52 = vsel %vm4387_vm3, %v4383_v44, %v2078_v26 }
 0x446   :  { %v8084_v53 = vpop.eup %8083  ;;  %v2087_v24 = vrot.slane %v2080_v47, 1  ;;  %v9623_v3 = vsel %vm4387_vm3, %v4385_v50, %v2080_v47  ;;  %v11855_v47 = vld [vmem:[#allocation91_spill] sm:$0xff]  ;;  %v11858_v50 = vld [vmem:[#allocation97_spill] sm:$0xff] }
 0x447   :  { %v8086_v57 = vpop.eup %8085  ;;  %v2079_v38 = vmul.f32 %v8084_v53, %v8080_v13  ;;  %v11860_v53 = vld [vmem:[#allocation101_spill] sm:$0xff] }
 0x448   :  { %v2081_v32 = vmul.f32 %v8086_v57, %v8082_v31  ;;  %v9629_v28 = vsel %vm1178_vm1, %v2087_v24, %v2086_v1  ;;  %v11856_v31 = vld [vmem:[#allocation93_spill] sm:$0xff]  ;;  %v11859_v1 = vld [vmem:[#allocation99_spill] sm:$0xff]  ;;  %v11861_v24 = vld [vmem:[#allocation122_spill] sm:$0xff] }
 0x449   :  { %v2089_v22 = vrot.slane %v2079_v38, 2  ;;  %v9635_v26 = vsel %vm4387_vm3, %v4384_v49, %v2079_v38  ;;  %v11862_v57 = vld [vmem:[#allocation107_spill] sm:$0xff]  ;;  %v11863_v38 = vld [vmem:[#allocation124_spill] sm:$0xff]  ;;  %v11865_v49 = vld [vmem:[#allocation126_spill] sm:$0xff] }
 0x44a   :  { %v2090_v14 = vrot.slane %v2081_v32, 1  ;;  %v9638_v44 = vsel %vm4387_vm3, %v4386_v54, %v2081_v32  ;;  %v11866_v32 = vld [vmem:[#allocation111_spill] sm:$0xff]  ;;  %v11868_v54 = vld [vmem:[#allocation113_spill] sm:$0xff] }
 0x44c   :  { %v2091_v13 = vsel %vm1178_vm1, %v2090_v14, %v2089_v22  ;;  %v11869_v22 = vld [vmem:[#allocation130_spill] sm:$0xff]  ;;  %v11870_v14 = vld [vmem:[#allocation115_spill] sm:$0xff] }
 0x44d   :  { %2158 = vmatprep.mubr.f32.mxu0 %v2091_v13  ;;  %2229 = vmatprep.mubr.f32.mxu1 %v2091_v13 }
 0x44e   :  { %2159 = vmatmul.mubr.f32.vlgmr.msra.gmra.mrb[24].mxu0 %v9629_v28  ;;  %2230 = vmatmul.mubr.f32.vlgmr.msra.gmra.mrb[16].mxu1 %v9629_v28 }
 0x44f   :  { %6540 = vmatpush1.bf16.msra.mxu0 %v11638_v7  ;;  %6604 = vmatpush1.bf16.msra.mxu1 %v11639_v43 }
 0x450   :  { %2300 = vmatprep.mubr.f32.mxu0 %v2091_v13  ;;  %2371 = vmatprep.mubr.f32.mxu1 %v2091_v13  ;;  %v11871_v13 = vld [vmem:[#allocation132_spill] sm:$0xff] }
 0x451   :  { %6542 = vmatprep.subr.bf16.mxu0 %v11640_v45  ;;  %6606 = vmatprep.subr.bf16.mxu1 %v11641_v46 }
 0x453   :  { %6544 = vmatpush1.bf16.msra.mxu0 %v11642_v30  ;;  %6608 = vmatpush1.bf16.msra.mxu1 %v11643_v2 }
 0x454   :  { %6546 = vmatprep.subr.bf16.mxu0 %v11644_v33  ;;  %6610 = vmatprep.subr.bf16.mxu1 %v11645_v35 }
 0x457   :  { %6548 = vmatpush1.bf16.msra.mxu0 %v11646_v48  ;;  %6612 = vmatpush1.bf16.msra.mxu1 %v11647_v18 }
 0x458   :  { %6550 = vmatprep.subr.bf16.mxu0 %v11648_v36  ;;  %6614 = vmatprep.subr.bf16.mxu1 %v11649_v19 }
 0x45b   :  { %6552 = vmatpush1.bf16.msra.mxu0 %v11746_v41  ;;  %6616 = vmatpush1.bf16.msra.mxu1 %v11747_v62 }
 0x45c   :  { %6554 = vmatprep.subr.bf16.mxu0 %v11748_v37  ;;  %6618 = vmatprep.subr.bf16.mxu1 %v11853_v11 }
 0x45f   :  { %6556 = vmatpush1.bf16.msra.mxu0 %v11750_v63  ;;  %6620 = vmatpush1.bf16.msra.mxu1 %v11854_v39 }
 0x460   :  { %6558 = vmatprep.subr.bf16.mxu0 %v11752_v29  ;;  %6622 = vmatprep.subr.bf16.mxu1 %v11855_v47 }
 0x463   :  { %6560 = vmatpush1.bf16.msra.mxu0 %v11754_v20  ;;  %6624 = vmatpush1.bf16.msra.mxu1 %v11856_v31 }
 0x464   :  { %6562 = vmatprep.subr.bf16.mxu0 %v11756_v21  ;;  %6626 = vmatprep.subr.bf16.mxu1 %v11857_v42 }
 0x467   :  { %6564 = vmatpush1.bf16.msra.mxu0 %v11758_v55  ;;  %6628 = vmatpush1.bf16.msra.mxu1 %v11858_v50 }
 0x468   :  { %6566 = vmatprep.subr.bf16.mxu0 %v11760_v17  ;;  %6630 = vmatprep.subr.bf16.mxu1 %v11859_v1 }
 0x46b   :  { %6568 = vmatpush1.bf16.msra.mxu0 %v11761_v51  ;;  %6632 = vmatpush1.bf16.msra.mxu1 %v11860_v53  ;;  %v11956_v53 = vld [vmem:[#allocation146_spill] sm:$0xff] }
 0x46c   :  { %6570 = vmatprep.subr.bf16.mxu0 %v11762_v40  ;;  %6634 = vmatprep.subr.bf16.mxu1 %v11669_v16  ;;  %v11955_v16 = vld [vmem:[#allocation145_spill] sm:$0xff] }
 0x46f   :  { %6572 = vmatpush1.bf16.msra.mxu0 %v11763_v5  ;;  %6636 = vmatpush1.bf16.msra.mxu1 %v11671_v61 }
 0x470   :  { %6574 = vmatprep.subr.bf16.mxu0 %v11861_v24  ;;  %6638 = vmatprep.subr.bf16.mxu1 %v11862_v57  ;;  %v11872_v24 = vld [vmem:[#allocation117_spill] sm:$0xff]  ;;  %v11873_v57 = vld [vmem:[#allocation134_spill] sm:$0xff] }
 0x473   :  { %6576 = vmatpush1.bf16.msra.mxu0 %v11863_v38  ;;  %6640 = vmatpush1.bf16.msra.mxu1 %v11864_v34  ;;  %v11874_v38 = vld [vmem:[#allocation119_spill] sm:$0xff] }
 0x474   :  { %6578 = vmatprep.subr.bf16.mxu0 %v11865_v49  ;;  %6642 = vmatprep.subr.bf16.mxu1 %v11866_v32  ;;  %v11875_v34 = vld [vmem:[#allocation135_spill] sm:$0xff]  ;;  %v11876_v49 = vld [vmem:[#allocation121_spill] sm:$0xff]  ;;  %v11877_v32 = vld [vmem:[#allocation136_spill] sm:$0xff] }
 0x477   :  { %6580 = vmatpush1.bf16.msra.mxu0 %v11867_v4  ;;  %6644 = vmatpush1.bf16.msra.mxu1 %v11868_v54  ;;  %v11878_v4 = vld [vmem:[#allocation123_spill] sm:$0xff]  ;;  %v11879_v54 = vld [vmem:[#allocation137_spill] sm:$0xff] }
 0x478   :  { %6582 = vmatprep.subr.bf16.mxu0 %v11869_v22  ;;  %6646 = vmatprep.subr.bf16.mxu1 %v11870_v14  ;;  %v11880_v22 = vld [vmem:[#allocation125_spill] sm:$0xff]  ;;  %v11881_v14 = vld [vmem:[#allocation138_spill] sm:$0xff] }
 0x47b   :  { %6584 = vmatpush1.bf16.msra.mxu0 %v11871_v13  ;;  %6648 = vmatpush1.bf16.msra.mxu1 %v11872_v24  ;;  %v11882_v13 = vld [vmem:[#allocation127_spill] sm:$0xff] }
 0x47c   :  { %6586 = vmatprep.subr.bf16.mxu0 %v11873_v57  ;;  %6650 = vmatprep.subr.bf16.mxu1 %v11874_v38  ;;  %v11883_v24 = vld [vmem:[#allocation139_spill] sm:$0xff]  ;;  %v11884_v57 = vld [vmem:[#allocation129_spill] sm:$0xff]  ;;  %v11885_v38 = vld [vmem:[#allocation140_spill] sm:$0xff] }
 0x47f   :  { %6588 = vmatpush1.bf16.msra.mxu0 %v11875_v34  ;;  %6652 = vmatpush1.bf16.msra.mxu1 %v11876_v49  ;;  %v11886_v34 = vld [vmem:[#allocation131_spill] sm:$0xff]  ;;  %v11887_v49 = vld [vmem:[#allocation141_spill] sm:$0xff] }
 0x480   :  { %6590 = vmatprep.subr.bf16.mxu0 %v11877_v32  ;;  %6654 = vmatprep.subr.bf16.mxu1 %v11878_v4  ;;  %v11888_v32 = vld [vmem:[#allocation133_spill] sm:$0xff]  ;;  %v11889_v4 = vld [vmem:[#allocation20_spill] sm:$0xff] }
 0x483   :  { %6592 = vmatpush1.bf16.msra.mxu0 %v11879_v54  ;;  %6656 = vmatpush1.bf16.msra.mxu1 %v11880_v22  ;;  %v11890_v54 = vld [vmem:[#allocation14_spill] sm:$0xff] }
 0x484   :  { %6594 = vmatprep.subr.bf16.mxu0 %v11881_v14  ;;  %6658 = vmatprep.subr.bf16.mxu1 %v11882_v13  ;;  %v11891_v13 = vld [vmem:[#allocation24_spill] sm:$0xff]  ;;  %v11900_v14 = vld [vmem:[#allocation19_spill] sm:$0xff] }
 0x487   :  { %6596 = vmatpush1.bf16.msra.mxu0 %v11883_v24  ;;  %6660 = vmatpush1.bf16.msra.mxu1 %v11884_v57  ;;  %v11892_v24 = vld [vmem:[#allocation15_spill] sm:$0xff]  ;;  %v11893_v57 = vld [vmem:[#allocation26_spill] sm:$0xff] }
 0x488   :  { %6598 = vmatprep.subr.bf16.mxu0 %v11885_v38  ;;  %6662 = vmatprep.subr.bf16.mxu1 %v11886_v34  ;;  %v11894_v38 = vld [vmem:[#allocation16_spill] sm:$0xff] }
 0x489   :  { %v11895_v34 = vld [vmem:[#allocation28_spill] sm:$0xff] }
 0x48b   :  { %6600 = vmatpush1.bf16.msra.mxu0 %v11887_v49  ;;  %6664 = vmatpush1.bf16.msra.mxu1 %v11888_v32  ;;  %v11896_v49 = vld [vmem:[#allocation17_spill] sm:$0xff]  ;;  %v11897_v32 = vld [vmem:[#allocation30_spill] sm:$0xff] }
 0x48c   :  { %6666 = vmatprep.subr.bf16.mxu0 %v11889_v4  ;;  %6730 = vmatprep.subr.bf16.mxu1 %v11890_v54  ;;  %v11898_v4 = vld [vmem:[#allocation18_spill] sm:$0xff]  ;;  %v11899_v54 = vld [vmem:[#allocation32_spill] sm:$0xff] }
 0x48e   :  { %2301 = vmatmul.mubr.f32.vlgmr.msra.gmra.mrb[26].mxu0 %v9629_v28  ;;  %2372 = vmatmul.mubr.f32.vlgmr.msra.gmra.mrb[18].mxu1 %v9629_v28  ;;  %v11901_v28 = vld [vmem:[#allocation34_spill] sm:$0xff] }
 0x48f   :  { %6668 = vmatpush1.bf16.msra.mxu0 %v11891_v13  ;;  %6732 = vmatpush1.bf16.msra.mxu1 %v11892_v24  ;;  %v11902_v13 = vld [vmem:[#allocation21_spill] sm:$0xff]  ;;  %v11903_v24 = vld [vmem:[#allocation36_spill] sm:$0xff] }
 0x490   :  { %6670 = vmatprep.subr.bf16.mxu0 %v11893_v57  ;;  %6734 = vmatprep.subr.bf16.mxu1 %v11894_v38  ;;  %v11904_v57 = vld [vmem:[#allocation22_spill] sm:$0xff] }
 0x491   :  { %v11905_v38 = vld [vmem:[#allocation38_spill] sm:$0xff] }
 0x493   :  { %6672 = vmatpush1.bf16.msra.mxu0 %v11895_v34  ;;  %6736 = vmatpush1.bf16.msra.mxu1 %v11896_v49  ;;  %v11906_v34 = vld [vmem:[#allocation23_spill] sm:$0xff]  ;;  %v11907_v49 = vld [vmem:[#allocation40_spill] sm:$0xff] }
 0x494   :  { %6674 = vmatprep.subr.bf16.mxu0 %v11897_v32  ;;  %6738 = vmatprep.subr.bf16.mxu1 %v11898_v4  ;;  %v11908_v32 = vld [vmem:[#allocation25_spill] sm:$0xff]  ;;  %v11909_v4 = vld [vmem:[#allocation42_spill] sm:$0xff] }
 0x497   :  { %6676 = vmatpush1.bf16.msra.mxu0 %v11899_v54  ;;  %6740 = vmatpush1.bf16.msra.mxu1 %v11900_v14  ;;  %v11910_v54 = vld [vmem:[#allocation27_spill] sm:$0xff]  ;;  %v11911_v14 = vld [vmem:[#allocation44_spill] sm:$0xff] }
 0x498   :  { %6678 = vmatprep.subr.bf16.mxu0 %v11901_v28  ;;  %6742 = vmatprep.subr.bf16.mxu1 %v11902_v13  ;;  %v11912_v28 = vld [vmem:[#allocation29_spill] sm:$0xff]  ;;  %v11913_v13 = vld [vmem:[#allocation46_spill] sm:$0xff] }
 0x49b   :  { %6680 = vmatpush1.bf16.msra.mxu0 %v11903_v24  ;;  %6744 = vmatpush1.bf16.msra.mxu1 %v11904_v57  ;;  %v11914_v24 = vld [vmem:[#allocation31_spill] sm:$0xff]  ;;  %v11915_v57 = vld [vmem:[#allocation48_spill] sm:$0xff] }
 0x49c   :  { %6682 = vmatprep.subr.bf16.mxu0 %v11905_v38  ;;  %6746 = vmatprep.subr.bf16.mxu1 %v11906_v34  ;;  %v11916_v38 = vld [vmem:[#allocation33_spill] sm:$0xff]  ;;  %v11917_v34 = vld [vmem:[#allocation50_spill] sm:$0xff] }
 0x49f   :  { %6684 = vmatpush1.bf16.msra.mxu0 %v11907_v49  ;;  %6748 = vmatpush1.bf16.msra.mxu1 %v11908_v32  ;;  %v11918_v49 = vld [vmem:[#allocation35_spill] sm:$0xff]  ;;  %v11919_v32 = vld [vmem:[#allocation52_spill] sm:$0xff] }
 0x4a0   :  { %6686 = vmatprep.subr.bf16.mxu0 %v11909_v4  ;;  %6750 = vmatprep.subr.bf16.mxu1 %v11910_v54  ;;  %v11920_v4 = vld [vmem:[#allocation37_spill] sm:$0xff]  ;;  %v11921_v54 = vld [vmem:[#allocation54_spill] sm:$0xff] }
 0x4a3   :  { %6688 = vmatpush1.bf16.msra.mxu0 %v11911_v14  ;;  %6752 = vmatpush1.bf16.msra.mxu1 %v11912_v28  ;;  %v11922_v14 = vld [vmem:[#allocation39_spill] sm:$0xff]  ;;  %v11923_v28 = vld [vmem:[#allocation56_spill] sm:$0xff] }
 0x4a4   :  { %6690 = vmatprep.subr.bf16.mxu0 %v11913_v13  ;;  %6754 = vmatprep.subr.bf16.mxu1 %v11914_v24  ;;  %v11924_v13 = vld [vmem:[#allocation41_spill] sm:$0xff]  ;;  %v11925_v24 = vld [vmem:[#allocation58_spill] sm:$0xff] }
 0x4a7   :  { %6692 = vmatpush1.bf16.msra.mxu0 %v11915_v57  ;;  %6756 = vmatpush1.bf16.msra.mxu1 %v11916_v38  ;;  %v11926_v57 = vld [vmem:[#allocation43_spill] sm:$0xff]  ;;  %v11927_v38 = vld [vmem:[#allocation60_spill] sm:$0xff] }
 0x4a8   :  { %6694 = vmatprep.subr.bf16.mxu0 %v11917_v34  ;;  %6758 = vmatprep.subr.bf16.mxu1 %v11918_v49  ;;  %v11928_v34 = vld [vmem:[#allocation45_spill] sm:$0xff]  ;;  %v11929_v49 = vld [vmem:[#allocation62_spill] sm:$0xff] }
 0x4ab   :  { %6696 = vmatpush1.bf16.msra.mxu0 %v11919_v32  ;;  %6760 = vmatpush1.bf16.msra.mxu1 %v11920_v4  ;;  %v11930_v32 = vld [vmem:[#allocation47_spill] sm:$0xff]  ;;  %v11931_v4 = vld [vmem:[#allocation64_spill] sm:$0xff] }
 0x4ac   :  { %6698 = vmatprep.subr.bf16.mxu0 %v11921_v54  ;;  %6762 = vmatprep.subr.bf16.mxu1 %v11922_v14  ;;  %v11932_v54 = vld [vmem:[#allocation49_spill] sm:$0xff]  ;;  %v11933_v14 = vld [vmem:[#allocation66_spill] sm:$0xff] }
 0x4af   :  { %6700 = vmatpush1.bf16.msra.mxu0 %v11923_v28  ;;  %6764 = vmatpush1.bf16.msra.mxu1 %v11924_v13  ;;  %v11934_v28 = vld [vmem:[#allocation51_spill] sm:$0xff]  ;;  %v11935_v13 = vld [vmem:[#allocation68_spill] sm:$0xff] }
 0x4b0   :  { %6702 = vmatprep.subr.bf16.mxu0 %v11925_v24  ;;  %6766 = vmatprep.subr.bf16.mxu1 %v11926_v57  ;;  %v11936_v24 = vld [vmem:[#allocation53_spill] sm:$0xff]  ;;  %v11937_v57 = vld [vmem:[#allocation70_spill] sm:$0xff] }
 0x4b3   :  { %6704 = vmatpush1.bf16.msra.mxu0 %v11927_v38  ;;  %6768 = vmatpush1.bf16.msra.mxu1 %v11928_v34  ;;  %v11938_v38 = vld [vmem:[#allocation55_spill] sm:$0xff]  ;;  %v11939_v34 = vld [vmem:[#allocation72_spill] sm:$0xff] }
 0x4b4   :  { %6706 = vmatprep.subr.bf16.mxu0 %v11929_v49  ;;  %6770 = vmatprep.subr.bf16.mxu1 %v11930_v32  ;;  %v11940_v49 = vld [vmem:[#allocation57_spill] sm:$0xff]  ;;  %v11941_v32 = vld [vmem:[#allocation74_spill] sm:$0xff] }
 0x4b7   :  { %6708 = vmatpush1.bf16.msra.mxu0 %v11931_v4  ;;  %6772 = vmatpush1.bf16.msra.mxu1 %v11932_v54  ;;  %v11942_v4 = vld [vmem:[#allocation59_spill] sm:$0xff]  ;;  %v11943_v54 = vld [vmem:[#allocation76_spill] sm:$0xff] }
 0x4b8   :  { %6710 = vmatprep.subr.bf16.mxu0 %v11933_v14  ;;  %6774 = vmatprep.subr.bf16.mxu1 %v11934_v28  ;;  %v11944_v14 = vld [vmem:[#allocation61_spill] sm:$0xff]  ;;  %v11945_v28 = vld [vmem:[#allocation78_spill] sm:$0xff] }
 0x4bb   :  { %6712 = vmatpush1.bf16.msra.mxu0 %v11935_v13  ;;  %6776 = vmatpush1.bf16.msra.mxu1 %v11936_v24  ;;  %v11946_v13 = vld [vmem:[#allocation63_spill] sm:$0xff]  ;;  %v11947_v24 = vld [vmem:[#allocation80_spill] sm:$0xff] }
 0x4bc   :  { %6714 = vmatprep.subr.bf16.mxu0 %v11937_v57  ;;  %6778 = vmatprep.subr.bf16.mxu1 %v11938_v38  ;;  %v11948_v57 = vld [vmem:[#allocation65_spill] sm:$0xff]  ;;  %v11949_v38 = vld [vmem:[#allocation82_spill] sm:$0xff] }
 0x4bf   :  { %6716 = vmatpush1.bf16.msra.mxu0 %v11939_v34  ;;  %6780 = vmatpush1.bf16.msra.mxu1 %v11940_v49  ;;  %v11950_v34 = vld [vmem:[#allocation67_spill] sm:$0xff]  ;;  %v11951_v49 = vld [vmem:[#allocation84_spill] sm:$0xff] }
 0x4c0   :  { %6718 = vmatprep.subr.bf16.mxu0 %v11941_v32  ;;  %6782 = vmatprep.subr.bf16.mxu1 %v11942_v4  ;;  %v11952_v32 = vld [vmem:[#allocation69_spill] sm:$0xff]  ;;  %v11953_v4 = vld [vmem:[#allocation86_spill] sm:$0xff] }
 0x4c3   :  { %6720 = vmatpush1.bf16.msra.mxu0 %v11943_v54  ;;  %6784 = vmatpush1.bf16.msra.mxu1 %v11944_v14  ;;  %v11954_v54 = vld [vmem:[#allocation71_spill] sm:$0xff] }
 0x4c4   :  { %6722 = vmatprep.subr.bf16.mxu0 %v11945_v28  ;;  %6786 = vmatprep.subr.bf16.mxu1 %v11946_v13 }
 0x4c7   :  { %6724 = vmatpush1.bf16.msra.mxu0 %v11947_v24  ;;  %6788 = vmatpush1.bf16.msra.mxu1 %v11948_v57 }
 0x4c8   :  { %6726 = vmatprep.subr.bf16.mxu0 %v11949_v38  ;;  %6790 = vmatprep.subr.bf16.mxu1 %v11950_v34 }
 0x4cb   :  { %6728 = vmatpush1.bf16.msra.mxu0 %v11951_v49  ;;  %6792 = vmatpush1.bf16.msra.mxu1 %v11952_v32 }
 0x4cc   :  { %6794 = vmatprep.subr.bf16.mxu0 %v11953_v4  ;;  %6858 = vmatprep.subr.bf16.mxu1 %v11954_v54 }
 0x521   :  { %v2160_v14 = vpop.f32.mrb[24].mxu0  ;;  %v2231_v28 = vpop.f32.mrb[16].mxu1 }
 0x522   :  { %v2388_v22 = vrot.slane %v2231_v28, 5  ;;  %v2396_v13 = vrot.slane %v2231_v28, 6  ;;  %v2162_v61 = vpop.f32.mrb[25].mxu0  ;;  %v2233_v24 = vpop.f32.mrb[17].mxu1 }
 0x523   :  { %v2389_v5 = vrot.slane %v2233_v24, 5  ;;  %v2397_v57 = vrot.slane %v2233_v24, 6 }
 0x524   :  { %v2420_v38 = vadd.f32 %v2388_v22, %v11843_v27  ;;  %v2428_v34 = vadd.f32 %v2396_v13, %v11955_v16 }
 0x525   :  { %v2421_v49 = vadd.f32 %v2389_v5, %v9154_v60  ;;  %v2429_v4 = vadd.f32 %v2397_v57, %v11956_v53  ;;  %v2514_v5 = vrot.slane %v9598_v56, 7  ;;  %v2516_v57 = vrot.slane %v9601_v25, 7  ;;  %v11957_v56 = vld [vmem:[#allocation147_spill] sm:$0xff]  ;;  %v11958_v25 = vld [vmem:[#allocation148_spill] sm:$0xff] }
 0x526   :  { %v5332_v40 = vmul.f32 -1.442695, %v2420_v38  ;;  %v5338_v32 = vmul.f32 -1.442695, %v2428_v34 }
 0x527   :  { %v5333_v54 = vmul.f32 -1.442695, %v2421_v49  ;;  %v5339_v51 = vmul.f32 -1.442695, %v2429_v4 }
 0x528   :  { %8087 = vpow2.f32 %v5332_v40 }
 0x529   :  { %8089 = vpow2.f32 %v5338_v32 }
 0x52a   :  { %8091 = vpow2.f32 %v5333_v54  ;;  %v2517_v54 = vrot.slane %v9609_v6, 7 }
 0x52b   :  { %8093 = vpow2.f32 %v5339_v51  ;;  %v2386_v51 = vrot.slane %v2160_v14, 5 }
 0x532   :  { %v8088_v28 = vpop.eup %8087 }
 0x533   :  { %v8090_v1 = vpop.eup %8089  ;;  %v2472_v17 = vadd.f32 1.0, %v8088_v28 }
 0x534   :  { %v2478_v24 = vadd.f32 1.0, %v8090_v1  ;;  %v8092_v22 = vpop.eup %8091  ;;  %v2394_v1 = vrot.slane %v2160_v14, 6 }
 0x535   :  { %8095 = vrcp.f32 %v2472_v17  ;;  %v8094_v13 = vpop.eup %8093  ;;  %v2473_v38 = vadd.f32 1.0, %v8092_v22  ;;  %v2515_v17 = vrot.slane %v9606_v10, 7  ;;  %v2418_v22 = vadd.f32 %v2386_v51, %v11957_v56  ;;  %v11960_v10 = vld [vmem:[#allocation150_spill] sm:$0xff] }
 0x536   :  { %8097 = vrcp.f32 %v2478_v24  ;;  %v2479_v16 = vadd.f32 1.0, %v8094_v13  ;;  %v2387_v24 = vrot.slane %v2162_v61, 5 }
 0x537   :  { %8099 = vrcp.f32 %v2473_v38  ;;  %v2426_v38 = vadd.f32 %v2394_v1, %v11958_v25 }
 0x538   :  { %8101 = vrcp.f32 %v2479_v16 }
 0x539   :  { %v5336_v53 = vmul.f32 -1.442695, %v2426_v38 }
 0x53f   :  { %v8096_v40 = vpop.eup %8095 }
 0x540   :  { %v8098_v34 = vpop.eup %8097  ;;  %v9779_v49 = vmul.f32 %v8096_v40, %v2514_v5  ;;  %v2395_v5 = vrot.slane %v2162_v61, 6  ;;  %v11959_v40 = vld [vmem:[#allocation149_spill] sm:$0xff] }
 0x541   :  { %v9781_v32 = vmul.f32 %v8098_v34, %v2516_v57  ;;  %v8100_v4 = vpop.eup %8099  ;;  %v2419_v57 = vadd.f32 %v2387_v24, %v11959_v40  ;;  %v5330_v34 = vmul.f32 -1.442695, %v2418_v22 }
 0x542   :  { %v8102_v28 = vpop.eup %8101  ;;  %v9785_v16 = vmul.f32 %v8100_v4, %v2515_v17  ;;  %v2427_v14 = vadd.f32 %v2395_v5, %v11960_v10 }
 0x543   :  { %v9788_v13 = vmul.f32 %v8102_v28, %v2517_v54  ;;  %v5331_v60 = vmul.f32 -1.442695, %v2419_v57  ;;  %8103 = vpow2.f32 %v5330_v34 }
 0x544   :  { %8105 = vpow2.f32 %v5336_v53  ;;  %v5337_v6 = vmul.f32 -1.442695, %v2427_v14 }
 0x545   :  { %8107 = vpow2.f32 %v5331_v60 }
 0x546   :  { %8109 = vpow2.f32 %v5337_v6 }
 0x54d   :  { %v8104_v17 = vpop.eup %8103 }
 0x54e   :  { %v8106_v4 = vpop.eup %8105  ;;  %v2470_v54 = vadd.f32 1.0, %v8104_v17 }
 0x54f   :  { %v8108_v51 = vpop.eup %8107  ;;  %v2476_v28 = vadd.f32 1.0, %v8106_v4 }
 0x550   :  { %v8110_v56 = vpop.eup %8109  ;;  %v2471_v1 = vadd.f32 1.0, %v8108_v51  ;;  %8111 = vrcp.f32 %v2470_v54 }
 0x551   :  { %8113 = vrcp.f32 %v2476_v28  ;;  %v2477_v61 = vadd.f32 1.0, %v8110_v56 }
 0x552   :  { %8115 = vrcp.f32 %v2471_v1 }
 0x553   :  { %8117 = vrcp.f32 %v2477_v61 }
 0x561   :  { %v2302_v24 = vpop.f32.mrb[26].mxu0  ;;  %v2373_v22 = vpop.f32.mrb[18].mxu1 }
 0x562   :  { %v2390_v38 = vrot.slane %v2302_v24, 5  ;;  %v2398_v5 = vrot.slane %v2302_v24, 6  ;;  %v2392_v57 = vrot.slane %v2373_v22, 5  ;;  %v2400_v34 = vrot.slane %v2373_v22, 6  ;;  %v2304_v53 = vpop.f32.mrb[27].mxu0  ;;  %v2375_v14 = vpop.f32.mrb[19].mxu1 }
 0x563   :  { %v2391_v60 = vrot.slane %v2304_v53, 5  ;;  %v2399_v6 = vrot.slane %v2304_v53, 6  ;;  %v2393_v10 = vrot.slane %v2375_v14, 5  ;;  %v2401_v24 = vrot.slane %v2375_v14, 6 }
 0x564   :  { %v2422_v17 = vadd.f32 %v2390_v38, %v9202_v59  ;;  %v2430_v4 = vadd.f32 %v2398_v5, %v11846_v8  ;;  %v2424_v51 = vadd.f32 %v2392_v57, %v11744_v23  ;;  %v2432_v56 = vadd.f32 %v2400_v34, %v11847_v0  ;;  %v8112_v57 = vpop.eup %8111 }
 0x565   :  { %v2423_v54 = vadd.f32 %v2391_v60, %v9205_v9  ;;  %v2431_v28 = vadd.f32 %v2399_v6, %v11848_v12  ;;  %v2425_v38 = vadd.f32 %v2393_v10, %v11745_v58  ;;  %v2433_v5 = vadd.f32 %v2401_v24, %v11743_v15  ;;  %v8114_v61 = vpop.eup %8113 }
 0x566   :  { %v5334_v22 = vmul.f32 -1.442695, %v2422_v17  ;;  %v5340_v40 = vmul.f32 -1.442695, %v2430_v4  ;;  %8119 = vtanh.f32 %v2424_v51  ;;  %v8116_v34 = vpop.eup %8115 }
 0x567   :  { %8121 = vtanh.f32 %v2432_v56  ;;  %v5335_v1 = vmul.f32 -1.442695, %v2423_v54  ;;  %v5341_v53 = vmul.f32 -1.442695, %v2431_v28  ;;  %v8118_v14 = vpop.eup %8117 }
 0x568   :  { %8123 = vpow2.f32 %v5334_v22 }
 0x569   :  { %8125 = vpow2.f32 %v5340_v40 }
 0x56a   :  { %8127 = vpow2.f32 %v5335_v1 }
 0x56b   :  { %8129 = vpow2.f32 %v5341_v53 }
 0x56c   :  { %8131 = vtanh.f32 %v2425_v38 }
 0x56d   :  { %8133 = vtanh.f32 %v2433_v5 }
 0x570   :  { %v8120_v60 = vpop.eup %8119 }
 0x571   :  { %v8122_v6 = vpop.eup %8121  ;;  %v2526_v17 = vmul.f32 %v8120_v60, %v8112_v57 }
 0x572   :  { %v8124_v4 = vpop.eup %8123  ;;  %v2528_v51 = vmul.f32 %v8122_v6, %v8114_v61 }
 0x573   :  { %v8126_v56 = vpop.eup %8125  ;;  %v2474_v54 = vadd.f32 1.0, %v8124_v4  ;;  %v9802_v10 = vadd.f32 %v2526_v17, %v9779_v49 }
 0x574   :  { %v8128_v40 = vpop.eup %8127  ;;  %v2480_v28 = vadd.f32 1.0, %v8126_v56  ;;  %v9805_v24 = vadd.f32 %v2528_v51, %v9781_v32 }
 0x575   :  { %v8130_v22 = vpop.eup %8129  ;;  %8135 = vrcp.f32 %v2474_v54  ;;  %v2475_v1 = vadd.f32 1.0, %v8128_v40 }
 0x576   :  { %v8132_v53 = vpop.eup %8131  ;;  %8137 = vrcp.f32 %v2480_v28  ;;  %v2481_v38 = vadd.f32 1.0, %v8130_v22 }
 0x577   :  { %v8134_v5 = vpop.eup %8133  ;;  %8139 = vtanh.f32 %v9802_v10  ;;  %v2527_v57 = vmul.f32 %v8132_v53, %v8116_v34 }
 0x578   :  { %8141 = vtanh.f32 %v9805_v24  ;;  %v2529_v61 = vmul.f32 %v8134_v5, %v8118_v14 }
 0x579   :  { %8143 = vrcp.f32 %v2475_v1  ;;  %v9810_v49 = vadd.f32 %v2527_v57, %v9785_v16 }
 0x57a   :  { %8145 = vrcp.f32 %v2481_v38  ;;  %v9813_v32 = vadd.f32 %v2529_v61, %v9788_v13 }
 0x57b   :  { %8147 = vtanh.f32 %v9810_v49 }
 0x57c   :  { %8149 = vtanh.f32 %v9813_v32 }
 0x57f   :  { %v8136_v60 = vpop.eup %8135 }
 0x580   :  { %v8138_v6 = vpop.eup %8137 }
 0x581   :  { %v8140_v17 = vpop.eup %8139 }
 0x582   :  { %v8142_v34 = vpop.eup %8141  ;;  %v2538_v4 = vmul.f32 %v8140_v17, %v8136_v60  ;;  %v11965_v17 = vld [vmem:[#allocation118_spill] sm:$0xff] }
 0x583   :  { %v8144_v51 = vpop.eup %8143  ;;  %v2540_v14 = vmul.f32 %v8142_v34, %v8138_v6  ;;  %v11964_v6 = vld [vmem:[#allocation101_spill] sm:$0xff]  ;;  %v11966_v34 = vld [vmem:[#allocation103_spill] sm:$0xff] }
 0x584   :  { %v8146_v56 = vpop.eup %8145  ;;  %v2546_v54 = vrot.slane %v2538_v4, 3  ;;  %v9819_v16 = vsel %vm4392_vm4, %v9620_v52, %v2538_v4  ;;  %v11967_v4 = vld [vmem:[#allocation120_spill] sm:$0xff] }
 0x585   :  { %v8148_v13 = vpop.eup %8147  ;;  %v2547_v40 = vrot.slane %v2540_v14, 2  ;;  %v9823_v28 = vsel %vm4392_vm4, %v9623_v3, %v2540_v14  ;;  %v11961_v3 = vld [vmem:[#allocation114_spill] sm:$0xff] }
 0x586   :  { %v8150_v22 = vpop.eup %8149  ;;  %v2539_v1 = vmul.f32 %v8148_v13, %v8144_v51  ;;  %v11968_v51 = vld [vmem:[#allocation105_spill] sm:$0xff]  ;;  %v11969_v14 = vld [vmem:[#allocation122_spill] sm:$0xff] }
 0x587   :  { %v2541_v53 = vmul.f32 %v8150_v22, %v8146_v56  ;;  %v9826_v38 = vsel %vm1178_vm1, %v2547_v40, %v2546_v54  ;;  %v11970_v56 = vld [vmem:[#allocation107_spill] sm:$0xff]  ;;  %v11971_v54 = vld [vmem:[#allocation124_spill] sm:$0xff]  ;;  %v11972_v13 = vld [vmem:[#allocation109_spill] sm:$0xff] }
 0x588   :  { %v2549_v5 = vrot.slane %v2539_v1, 3  ;;  %v9830_v57 = vsel %vm4392_vm4, %v9635_v26, %v2539_v1  ;;  %v11962_v26 = vld [vmem:[#allocation99_spill] sm:$0xff]  ;;  %v11973_v40 = vld [vmem:[#allocation126_spill] sm:$0xff]  ;;  %v11975_v1 = vld [vmem:[#allocation128_spill] sm:$0xff] }
 0x589   :  { %v2550_v61 = vrot.slane %v2541_v53, 2  ;;  %v9834_v52 = vsel %vm4392_vm4, %v9638_v44, %v2541_v53  ;;  %v11963_v44 = vld [vmem:[#allocation116_spill] sm:$0xff]  ;;  %v11974_v22 = vld [vmem:[#allocation111_spill] sm:$0xff]  ;;  %v11976_v53 = vld [vmem:[#allocation113_spill] sm:$0xff] }
 0x58b   :  { %v2551_v60 = vsel %vm1178_vm1, %v2550_v61, %v2549_v5  ;;  %v11977_v5 = vld [vmem:[#allocation130_spill] sm:$0xff]  ;;  %v11978_v61 = vld [vmem:[#allocation115_spill] sm:$0xff] }
 0x58c   :  { %2618 = vmatprep.mubr.f32.mxu0 %v2551_v60  ;;  %2689 = vmatprep.mubr.f32.mxu1 %v2551_v60 }
 0x58d   :  { %2619 = vmatmul.mubr.f32.vlgmr.msra.gmra.mrb[28].mxu0 %v9826_v38  ;;  %2690 = vmatmul.mubr.f32.vlgmr.msra.gmra.mrb[20].mxu1 %v9826_v38 }
 0x58e   :  { %6796 = vmatpush1.bf16.msra.mxu0 %v11638_v7  ;;  %6860 = vmatpush1.bf16.msra.mxu1 %v11639_v43 }
 0x58f   :  { %2760 = vmatprep.mubr.f32.mxu0 %v2551_v60  ;;  %2831 = vmatprep.mubr.f32.mxu1 %v2551_v60  ;;  %v11979_v60 = vld [vmem:[#allocation132_spill] sm:$0xff] }
 0x590   :  { %6798 = vmatprep.subr.bf16.mxu0 %v11640_v45  ;;  %6862 = vmatprep.subr.bf16.mxu1 %v11641_v46 }
 0x592   :  { %6800 = vmatpush1.bf16.msra.mxu0 %v11642_v30  ;;  %6864 = vmatpush1.bf16.msra.mxu1 %v11643_v2 }
 0x593   :  { %6802 = vmatprep.subr.bf16.mxu0 %v11644_v33  ;;  %6866 = vmatprep.subr.bf16.mxu1 %v11645_v35 }
 0x596   :  { %6804 = vmatpush1.bf16.msra.mxu0 %v11646_v48  ;;  %6868 = vmatpush1.bf16.msra.mxu1 %v11647_v18 }
 0x597   :  { %6806 = vmatprep.subr.bf16.mxu0 %v11648_v36  ;;  %6870 = vmatprep.subr.bf16.mxu1 %v11649_v19 }
 0x59a   :  { %6808 = vmatpush1.bf16.msra.mxu0 %v11746_v41  ;;  %6872 = vmatpush1.bf16.msra.mxu1 %v11747_v62 }
 0x59b   :  { %6810 = vmatprep.subr.bf16.mxu0 %v11748_v37  ;;  %6874 = vmatprep.subr.bf16.mxu1 %v11853_v11 }
 0x59e   :  { %6812 = vmatpush1.bf16.msra.mxu0 %v11750_v63  ;;  %6876 = vmatpush1.bf16.msra.mxu1 %v11854_v39 }
 0x59f   :  { %6814 = vmatprep.subr.bf16.mxu0 %v11752_v29  ;;  %6878 = vmatprep.subr.bf16.mxu1 %v11855_v47 }
 0x5a2   :  { %6816 = vmatpush1.bf16.msra.mxu0 %v11754_v20  ;;  %6880 = vmatpush1.bf16.msra.mxu1 %v11856_v31 }
 0x5a3   :  { %6818 = vmatprep.subr.bf16.mxu0 %v11756_v21  ;;  %6882 = vmatprep.subr.bf16.mxu1 %v11857_v42 }
 0x5a6   :  { %6820 = vmatpush1.bf16.msra.mxu0 %v11758_v55  ;;  %6884 = vmatpush1.bf16.msra.mxu1 %v11858_v50 }
 0x5a7   :  { %6822 = vmatprep.subr.bf16.mxu0 %v11961_v3  ;;  %6886 = vmatprep.subr.bf16.mxu1 %v11962_v26 }
 0x5aa   :  { %6824 = vmatpush1.bf16.msra.mxu0 %v11963_v44  ;;  %6888 = vmatpush1.bf16.msra.mxu1 %v11964_v6  ;;  %v12065_v44 = vld [vmem:[#allocation146_spill] sm:$0xff] }
 0x5ab   :  { %6826 = vmatprep.subr.bf16.mxu0 %v11965_v17  ;;  %6890 = vmatprep.subr.bf16.mxu1 %v11966_v34  ;;  %v12063_v34 = vld [vmem:[#allocation145_spill] sm:$0xff] }
 0x5ae   :  { %6828 = vmatpush1.bf16.msra.mxu0 %v11967_v4  ;;  %6892 = vmatpush1.bf16.msra.mxu1 %v11968_v51 }
 0x5af   :  { %6830 = vmatprep.subr.bf16.mxu0 %v11969_v14  ;;  %6894 = vmatprep.subr.bf16.mxu1 %v11970_v56  ;;  %v11980_v14 = vld [vmem:[#allocation117_spill] sm:$0xff]  ;;  %v11981_v56 = vld [vmem:[#allocation134_spill] sm:$0xff] }
 0x5b2   :  { %6832 = vmatpush1.bf16.msra.mxu0 %v11971_v54  ;;  %6896 = vmatpush1.bf16.msra.mxu1 %v11972_v13  ;;  %v11982_v54 = vld [vmem:[#allocation119_spill] sm:$0xff] }
 0x5b3   :  { %6834 = vmatprep.subr.bf16.mxu0 %v11973_v40  ;;  %6898 = vmatprep.subr.bf16.mxu1 %v11974_v22  ;;  %v11983_v13 = vld [vmem:[#allocation135_spill] sm:$0xff]  ;;  %v11984_v40 = vld [vmem:[#allocation121_spill] sm:$0xff]  ;;  %v11985_v22 = vld [vmem:[#allocation136_spill] sm:$0xff] }
 0x5b6   :  { %6836 = vmatpush1.bf16.msra.mxu0 %v11975_v1  ;;  %6900 = vmatpush1.bf16.msra.mxu1 %v11976_v53  ;;  %v11986_v1 = vld [vmem:[#allocation123_spill] sm:$0xff]  ;;  %v11987_v53 = vld [vmem:[#allocation137_spill] sm:$0xff] }
 0x5b7   :  { %6838 = vmatprep.subr.bf16.mxu0 %v11977_v5  ;;  %6902 = vmatprep.subr.bf16.mxu1 %v11978_v61  ;;  %v11988_v5 = vld [vmem:[#allocation125_spill] sm:$0xff]  ;;  %v11989_v61 = vld [vmem:[#allocation138_spill] sm:$0xff] }
 0x5ba   :  { %6840 = vmatpush1.bf16.msra.mxu0 %v11979_v60  ;;  %6904 = vmatpush1.bf16.msra.mxu1 %v11980_v14  ;;  %v11990_v60 = vld [vmem:[#allocation127_spill] sm:$0xff] }
 0x5bb   :  { %6842 = vmatprep.subr.bf16.mxu0 %v11981_v56  ;;  %6906 = vmatprep.subr.bf16.mxu1 %v11982_v54  ;;  %v11991_v14 = vld [vmem:[#allocation139_spill] sm:$0xff]  ;;  %v11992_v56 = vld [vmem:[#allocation129_spill] sm:$0xff]  ;;  %v11993_v54 = vld [vmem:[#allocation140_spill] sm:$0xff] }
 0x5be   :  { %6844 = vmatpush1.bf16.msra.mxu0 %v11983_v13  ;;  %6908 = vmatpush1.bf16.msra.mxu1 %v11984_v40  ;;  %v11994_v13 = vld [vmem:[#allocation131_spill] sm:$0xff]  ;;  %v11995_v40 = vld [vmem:[#allocation141_spill] sm:$0xff] }
 0x5bf   :  { %6846 = vmatprep.subr.bf16.mxu0 %v11985_v22  ;;  %6910 = vmatprep.subr.bf16.mxu1 %v11986_v1  ;;  %v11996_v22 = vld [vmem:[#allocation133_spill] sm:$0xff]  ;;  %v11997_v1 = vld [vmem:[#allocation20_spill] sm:$0xff] }
 0x5c2   :  { %6848 = vmatpush1.bf16.msra.mxu0 %v11987_v53  ;;  %6912 = vmatpush1.bf16.msra.mxu1 %v11988_v5  ;;  %v11998_v53 = vld [vmem:[#allocation14_spill] sm:$0xff] }
 0x5c3   :  { %6850 = vmatprep.subr.bf16.mxu0 %v11989_v61  ;;  %6914 = vmatprep.subr.bf16.mxu1 %v11990_v60  ;;  %v11999_v60 = vld [vmem:[#allocation24_spill] sm:$0xff]  ;;  %v12008_v61 = vld [vmem:[#allocation19_spill] sm:$0xff] }
 0x5c6   :  { %6852 = vmatpush1.bf16.msra.mxu0 %v11991_v14  ;;  %6916 = vmatpush1.bf16.msra.mxu1 %v11992_v56  ;;  %v12000_v14 = vld [vmem:[#allocation15_spill] sm:$0xff]  ;;  %v12001_v56 = vld [vmem:[#allocation26_spill] sm:$0xff] }
 0x5c7   :  { %6854 = vmatprep.subr.bf16.mxu0 %v11993_v54  ;;  %6918 = vmatprep.subr.bf16.mxu1 %v11994_v13  ;;  %v12002_v54 = vld [vmem:[#allocation16_spill] sm:$0xff] }
 0x5c8   :  { %v12003_v13 = vld [vmem:[#allocation28_spill] sm:$0xff] }
 0x5ca   :  { %6856 = vmatpush1.bf16.msra.mxu0 %v11995_v40  ;;  %6920 = vmatpush1.bf16.msra.mxu1 %v11996_v22  ;;  %v12004_v40 = vld [vmem:[#allocation17_spill] sm:$0xff]  ;;  %v12005_v22 = vld [vmem:[#allocation30_spill] sm:$0xff] }
 0x5cb   :  { %6922 = vmatprep.subr.bf16.mxu0 %v11997_v1  ;;  %6986 = vmatprep.subr.bf16.mxu1 %v11998_v53  ;;  %v12006_v1 = vld [vmem:[#allocation18_spill] sm:$0xff]  ;;  %v12007_v53 = vld [vmem:[#allocation32_spill] sm:$0xff] }
 0x5cd   :  { %2761 = vmatmul.mubr.f32.vlgmr.msra.gmra.mrb[30].mxu0 %v9826_v38  ;;  %2832 = vmatmul.mubr.f32.vlgmr.msra.gmra.mrb[22].mxu1 %v9826_v38  ;;  %v12009_v38 = vld [vmem:[#allocation34_spill] sm:$0xff] }
 0x5ce   :  { %6924 = vmatpush1.bf16.msra.mxu0 %v11999_v60  ;;  %6988 = vmatpush1.bf16.msra.mxu1 %v12000_v14  ;;  %v12010_v60 = vld [vmem:[#allocation21_spill] sm:$0xff]  ;;  %v12011_v14 = vld [vmem:[#allocation36_spill] sm:$0xff] }
 0x5cf   :  { %6926 = vmatprep.subr.bf16.mxu0 %v12001_v56  ;;  %6990 = vmatprep.subr.bf16.mxu1 %v12002_v54  ;;  %v12012_v56 = vld [vmem:[#allocation22_spill] sm:$0xff] }
 0x5d0   :  { %v12013_v54 = vld [vmem:[#allocation38_spill] sm:$0xff] }
 0x5d2   :  { %6928 = vmatpush1.bf16.msra.mxu0 %v12003_v13  ;;  %6992 = vmatpush1.bf16.msra.mxu1 %v12004_v40  ;;  %v12014_v13 = vld [vmem:[#allocation23_spill] sm:$0xff]  ;;  %v12015_v40 = vld [vmem:[#allocation40_spill] sm:$0xff] }
 0x5d3   :  { %6930 = vmatprep.subr.bf16.mxu0 %v12005_v22  ;;  %6994 = vmatprep.subr.bf16.mxu1 %v12006_v1  ;;  %v12016_v22 = vld [vmem:[#allocation25_spill] sm:$0xff]  ;;  %v12017_v1 = vld [vmem:[#allocation42_spill] sm:$0xff] }
 0x5d6   :  { %6932 = vmatpush1.bf16.msra.mxu0 %v12007_v53  ;;  %6996 = vmatpush1.bf16.msra.mxu1 %v12008_v61  ;;  %v12018_v53 = vld [vmem:[#allocation27_spill] sm:$0xff]  ;;  %v12019_v61 = vld [vmem:[#allocation44_spill] sm:$0xff] }
 0x5d7   :  { %6934 = vmatprep.subr.bf16.mxu0 %v12009_v38  ;;  %6998 = vmatprep.subr.bf16.mxu1 %v12010_v60  ;;  %v12020_v38 = vld [vmem:[#allocation29_spill] sm:$0xff]  ;;  %v12021_v60 = vld [vmem:[#allocation46_spill] sm:$0xff] }
 0x5da   :  { %6936 = vmatpush1.bf16.msra.mxu0 %v12011_v14  ;;  %7000 = vmatpush1.bf16.msra.mxu1 %v12012_v56  ;;  %v12022_v14 = vld [vmem:[#allocation31_spill] sm:$0xff]  ;;  %v12023_v56 = vld [vmem:[#allocation48_spill] sm:$0xff] }
 0x5db   :  { %6938 = vmatprep.subr.bf16.mxu0 %v12013_v54  ;;  %7002 = vmatprep.subr.bf16.mxu1 %v12014_v13  ;;  %v12024_v54 = vld [vmem:[#allocation33_spill] sm:$0xff]  ;;  %v12025_v13 = vld [vmem:[#allocation50_spill] sm:$0xff] }
 0x5de   :  { %6940 = vmatpush1.bf16.msra.mxu0 %v12015_v40  ;;  %7004 = vmatpush1.bf16.msra.mxu1 %v12016_v22  ;;  %v12026_v40 = vld [vmem:[#allocation35_spill] sm:$0xff]  ;;  %v12027_v22 = vld [vmem:[#allocation52_spill] sm:$0xff] }
 0x5df   :  { %6942 = vmatprep.subr.bf16.mxu0 %v12017_v1  ;;  %7006 = vmatprep.subr.bf16.mxu1 %v12018_v53  ;;  %v12028_v1 = vld [vmem:[#allocation37_spill] sm:$0xff]  ;;  %v12029_v53 = vld [vmem:[#allocation54_spill] sm:$0xff] }
 0x5e2   :  { %6944 = vmatpush1.bf16.msra.mxu0 %v12019_v61  ;;  %7008 = vmatpush1.bf16.msra.mxu1 %v12020_v38  ;;  %v12030_v61 = vld [vmem:[#allocation39_spill] sm:$0xff]  ;;  %v12031_v38 = vld [vmem:[#allocation56_spill] sm:$0xff] }
 0x5e3   :  { %6946 = vmatprep.subr.bf16.mxu0 %v12021_v60  ;;  %7010 = vmatprep.subr.bf16.mxu1 %v12022_v14  ;;  %v12032_v60 = vld [vmem:[#allocation41_spill] sm:$0xff]  ;;  %v12033_v14 = vld [vmem:[#allocation58_spill] sm:$0xff] }
 0x5e6   :  { %6948 = vmatpush1.bf16.msra.mxu0 %v12023_v56  ;;  %7012 = vmatpush1.bf16.msra.mxu1 %v12024_v54  ;;  %v12034_v56 = vld [vmem:[#allocation43_spill] sm:$0xff]  ;;  %v12035_v54 = vld [vmem:[#allocation60_spill] sm:$0xff] }
 0x5e7   :  { %6950 = vmatprep.subr.bf16.mxu0 %v12025_v13  ;;  %7014 = vmatprep.subr.bf16.mxu1 %v12026_v40  ;;  %v12036_v13 = vld [vmem:[#allocation45_spill] sm:$0xff]  ;;  %v12037_v40 = vld [vmem:[#allocation62_spill] sm:$0xff] }
 0x5ea   :  { %6952 = vmatpush1.bf16.msra.mxu0 %v12027_v22  ;;  %7016 = vmatpush1.bf16.msra.mxu1 %v12028_v1  ;;  %v12038_v22 = vld [vmem:[#allocation47_spill] sm:$0xff]  ;;  %v12039_v1 = vld [vmem:[#allocation64_spill] sm:$0xff] }
 0x5eb   :  { %6954 = vmatprep.subr.bf16.mxu0 %v12029_v53  ;;  %7018 = vmatprep.subr.bf16.mxu1 %v12030_v61  ;;  %v12040_v53 = vld [vmem:[#allocation49_spill] sm:$0xff]  ;;  %v12041_v61 = vld [vmem:[#allocation66_spill] sm:$0xff] }
 0x5ee   :  { %6956 = vmatpush1.bf16.msra.mxu0 %v12031_v38  ;;  %7020 = vmatpush1.bf16.msra.mxu1 %v12032_v60  ;;  %v12042_v38 = vld [vmem:[#allocation51_spill] sm:$0xff]  ;;  %v12043_v60 = vld [vmem:[#allocation68_spill] sm:$0xff] }
 0x5ef   :  { %6958 = vmatprep.subr.bf16.mxu0 %v12033_v14  ;;  %7022 = vmatprep.subr.bf16.mxu1 %v12034_v56  ;;  %v12044_v14 = vld [vmem:[#allocation53_spill] sm:$0xff]  ;;  %v12045_v56 = vld [vmem:[#allocation70_spill] sm:$0xff] }
 0x5f2   :  { %6960 = vmatpush1.bf16.msra.mxu0 %v12035_v54  ;;  %7024 = vmatpush1.bf16.msra.mxu1 %v12036_v13  ;;  %v12046_v54 = vld [vmem:[#allocation55_spill] sm:$0xff]  ;;  %v12047_v13 = vld [vmem:[#allocation72_spill] sm:$0xff] }
 0x5f3   :  { %6962 = vmatprep.subr.bf16.mxu0 %v12037_v40  ;;  %7026 = vmatprep.subr.bf16.mxu1 %v12038_v22  ;;  %v12048_v40 = vld [vmem:[#allocation57_spill] sm:$0xff]  ;;  %v12049_v22 = vld [vmem:[#allocation74_spill] sm:$0xff] }
 0x5f6   :  { %6964 = vmatpush1.bf16.msra.mxu0 %v12039_v1  ;;  %7028 = vmatpush1.bf16.msra.mxu1 %v12040_v53  ;;  %v12050_v1 = vld [vmem:[#allocation59_spill] sm:$0xff]  ;;  %v12051_v53 = vld [vmem:[#allocation76_spill] sm:$0xff] }
 0x5f7   :  { %6966 = vmatprep.subr.bf16.mxu0 %v12041_v61  ;;  %7030 = vmatprep.subr.bf16.mxu1 %v12042_v38  ;;  %v12052_v61 = vld [vmem:[#allocation61_spill] sm:$0xff]  ;;  %v12053_v38 = vld [vmem:[#allocation78_spill] sm:$0xff] }
 0x5fa   :  { %6968 = vmatpush1.bf16.msra.mxu0 %v12043_v60  ;;  %7032 = vmatpush1.bf16.msra.mxu1 %v12044_v14  ;;  %v12054_v60 = vld [vmem:[#allocation63_spill] sm:$0xff]  ;;  %v12055_v14 = vld [vmem:[#allocation80_spill] sm:$0xff] }
 0x5fb   :  { %6970 = vmatprep.subr.bf16.mxu0 %v12045_v56  ;;  %7034 = vmatprep.subr.bf16.mxu1 %v12046_v54  ;;  %v12056_v56 = vld [vmem:[#allocation65_spill] sm:$0xff]  ;;  %v12057_v54 = vld [vmem:[#allocation82_spill] sm:$0xff] }
 0x5fe   :  { %6972 = vmatpush1.bf16.msra.mxu0 %v12047_v13  ;;  %7036 = vmatpush1.bf16.msra.mxu1 %v12048_v40  ;;  %v12058_v13 = vld [vmem:[#allocation67_spill] sm:$0xff]  ;;  %v12059_v40 = vld [vmem:[#allocation84_spill] sm:$0xff] }
 0x5ff   :  { %6974 = vmatprep.subr.bf16.mxu0 %v12049_v22  ;;  %7038 = vmatprep.subr.bf16.mxu1 %v12050_v1  ;;  %v12060_v22 = vld [vmem:[#allocation69_spill] sm:$0xff]  ;;  %v12061_v1 = vld [vmem:[#allocation86_spill] sm:$0xff] }
 0x602   :  { %6976 = vmatpush1.bf16.msra.mxu0 %v12051_v53  ;;  %7040 = vmatpush1.bf16.msra.mxu1 %v12052_v61  ;;  %v12062_v53 = vld [vmem:[#allocation71_spill] sm:$0xff] }
 0x603   :  { %6978 = vmatprep.subr.bf16.mxu0 %v12053_v38  ;;  %7042 = vmatprep.subr.bf16.mxu1 %v12054_v60 }
 0x606   :  { %6980 = vmatpush1.bf16.msra.mxu0 %v12055_v14  ;;  %7044 = vmatpush1.bf16.msra.mxu1 %v12056_v56 }
 0x607   :  { %6982 = vmatprep.subr.bf16.mxu0 %v12057_v54  ;;  %7046 = vmatprep.subr.bf16.mxu1 %v12058_v13 }
 0x60a   :  { %6984 = vmatpush1.bf16.msra.mxu0 %v12059_v40  ;;  %7048 = vmatpush1.bf16.msra.mxu1 %v12060_v22  ;;  %v12064_v40 = vld [vmem:[#allocation144_spill] sm:$0xff] }
 0x60b   :  { %7050 = vmatprep.subr.bf16.mxu0 %v12061_v1  ;;  %7114 = vmatprep.subr.bf16.mxu1 %v12062_v53 }
 0x660   :  { %v2620_v61 = vpop.f32.mrb[28].mxu0  ;;  %v2691_v38 = vpop.f32.mrb[20].mxu1 }
 0x661   :  { %v2848_v5 = vrot.slane %v2691_v38, 4  ;;  %v2856_v60 = vrot.slane %v2691_v38, 5  ;;  %v2622_v51 = vpop.f32.mrb[29].mxu0  ;;  %v2693_v14 = vpop.f32.mrb[21].mxu1 }
 0x662   :  { %v2849_v4 = vrot.slane %v2693_v14, 4  ;;  %v2857_v56 = vrot.slane %v2693_v14, 5 }
 0x663   :  { %v2880_v54 = vadd.f32 %v2848_v5, %v11843_v27  ;;  %v2888_v13 = vadd.f32 %v2856_v60, %v12063_v34 }
 0x664   :  { %v2881_v6 = vadd.f32 %v2849_v4, %v12064_v40  ;;  %v2889_v1 = vadd.f32 %v2857_v56, %v12065_v44  ;;  %v2974_v4 = vrot.slane %v9802_v10, 7  ;;  %v12066_v10 = vld [vmem:[#allocation147_spill] sm:$0xff] }
 0x665   :  { %v5344_v17 = vmul.f32 -1.442695, %v2880_v54  ;;  %v5350_v22 = vmul.f32 -1.442695, %v2888_v13 }
 0x666   :  { %v5345_v53 = vmul.f32 -1.442695, %v2881_v6  ;;  %v5351_v26 = vmul.f32 -1.442695, %v2889_v1  ;;  %v2976_v6 = vrot.slane %v9805_v24, 7 }
 0x667   :  { %8151 = vpow2.f32 %v5344_v17 }
 0x668   :  { %8153 = vpow2.f32 %v5350_v22 }
 0x669   :  { %8155 = vpow2.f32 %v5345_v53  ;;  %v2977_v53 = vrot.slane %v9813_v32, 7 }
 0x66a   :  { %8157 = vpow2.f32 %v5351_v26  ;;  %v2846_v26 = vrot.slane %v2620_v61, 4 }
 0x671   :  { %v8152_v38 = vpop.eup %8151 }
 0x672   :  { %v8154_v3 = vpop.eup %8153  ;;  %v2932_v50 = vadd.f32 1.0, %v8152_v38 }
 0x673   :  { %v2938_v14 = vadd.f32 1.0, %v8154_v3  ;;  %v8156_v5 = vpop.eup %8155  ;;  %v2854_v3 = vrot.slane %v2620_v61, 5 }
 0x674   :  { %8159 = vrcp.f32 %v2932_v50  ;;  %v8158_v60 = vpop.eup %8157  ;;  %v2933_v54 = vadd.f32 1.0, %v8156_v5  ;;  %v2975_v50 = vrot.slane %v9810_v49, 7  ;;  %v2878_v5 = vadd.f32 %v2846_v26, %v12066_v10  ;;  %v12068_v49 = vld [vmem:[#allocation150_spill] sm:$0xff] }
 0x675   :  { %8161 = vrcp.f32 %v2938_v14  ;;  %v2939_v34 = vadd.f32 1.0, %v8158_v60  ;;  %v2847_v14 = vrot.slane %v2622_v51, 4  ;;  %v2886_v24 = vadd.f32 %v2854_v3, %v11958_v25 }
 0x676   :  { %8163 = vrcp.f32 %v2933_v54  ;;  %v2855_v54 = vrot.slane %v2622_v51, 5 }
 0x677   :  { %8165 = vrcp.f32 %v2939_v34 }
 0x678   :  { %v2887_v61 = vadd.f32 %v2855_v54, %v12068_v49 }
 0x67a   :  { %v5349_v32 = vmul.f32 -1.442695, %v2887_v61 }
 0x67e   :  { %v8160_v17 = vpop.eup %8159 }
 0x67f   :  { %v8162_v56 = vpop.eup %8161  ;;  %v9975_v13 = vmul.f32 %v8160_v17, %v2974_v4  ;;  %v12067_v4 = vld [vmem:[#allocation149_spill] sm:$0xff] }
 0x680   :  { %v9977_v22 = vmul.f32 %v8162_v56, %v2976_v6  ;;  %v8164_v1 = vpop.eup %8163  ;;  %v2879_v17 = vadd.f32 %v2847_v14, %v12067_v4  ;;  %v5342_v6 = vmul.f32 -1.442695, %v2878_v5  ;;  %v5348_v56 = vmul.f32 -1.442695, %v2886_v24 }
 0x681   :  { %v8166_v38 = vpop.eup %8165  ;;  %v9981_v34 = vmul.f32 %v8164_v1, %v2975_v50 }
 0x682   :  { %v9984_v60 = vmul.f32 %v8166_v38, %v2977_v53  ;;  %v5343_v44 = vmul.f32 -1.442695, %v2879_v17  ;;  %8167 = vpow2.f32 %v5342_v6 }
 0x683   :  { %8169 = vpow2.f32 %v5348_v56 }
 0x684   :  { %8171 = vpow2.f32 %v5343_v44 }
 0x685   :  { %8173 = vpow2.f32 %v5349_v32 }
 0x68c   :  { %v8168_v50 = vpop.eup %8167 }
 0x68d   :  { %v8170_v1 = vpop.eup %8169  ;;  %v2930_v53 = vadd.f32 1.0, %v8168_v50 }
 0x68e   :  { %v8172_v26 = vpop.eup %8171  ;;  %v2936_v38 = vadd.f32 1.0, %v8170_v1 }
 0x68f   :  { %v8174_v10 = vpop.eup %8173  ;;  %v2931_v3 = vadd.f32 1.0, %v8172_v26  ;;  %8175 = vrcp.f32 %v2930_v53 }
 0x690   :  { %8177 = vrcp.f32 %v2936_v38  ;;  %v2937_v51 = vadd.f32 1.0, %v8174_v10 }
 0x691   :  { %8179 = vrcp.f32 %v2931_v3 }
 0x692   :  { %8181 = vrcp.f32 %v2937_v51 }
 0x6a0   :  { %v2762_v14 = vpop.f32.mrb[30].mxu0  ;;  %v2833_v5 = vpop.f32.mrb[22].mxu1 }
 0x6a1   :  { %v2850_v24 = vrot.slane %v2762_v14, 4  ;;  %v2858_v54 = vrot.slane %v2762_v14, 5  ;;  %v2852_v17 = vrot.slane %v2833_v5, 4  ;;  %v2860_v6 = vrot.slane %v2833_v5, 5  ;;  %v2764_v56 = vpop.f32.mrb[31].mxu0  ;;  %v2835_v61 = vpop.f32.mrb[23].mxu1 }
 0x6a2   :  { %v2851_v44 = vrot.slane %v2764_v56, 4  ;;  %v2859_v32 = vrot.slane %v2764_v56, 5  ;;  %v2853_v49 = vrot.slane %v2835_v61, 4  ;;  %v2861_v14 = vrot.slane %v2835_v61, 5 }
 0x6a3   :  { %v2882_v50 = vadd.f32 %v2850_v24, %v9202_v59  ;;  %v2890_v1 = vadd.f32 %v2858_v54, %v11846_v8  ;;  %v2884_v26 = vadd.f32 %v2852_v17, %v11744_v23  ;;  %v2892_v10 = vadd.f32 %v2860_v6, %v11847_v0  ;;  %v8176_v17 = vpop.eup %8175 }
 0x6a4   :  { %v2883_v53 = vadd.f32 %v2851_v44, %v9205_v9  ;;  %v2891_v38 = vadd.f32 %v2859_v32, %v11848_v12  ;;  %v2885_v24 = vadd.f32 %v2853_v49, %v11745_v58  ;;  %v2893_v54 = vadd.f32 %v2861_v14, %v11743_v15  ;;  %v8178_v51 = vpop.eup %8177 }
 0x6a5   :  { %v5346_v5 = vmul.f32 -1.442695, %v2882_v50  ;;  %v5352_v4 = vmul.f32 -1.442695, %v2890_v1  ;;  %8183 = vtanh.f32 %v2884_v26  ;;  %v8180_v6 = vpop.eup %8179 }
 0x6a6   :  { %8185 = vtanh.f32 %v2892_v10  ;;  %v5347_v3 = vmul.f32 -1.442695, %v2883_v53  ;;  %v5353_v56 = vmul.f32 -1.442695, %v2891_v38  ;;  %v8182_v61 = vpop.eup %8181 }
 0x6a7   :  { %8187 = vpow2.f32 %v5346_v5 }
 0x6a8   :  { %8189 = vpow2.f32 %v5352_v4 }
 0x6a9   :  { %8191 = vpow2.f32 %v5347_v3 }
 0x6aa   :  { %8193 = vpow2.f32 %v5353_v56 }
 0x6ab   :  { %8195 = vtanh.f32 %v2885_v24 }
 0x6ac   :  { %8197 = vtanh.f32 %v2893_v54 }
 0x6af   :  { %v8184_v44 = vpop.eup %8183 }
 0x6b0   :  { %v8186_v32 = vpop.eup %8185  ;;  %v2986_v50 = vmul.f32 %v8184_v44, %v8176_v17 }
 0x6b1   :  { %v8188_v1 = vpop.eup %8187  ;;  %v2988_v26 = vmul.f32 %v8186_v32, %v8178_v51 }
 0x6b2   :  { %v8190_v10 = vpop.eup %8189  ;;  %v2934_v53 = vadd.f32 1.0, %v8188_v1  ;;  %v9998_v49 = vadd.f32 %v2986_v50, %v9975_v13 }
 0x6b3   :  { %v8192_v4 = vpop.eup %8191  ;;  %v2940_v38 = vadd.f32 1.0, %v8190_v10  ;;  %v10001_v14 = vadd.f32 %v2988_v26, %v9977_v22 }
 0x6b4   :  { %v8194_v5 = vpop.eup %8193  ;;  %8199 = vrcp.f32 %v2934_v53  ;;  %v2935_v3 = vadd.f32 1.0, %v8192_v4 }
 0x6b5   :  { %v8196_v56 = vpop.eup %8195  ;;  %8201 = vrcp.f32 %v2940_v38  ;;  %v2941_v24 = vadd.f32 1.0, %v8194_v5 }
 0x6b6   :  { %v8198_v54 = vpop.eup %8197  ;;  %8203 = vtanh.f32 %v9998_v49  ;;  %v2987_v17 = vmul.f32 %v8196_v56, %v8180_v6 }
 0x6b7   :  { %8205 = vtanh.f32 %v10001_v14  ;;  %v2989_v51 = vmul.f32 %v8198_v54, %v8182_v61 }
 0x6b8   :  { %8207 = vrcp.f32 %v2935_v3  ;;  %v10006_v13 = vadd.f32 %v2987_v17, %v9981_v34 }
 0x6b9   :  { %8209 = vrcp.f32 %v2941_v24  ;;  %v10009_v22 = vadd.f32 %v2989_v51, %v9984_v60 }
 0x6ba   :  { %8211 = vtanh.f32 %v10006_v13 }
 0x6bb   :  { %8213 = vtanh.f32 %v10009_v22 }
 0x6be   :  { %v8200_v44 = vpop.eup %8199 }
 0x6bf   :  { %v8202_v32 = vpop.eup %8201 }
 0x6c0   :  { %v8204_v50 = vpop.eup %8203 }
 0x6c1   :  { %v8206_v6 = vpop.eup %8205  ;;  %v2998_v1 = vmul.f32 %v8204_v50, %v8200_v44  ;;  %v12073_v50 = vld [vmem:[#allocation101_spill] sm:$0xff] }
 0x6c2   :  { %v8208_v26 = vpop.eup %8207  ;;  %v3000_v61 = vmul.f32 %v8206_v6, %v8202_v32  ;;  %v12072_v32 = vld [vmem:[#allocation116_spill] sm:$0xff]  ;;  %v12074_v6 = vld [vmem:[#allocation118_spill] sm:$0xff] }
 0x6c3   :  { %v8210_v10 = vpop.eup %8209  ;;  %v3006_v53 = vrot.slane %v2998_v1, 4  ;;  %v10015_v34 = vsel %vm4397_vm5, %v9819_v16, %v2998_v1  ;;  %v12075_v1 = vld [vmem:[#allocation103_spill] sm:$0xff] }
 0x6c4   :  { %v8212_v60 = vpop.eup %8211  ;;  %v3007_v4 = vrot.slane %v3000_v61, 3  ;;  %v10019_v38 = vsel %vm4397_vm5, %v9823_v28, %v3000_v61  ;;  %v12069_v28 = vld [vmem:[#allocation97_spill] sm:$0xff] }
 0x6c5   :  { %v8214_v5 = vpop.eup %8213  ;;  %v2999_v3 = vmul.f32 %v8212_v60, %v8208_v26  ;;  %v12076_v26 = vld [vmem:[#allocation120_spill] sm:$0xff]  ;;  %v12077_v61 = vld [vmem:[#allocation105_spill] sm:$0xff] }
 0x6c6   :  { %v3001_v56 = vmul.f32 %v8214_v5, %v8210_v10  ;;  %v10022_v24 = vsel %vm1178_vm1, %v3007_v4, %v3006_v53  ;;  %v12078_v10 = vld [vmem:[#allocation122_spill] sm:$0xff]  ;;  %v12079_v53 = vld [vmem:[#allocation107_spill] sm:$0xff]  ;;  %v12080_v60 = vld [vmem:[#allocation124_spill] sm:$0xff] }
 0x6c7   :  { %v3009_v54 = vrot.slane %v2999_v3, 4  ;;  %v10026_v17 = vsel %vm4397_vm5, %v9830_v57, %v2999_v3  ;;  %v12070_v57 = vld [vmem:[#allocation114_spill] sm:$0xff]  ;;  %v12081_v4 = vld [vmem:[#allocation109_spill] sm:$0xff]  ;;  %v12083_v3 = vld [vmem:[#allocation111_spill] sm:$0xff] }
 0x6c8   :  { %v3010_v51 = vrot.slane %v3001_v56, 3  ;;  %v10030_v16 = vsel %vm4397_vm5, %v9834_v52, %v3001_v56  ;;  %v12071_v52 = vld [vmem:[#allocation99_spill] sm:$0xff]  ;;  %v12082_v5 = vld [vmem:[#allocation126_spill] sm:$0xff]  ;;  %v12084_v56 = vld [vmem:[#allocation128_spill] sm:$0xff] }
 0x6ca   :  { %v3011_v44 = vsel %vm1178_vm1, %v3010_v51, %v3009_v54  ;;  %v12085_v54 = vld [vmem:[#allocation113_spill] sm:$0xff]  ;;  %v12086_v51 = vld [vmem:[#allocation130_spill] sm:$0xff] }
 0x6cb   :  { %3078 = vmatprep.mubr.f32.mxu0 %v3011_v44  ;;  %3149 = vmatprep.mubr.f32.mxu1 %v3011_v44 }
 0x6cc   :  { %3079 = vmatmul.mubr.f32.vlgmr.msra.gmra.mrb[32].mxu0 %v10022_v24  ;;  %3150 = vmatmul.mubr.f32.vlgmr.msra.gmra.mrb[24].mxu1 %v10022_v24 }
 0x6cd   :  { %7052 = vmatpush1.bf16.msra.mxu0 %v11638_v7  ;;  %7116 = vmatpush1.bf16.msra.mxu1 %v11639_v43 }
 0x6ce   :  { %3220 = vmatprep.mubr.f32.mxu0 %v3011_v44  ;;  %3291 = vmatprep.mubr.f32.mxu1 %v3011_v44  ;;  %v12087_v44 = vld [vmem:[#allocation115_spill] sm:$0xff] }
 0x6cf   :  { %7054 = vmatprep.subr.bf16.mxu0 %v11640_v45  ;;  %7118 = vmatprep.subr.bf16.mxu1 %v11641_v46 }
 0x6d1   :  { %7056 = vmatpush1.bf16.msra.mxu0 %v11642_v30  ;;  %7120 = vmatpush1.bf16.msra.mxu1 %v11643_v2 }
 0x6d2   :  { %7058 = vmatprep.subr.bf16.mxu0 %v11644_v33  ;;  %7122 = vmatprep.subr.bf16.mxu1 %v11645_v35 }
 0x6d5   :  { %7060 = vmatpush1.bf16.msra.mxu0 %v11646_v48  ;;  %7124 = vmatpush1.bf16.msra.mxu1 %v11647_v18 }
 0x6d6   :  { %7062 = vmatprep.subr.bf16.mxu0 %v11648_v36  ;;  %7126 = vmatprep.subr.bf16.mxu1 %v11649_v19 }
 0x6d9   :  { %7064 = vmatpush1.bf16.msra.mxu0 %v11746_v41  ;;  %7128 = vmatpush1.bf16.msra.mxu1 %v11747_v62 }
 0x6da   :  { %7066 = vmatprep.subr.bf16.mxu0 %v11748_v37  ;;  %7130 = vmatprep.subr.bf16.mxu1 %v11853_v11 }
 0x6dd   :  { %7068 = vmatpush1.bf16.msra.mxu0 %v11750_v63  ;;  %7132 = vmatpush1.bf16.msra.mxu1 %v11854_v39 }
 0x6de   :  { %7070 = vmatprep.subr.bf16.mxu0 %v11752_v29  ;;  %7134 = vmatprep.subr.bf16.mxu1 %v11855_v47 }
 0x6e1   :  { %7072 = vmatpush1.bf16.msra.mxu0 %v11754_v20  ;;  %7136 = vmatpush1.bf16.msra.mxu1 %v11856_v31 }
 0x6e2   :  { %7074 = vmatprep.subr.bf16.mxu0 %v11756_v21  ;;  %7138 = vmatprep.subr.bf16.mxu1 %v11857_v42 }
 0x6e5   :  { %7076 = vmatpush1.bf16.msra.mxu0 %v11758_v55  ;;  %7140 = vmatpush1.bf16.msra.mxu1 %v12069_v28 }
 0x6e6   :  { %7078 = vmatprep.subr.bf16.mxu0 %v12070_v57  ;;  %7142 = vmatprep.subr.bf16.mxu1 %v12071_v52 }
 0x6e9   :  { %7080 = vmatpush1.bf16.msra.mxu0 %v12072_v32  ;;  %7144 = vmatpush1.bf16.msra.mxu1 %v12073_v50  ;;  %v12173_v32 = vld [vmem:[#allocation146_spill] sm:$0xff] }
 0x6ea   :  { %7082 = vmatprep.subr.bf16.mxu0 %v12074_v6  ;;  %7146 = vmatprep.subr.bf16.mxu1 %v12075_v1  ;;  %v12172_v6 = vld [vmem:[#allocation145_spill] sm:$0xff] }
 0x6ed   :  { %7084 = vmatpush1.bf16.msra.mxu0 %v12076_v26  ;;  %7148 = vmatpush1.bf16.msra.mxu1 %v12077_v61  ;;  %v12088_v61 = vld [vmem:[#allocation132_spill] sm:$0xff] }
 0x6ee   :  { %7086 = vmatprep.subr.bf16.mxu0 %v12078_v10  ;;  %7150 = vmatprep.subr.bf16.mxu1 %v12079_v53  ;;  %v12089_v10 = vld [vmem:[#allocation117_spill] sm:$0xff]  ;;  %v12090_v53 = vld [vmem:[#allocation134_spill] sm:$0xff] }
 0x6f1   :  { %7088 = vmatpush1.bf16.msra.mxu0 %v12080_v60  ;;  %7152 = vmatpush1.bf16.msra.mxu1 %v12081_v4  ;;  %v12091_v60 = vld [vmem:[#allocation119_spill] sm:$0xff] }
 0x6f2   :  { %7090 = vmatprep.subr.bf16.mxu0 %v12082_v5  ;;  %7154 = vmatprep.subr.bf16.mxu1 %v12083_v3  ;;  %v12092_v4 = vld [vmem:[#allocation135_spill] sm:$0xff]  ;;  %v12093_v5 = vld [vmem:[#allocation121_spill] sm:$0xff]  ;;  %v12094_v3 = vld [vmem:[#allocation136_spill] sm:$0xff] }
 0x6f5   :  { %7092 = vmatpush1.bf16.msra.mxu0 %v12084_v56  ;;  %7156 = vmatpush1.bf16.msra.mxu1 %v12085_v54  ;;  %v12095_v56 = vld [vmem:[#allocation123_spill] sm:$0xff]  ;;  %v12096_v54 = vld [vmem:[#allocation137_spill] sm:$0xff] }
 0x6f6   :  { %7094 = vmatprep.subr.bf16.mxu0 %v12086_v51  ;;  %7158 = vmatprep.subr.bf16.mxu1 %v12087_v44  ;;  %v12097_v51 = vld [vmem:[#allocation125_spill] sm:$0xff]  ;;  %v12098_v44 = vld [vmem:[#allocation138_spill] sm:$0xff] }
 0x6f9   :  { %7096 = vmatpush1.bf16.msra.mxu0 %v12088_v61  ;;  %7160 = vmatpush1.bf16.msra.mxu1 %v12089_v10  ;;  %v12099_v61 = vld [vmem:[#allocation127_spill] sm:$0xff] }
 0x6fa   :  { %7098 = vmatprep.subr.bf16.mxu0 %v12090_v53  ;;  %7162 = vmatprep.subr.bf16.mxu1 %v12091_v60  ;;  %v12100_v10 = vld [vmem:[#allocation139_spill] sm:$0xff]  ;;  %v12101_v53 = vld [vmem:[#allocation129_spill] sm:$0xff]  ;;  %v12102_v60 = vld [vmem:[#allocation140_spill] sm:$0xff] }
 0x6fd   :  { %7100 = vmatpush1.bf16.msra.mxu0 %v12092_v4  ;;  %7164 = vmatpush1.bf16.msra.mxu1 %v12093_v5  ;;  %v12103_v4 = vld [vmem:[#allocation131_spill] sm:$0xff]  ;;  %v12104_v5 = vld [vmem:[#allocation141_spill] sm:$0xff] }
 0x6fe   :  { %7102 = vmatprep.subr.bf16.mxu0 %v12094_v3  ;;  %7166 = vmatprep.subr.bf16.mxu1 %v12095_v56  ;;  %v12105_v3 = vld [vmem:[#allocation133_spill] sm:$0xff]  ;;  %v12106_v56 = vld [vmem:[#allocation20_spill] sm:$0xff] }
 0x701   :  { %7104 = vmatpush1.bf16.msra.mxu0 %v12096_v54  ;;  %7168 = vmatpush1.bf16.msra.mxu1 %v12097_v51  ;;  %v12107_v54 = vld [vmem:[#allocation14_spill] sm:$0xff] }
 0x702   :  { %7106 = vmatprep.subr.bf16.mxu0 %v12098_v44  ;;  %7170 = vmatprep.subr.bf16.mxu1 %v12099_v61  ;;  %v12108_v61 = vld [vmem:[#allocation24_spill] sm:$0xff]  ;;  %v12117_v44 = vld [vmem:[#allocation19_spill] sm:$0xff] }
 0x705   :  { %7108 = vmatpush1.bf16.msra.mxu0 %v12100_v10  ;;  %7172 = vmatpush1.bf16.msra.mxu1 %v12101_v53  ;;  %v12109_v10 = vld [vmem:[#allocation15_spill] sm:$0xff]  ;;  %v12110_v53 = vld [vmem:[#allocation26_spill] sm:$0xff] }
 0x706   :  { %7110 = vmatprep.subr.bf16.mxu0 %v12102_v60  ;;  %7174 = vmatprep.subr.bf16.mxu1 %v12103_v4  ;;  %v12111_v60 = vld [vmem:[#allocation16_spill] sm:$0xff] }
 0x707   :  { %v12112_v4 = vld [vmem:[#allocation28_spill] sm:$0xff] }
 0x709   :  { %7112 = vmatpush1.bf16.msra.mxu0 %v12104_v5  ;;  %7176 = vmatpush1.bf16.msra.mxu1 %v12105_v3  ;;  %v12113_v5 = vld [vmem:[#allocation17_spill] sm:$0xff]  ;;  %v12114_v3 = vld [vmem:[#allocation30_spill] sm:$0xff] }
 0x70a   :  { %7178 = vmatprep.subr.bf16.mxu0 %v12106_v56  ;;  %7242 = vmatprep.subr.bf16.mxu1 %v12107_v54  ;;  %v12115_v56 = vld [vmem:[#allocation18_spill] sm:$0xff]  ;;  %v12116_v54 = vld [vmem:[#allocation32_spill] sm:$0xff] }
 0x70c   :  { %3221 = vmatmul.mubr.f32.vlgmr.msra.gmra.mrb[34].mxu0 %v10022_v24  ;;  %3292 = vmatmul.mubr.f32.vlgmr.msra.gmra.mrb[26].mxu1 %v10022_v24  ;;  %v12118_v24 = vld [vmem:[#allocation34_spill] sm:$0xff] }
 0x70d   :  { %7180 = vmatpush1.bf16.msra.mxu0 %v12108_v61  ;;  %7244 = vmatpush1.bf16.msra.mxu1 %v12109_v10  ;;  %v12119_v61 = vld [vmem:[#allocation21_spill] sm:$0xff]  ;;  %v12120_v10 = vld [vmem:[#allocation36_spill] sm:$0xff] }
 0x70e   :  { %7182 = vmatprep.subr.bf16.mxu0 %v12110_v53  ;;  %7246 = vmatprep.subr.bf16.mxu1 %v12111_v60  ;;  %v12121_v53 = vld [vmem:[#allocation22_spill] sm:$0xff] }
 0x70f   :  { %v12122_v60 = vld [vmem:[#allocation38_spill] sm:$0xff] }
 0x711   :  { %7184 = vmatpush1.bf16.msra.mxu0 %v12112_v4  ;;  %7248 = vmatpush1.bf16.msra.mxu1 %v12113_v5  ;;  %v12123_v4 = vld [vmem:[#allocation23_spill] sm:$0xff]  ;;  %v12124_v5 = vld [vmem:[#allocation40_spill] sm:$0xff] }
 0x712   :  { %7186 = vmatprep.subr.bf16.mxu0 %v12114_v3  ;;  %7250 = vmatprep.subr.bf16.mxu1 %v12115_v56  ;;  %v12125_v3 = vld [vmem:[#allocation25_spill] sm:$0xff]  ;;  %v12126_v56 = vld [vmem:[#allocation42_spill] sm:$0xff] }
 0x715   :  { %7188 = vmatpush1.bf16.msra.mxu0 %v12116_v54  ;;  %7252 = vmatpush1.bf16.msra.mxu1 %v12117_v44  ;;  %v12127_v54 = vld [vmem:[#allocation27_spill] sm:$0xff]  ;;  %v12128_v44 = vld [vmem:[#allocation44_spill] sm:$0xff] }
 0x716   :  { %7190 = vmatprep.subr.bf16.mxu0 %v12118_v24  ;;  %7254 = vmatprep.subr.bf16.mxu1 %v12119_v61  ;;  %v12129_v24 = vld [vmem:[#allocation29_spill] sm:$0xff]  ;;  %v12130_v61 = vld [vmem:[#allocation46_spill] sm:$0xff] }
 0x719   :  { %7192 = vmatpush1.bf16.msra.mxu0 %v12120_v10  ;;  %7256 = vmatpush1.bf16.msra.mxu1 %v12121_v53  ;;  %v12131_v10 = vld [vmem:[#allocation31_spill] sm:$0xff]  ;;  %v12132_v53 = vld [vmem:[#allocation48_spill] sm:$0xff] }
 0x71a   :  { %7194 = vmatprep.subr.bf16.mxu0 %v12122_v60  ;;  %7258 = vmatprep.subr.bf16.mxu1 %v12123_v4  ;;  %v12133_v60 = vld [vmem:[#allocation33_spill] sm:$0xff]  ;;  %v12134_v4 = vld [vmem:[#allocation50_spill] sm:$0xff] }
 0x71d   :  { %7196 = vmatpush1.bf16.msra.mxu0 %v12124_v5  ;;  %7260 = vmatpush1.bf16.msra.mxu1 %v12125_v3  ;;  %v12135_v5 = vld [vmem:[#allocation35_spill] sm:$0xff]  ;;  %v12136_v3 = vld [vmem:[#allocation52_spill] sm:$0xff] }
 0x71e   :  { %7198 = vmatprep.subr.bf16.mxu0 %v12126_v56  ;;  %7262 = vmatprep.subr.bf16.mxu1 %v12127_v54  ;;  %v12137_v56 = vld [vmem:[#allocation37_spill] sm:$0xff]  ;;  %v12138_v54 = vld [vmem:[#allocation54_spill] sm:$0xff] }
 0x721   :  { %7200 = vmatpush1.bf16.msra.mxu0 %v12128_v44  ;;  %7264 = vmatpush1.bf16.msra.mxu1 %v12129_v24  ;;  %v12139_v44 = vld [vmem:[#allocation39_spill] sm:$0xff]  ;;  %v12140_v24 = vld [vmem:[#allocation56_spill] sm:$0xff] }
 0x722   :  { %7202 = vmatprep.subr.bf16.mxu0 %v12130_v61  ;;  %7266 = vmatprep.subr.bf16.mxu1 %v12131_v10  ;;  %v12141_v61 = vld [vmem:[#allocation41_spill] sm:$0xff]  ;;  %v12142_v10 = vld [vmem:[#allocation58_spill] sm:$0xff] }
 0x725   :  { %7204 = vmatpush1.bf16.msra.mxu0 %v12132_v53  ;;  %7268 = vmatpush1.bf16.msra.mxu1 %v12133_v60  ;;  %v12143_v53 = vld [vmem:[#allocation43_spill] sm:$0xff]  ;;  %v12144_v60 = vld [vmem:[#allocation60_spill] sm:$0xff] }
 0x726   :  { %7206 = vmatprep.subr.bf16.mxu0 %v12134_v4  ;;  %7270 = vmatprep.subr.bf16.mxu1 %v12135_v5  ;;  %v12145_v4 = vld [vmem:[#allocation45_spill] sm:$0xff]  ;;  %v12146_v5 = vld [vmem:[#allocation62_spill] sm:$0xff] }
 0x729   :  { %7208 = vmatpush1.bf16.msra.mxu0 %v12136_v3  ;;  %7272 = vmatpush1.bf16.msra.mxu1 %v12137_v56  ;;  %v12147_v3 = vld [vmem:[#allocation47_spill] sm:$0xff]  ;;  %v12148_v56 = vld [vmem:[#allocation64_spill] sm:$0xff] }
 0x72a   :  { %7210 = vmatprep.subr.bf16.mxu0 %v12138_v54  ;;  %7274 = vmatprep.subr.bf16.mxu1 %v12139_v44  ;;  %v12149_v54 = vld [vmem:[#allocation49_spill] sm:$0xff]  ;;  %v12150_v44 = vld [vmem:[#allocation66_spill] sm:$0xff] }
 0x72d   :  { %7212 = vmatpush1.bf16.msra.mxu0 %v12140_v24  ;;  %7276 = vmatpush1.bf16.msra.mxu1 %v12141_v61  ;;  %v12151_v24 = vld [vmem:[#allocation51_spill] sm:$0xff]  ;;  %v12152_v61 = vld [vmem:[#allocation68_spill] sm:$0xff] }
 0x72e   :  { %7214 = vmatprep.subr.bf16.mxu0 %v12142_v10  ;;  %7278 = vmatprep.subr.bf16.mxu1 %v12143_v53  ;;  %v12153_v10 = vld [vmem:[#allocation53_spill] sm:$0xff]  ;;  %v12154_v53 = vld [vmem:[#allocation70_spill] sm:$0xff] }
 0x731   :  { %7216 = vmatpush1.bf16.msra.mxu0 %v12144_v60  ;;  %7280 = vmatpush1.bf16.msra.mxu1 %v12145_v4  ;;  %v12155_v60 = vld [vmem:[#allocation55_spill] sm:$0xff]  ;;  %v12156_v4 = vld [vmem:[#allocation72_spill] sm:$0xff] }
 0x732   :  { %7218 = vmatprep.subr.bf16.mxu0 %v12146_v5  ;;  %7282 = vmatprep.subr.bf16.mxu1 %v12147_v3  ;;  %v12157_v5 = vld [vmem:[#allocation57_spill] sm:$0xff]  ;;  %v12158_v3 = vld [vmem:[#allocation74_spill] sm:$0xff] }
 0x735   :  { %7220 = vmatpush1.bf16.msra.mxu0 %v12148_v56  ;;  %7284 = vmatpush1.bf16.msra.mxu1 %v12149_v54  ;;  %v12159_v56 = vld [vmem:[#allocation59_spill] sm:$0xff]  ;;  %v12160_v54 = vld [vmem:[#allocation76_spill] sm:$0xff] }
 0x736   :  { %7222 = vmatprep.subr.bf16.mxu0 %v12150_v44  ;;  %7286 = vmatprep.subr.bf16.mxu1 %v12151_v24  ;;  %v12161_v44 = vld [vmem:[#allocation61_spill] sm:$0xff]  ;;  %v12162_v24 = vld [vmem:[#allocation78_spill] sm:$0xff] }
 0x739   :  { %7224 = vmatpush1.bf16.msra.mxu0 %v12152_v61  ;;  %7288 = vmatpush1.bf16.msra.mxu1 %v12153_v10  ;;  %v12163_v61 = vld [vmem:[#allocation63_spill] sm:$0xff]  ;;  %v12164_v10 = vld [vmem:[#allocation80_spill] sm:$0xff] }
 0x73a   :  { %7226 = vmatprep.subr.bf16.mxu0 %v12154_v53  ;;  %7290 = vmatprep.subr.bf16.mxu1 %v12155_v60  ;;  %v12165_v53 = vld [vmem:[#allocation65_spill] sm:$0xff]  ;;  %v12166_v60 = vld [vmem:[#allocation82_spill] sm:$0xff] }
 0x73d   :  { %7228 = vmatpush1.bf16.msra.mxu0 %v12156_v4  ;;  %7292 = vmatpush1.bf16.msra.mxu1 %v12157_v5  ;;  %v12167_v4 = vld [vmem:[#allocation67_spill] sm:$0xff]  ;;  %v12168_v5 = vld [vmem:[#allocation84_spill] sm:$0xff] }
 0x73e   :  { %7230 = vmatprep.subr.bf16.mxu0 %v12158_v3  ;;  %7294 = vmatprep.subr.bf16.mxu1 %v12159_v56  ;;  %v12169_v3 = vld [vmem:[#allocation69_spill] sm:$0xff]  ;;  %v12170_v56 = vld [vmem:[#allocation86_spill] sm:$0xff] }
 0x741   :  { %7232 = vmatpush1.bf16.msra.mxu0 %v12160_v54  ;;  %7296 = vmatpush1.bf16.msra.mxu1 %v12161_v44  ;;  %v12171_v54 = vld [vmem:[#allocation71_spill] sm:$0xff] }
 0x742   :  { %7234 = vmatprep.subr.bf16.mxu0 %v12162_v24  ;;  %7298 = vmatprep.subr.bf16.mxu1 %v12163_v61 }
 0x745   :  { %7236 = vmatpush1.bf16.msra.mxu0 %v12164_v10  ;;  %7300 = vmatpush1.bf16.msra.mxu1 %v12165_v53 }
 0x746   :  { %7238 = vmatprep.subr.bf16.mxu0 %v12166_v60  ;;  %7302 = vmatprep.subr.bf16.mxu1 %v12167_v4 }
 0x749   :  { %7240 = vmatpush1.bf16.msra.mxu0 %v12168_v5  ;;  %7304 = vmatpush1.bf16.msra.mxu1 %v12169_v3 }
 0x74a   :  { %7306 = vmatprep.subr.bf16.mxu0 %v12170_v56  ;;  %7370 = vmatprep.subr.bf16.mxu1 %v12171_v54 }
 0x79f   :  { %v3080_v44 = vpop.f32.mrb[32].mxu0  ;;  %v3151_v24 = vpop.f32.mrb[24].mxu1 }
 0x7a0   :  { %v3308_v51 = vrot.slane %v3151_v24, 3  ;;  %v3316_v61 = vrot.slane %v3151_v24, 4  ;;  %v3082_v26 = vpop.f32.mrb[33].mxu0  ;;  %v3153_v10 = vpop.f32.mrb[25].mxu1 }
 0x7a1   :  { %v3309_v1 = vrot.slane %v3153_v10, 3  ;;  %v3317_v53 = vrot.slane %v3153_v10, 4 }
 0x7a2   :  { %v3340_v60 = vadd.f32 %v3308_v51, %v11843_v27  ;;  %v3348_v4 = vadd.f32 %v3316_v61, %v12172_v6 }
 0x7a3   :  { %v3341_v5 = vadd.f32 %v3309_v1, %v12064_v40  ;;  %v3349_v56 = vadd.f32 %v3317_v53, %v12173_v32  ;;  %v3434_v1 = vrot.slane %v9998_v49, 7  ;;  %v3436_v53 = vrot.slane %v10001_v14, 7  ;;  %v12174_v49 = vld [vmem:[#allocation147_spill] sm:$0xff] }
 0x7a4   :  { %v5356_v50 = vmul.f32 -1.442695, %v3340_v60  ;;  %v5362_v3 = vmul.f32 -1.442695, %v3348_v4 }
 0x7a5   :  { %v5357_v54 = vmul.f32 -1.442695, %v3341_v5  ;;  %v5363_v52 = vmul.f32 -1.442695, %v3349_v56 }
 0x7a6   :  { %8215 = vpow2.f32 %v5356_v50 }
 0x7a7   :  { %8217 = vpow2.f32 %v5362_v3 }
 0x7a8   :  { %8219 = vpow2.f32 %v5357_v54  ;;  %v3437_v54 = vrot.slane %v10009_v22, 7 }
 0x7a9   :  { %8221 = vpow2.f32 %v5363_v52  ;;  %v3306_v52 = vrot.slane %v3080_v44, 3 }
 0x7b0   :  { %v8216_v24 = vpop.eup %8215 }
 0x7b1   :  { %v8218_v57 = vpop.eup %8217  ;;  %v3392_v28 = vadd.f32 1.0, %v8216_v24 }
 0x7b2   :  { %v3398_v10 = vadd.f32 1.0, %v8218_v57  ;;  %v8220_v51 = vpop.eup %8219  ;;  %v3314_v57 = vrot.slane %v3080_v44, 4 }
 0x7b3   :  { %8223 = vrcp.f32 %v3392_v28  ;;  %v8222_v61 = vpop.eup %8221  ;;  %v3393_v60 = vadd.f32 1.0, %v8220_v51  ;;  %v3435_v28 = vrot.slane %v10006_v13, 7  ;;  %v3338_v51 = vadd.f32 %v3306_v52, %v12174_v49  ;;  %v12176_v13 = vld [vmem:[#allocation150_spill] sm:$0xff] }
 0x7b4   :  { %8225 = vrcp.f32 %v3398_v10  ;;  %v3399_v6 = vadd.f32 1.0, %v8222_v61  ;;  %v3307_v10 = vrot.slane %v3082_v26, 3  ;;  %v3346_v14 = vadd.f32 %v3314_v57, %v11958_v25 }
 0x7b5   :  { %8227 = vrcp.f32 %v3393_v60  ;;  %v3315_v60 = vrot.slane %v3082_v26, 4 }
 0x7b6   :  { %8229 = vrcp.f32 %v3399_v6 }
 0x7b7   :  { %v3347_v44 = vadd.f32 %v3315_v60, %v12176_v13 }
 0x7b9   :  { %v5361_v22 = vmul.f32 -1.442695, %v3347_v44 }
 0x7bd   :  { %v8224_v50 = vpop.eup %8223 }
 0x7be   :  { %v8226_v4 = vpop.eup %8225  ;;  %v10171_v5 = vmul.f32 %v8224_v50, %v3434_v1  ;;  %v12175_v1 = vld [vmem:[#allocation149_spill] sm:$0xff] }
 0x7bf   :  { %v10173_v3 = vmul.f32 %v8226_v4, %v3436_v53  ;;  %v8228_v56 = vpop.eup %8227  ;;  %v3339_v50 = vadd.f32 %v3307_v10, %v12175_v1  ;;  %v5354_v53 = vmul.f32 -1.442695, %v3338_v51  ;;  %v5360_v4 = vmul.f32 -1.442695, %v3346_v14 }
 0x7c0   :  { %v8230_v24 = vpop.eup %8229  ;;  %v10177_v6 = vmul.f32 %v8228_v56, %v3435_v28 }
 0x7c1   :  { %v10180_v61 = vmul.f32 %v8230_v24, %v3437_v54  ;;  %v5355_v32 = vmul.f32 -1.442695, %v3339_v50  ;;  %8231 = vpow2.f32 %v5354_v53 }
 0x7c2   :  { %8233 = vpow2.f32 %v5360_v4 }
 0x7c3   :  { %8235 = vpow2.f32 %v5355_v32 }
 0x7c4   :  { %8237 = vpow2.f32 %v5361_v22 }
 0x7cb   :  { %v8232_v28 = vpop.eup %8231 }
 0x7cc   :  { %v8234_v56 = vpop.eup %8233  ;;  %v3390_v54 = vadd.f32 1.0, %v8232_v28 }
 0x7cd   :  { %v8236_v52 = vpop.eup %8235  ;;  %v3396_v24 = vadd.f32 1.0, %v8234_v56 }
 0x7ce   :  { %v8238_v49 = vpop.eup %8237  ;;  %v3391_v57 = vadd.f32 1.0, %v8236_v52  ;;  %8239 = vrcp.f32 %v3390_v54 }
 0x7cf   :  { %8241 = vrcp.f32 %v3396_v24  ;;  %v3397_v26 = vadd.f32 1.0, %v8238_v49 }
 0x7d0   :  { %8243 = vrcp.f32 %v3391_v57 }
 0x7d1   :  { %8245 = vrcp.f32 %v3397_v26 }
 0x7df   :  { %v3222_v10 = vpop.f32.mrb[34].mxu0  ;;  %v3293_v51 = vpop.f32.mrb[26].mxu1 }
 0x7e0   :  { %v3310_v14 = vrot.slane %v3222_v10, 3  ;;  %v3318_v60 = vrot.slane %v3222_v10, 4  ;;  %v3312_v50 = vrot.slane %v3293_v51, 3  ;;  %v3320_v53 = vrot.slane %v3293_v51, 4  ;;  %v3224_v4 = vpop.f32.mrb[35].mxu0  ;;  %v3295_v44 = vpop.f32.mrb[27].mxu1 }
 0x7e1   :  { %v3311_v32 = vrot.slane %v3224_v4, 3  ;;  %v3319_v22 = vrot.slane %v3224_v4, 4  ;;  %v3313_v13 = vrot.slane %v3295_v44, 3  ;;  %v3321_v10 = vrot.slane %v3295_v44, 4 }
 0x7e2   :  { %v3342_v28 = vadd.f32 %v3310_v14, %v9202_v59  ;;  %v3350_v56 = vadd.f32 %v3318_v60, %v11846_v8  ;;  %v3344_v52 = vadd.f32 %v3312_v50, %v11744_v23  ;;  %v3352_v49 = vadd.f32 %v3320_v53, %v11847_v0  ;;  %v8240_v50 = vpop.eup %8239 }
 0x7e3   :  { %v3343_v54 = vadd.f32 %v3311_v32, %v9205_v9  ;;  %v3351_v24 = vadd.f32 %v3319_v22, %v11848_v12  ;;  %v3345_v14 = vadd.f32 %v3313_v13, %v11745_v58  ;;  %v3353_v60 = vadd.f32 %v3321_v10, %v11743_v15  ;;  %v8242_v26 = vpop.eup %8241 }
 0x7e4   :  { %v5358_v51 = vmul.f32 -1.442695, %v3342_v28  ;;  %v5364_v1 = vmul.f32 -1.442695, %v3350_v56  ;;  %8247 = vtanh.f32 %v3344_v52  ;;  %v8244_v53 = vpop.eup %8243 }
 0x7e5   :  { %8249 = vtanh.f32 %v3352_v49  ;;  %v5359_v57 = vmul.f32 -1.442695, %v3343_v54  ;;  %v5365_v4 = vmul.f32 -1.442695, %v3351_v24  ;;  %v8246_v44 = vpop.eup %8245 }
 0x7e6   :  { %8251 = vpow2.f32 %v5358_v51 }
 0x7e7   :  { %8253 = vpow2.f32 %v5364_v1 }
 0x7e8   :  { %8255 = vpow2.f32 %v5359_v57 }
 0x7e9   :  { %8257 = vpow2.f32 %v5365_v4 }
 0x7ea   :  { %8259 = vtanh.f32 %v3345_v14 }
 0x7eb   :  { %8261 = vtanh.f32 %v3353_v60 }
 0x7ee   :  { %v8248_v32 = vpop.eup %8247 }
 0x7ef   :  { %v8250_v22 = vpop.eup %8249  ;;  %v3446_v28 = vmul.f32 %v8248_v32, %v8240_v50 }
 0x7f0   :  { %v8252_v56 = vpop.eup %8251  ;;  %v3448_v52 = vmul.f32 %v8250_v22, %v8242_v26 }
 0x7f1   :  { %v8254_v49 = vpop.eup %8253  ;;  %v3394_v54 = vadd.f32 1.0, %v8252_v56  ;;  %v10194_v13 = vadd.f32 %v3446_v28, %v10171_v5 }
 0x7f2   :  { %v8256_v1 = vpop.eup %8255  ;;  %v3400_v24 = vadd.f32 1.0, %v8254_v49  ;;  %v10197_v10 = vadd.f32 %v3448_v52, %v10173_v3 }
 0x7f3   :  { %v8258_v51 = vpop.eup %8257  ;;  %8263 = vrcp.f32 %v3394_v54  ;;  %v3395_v57 = vadd.f32 1.0, %v8256_v1 }
 0x7f4   :  { %v8260_v4 = vpop.eup %8259  ;;  %8265 = vrcp.f32 %v3400_v24  ;;  %v3401_v14 = vadd.f32 1.0, %v8258_v51 }
 0x7f5   :  { %v8262_v60 = vpop.eup %8261  ;;  %8267 = vtanh.f32 %v10194_v13  ;;  %v3447_v50 = vmul.f32 %v8260_v4, %v8244_v53 }
 0x7f6   :  { %8269 = vtanh.f32 %v10197_v10  ;;  %v3449_v26 = vmul.f32 %v8262_v60, %v8246_v44 }
 0x7f7   :  { %8271 = vrcp.f32 %v3395_v57  ;;  %v10202_v5 = vadd.f32 %v3447_v50, %v10177_v6 }
 0x7f8   :  { %8273 = vrcp.f32 %v3401_v14  ;;  %v10205_v3 = vadd.f32 %v3449_v26, %v10180_v61 }
 0x7f9   :  { %8275 = vtanh.f32 %v10202_v5 }
 0x7fa   :  { %8277 = vtanh.f32 %v10205_v3 }
 0x7fd   :  { %v8264_v32 = vpop.eup %8263 }
 0x7fe   :  { %v8266_v22 = vpop.eup %8265 }
 0x7ff   :  { %v8268_v28 = vpop.eup %8267 }
 0x800   :  { %v8270_v53 = vpop.eup %8269  ;;  %v3458_v56 = vmul.f32 %v8268_v28, %v8264_v32  ;;  %v12181_v28 = vld [vmem:[#allocation101_spill] sm:$0xff] }
 0x801   :  { %v8272_v52 = vpop.eup %8271  ;;  %v3460_v44 = vmul.f32 %v8270_v53, %v8266_v22  ;;  %v12180_v22 = vld [vmem:[#allocation116_spill] sm:$0xff]  ;;  %v12182_v53 = vld [vmem:[#allocation118_spill] sm:$0xff] }
 0x802   :  { %v8274_v49 = vpop.eup %8273  ;;  %v3466_v54 = vrot.slane %v3458_v56, 5  ;;  %v10211_v6 = vsel %vm4402_vm6, %v10015_v34, %v3458_v56  ;;  %v12183_v56 = vld [vmem:[#allocation103_spill] sm:$0xff] }
 0x803   :  { %v8276_v61 = vpop.eup %8275  ;;  %v3467_v1 = vrot.slane %v3460_v44, 4  ;;  %v10215_v24 = vsel %vm4402_vm6, %v10019_v38, %v3460_v44  ;;  %v12177_v38 = vld [vmem:[#allocation97_spill] sm:$0xff] }
 0x804   :  { %v8278_v51 = vpop.eup %8277  ;;  %v3459_v57 = vmul.f32 %v8276_v61, %v8272_v52  ;;  %v12184_v52 = vld [vmem:[#allocation120_spill] sm:$0xff]  ;;  %v12185_v44 = vld [vmem:[#allocation105_spill] sm:$0xff] }
 0x805   :  { %v3461_v4 = vmul.f32 %v8278_v51, %v8274_v49  ;;  %v10218_v14 = vsel %vm1178_vm1, %v3467_v1, %v3466_v54  ;;  %v12186_v49 = vld [vmem:[#allocation122_spill] sm:$0xff]  ;;  %v12187_v54 = vld [vmem:[#allocation107_spill] sm:$0xff]  ;;  %v12188_v61 = vld [vmem:[#allocation124_spill] sm:$0xff] }
 0x806   :  { %v3469_v60 = vrot.slane %v3459_v57, 5  ;;  %v10222_v50 = vsel %vm4402_vm6, %v10026_v17, %v3459_v57  ;;  %v12178_v17 = vld [vmem:[#allocation114_spill] sm:$0xff]  ;;  %v12189_v1 = vld [vmem:[#allocation109_spill] sm:$0xff]  ;;  %v12191_v57 = vld [vmem:[#allocation111_spill] sm:$0xff] }
 0x807   :  { %v3470_v26 = vrot.slane %v3461_v4, 4  ;;  %v10226_v34 = vsel %vm4402_vm6, %v10030_v16, %v3461_v4  ;;  %v12179_v16 = vld [vmem:[#allocation99_spill] sm:$0xff]  ;;  %v12190_v51 = vld [vmem:[#allocation126_spill] sm:$0xff]  ;;  %v12192_v4 = vld [vmem:[#allocation128_spill] sm:$0xff] }
 0x809   :  { %v3471_v32 = vsel %vm1178_vm1, %v3470_v26, %v3469_v60  ;;  %v12193_v60 = vld [vmem:[#allocation113_spill] sm:$0xff]  ;;  %v12194_v26 = vld [vmem:[#allocation130_spill] sm:$0xff] }
 0x80a   :  { %3538 = vmatprep.mubr.f32.mxu0 %v3471_v32  ;;  %3609 = vmatprep.mubr.f32.mxu1 %v3471_v32 }
 0x80b   :  { %3539 = vmatmul.mubr.f32.vlgmr.msra.gmra.mrb[36].mxu0 %v10218_v14  ;;  %3610 = vmatmul.mubr.f32.vlgmr.msra.gmra.mrb[28].mxu1 %v10218_v14 }
 0x80c   :  { %7308 = vmatpush1.bf16.msra.mxu0 %v11638_v7  ;;  %7372 = vmatpush1.bf16.msra.mxu1 %v11639_v43 }
 0x80d   :  { %3680 = vmatprep.mubr.f32.mxu0 %v3471_v32  ;;  %3751 = vmatprep.mubr.f32.mxu1 %v3471_v32  ;;  %v12195_v32 = vld [vmem:[#allocation115_spill] sm:$0xff] }
 0x80e   :  { %7310 = vmatprep.subr.bf16.mxu0 %v11640_v45  ;;  %7374 = vmatprep.subr.bf16.mxu1 %v11641_v46 }
 0x810   :  { %7312 = vmatpush1.bf16.msra.mxu0 %v11642_v30  ;;  %7376 = vmatpush1.bf16.msra.mxu1 %v11643_v2 }
 0x811   :  { %7314 = vmatprep.subr.bf16.mxu0 %v11644_v33  ;;  %7378 = vmatprep.subr.bf16.mxu1 %v11645_v35 }
 0x814   :  { %7316 = vmatpush1.bf16.msra.mxu0 %v11646_v48  ;;  %7380 = vmatpush1.bf16.msra.mxu1 %v11647_v18 }
 0x815   :  { %7318 = vmatprep.subr.bf16.mxu0 %v11648_v36  ;;  %7382 = vmatprep.subr.bf16.mxu1 %v11649_v19 }
 0x818   :  { %7320 = vmatpush1.bf16.msra.mxu0 %v11746_v41  ;;  %7384 = vmatpush1.bf16.msra.mxu1 %v11747_v62 }
 0x819   :  { %7322 = vmatprep.subr.bf16.mxu0 %v11748_v37  ;;  %7386 = vmatprep.subr.bf16.mxu1 %v11853_v11 }
 0x81c   :  { %7324 = vmatpush1.bf16.msra.mxu0 %v11750_v63  ;;  %7388 = vmatpush1.bf16.msra.mxu1 %v11854_v39 }
 0x81d   :  { %7326 = vmatprep.subr.bf16.mxu0 %v11752_v29  ;;  %7390 = vmatprep.subr.bf16.mxu1 %v11855_v47 }
 0x820   :  { %7328 = vmatpush1.bf16.msra.mxu0 %v11754_v20  ;;  %7392 = vmatpush1.bf16.msra.mxu1 %v11856_v31 }
 0x821   :  { %7330 = vmatprep.subr.bf16.mxu0 %v11756_v21  ;;  %7394 = vmatprep.subr.bf16.mxu1 %v11857_v42 }
 0x824   :  { %7332 = vmatpush1.bf16.msra.mxu0 %v11758_v55  ;;  %7396 = vmatpush1.bf16.msra.mxu1 %v12177_v38 }
 0x825   :  { %7334 = vmatprep.subr.bf16.mxu0 %v12178_v17  ;;  %7398 = vmatprep.subr.bf16.mxu1 %v12179_v16 }
 0x828   :  { %7336 = vmatpush1.bf16.msra.mxu0 %v12180_v22  ;;  %7400 = vmatpush1.bf16.msra.mxu1 %v12181_v28  ;;  %v12281_v22 = vld [vmem:[#allocation146_spill] sm:$0xff] }
 0x829   :  { %7338 = vmatprep.subr.bf16.mxu0 %v12182_v53  ;;  %7402 = vmatprep.subr.bf16.mxu1 %v12183_v56  ;;  %v12280_v53 = vld [vmem:[#allocation145_spill] sm:$0xff] }
 0x82c   :  { %7340 = vmatpush1.bf16.msra.mxu0 %v12184_v52  ;;  %7404 = vmatpush1.bf16.msra.mxu1 %v12185_v44  ;;  %v12196_v44 = vld [vmem:[#allocation132_spill] sm:$0xff] }
 0x82d   :  { %7342 = vmatprep.subr.bf16.mxu0 %v12186_v49  ;;  %7406 = vmatprep.subr.bf16.mxu1 %v12187_v54  ;;  %v12197_v49 = vld [vmem:[#allocation117_spill] sm:$0xff]  ;;  %v12198_v54 = vld [vmem:[#allocation134_spill] sm:$0xff] }
 0x830   :  { %7344 = vmatpush1.bf16.msra.mxu0 %v12188_v61  ;;  %7408 = vmatpush1.bf16.msra.mxu1 %v12189_v1  ;;  %v12199_v61 = vld [vmem:[#allocation119_spill] sm:$0xff] }
 0x831   :  { %7346 = vmatprep.subr.bf16.mxu0 %v12190_v51  ;;  %7410 = vmatprep.subr.bf16.mxu1 %v12191_v57  ;;  %v12200_v1 = vld [vmem:[#allocation135_spill] sm:$0xff]  ;;  %v12201_v51 = vld [vmem:[#allocation121_spill] sm:$0xff]  ;;  %v12202_v57 = vld [vmem:[#allocation136_spill] sm:$0xff] }
 0x834   :  { %7348 = vmatpush1.bf16.msra.mxu0 %v12192_v4  ;;  %7412 = vmatpush1.bf16.msra.mxu1 %v12193_v60  ;;  %v12203_v4 = vld [vmem:[#allocation123_spill] sm:$0xff]  ;;  %v12204_v60 = vld [vmem:[#allocation137_spill] sm:$0xff] }
 0x835   :  { %7350 = vmatprep.subr.bf16.mxu0 %v12194_v26  ;;  %7414 = vmatprep.subr.bf16.mxu1 %v12195_v32  ;;  %v12205_v26 = vld [vmem:[#allocation125_spill] sm:$0xff]  ;;  %v12206_v32 = vld [vmem:[#allocation138_spill] sm:$0xff] }
 0x838   :  { %7352 = vmatpush1.bf16.msra.mxu0 %v12196_v44  ;;  %7416 = vmatpush1.bf16.msra.mxu1 %v12197_v49  ;;  %v12207_v44 = vld [vmem:[#allocation127_spill] sm:$0xff] }
 0x839   :  { %7354 = vmatprep.subr.bf16.mxu0 %v12198_v54  ;;  %7418 = vmatprep.subr.bf16.mxu1 %v12199_v61  ;;  %v12208_v49 = vld [vmem:[#allocation139_spill] sm:$0xff]  ;;  %v12209_v54 = vld [vmem:[#allocation129_spill] sm:$0xff]  ;;  %v12210_v61 = vld [vmem:[#allocation140_spill] sm:$0xff] }
 0x83c   :  { %7356 = vmatpush1.bf16.msra.mxu0 %v12200_v1  ;;  %7420 = vmatpush1.bf16.msra.mxu1 %v12201_v51  ;;  %v12211_v1 = vld [vmem:[#allocation131_spill] sm:$0xff]  ;;  %v12212_v51 = vld [vmem:[#allocation141_spill] sm:$0xff] }
 0x83d   :  { %7358 = vmatprep.subr.bf16.mxu0 %v12202_v57  ;;  %7422 = vmatprep.subr.bf16.mxu1 %v12203_v4  ;;  %v12213_v57 = vld [vmem:[#allocation133_spill] sm:$0xff]  ;;  %v12214_v4 = vld [vmem:[#allocation20_spill] sm:$0xff] }
 0x840   :  { %7360 = vmatpush1.bf16.msra.mxu0 %v12204_v60  ;;  %7424 = vmatpush1.bf16.msra.mxu1 %v12205_v26  ;;  %v12215_v60 = vld [vmem:[#allocation14_spill] sm:$0xff] }
 0x841   :  { %7362 = vmatprep.subr.bf16.mxu0 %v12206_v32  ;;  %7426 = vmatprep.subr.bf16.mxu1 %v12207_v44  ;;  %v12216_v44 = vld [vmem:[#allocation24_spill] sm:$0xff]  ;;  %v12225_v32 = vld [vmem:[#allocation19_spill] sm:$0xff] }
 0x844   :  { %7364 = vmatpush1.bf16.msra.mxu0 %v12208_v49  ;;  %7428 = vmatpush1.bf16.msra.mxu1 %v12209_v54  ;;  %v12217_v49 = vld [vmem:[#allocation15_spill] sm:$0xff]  ;;  %v12218_v54 = vld [vmem:[#allocation26_spill] sm:$0xff] }
 0x845   :  { %7366 = vmatprep.subr.bf16.mxu0 %v12210_v61  ;;  %7430 = vmatprep.subr.bf16.mxu1 %v12211_v1  ;;  %v12219_v61 = vld [vmem:[#allocation16_spill] sm:$0xff] }
 0x846   :  { %v12220_v1 = vld [vmem:[#allocation28_spill] sm:$0xff] }
 0x848   :  { %7368 = vmatpush1.bf16.msra.mxu0 %v12212_v51  ;;  %7432 = vmatpush1.bf16.msra.mxu1 %v12213_v57  ;;  %v12221_v51 = vld [vmem:[#allocation17_spill] sm:$0xff]  ;;  %v12222_v57 = vld [vmem:[#allocation30_spill] sm:$0xff] }
 0x849   :  { %7434 = vmatprep.subr.bf16.mxu0 %v12214_v4  ;;  %7498 = vmatprep.subr.bf16.mxu1 %v12215_v60  ;;  %v12223_v4 = vld [vmem:[#allocation18_spill] sm:$0xff]  ;;  %v12224_v60 = vld [vmem:[#allocation32_spill] sm:$0xff] }
 0x84b   :  { %3681 = vmatmul.mubr.f32.vlgmr.msra.gmra.mrb[38].mxu0 %v10218_v14  ;;  %3752 = vmatmul.mubr.f32.vlgmr.msra.gmra.mrb[30].mxu1 %v10218_v14  ;;  %v12226_v14 = vld [vmem:[#allocation34_spill] sm:$0xff] }
 0x84c   :  { %7436 = vmatpush1.bf16.msra.mxu0 %v12216_v44  ;;  %7500 = vmatpush1.bf16.msra.mxu1 %v12217_v49  ;;  %v12227_v44 = vld [vmem:[#allocation21_spill] sm:$0xff]  ;;  %v12228_v49 = vld [vmem:[#allocation36_spill] sm:$0xff] }
 0x84d   :  { %7438 = vmatprep.subr.bf16.mxu0 %v12218_v54  ;;  %7502 = vmatprep.subr.bf16.mxu1 %v12219_v61  ;;  %v12229_v54 = vld [vmem:[#allocation22_spill] sm:$0xff] }
 0x84e   :  { %v12230_v61 = vld [vmem:[#allocation38_spill] sm:$0xff] }
 0x850   :  { %7440 = vmatpush1.bf16.msra.mxu0 %v12220_v1  ;;  %7504 = vmatpush1.bf16.msra.mxu1 %v12221_v51  ;;  %v12231_v1 = vld [vmem:[#allocation23_spill] sm:$0xff]  ;;  %v12232_v51 = vld [vmem:[#allocation40_spill] sm:$0xff] }
 0x851   :  { %7442 = vmatprep.subr.bf16.mxu0 %v12222_v57  ;;  %7506 = vmatprep.subr.bf16.mxu1 %v12223_v4  ;;  %v12233_v57 = vld [vmem:[#allocation25_spill] sm:$0xff]  ;;  %v12234_v4 = vld [vmem:[#allocation42_spill] sm:$0xff] }
 0x854   :  { %7444 = vmatpush1.bf16.msra.mxu0 %v12224_v60  ;;  %7508 = vmatpush1.bf16.msra.mxu1 %v12225_v32  ;;  %v12235_v60 = vld [vmem:[#allocation27_spill] sm:$0xff]  ;;  %v12236_v32 = vld [vmem:[#allocation44_spill] sm:$0xff] }
 0x855   :  { %7446 = vmatprep.subr.bf16.mxu0 %v12226_v14  ;;  %7510 = vmatprep.subr.bf16.mxu1 %v12227_v44  ;;  %v12237_v14 = vld [vmem:[#allocation29_spill] sm:$0xff]  ;;  %v12238_v44 = vld [vmem:[#allocation46_spill] sm:$0xff] }
 0x858   :  { %7448 = vmatpush1.bf16.msra.mxu0 %v12228_v49  ;;  %7512 = vmatpush1.bf16.msra.mxu1 %v12229_v54  ;;  %v12239_v49 = vld [vmem:[#allocation31_spill] sm:$0xff]  ;;  %v12240_v54 = vld [vmem:[#allocation48_spill] sm:$0xff] }
 0x859   :  { %7450 = vmatprep.subr.bf16.mxu0 %v12230_v61  ;;  %7514 = vmatprep.subr.bf16.mxu1 %v12231_v1  ;;  %v12241_v61 = vld [vmem:[#allocation33_spill] sm:$0xff]  ;;  %v12242_v1 = vld [vmem:[#allocation50_spill] sm:$0xff] }
 0x85c   :  { %7452 = vmatpush1.bf16.msra.mxu0 %v12232_v51  ;;  %7516 = vmatpush1.bf16.msra.mxu1 %v12233_v57  ;;  %v12243_v51 = vld [vmem:[#allocation35_spill] sm:$0xff]  ;;  %v12244_v57 = vld [vmem:[#allocation52_spill] sm:$0xff] }
 0x85d   :  { %7454 = vmatprep.subr.bf16.mxu0 %v12234_v4  ;;  %7518 = vmatprep.subr.bf16.mxu1 %v12235_v60  ;;  %v12245_v4 = vld [vmem:[#allocation37_spill] sm:$0xff]  ;;  %v12246_v60 = vld [vmem:[#allocation54_spill] sm:$0xff] }
 0x860   :  { %7456 = vmatpush1.bf16.msra.mxu0 %v12236_v32  ;;  %7520 = vmatpush1.bf16.msra.mxu1 %v12237_v14  ;;  %v12247_v32 = vld [vmem:[#allocation39_spill] sm:$0xff]  ;;  %v12248_v14 = vld [vmem:[#allocation56_spill] sm:$0xff] }
 0x861   :  { %7458 = vmatprep.subr.bf16.mxu0 %v12238_v44  ;;  %7522 = vmatprep.subr.bf16.mxu1 %v12239_v49  ;;  %v12249_v44 = vld [vmem:[#allocation41_spill] sm:$0xff]  ;;  %v12250_v49 = vld [vmem:[#allocation58_spill] sm:$0xff] }
 0x864   :  { %7460 = vmatpush1.bf16.msra.mxu0 %v12240_v54  ;;  %7524 = vmatpush1.bf16.msra.mxu1 %v12241_v61  ;;  %v12251_v54 = vld [vmem:[#allocation43_spill] sm:$0xff]  ;;  %v12252_v61 = vld [vmem:[#allocation60_spill] sm:$0xff] }
 0x865   :  { %7462 = vmatprep.subr.bf16.mxu0 %v12242_v1  ;;  %7526 = vmatprep.subr.bf16.mxu1 %v12243_v51  ;;  %v12253_v1 = vld [vmem:[#allocation45_spill] sm:$0xff]  ;;  %v12254_v51 = vld [vmem:[#allocation62_spill] sm:$0xff] }
 0x868   :  { %7464 = vmatpush1.bf16.msra.mxu0 %v12244_v57  ;;  %7528 = vmatpush1.bf16.msra.mxu1 %v12245_v4  ;;  %v12255_v57 = vld [vmem:[#allocation47_spill] sm:$0xff]  ;;  %v12256_v4 = vld [vmem:[#allocation64_spill] sm:$0xff] }
 0x869   :  { %7466 = vmatprep.subr.bf16.mxu0 %v12246_v60  ;;  %7530 = vmatprep.subr.bf16.mxu1 %v12247_v32  ;;  %v12257_v60 = vld [vmem:[#allocation49_spill] sm:$0xff]  ;;  %v12258_v32 = vld [vmem:[#allocation66_spill] sm:$0xff] }
 0x86c   :  { %7468 = vmatpush1.bf16.msra.mxu0 %v12248_v14  ;;  %7532 = vmatpush1.bf16.msra.mxu1 %v12249_v44  ;;  %v12259_v14 = vld [vmem:[#allocation51_spill] sm:$0xff]  ;;  %v12260_v44 = vld [vmem:[#allocation68_spill] sm:$0xff] }
 0x86d   :  { %7470 = vmatprep.subr.bf16.mxu0 %v12250_v49  ;;  %7534 = vmatprep.subr.bf16.mxu1 %v12251_v54  ;;  %v12261_v49 = vld [vmem:[#allocation53_spill] sm:$0xff]  ;;  %v12262_v54 = vld [vmem:[#allocation70_spill] sm:$0xff] }
 0x870   :  { %7472 = vmatpush1.bf16.msra.mxu0 %v12252_v61  ;;  %7536 = vmatpush1.bf16.msra.mxu1 %v12253_v1  ;;  %v12263_v61 = vld [vmem:[#allocation55_spill] sm:$0xff]  ;;  %v12264_v1 = vld [vmem:[#allocation72_spill] sm:$0xff] }
 0x871   :  { %7474 = vmatprep.subr.bf16.mxu0 %v12254_v51  ;;  %7538 = vmatprep.subr.bf16.mxu1 %v12255_v57  ;;  %v12265_v51 = vld [vmem:[#allocation57_spill] sm:$0xff]  ;;  %v12266_v57 = vld [vmem:[#allocation74_spill] sm:$0xff] }
 0x874   :  { %7476 = vmatpush1.bf16.msra.mxu0 %v12256_v4  ;;  %7540 = vmatpush1.bf16.msra.mxu1 %v12257_v60  ;;  %v12267_v4 = vld [vmem:[#allocation59_spill] sm:$0xff]  ;;  %v12268_v60 = vld [vmem:[#allocation76_spill] sm:$0xff] }
 0x875   :  { %7478 = vmatprep.subr.bf16.mxu0 %v12258_v32  ;;  %7542 = vmatprep.subr.bf16.mxu1 %v12259_v14  ;;  %v12269_v32 = vld [vmem:[#allocation61_spill] sm:$0xff]  ;;  %v12270_v14 = vld [vmem:[#allocation78_spill] sm:$0xff] }
 0x878   :  { %7480 = vmatpush1.bf16.msra.mxu0 %v12260_v44  ;;  %7544 = vmatpush1.bf16.msra.mxu1 %v12261_v49  ;;  %v12271_v44 = vld [vmem:[#allocation63_spill] sm:$0xff]  ;;  %v12272_v49 = vld [vmem:[#allocation80_spill] sm:$0xff] }
 0x879   :  { %7482 = vmatprep.subr.bf16.mxu0 %v12262_v54  ;;  %7546 = vmatprep.subr.bf16.mxu1 %v12263_v61  ;;  %v12273_v54 = vld [vmem:[#allocation65_spill] sm:$0xff]  ;;  %v12274_v61 = vld [vmem:[#allocation82_spill] sm:$0xff] }
 0x87c   :  { %7484 = vmatpush1.bf16.msra.mxu0 %v12264_v1  ;;  %7548 = vmatpush1.bf16.msra.mxu1 %v12265_v51  ;;  %v12275_v1 = vld [vmem:[#allocation67_spill] sm:$0xff]  ;;  %v12276_v51 = vld [vmem:[#allocation84_spill] sm:$0xff] }
 0x87d   :  { %7486 = vmatprep.subr.bf16.mxu0 %v12266_v57  ;;  %7550 = vmatprep.subr.bf16.mxu1 %v12267_v4  ;;  %v12277_v57 = vld [vmem:[#allocation69_spill] sm:$0xff]  ;;  %v12278_v4 = vld [vmem:[#allocation86_spill] sm:$0xff] }
 0x880   :  { %7488 = vmatpush1.bf16.msra.mxu0 %v12268_v60  ;;  %7552 = vmatpush1.bf16.msra.mxu1 %v12269_v32  ;;  %v12279_v60 = vld [vmem:[#allocation71_spill] sm:$0xff] }
 0x881   :  { %7490 = vmatprep.subr.bf16.mxu0 %v12270_v14  ;;  %7554 = vmatprep.subr.bf16.mxu1 %v12271_v44 }
 0x884   :  { %7492 = vmatpush1.bf16.msra.mxu0 %v12272_v49  ;;  %7556 = vmatpush1.bf16.msra.mxu1 %v12273_v54 }
 0x885   :  { %7494 = vmatprep.subr.bf16.mxu0 %v12274_v61  ;;  %7558 = vmatprep.subr.bf16.mxu1 %v12275_v1 }
 0x888   :  { %7496 = vmatpush1.bf16.msra.mxu0 %v12276_v51  ;;  %7560 = vmatpush1.bf16.msra.mxu1 %v12277_v57 }
 0x889   :  { %7562 = vmatprep.subr.bf16.mxu0 %v12278_v4  ;;  %7626 = vmatprep.subr.bf16.mxu1 %v12279_v60 }
 0x8de   :  { %v3540_v32 = vpop.f32.mrb[36].mxu0  ;;  %v3611_v14 = vpop.f32.mrb[28].mxu1 }
 0x8df   :  { %v3768_v26 = vrot.slane %v3611_v14, 2  ;;  %v3776_v44 = vrot.slane %v3611_v14, 3  ;;  %v3542_v52 = vpop.f32.mrb[37].mxu0  ;;  %v3613_v49 = vpop.f32.mrb[29].mxu1 }
 0x8e0   :  { %v3769_v56 = vrot.slane %v3613_v49, 2  ;;  %v3777_v54 = vrot.slane %v3613_v49, 3 }
 0x8e1   :  { %v3800_v61 = vadd.f32 %v3768_v26, %v11843_v27  ;;  %v3808_v1 = vadd.f32 %v3776_v44, %v12280_v53 }
 0x8e2   :  { %v3801_v51 = vadd.f32 %v3769_v56, %v12064_v40  ;;  %v3809_v4 = vadd.f32 %v3777_v54, %v12281_v22  ;;  %v3894_v56 = vrot.slane %v10194_v13, 7  ;;  %v3896_v54 = vrot.slane %v10197_v10, 7  ;;  %v12282_v13 = vld [vmem:[#allocation147_spill] sm:$0xff] }
 0x8e3   :  { %v5368_v28 = vmul.f32 -1.442695, %v3800_v61  ;;  %v5374_v57 = vmul.f32 -1.442695, %v3808_v1 }
 0x8e4   :  { %v5369_v60 = vmul.f32 -1.442695, %v3801_v51  ;;  %v5375_v16 = vmul.f32 -1.442695, %v3809_v4 }
 0x8e5   :  { %8279 = vpow2.f32 %v5368_v28 }
 0x8e6   :  { %8281 = vpow2.f32 %v5374_v57 }
 0x8e7   :  { %8283 = vpow2.f32 %v5369_v60  ;;  %v3897_v60 = vrot.slane %v10205_v3, 7 }
 0x8e8   :  { %8285 = vpow2.f32 %v5375_v16  ;;  %v3766_v16 = vrot.slane %v3540_v32, 2 }
 0x8ef   :  { %v8280_v14 = vpop.eup %8279 }
 0x8f0   :  { %v8282_v17 = vpop.eup %8281  ;;  %v3852_v38 = vadd.f32 1.0, %v8280_v14 }
 0x8f1   :  { %v3858_v49 = vadd.f32 1.0, %v8282_v17  ;;  %v8284_v26 = vpop.eup %8283  ;;  %v3774_v17 = vrot.slane %v3540_v32, 3 }
 0x8f2   :  { %8287 = vrcp.f32 %v3852_v38  ;;  %v8286_v44 = vpop.eup %8285  ;;  %v3853_v61 = vadd.f32 1.0, %v8284_v26  ;;  %v3895_v38 = vrot.slane %v10202_v5, 7  ;;  %v3798_v26 = vadd.f32 %v3766_v16, %v12282_v13  ;;  %v12284_v5 = vld [vmem:[#allocation150_spill] sm:$0xff] }
 0x8f3   :  { %8289 = vrcp.f32 %v3858_v49  ;;  %v3859_v53 = vadd.f32 1.0, %v8286_v44  ;;  %v3767_v49 = vrot.slane %v3542_v52, 2  ;;  %v3806_v10 = vadd.f32 %v3774_v17, %v11958_v25 }
 0x8f4   :  { %8291 = vrcp.f32 %v3853_v61  ;;  %v3775_v61 = vrot.slane %v3542_v52, 3 }
 0x8f5   :  { %8293 = vrcp.f32 %v3859_v53 }
 0x8f6   :  { %v3807_v32 = vadd.f32 %v3775_v61, %v12284_v5 }
 0x8f8   :  { %v5373_v3 = vmul.f32 -1.442695, %v3807_v32 }
 0x8fc   :  { %v8288_v28 = vpop.eup %8287 }
 0x8fd   :  { %v8290_v1 = vpop.eup %8289  ;;  %v10367_v51 = vmul.f32 %v8288_v28, %v3894_v56  ;;  %v12283_v56 = vld [vmem:[#allocation149_spill] sm:$0xff] }
 0x8fe   :  { %v10369_v57 = vmul.f32 %v8290_v1, %v3896_v54  ;;  %v8292_v4 = vpop.eup %8291  ;;  %v3799_v28 = vadd.f32 %v3767_v49, %v12283_v56  ;;  %v5366_v54 = vmul.f32 -1.442695, %v3798_v26  ;;  %v5372_v1 = vmul.f32 -1.442695, %v3806_v10 }
 0x8ff   :  { %v8294_v14 = vpop.eup %8293  ;;  %v10373_v53 = vmul.f32 %v8292_v4, %v3895_v38 }
 0x900   :  { %v10376_v44 = vmul.f32 %v8294_v14, %v3897_v60  ;;  %v5367_v22 = vmul.f32 -1.442695, %v3799_v28  ;;  %8295 = vpow2.f32 %v5366_v54 }
 0x901   :  { %8297 = vpow2.f32 %v5372_v1 }
 0x902   :  { %8299 = vpow2.f32 %v5367_v22 }
 0x903   :  { %8301 = vpow2.f32 %v5373_v3 }
 0x90a   :  { %v8296_v38 = vpop.eup %8295 }
 0x90b   :  { %v8298_v4 = vpop.eup %8297  ;;  %v3850_v60 = vadd.f32 1.0, %v8296_v38 }
 0x90c   :  { %v8300_v16 = vpop.eup %8299  ;;  %v3856_v14 = vadd.f32 1.0, %v8298_v4 }
 0x90d   :  { %v8302_v13 = vpop.eup %8301  ;;  %v3851_v17 = vadd.f32 1.0, %v8300_v16  ;;  %8303 = vrcp.f32 %v3850_v60 }
 0x90e   :  { %8305 = vrcp.f32 %v3856_v14  ;;  %v3857_v52 = vadd.f32 1.0, %v8302_v13 }
 0x90f   :  { %8307 = vrcp.f32 %v3851_v17 }
 0x910   :  { %8309 = vrcp.f32 %v3857_v52 }
 0x91e   :  { %v3682_v49 = vpop.f32.mrb[38].mxu0  ;;  %v3753_v26 = vpop.f32.mrb[30].mxu1 }
 0x91f   :  { %v3770_v10 = vrot.slane %v3682_v49, 2  ;;  %v3778_v61 = vrot.slane %v3682_v49, 3  ;;  %v3772_v28 = vrot.slane %v3753_v26, 2  ;;  %v3780_v54 = vrot.slane %v3753_v26, 3  ;;  %v3684_v1 = vpop.f32.mrb[39].mxu0  ;;  %v3755_v32 = vpop.f32.mrb[31].mxu1 }
 0x920   :  { %v3771_v22 = vrot.slane %v3684_v1, 2  ;;  %v3779_v3 = vrot.slane %v3684_v1, 3  ;;  %v3773_v5 = vrot.slane %v3755_v32, 2  ;;  %v3781_v49 = vrot.slane %v3755_v32, 3 }
 0x921   :  { %v3802_v38 = vadd.f32 %v3770_v10, %v9202_v59  ;;  %v3810_v4 = vadd.f32 %v3778_v61, %v11846_v8  ;;  %v3804_v16 = vadd.f32 %v3772_v28, %v11744_v23  ;;  %v3812_v13 = vadd.f32 %v3780_v54, %v11847_v0  ;;  %v8304_v28 = vpop.eup %8303 }
 0x922   :  { %v3803_v60 = vadd.f32 %v3771_v22, %v9205_v9  ;;  %v3811_v14 = vadd.f32 %v3779_v3, %v11848_v12  ;;  %v3805_v10 = vadd.f32 %v3773_v5, %v11745_v58  ;;  %v3813_v61 = vadd.f32 %v3781_v49, %v11743_v15  ;;  %v8306_v52 = vpop.eup %8305 }
 0x923   :  { %v5370_v26 = vmul.f32 -1.442695, %v3802_v38  ;;  %v5376_v56 = vmul.f32 -1.442695, %v3810_v4  ;;  %8311 = vtanh.f32 %v3804_v16  ;;  %v8308_v54 = vpop.eup %8307 }
 0x924   :  { %8313 = vtanh.f32 %v3812_v13  ;;  %v5371_v17 = vmul.f32 -1.442695, %v3803_v60  ;;  %v5377_v1 = vmul.f32 -1.442695, %v3811_v14  ;;  %v8310_v32 = vpop.eup %8309 }
 0x925   :  { %8315 = vpow2.f32 %v5370_v26 }
 0x926   :  { %8317 = vpow2.f32 %v5376_v56 }
 0x927   :  { %8319 = vpow2.f32 %v5371_v17 }
 0x928   :  { %8321 = vpow2.f32 %v5377_v1 }
 0x929   :  { %8323 = vtanh.f32 %v3805_v10 }
 0x92a   :  { %8325 = vtanh.f32 %v3813_v61 }
 0x92d   :  { %v8312_v22 = vpop.eup %8311 }
 0x92e   :  { %v8314_v3 = vpop.eup %8313  ;;  %v3906_v38 = vmul.f32 %v8312_v22, %v8304_v28 }
 0x92f   :  { %v8316_v4 = vpop.eup %8315  ;;  %v3908_v16 = vmul.f32 %v8314_v3, %v8306_v52 }
 0x930   :  { %v8318_v13 = vpop.eup %8317  ;;  %v3854_v60 = vadd.f32 1.0, %v8316_v4  ;;  %v10390_v5 = vadd.f32 %v3906_v38, %v10367_v51 }
 0x931   :  { %v8320_v56 = vpop.eup %8319  ;;  %v3860_v14 = vadd.f32 1.0, %v8318_v13  ;;  %v10393_v49 = vadd.f32 %v3908_v16, %v10369_v57 }
 0x932   :  { %v8322_v26 = vpop.eup %8321  ;;  %8327 = vrcp.f32 %v3854_v60  ;;  %v3855_v17 = vadd.f32 1.0, %v8320_v56 }
 0x933   :  { %v8324_v1 = vpop.eup %8323  ;;  %8329 = vrcp.f32 %v3860_v14  ;;  %v3861_v10 = vadd.f32 1.0, %v8322_v26 }
 0x934   :  { %v8326_v61 = vpop.eup %8325  ;;  %8331 = vtanh.f32 %v10390_v5  ;;  %v3907_v28 = vmul.f32 %v8324_v1, %v8308_v54 }
 0x935   :  { %8333 = vtanh.f32 %v10393_v49  ;;  %v3909_v52 = vmul.f32 %v8326_v61, %v8310_v32 }
 0x936   :  { %8335 = vrcp.f32 %v3855_v17  ;;  %v10398_v51 = vadd.f32 %v3907_v28, %v10373_v53 }
 0x937   :  { %8337 = vrcp.f32 %v3861_v10  ;;  %v10401_v57 = vadd.f32 %v3909_v52, %v10376_v44 }
 0x938   :  { %8339 = vtanh.f32 %v10398_v51 }
 0x939   :  { %8341 = vtanh.f32 %v10401_v57 }
 0x93c   :  { %v8328_v22 = vpop.eup %8327 }
 0x93d   :  { %v8330_v3 = vpop.eup %8329 }
 0x93e   :  { %v8332_v38 = vpop.eup %8331 }
 0x93f   :  { %v8334_v54 = vpop.eup %8333  ;;  %v3918_v4 = vmul.f32 %v8332_v38, %v8328_v22  ;;  %v12314_v38 = vld [vmem:[#allocation138_spill] sm:$0xff] }
 0x940   :  { %v8336_v16 = vpop.eup %8335  ;;  %v3920_v32 = vmul.f32 %v8334_v54, %v8330_v3  ;;  %v12313_v3 = vld [vmem:[#allocation125_spill] sm:$0xff]  ;;  %v12315_v54 = vld [vmem:[#allocation127_spill] sm:$0xff] }
 0x941   :  { %v8338_v13 = vpop.eup %8337  ;;  %v3926_v60 = vrot.slane %v3918_v4, 6  ;;  %v10407_v53 = vsel %vm4407_vm7, %v10211_v6, %v3918_v4  ;;  %v12316_v4 = vld [vmem:[#allocation139_spill] sm:$0xff] }
 0x942   :  { %v8340_v44 = vpop.eup %8339  ;;  %v3927_v56 = vrot.slane %v3920_v32, 5  ;;  %v10411_v14 = vsel %vm4407_vm7, %v10215_v24, %v3920_v32  ;;  %v12310_v24 = vld [vmem:[#allocation136_spill] sm:$0xff] }
 0x943   :  { %v8342_v26 = vpop.eup %8341  ;;  %v3919_v17 = vmul.f32 %v8340_v44, %v8336_v16  ;;  %v12317_v16 = vld [vmem:[#allocation129_spill] sm:$0xff]  ;;  %v12318_v32 = vld [vmem:[#allocation140_spill] sm:$0xff] }
 0x944   :  { %v3921_v1 = vmul.f32 %v8342_v26, %v8338_v13  ;;  %v10414_v10 = vsel %vm1178_vm1, %v3927_v56, %v3926_v60  ;;  %v12319_v13 = vld [vmem:[#allocation131_spill] sm:$0xff]  ;;  %v12320_v60 = vld [vmem:[#allocation141_spill] sm:$0xff]  ;;  %v4493_v56 = vld [vmem:[%s11132_s4 + $0x180] sm:$0xff] }
 0x945   :  { %v3929_v61 = vrot.slane %v3919_v17, 6  ;;  %v10418_v28 = vsel %vm4407_vm7, %v10222_v50, %v3919_v17  ;;  %v12311_v50 = vld [vmem:[#allocation123_spill] sm:$0xff]  ;;  %v12321_v44 = vld [vmem:[#allocation133_spill] sm:$0xff] }
 0x946   :  { %v3930_v52 = vrot.slane %v3921_v1, 5  ;;  %v10422_v6 = vsel %vm4407_vm7, %v10226_v34, %v3921_v1  ;;  %v12312_v34 = vld [vmem:[#allocation137_spill] sm:$0xff]  ;;  %v4461_v1 = vld [vmem:[%s11132_s4 + $0x80] sm:$0xff] }
 0x947   :  { %v4494_v26 = vld [vmem:[%s11132_s4 + $0x188] sm:$0xff] }
 0x948   :  { %v3931_v22 = vsel %vm1178_vm1, %v3930_v52, %v3929_v61  ;;  %v7721_v17 = vpack.c.bf16 %v4494_v26, %v4493_v56  ;;  %v4462_v61 = vld [vmem:[%s11132_s4 + $0x88] sm:$0xff]  ;;  %v4452_v56 = vld [vmem:[%s11132_s4 + $0x38] sm:$0xff]  ;;  %vm5264_vm1 = vcmask 64512  }
 0x949   :  { %3998 = vmatprep.mubr.f32.mxu0 %v3931_v22  ;;  %4069 = vmatprep.mubr.f32.mxu1 %v3931_v22  ;;  %v7689_v52 = vpack.c.bf16 %v4462_v61, %v4461_v1  ;;  %v4501_v1 = vld [vmem:[%s11132_s4 + $0x1c0] sm:$0xff]  ;;  %v4502_v61 = vld [vmem:[%s11132_s4 + $0x1c8] sm:$0xff] }
 0x94a   :  { %3999 = vmatmul.mubr.f32.vlgmr.msra.gmra.mrb[40].mxu0 %v10414_v10  ;;  %4070 = vmatmul.mubr.f32.vlgmr.msra.gmra.mrb[32].mxu1 %v10414_v10 }
 0x94b   :  { %7564 = vmatpush1.bf16.msra.mxu0 %v11638_v7  ;;  %7628 = vmatpush1.bf16.msra.mxu1 %v11639_v43  ;;  %v12285_v7 = vld [vmem:[#allocation97_spill] sm:$0xff]  ;;  %v12286_v43 = vld [vmem:[#allocation114_spill] sm:$0xff] }
 0x94c   :  { %4140 = vmatprep.mubr.f32.mxu0 %v3931_v22  ;;  %4211 = vmatprep.mubr.f32.mxu1 %v3931_v22  ;;  %v4478_v22 = vld [vmem:[%s11132_s4 + $0x108] sm:$0xff] }
 0x94d   :  { %7566 = vmatprep.subr.bf16.mxu0 %v11640_v45  ;;  %7630 = vmatprep.subr.bf16.mxu1 %v11641_v46  ;;  %v12287_v45 = vld [vmem:[#allocation99_spill] sm:$0xff]  ;;  %v12288_v46 = vld [vmem:[#allocation116_spill] sm:$0xff] }
 0x94f   :  { %7568 = vmatpush1.bf16.msra.mxu0 %v11642_v30  ;;  %7632 = vmatpush1.bf16.msra.mxu1 %v11643_v2  ;;  %v12289_v30 = vld [vmem:[#allocation101_spill] sm:$0xff]  ;;  %v12290_v2 = vld [vmem:[#allocation118_spill] sm:$0xff] }
 0x950   :  { %7570 = vmatprep.subr.bf16.mxu0 %v11644_v33  ;;  %7634 = vmatprep.subr.bf16.mxu1 %v11645_v35  ;;  %v12291_v33 = vld [vmem:[#allocation103_spill] sm:$0xff]  ;;  %v12292_v35 = vld [vmem:[#allocation120_spill] sm:$0xff] }
 0x953   :  { %7572 = vmatpush1.bf16.msra.mxu0 %v11646_v48  ;;  %7636 = vmatpush1.bf16.msra.mxu1 %v11647_v18  ;;  %v12293_v48 = vld [vmem:[#allocation105_spill] sm:$0xff]  ;;  %v12294_v18 = vld [vmem:[#allocation122_spill] sm:$0xff] }
 0x954   :  { %7574 = vmatprep.subr.bf16.mxu0 %v11648_v36  ;;  %7638 = vmatprep.subr.bf16.mxu1 %v11649_v19  ;;  %v12295_v36 = vld [vmem:[#allocation107_spill] sm:$0xff]  ;;  %v12296_v19 = vld [vmem:[#allocation124_spill] sm:$0xff] }
 0x957   :  { %7576 = vmatpush1.bf16.msra.mxu0 %v11746_v41  ;;  %7640 = vmatpush1.bf16.msra.mxu1 %v11747_v62  ;;  %v12297_v41 = vld [vmem:[#allocation109_spill] sm:$0xff]  ;;  %v12298_v62 = vld [vmem:[#allocation126_spill] sm:$0xff] }
 0x958   :  { %7578 = vmatprep.subr.bf16.mxu0 %v11748_v37  ;;  %7642 = vmatprep.subr.bf16.mxu1 %v11853_v11  ;;  %v12299_v37 = vld [vmem:[#allocation111_spill] sm:$0xff]  ;;  %v12305_v11 = vld [vmem:[#allocation117_spill] sm:$0xff] }
 0x95b   :  { %7580 = vmatpush1.bf16.msra.mxu0 %v11750_v63  ;;  %7644 = vmatpush1.bf16.msra.mxu1 %v11854_v39  ;;  %v12300_v63 = vld [vmem:[#allocation128_spill] sm:$0xff]  ;;  %v12306_v39 = vld [vmem:[#allocation134_spill] sm:$0xff] }
 0x95c   :  { %7582 = vmatprep.subr.bf16.mxu0 %v11752_v29  ;;  %7646 = vmatprep.subr.bf16.mxu1 %v11855_v47  ;;  %v12301_v29 = vld [vmem:[#allocation113_spill] sm:$0xff]  ;;  %v12307_v47 = vld [vmem:[#allocation119_spill] sm:$0xff] }
 0x95f   :  { %7584 = vmatpush1.bf16.msra.mxu0 %v11754_v20  ;;  %7648 = vmatpush1.bf16.msra.mxu1 %v11856_v31  ;;  %v12302_v20 = vld [vmem:[#allocation130_spill] sm:$0xff]  ;;  %v12308_v31 = vld [vmem:[#allocation135_spill] sm:$0xff] }
 0x960   :  { %7586 = vmatprep.subr.bf16.mxu0 %v11756_v21  ;;  %7650 = vmatprep.subr.bf16.mxu1 %v11857_v42  ;;  %v12303_v21 = vld [vmem:[#allocation115_spill] sm:$0xff]  ;;  %v12309_v42 = vld [vmem:[#allocation121_spill] sm:$0xff] }
 0x963   :  { %7588 = vmatpush1.bf16.msra.mxu0 %v11758_v55  ;;  %7652 = vmatpush1.bf16.msra.mxu1 %v12285_v7  ;;  %v12304_v55 = vld [vmem:[#allocation132_spill] sm:$0xff] }
 0x964   :  { %7590 = vmatprep.subr.bf16.mxu0 %v12286_v43  ;;  %7654 = vmatprep.subr.bf16.mxu1 %v12287_v45  ;;  %v4445_v7 = vld [vmem:[%s11132_s4] sm:$0xff]  ;;  %v4446_v43 = vld [vmem:[%s11132_s4 + $0x8] sm:$0xff] }
 0x967   :  { %7592 = vmatpush1.bf16.msra.mxu0 %v12288_v46  ;;  %7656 = vmatpush1.bf16.msra.mxu1 %v12289_v30  ;;  %v7691_v46 = vpack.c.bf16 %v4446_v43, %v4445_v7  ;;  %v4495_v30 = vld [vmem:[%s11132_s4 + $0x190] sm:$0xff]  ;;  %v4485_v7 = vld [vmem:[%s11132_s4 + $0x140] sm:$0xff] }
 0x968   :  { %7594 = vmatprep.subr.bf16.mxu0 %v12290_v2  ;;  %7658 = vmatprep.subr.bf16.mxu1 %v12291_v33  ;;  %v4496_v2 = vld [vmem:[%s11132_s4 + $0x198] sm:$0xff] }
 0x969   :  { %v7725_v33 = vpack.c.bf16 %v4496_v2, %v4495_v30  ;;  %v4454_v30 = vld [vmem:[%s11132_s4 + $0x48] sm:$0xff] }
 0x96b   :  { %7596 = vmatpush1.bf16.msra.mxu0 %v12292_v35  ;;  %7660 = vmatpush1.bf16.msra.mxu1 %v12293_v48  ;;  %v4463_v35 = vld [vmem:[%s11132_s4 + $0x90] sm:$0xff]  ;;  %v4464_v48 = vld [vmem:[%s11132_s4 + $0x98] sm:$0xff] }
 0x96c   :  { %7598 = vmatprep.subr.bf16.mxu0 %v12294_v18  ;;  %7662 = vmatprep.subr.bf16.mxu1 %v12295_v36  ;;  %v4479_v18 = vld [vmem:[%s11132_s4 + $0x110] sm:$0xff]  ;;  %v7693_v36 = vpack.c.bf16 %v4464_v48, %v4463_v35  ;;  %v4504_v48 = vld [vmem:[%s11132_s4 + $0x1d8] sm:$0xff] }
 0x96d   :  { %v4503_v35 = vld [vmem:[%s11132_s4 + $0x1d0] sm:$0xff] }
 0x96f   :  { %7600 = vmatpush1.bf16.msra.mxu0 %v12296_v19  ;;  %7664 = vmatpush1.bf16.msra.mxu1 %v12297_v41  ;;  %v4480_v19 = vld [vmem:[%s11132_s4 + $0x118] sm:$0xff]  ;;  %v4447_v41 = vld [vmem:[%s11132_s4 + $0x10] sm:$0xff] }
 0x970   :  { %7602 = vmatprep.subr.bf16.mxu0 %v12298_v62  ;;  %7666 = vmatprep.subr.bf16.mxu1 %v12299_v37  ;;  %v4448_v62 = vld [vmem:[%s11132_s4 + $0x18] sm:$0xff]  ;;  %v7727_v37 = vpack.c.bf16 %v4480_v19, %v4479_v18  ;;  %v4471_v18 = vld [vmem:[%s11132_s4 + $0xd0] sm:$0xff] }
 0x971   :  { %v4472_v19 = vld [vmem:[%s11132_s4 + $0xd8] sm:$0xff] }
 0x973   :  { %7604 = vmatpush1.bf16.msra.mxu0 %v12300_v63  ;;  %7668 = vmatpush1.bf16.msra.mxu1 %v12301_v29  ;;  %v7695_v63 = vpack.c.bf16 %v4448_v62, %v4447_v41  ;;  %v4497_v29 = vld [vmem:[%s11132_s4 + $0x1a0] sm:$0xff]  ;;  %v4487_v41 = vld [vmem:[%s11132_s4 + $0x150] sm:$0xff]  ;;  %v4488_v62 = vld [vmem:[%s11132_s4 + $0x158] sm:$0xff] }
 0x974   :  { %7606 = vmatprep.subr.bf16.mxu0 %v12302_v20  ;;  %7670 = vmatprep.subr.bf16.mxu1 %v12303_v21  ;;  %v4498_v20 = vld [vmem:[%s11132_s4 + $0x1a8] sm:$0xff] }
 0x975   :  { %v7729_v21 = vpack.c.bf16 %v4498_v20, %v4497_v29  ;;  %v4455_v29 = vld [vmem:[%s11132_s4 + $0x50] sm:$0xff]  ;;  %v4456_v20 = vld [vmem:[%s11132_s4 + $0x58] sm:$0xff] }
 0x977   :  { %7608 = vmatpush1.bf16.msra.mxu0 %v12304_v55  ;;  %7672 = vmatpush1.bf16.msra.mxu1 %v12305_v11  ;;  %v4465_v55 = vld [vmem:[%s11132_s4 + $0xa0] sm:$0xff]  ;;  %v4466_v11 = vld [vmem:[%s11132_s4 + $0xa8] sm:$0xff] }
 0x978   :  { %7610 = vmatprep.subr.bf16.mxu0 %v12306_v39  ;;  %7674 = vmatprep.subr.bf16.mxu1 %v12307_v47  ;;  %v4481_v39 = vld [vmem:[%s11132_s4 + $0x120] sm:$0xff]  ;;  %v7697_v47 = vpack.c.bf16 %v4466_v11, %v4465_v55  ;;  %v7711_v55 = vpack.c.bf16 %v4456_v20, %v4455_v29  ;;  %v4506_v11 = vld [vmem:[%s11132_s4 + $0x1e8] sm:$0xff] }
 0x97b   :  { %7612 = vmatpush1.bf16.msra.mxu0 %v12308_v31  ;;  %7676 = vmatpush1.bf16.msra.mxu1 %v12309_v42  ;;  %v4482_v31 = vld [vmem:[%s11132_s4 + $0x128] sm:$0xff]  ;;  %v4449_v42 = vld [vmem:[%s11132_s4 + $0x20] sm:$0xff] }
 0x97c   :  { %7614 = vmatprep.subr.bf16.mxu0 %v12310_v24  ;;  %7678 = vmatprep.subr.bf16.mxu1 %v12311_v50  ;;  %v4450_v24 = vld [vmem:[%s11132_s4 + $0x28] sm:$0xff]  ;;  %v7731_v50 = vpack.c.bf16 %v4482_v31, %v4481_v39  ;;  %v4473_v39 = vld [vmem:[%s11132_s4 + $0xe0] sm:$0xff] }
 0x97f   :  { %7616 = vmatpush1.bf16.msra.mxu0 %v12312_v34  ;;  %7680 = vmatpush1.bf16.msra.mxu1 %v12313_v3  ;;  %v7699_v34 = vpack.c.bf16 %v4450_v24, %v4449_v42  ;;  %v4499_v3 = vld [vmem:[%s11132_s4 + $0x1b0] sm:$0xff]  ;;  %v4489_v24 = vld [vmem:[%s11132_s4 + $0x160] sm:$0xff] }
 0x980   :  { %7618 = vmatprep.subr.bf16.mxu0 %v12314_v38  ;;  %7682 = vmatprep.subr.bf16.mxu1 %v12315_v54  ;;  %v4500_v38 = vld [vmem:[%s11132_s4 + $0x1b8] sm:$0xff] }
 0x981   :  { %v7733_v54 = vpack.c.bf16 %v4500_v38, %v4499_v3  ;;  %v4458_v3 = vld [vmem:[%s11132_s4 + $0x68] sm:$0xff]  ;;  %v4507_v38 = vld [vmem:[%s11132_s4 + $0x1f0] sm:$0xff] }
 0x983   :  { %7620 = vmatpush1.bf16.msra.mxu0 %v12316_v4  ;;  %7684 = vmatpush1.bf16.msra.mxu1 %v12317_v16  ;;  %v4467_v4 = vld [vmem:[%s11132_s4 + $0xb0] sm:$0xff]  ;;  %v4468_v16 = vld [vmem:[%s11132_s4 + $0xb8] sm:$0xff] }
 0x984   :  { %7622 = vmatprep.subr.bf16.mxu0 %v12318_v32  ;;  %7686 = vmatprep.subr.bf16.mxu1 %v12319_v13  ;;  %v4483_v32 = vld [vmem:[%s11132_s4 + $0x130] sm:$0xff]  ;;  %v7701_v13 = vpack.c.bf16 %v4468_v16, %v4467_v4 }
 0x987   :  { %7624 = vmatpush1.bf16.msra.mxu0 %v12320_v60  ;;  %7688 = vmatpush1.bf16.msra.mxu1 %v12321_v44  ;;  %v4484_v60 = vld [vmem:[%s11132_s4 + $0x138] sm:$0xff]  ;;  %v4451_v44 = vld [vmem:[%s11132_s4 + $0x30] sm:$0xff] }
 0x988   :  { %7722 = vmatprep.subr.bf16.mxu1 %v7721_v17  ;;  %7690 = vmatprep.subr.bf16.mxu0 %v7689_v52  ;;  %v7735_v26 = vpack.c.bf16 %v4484_v60, %v4483_v32  ;;  %v7703_v17 = vpack.c.bf16 %v4452_v56, %v4451_v44  ;;  %v4469_v52 = vld [vmem:[%s11132_s4 + $0xc0] sm:$0xff]  ;;  %v4475_v32 = vld [vmem:[%s11132_s4 + $0xf0] sm:$0xff] }
 0x989   :  { %v4491_v60 = vld [vmem:[%s11132_s4 + $0x170] sm:$0xff] }
 0x98a   :  { %4141 = vmatmul.mubr.f32.vlgmr.msra.gmra.mrb[42].mxu0 %v10414_v10  ;;  %4212 = vmatmul.mubr.f32.vlgmr.msra.gmra.mrb[34].mxu1 %v10414_v10  ;;  %v4477_v10 = vld [vmem:[%s11132_s4 + $0x100] sm:$0xff] }
 0x98b   :  { %v7723_v45 = vpack.c.bf16 %v4478_v22, %v4477_v10  ;;  %7692 = vmatpush3.bf16.msra.mxu0 %v7691_v46  ;;  %v7737_v10 = vpack.c.bf16 %v4502_v61, %v4501_v1  ;;  %v4470_v22 = vld [vmem:[%s11132_s4 + $0xc8] sm:$0xff]  ;;  %v4453_v46 = vld [vmem:[%s11132_s4 + $0x40] sm:$0xff]  ;;  %v4460_v1 = vld [vmem:[%s11132_s4 + $0x78] sm:$0xff] }
 0x98c   :  { %7694 = vmatprep.subr.bf16.mxu0 %v7693_v36  ;;  %v7705_v43 = vpack.c.bf16 %v4470_v22, %v4469_v52  ;;  %v7741_v36 = vpack.c.bf16 %v4504_v48, %v4503_v35  ;;  %v4525_v52 = vld [vmem:[%s11132_s4 + $0x280] sm:$0xff]  ;;  %v4526_v22 = vld [vmem:[%s11132_s4 + $0x288] sm:$0xff] }
 0x98d   :  { %7724 = vmatpush3.bf16.msra.mxu1 %v7723_v45  ;;  %v4486_v45 = vld [vmem:[%s11132_s4 + $0x148] sm:$0xff] }
 0x98e   :  { %7726 = vmatprep.subr.bf16.mxu1 %v7725_v33  ;;  %v7739_v2 = vpack.c.bf16 %v4486_v45, %v4485_v7  ;;  %v7707_v33 = vpack.c.bf16 %v4454_v30, %v4453_v46  ;;  %v7753_v7 = vpack.c.bf16 %v4526_v22, %v4525_v52 }
 0x98f   :  { %7696 = vmatpush3.bf16.msra.mxu0 %v7695_v63  ;;  %v7743_v63 = vpack.c.bf16 %v4488_v62, %v4487_v41 }
 0x990   :  { %7698 = vmatprep.subr.bf16.mxu0 %v7697_v47  ;;  %v4474_v47 = vld [vmem:[%s11132_s4 + $0xe8] sm:$0xff] }
 0x991   :  { %7728 = vmatpush3.bf16.msra.mxu1 %v7727_v37  ;;  %v7709_v37 = vpack.c.bf16 %v4472_v19, %v4471_v18  ;;  %v7713_v42 = vpack.c.bf16 %v4474_v47, %v4473_v39 }
 0x992   :  { %7730 = vmatprep.subr.bf16.mxu1 %v7729_v21  ;;  %v4505_v21 = vld [vmem:[%s11132_s4 + $0x1e0] sm:$0xff] }
 0x993   :  { %7700 = vmatpush3.bf16.msra.mxu0 %v7699_v34  ;;  %v7745_v31 = vpack.c.bf16 %v4506_v11, %v4505_v21  ;;  %v4457_v34 = vld [vmem:[%s11132_s4 + $0x60] sm:$0xff] }
 0x994   :  { %7702 = vmatprep.subr.bf16.mxu0 %v7701_v13  ;;  %v7715_v16 = vpack.c.bf16 %v4458_v3, %v4457_v34  ;;  %v4476_v13 = vld [vmem:[%s11132_s4 + $0xf8] sm:$0xff]  ;;  %v4356_v34 = vrot.slane %v10393_v49, 7 }
 0x995   :  { %7732 = vmatpush3.bf16.msra.mxu1 %v7731_v50  ;;  %v4490_v50 = vld [vmem:[%s11132_s4 + $0x168] sm:$0xff]  ;;  %v7717_v56 = vpack.c.bf16 %v4476_v13, %v4475_v32 }
 0x996   :  { %7734 = vmatprep.subr.bf16.mxu1 %v7733_v54  ;;  %v4508_v54 = vld [vmem:[%s11132_s4 + $0x1f8] sm:$0xff]  ;;  %v7747_v4 = vpack.c.bf16 %v4490_v50, %v4489_v24 }
 0x997   :  { %7704 = vmatpush3.bf16.msra.mxu0 %v7703_v17  ;;  %v7749_v44 = vpack.c.bf16 %v4508_v54, %v4507_v38  ;;  %v4459_v17 = vld [vmem:[%s11132_s4 + $0x70] sm:$0xff] }
 0x998   :  { %7706 = vmatprep.subr.bf16.mxu0 %v7705_v43 }
 0x999   :  { %7736 = vmatpush3.bf16.msra.mxu1 %v7735_v26  ;;  %v4492_v26 = vld [vmem:[%s11132_s4 + $0x178] sm:$0xff] }
 0x99a   :  { %7738 = vmatprep.subr.bf16.mxu1 %v7737_v10  ;;  %v7751_v61 = vpack.c.bf16 %v4492_v26, %v4491_v60  ;;  %v7719_v10 = vpack.c.bf16 %v4460_v1, %v4459_v17  ;;  %v4357_v60 = vrot.slane %v10401_v57, 7 }
 0x99b   :  { %7708 = vmatpush3.bf16.msra.mxu0 %v7707_v33 }
 0x99c   :  { %7710 = vmatprep.subr.bf16.mxu0 %v7709_v37 }
 0x99d   :  { %7740 = vmatpush3.bf16.msra.mxu1 %v7739_v2 }
 0x99e   :  { %7742 = vmatprep.subr.bf16.mxu1 %v7741_v36  ;;  %v12322_v36 = vld [vmem:[#allocation145_spill] sm:$0xff] }
 0x99f   :  { %7712 = vmatpush3.bf16.msra.mxu0 %v7711_v55 }
 0x9a0   :  { %7714 = vmatprep.subr.bf16.mxu0 %v7713_v42 }
 0x9a1   :  { %7744 = vmatpush3.bf16.msra.mxu1 %v7743_v63  ;;  %v12323_v63 = vld [vmem:[#allocation146_spill] sm:$0xff] }
 0x9a2   :  { %7746 = vmatprep.subr.bf16.mxu1 %v7745_v31 }
 0x9a3   :  { %7716 = vmatpush3.bf16.msra.mxu0 %v7715_v16  ;;  %v4355_v16 = vrot.slane %v10398_v51, 7  ;;  %v12326_v51 = vld [vmem:[#allocation150_spill] sm:$0xff] }
 0x9a4   :  { %7718 = vmatprep.subr.bf16.mxu0 %v7717_v56 }
 0x9a5   :  { %7748 = vmatpush3.bf16.msra.mxu1 %v7747_v4 }
 0x9a6   :  { %7750 = vmatprep.subr.bf16.mxu1 %v7749_v44 }
 0x9a7   :  { %7720 = vmatpush3.bf16.msra.mxu0 %v7719_v10  ;;  %v12325_v10 = vld [vmem:[#allocation149_spill] sm:$0xff] }
 0x9a8   :  { %7754 = vmatprep.subr.bf16.mxu0 %v7753_v7 }
 0x9a9   :  { %7752 = vmatpush3.bf16.msra.mxu1 %v7751_v61 }
 0xa1d   :  { %v4000_v43 = vpop.f32.mrb[40].mxu0  ;;  %v4071_v45 = vpop.f32.mrb[32].mxu1 }
 0xa1e   :  { %v4228_v46 = vrot.slane %v4071_v45, 1  ;;  %v4236_v30 = vrot.slane %v4071_v45, 2  ;;  %v4002_v2 = vpop.f32.mrb[41].mxu0  ;;  %v4073_v33 = vpop.f32.mrb[33].mxu1  ;;  %v4226_v54 = vrot.slane %v4000_v43, 1  ;;  %v4234_v32 = vrot.slane %v4000_v43, 2 }
 0xa1f   :  { %v4229_v35 = vrot.slane %v4073_v33, 1  ;;  %v4237_v48 = vrot.slane %v4073_v33, 2  ;;  %v4227_v56 = vrot.slane %v4002_v2, 1  ;;  %v4235_v61 = vrot.slane %v4002_v2, 2 }
 0xa20   :  { %v4260_v18 = vadd.f32 %v4228_v46, %v11843_v27  ;;  %v4268_v19 = vadd.f32 %v4236_v30, %v12322_v36  ;;  %v4266_v49 = vadd.f32 %v4234_v32, %v11958_v25 }
 0xa21   :  { %v4261_v62 = vadd.f32 %v4229_v35, %v12064_v40  ;;  %v4269_v29 = vadd.f32 %v4237_v48, %v12323_v63  ;;  %v4354_v40 = vrot.slane %v10390_v5, 7  ;;  %v12324_v5 = vld [vmem:[#allocation147_spill] sm:$0xff]  ;;  %v4259_v52 = vadd.f32 %v4227_v56, %v12325_v10 }
 0xa22   :  { %v5380_v41 = vmul.f32 -1.442695, %v4260_v18  ;;  %v5386_v37 = vmul.f32 -1.442695, %v4268_v19  ;;  %v4258_v17 = vadd.f32 %v4226_v54, %v12324_v5  ;;  %v5384_v7 = vmul.f32 -1.442695, %v4266_v49 }
 0xa23   :  { %v5381_v20 = vmul.f32 -1.442695, %v4261_v62  ;;  %v5387_v21 = vmul.f32 -1.442695, %v4269_v29  ;;  %v4267_v43 = vadd.f32 %v4235_v61, %v12326_v51  ;;  %v5379_v45 = vmul.f32 -1.442695, %v4259_v52 }
 0xa24   :  { %8343 = vpow2.f32 %v5380_v41  ;;  %v5378_v22 = vmul.f32 -1.442695, %v4258_v17 }
 0xa25   :  { %8345 = vpow2.f32 %v5386_v37  ;;  %v5385_v57 = vmul.f32 -1.442695, %v4267_v43 }
 0xa26   :  { %8347 = vpow2.f32 %v5381_v20 }
 0xa27   :  { %8349 = vpow2.f32 %v5387_v21 }
 0xa2e   :  { %v8344_v55 = vpop.eup %8343 }
 0xa2f   :  { %v8346_v11 = vpop.eup %8345  ;;  %v4312_v39 = vadd.f32 1.0, %v8344_v55 }
 0xa30   :  { %v4318_v47 = vadd.f32 1.0, %v8346_v11  ;;  %v8348_v27 = vpop.eup %8347 }
 0xa31   :  { %8351 = vrcp.f32 %v4312_v39  ;;  %v8350_v31 = vpop.eup %8349  ;;  %v4313_v42 = vadd.f32 1.0, %v8348_v27 }
 0xa32   :  { %8353 = vrcp.f32 %v4318_v47  ;;  %v4319_v24 = vadd.f32 1.0, %v8350_v31 }
 0xa33   :  { %8355 = vrcp.f32 %v4313_v42 }
 0xa34   :  { %8357 = vrcp.f32 %v4319_v24 }
 0xa35   :  { %8359 = vpow2.f32 %v5378_v22 }
 0xa36   :  { %8361 = vpow2.f32 %v5384_v7 }
 0xa37   :  { %8363 = vpow2.f32 %v5379_v45 }
 0xa38   :  { %8365 = vpow2.f32 %v5385_v57 }
 0xa3b   :  { %v8352_v50 = vpop.eup %8351 }
 0xa3c   :  { %v8354_v3 = vpop.eup %8353  ;;  %v10695_v38 = vmul.f32 %v8352_v50, %v4354_v40 }
 0xa3d   :  { %v10697_v4 = vmul.f32 %v8354_v3, %v4356_v34  ;;  %v8356_v13 = vpop.eup %8355 }
 0xa3e   :  { %v8358_v44 = vpop.eup %8357  ;;  %v10701_v26 = vmul.f32 %v8356_v13, %v4355_v16 }
 0xa3f   :  { %v10704_v1 = vmul.f32 %v8358_v44, %v4357_v60  ;;  %v8360_v46 = vpop.eup %8359 }
 0xa40   :  { %v8362_v30 = vpop.eup %8361  ;;  %v4310_v35 = vadd.f32 1.0, %v8360_v46 }
 0xa41   :  { %v8364_v33 = vpop.eup %8363  ;;  %v4316_v48 = vadd.f32 1.0, %v8362_v30 }
 0xa42   :  { %v8366_v18 = vpop.eup %8365  ;;  %v4311_v25 = vadd.f32 1.0, %v8364_v33  ;;  %8367 = vrcp.f32 %v4310_v35 }
 0xa43   :  { %8369 = vrcp.f32 %v4316_v48  ;;  %v4317_v2 = vadd.f32 1.0, %v8366_v18 }
 0xa44   :  { %8371 = vrcp.f32 %v4311_v25 }
 0xa45   :  { %8373 = vrcp.f32 %v4317_v2 }
 0xa5d   :  { %v4142_v36 = vpop.f32.mrb[42].mxu0  ;;  %v4213_v19 = vpop.f32.mrb[34].mxu1 }
 0xa5e   :  { %v4230_v41 = vrot.slane %v4142_v36, 1  ;;  %v4238_v62 = vrot.slane %v4142_v36, 2  ;;  %v4232_v37 = vrot.slane %v4213_v19, 1  ;;  %v4240_v63 = vrot.slane %v4213_v19, 2  ;;  %v4144_v29 = vpop.f32.mrb[43].mxu0  ;;  %v4215_v20 = vpop.f32.mrb[35].mxu1 }
 0xa5f   :  { %v4231_v21 = vrot.slane %v4144_v29, 1  ;;  %v4239_v55 = vrot.slane %v4144_v29, 2  ;;  %v4233_v11 = vrot.slane %v4215_v20, 1  ;;  %v4241_v40 = vrot.slane %v4215_v20, 2  ;;  %v4510_v19 = vld [vmem:[%s11132_s4 + $0x208] sm:$0xff]  ;;  %v5151_v29 = vld [vmem:[%s11142_s14 + $0x18] sm:$0xff] }
 0xa60   :  { %v4262_v39 = vadd.f32 %v4230_v41, %v9202_v59  ;;  %v4270_v47 = vadd.f32 %v4238_v62, %v11846_v8  ;;  %v4264_v27 = vadd.f32 %v4232_v37, %v11744_v23  ;;  %v4272_v31 = vadd.f32 %v4240_v63, %v11847_v0  ;;  %v8368_v8 = vpop.eup %8367  ;;  %v4528_v37 = vld [vmem:[%s11132_s4 + $0x298] sm:$0xff] }
 0xa61   :  { %v4263_v42 = vadd.f32 %v4231_v21, %v9205_v9  ;;  %v4271_v24 = vadd.f32 %v4239_v55, %v11848_v12  ;;  %v4265_v59 = vadd.f32 %v4233_v11, %v11745_v58  ;;  %v4273_v23 = vadd.f32 %v4241_v40, %v11743_v15  ;;  %v8370_v0 = vpop.eup %8369  ;;  %v4513_v40 = vld [vmem:[%s11132_s4 + $0x220] sm:$0xff] }
 0xa62   :  { %v5382_v50 = vmul.f32 -1.442695, %v4262_v39  ;;  %v5388_v34 = vmul.f32 -1.442695, %v4270_v47  ;;  %8375 = vtanh.f32 %v4264_v27  ;;  %v8372_v9 = vpop.eup %8371  ;;  %v4512_v39 = vld [vmem:[%s11132_s4 + $0x218] sm:$0xff]  ;;  %v4529_v47 = vld [vmem:[%s11132_s4 + $0x2a0] sm:$0xff] }
 0xa63   :  { %8377 = vtanh.f32 %v4272_v31  ;;  %v5383_v3 = vmul.f32 -1.442695, %v4263_v42  ;;  %v5389_v54 = vmul.f32 -1.442695, %v4271_v24  ;;  %v8374_v12 = vpop.eup %8373  ;;  %v4530_v27 = vld [vmem:[%s11132_s4 + $0x2a8] sm:$0xff] }
 0xa64   :  { %8379 = vpow2.f32 %v5382_v50  ;;  %v7761_v24 = vpack.c.bf16 %v4530_v27, %v4529_v47  ;;  %v4514_v50 = vld [vmem:[%s11132_s4 + $0x228] sm:$0xff] }
 0xa65   :  { %8381 = vpow2.f32 %v5388_v34  ;;  %v4869_v27 = vld [vmem:[%s11138_s10 + $0x28] sm:$0xff] }
 0xa66   :  { %8383 = vpow2.f32 %v5383_v3  ;;  %v4531_v3 = vld [vmem:[%s11132_s4 + $0x2b0] sm:$0xff] }
 0xa67   :  { %8385 = vpow2.f32 %v5389_v54  ;;  %v4532_v54 = vld [vmem:[%s11132_s4 + $0x2b8] sm:$0xff] }
 0xa68   :  { %8387 = vtanh.f32 %v4265_v59  ;;  %v7763_v59 = vpack.c.bf16 %v4514_v50, %v4513_v40  ;;  %v4886_v40 = vld [vmem:[%s11138_s10 + $0xb0] sm:$0xff]  ;;  %v4887_v50 = vld [vmem:[%s11138_s10 + $0xb8] sm:$0xff] }
 0xa69   :  { %8389 = vtanh.f32 %v4273_v23  ;;  %v7765_v23 = vpack.c.bf16 %v4532_v54, %v4531_v3  ;;  %v4903_v3 = vld [vmem:[%s11138_s10 + $0x138] sm:$0xff] }
 0xa6c   :  { %v8376_v16 = vpop.eup %8375 }
 0xa6d   :  { %v8378_v32 = vpop.eup %8377  ;;  %v4366_v13 = vmul.f32 %v8376_v16, %v8368_v8  ;;  %v4515_v8 = vld [vmem:[%s11132_s4 + $0x230] sm:$0xff] }
 0xa6e   :  { %v8380_v60 = vpop.eup %8379  ;;  %v4368_v44 = vmul.f32 %v8378_v32, %v8370_v0  ;;  %v4516_v0 = vld [vmem:[%s11132_s4 + $0x238] sm:$0xff] }
 0xa6f   :  { %v8382_v56 = vpop.eup %8381  ;;  %v4314_v5 = vadd.f32 1.0, %v8380_v60  ;;  %v4370_v58 = vadd.f32 %v4366_v13, %v10695_v38  ;;  %v7767_v16 = vpack.c.bf16 %v4516_v0, %v4515_v8  ;;  %v4517_v13 = vld [vmem:[%s11132_s4 + $0x240] sm:$0xff]  ;;  %v4518_v60 = vld [vmem:[%s11132_s4 + $0x248] sm:$0xff]  ;;  %v4871_v8 = vld [vmem:[%s11138_s10 + $0x38] sm:$0xff] }
 0xa70   :  { %v8384_v17 = vpop.eup %8383  ;;  %v4320_v49 = vadd.f32 1.0, %v8382_v56  ;;  %v4372_v15 = vadd.f32 %v4368_v44, %v10697_v4  ;;  %v4535_v44 = vld [vmem:[%s11132_s4 + $0x2d0] sm:$0xff]  ;;  %v4536_v56 = vld [vmem:[%s11132_s4 + $0x2d8] sm:$0xff] }
 0xa71   :  { %v8386_v61 = vpop.eup %8385  ;;  %8391 = vrcp.f32 %v4314_v5  ;;  %v4315_v10 = vadd.f32 1.0, %v8384_v17  ;;  %v7771_v5 = vpack.c.bf16 %v4518_v60, %v4517_v13  ;;  %v4519_v17 = vld [vmem:[%s11132_s4 + $0x250] sm:$0xff] }
 0xa72   :  { %v8388_v52 = vpop.eup %8387  ;;  %8393 = vrcp.f32 %v4320_v49  ;;  %v4321_v22 = vadd.f32 1.0, %v8386_v61  ;;  %v4520_v49 = vld [vmem:[%s11132_s4 + $0x258] sm:$0xff]  ;;  %v4538_v61 = vld [vmem:[%s11132_s4 + $0x2e8] sm:$0xff] }
 0xa73   :  { %v8390_v7 = vpop.eup %8389  ;;  %8395 = vtanh.f32 %v4370_v58  ;;  %v4367_v51 = vmul.f32 %v8388_v52, %v8372_v9  ;;  %v4533_v9 = vld [vmem:[%s11132_s4 + $0x2c0] sm:$0xff]  ;;  %v7773_v58 = vpack.c.bf16 %v4536_v56, %v4535_v44  ;;  %v4873_v56 = vld [vmem:[%s11138_s10 + $0x48] sm:$0xff] }
 0xa74   :  { %8397 = vrcp.f32 %v4315_v10  ;;  %v4369_v43 = vmul.f32 %v8390_v7, %v8374_v12  ;;  %v4534_v12 = vld [vmem:[%s11132_s4 + $0x2c8] sm:$0xff]  ;;  %v7775_v10 = vpack.c.bf16 %v4520_v49, %v4519_v17  ;;  %v4872_v44 = vld [vmem:[%s11138_s10 + $0x40] sm:$0xff]  ;;  %v4891_v17 = vld [vmem:[%s11138_s10 + $0xd8] sm:$0xff] }
 0xa75   :  { %8399 = vrcp.f32 %v4321_v22  ;;  %v4371_v45 = vadd.f32 %v4367_v51, %v10701_v26  ;;  %v7769_v32 = vpack.c.bf16 %v4534_v12, %v4533_v9  ;;  %v4521_v22 = vld [vmem:[%s11132_s4 + $0x260] sm:$0xff]  ;;  %v4522_v7 = vld [vmem:[%s11132_s4 + $0x268] sm:$0xff]  ;;  %v4539_v51 = vld [vmem:[%s11132_s4 + $0x2f0] sm:$0xff] }
 0xa76   :  { %v4373_v38 = vadd.f32 %v4369_v43, %v10704_v1  ;;  %8401 = vtanh.f32 %v4372_v15  ;;  %v4509_v1 = vld [vmem:[%s11132_s4 + $0x200] sm:$0xff]  ;;  %v4540_v43 = vld [vmem:[%s11132_s4 + $0x2f8] sm:$0xff]  ;;  %v4889_v12 = vld [vmem:[%s11138_s10 + $0xc8] sm:$0xff] }
 0xa77   :  { %8403 = vtanh.f32 %v4371_v45  ;;  %v7755_v21 = vpack.c.bf16 %v4510_v19, %v4509_v1  ;;  %v4537_v15 = vld [vmem:[%s11132_s4 + $0x2e0] sm:$0xff]  ;;  %v7779_v45 = vpack.c.bf16 %v4522_v7, %v4521_v22  ;;  %v4897_v1 = vld [vmem:[%s11138_s10 + $0x108] sm:$0xff]  ;;  %v4906_v49 = vld [vmem:[%s11138_s10 + $0x150] sm:$0xff] }
 0xa78   :  { %8405 = vtanh.f32 %v4373_v38  ;;  %v7777_v52 = vpack.c.bf16 %v4538_v61, %v4537_v15  ;;  %v7781_v38 = vpack.c.bf16 %v4540_v43, %v4539_v51  ;;  %v4888_v9 = vld [vmem:[%s11138_s10 + $0xc0] sm:$0xff]  ;;  %v4907_v15 = vld [vmem:[%s11138_s10 + $0x158] sm:$0xff]  ;;  %v7803_v61 = vpack.c.bf16 %v4873_v56, %v4872_v44  ;;  %v4893_v43 = vld [vmem:[%s11138_s10 + $0xe8] sm:$0xff] }
 0xa79   :  { %v7801_v60 = vpack.c.bf16 %v4889_v12, %v4888_v9  ;;  %v4875_v22 = vld [vmem:[%s11138_s10 + $0x58] sm:$0xff]  ;;  %v7837_v7 = vpack.c.bf16 %v4907_v15, %v4906_v49  ;;  %v4892_v51 = vld [vmem:[%s11138_s10 + $0xe0] sm:$0xff] }
 0xa7a   :  { %v5404_v9 = vld [vmem:[%s11135_s7] ss:$0 sm:$0xff] }
 0xa7b   :  { %v8392_v4 = vpop.eup %8391 }
 0xa7c   :  { %v8394_v57 = vpop.eup %8393 }
 0xa7d   :  { %v8396_v46 = vpop.eup %8395 }
 0xa7e   :  { %v8398_v30 = vpop.eup %8397  ;;  %v4378_v33 = vmul.f32 %v8396_v46, %v8392_v4  ;;  %v4523_v4 = vld [vmem:[%s11132_s4 + $0x270] sm:$0xff] }
 0xa7f   :  { %v8400_v35 = vpop.eup %8399 }
 0xa80   :  { %v8402_v48 = vpop.eup %8401  ;;  %v10723_v18 = vsel %vm4412_vm8, %v10407_v53, %v4378_v33  ;;  %v4527_v53 = vld [vmem:[%s11132_s4 + $0x290] sm:$0xff] }
 0xa81   :  { %v8404_v25 = vpop.eup %8403  ;;  %v4380_v2 = vmul.f32 %v8402_v48, %v8394_v57  ;;  %v4421_v55 = vrot.slane %v10723_v18, 7  ;;  %v7757_v11 = vpack.c.bf16 %v4528_v37, %v4527_v53  ;;  %v4524_v57 = vld [vmem:[%s11132_s4 + $0x278] sm:$0xff]  ;;  %v4880_v48 = vld [vmem:[%s11138_s10 + $0x80] sm:$0xff]  ;;  %v4866_v37 = vld [vmem:[%s11138_s10 + $0x10] sm:$0xff] }
 0xa82   :  { %v8406_v26 = vpop.eup %8405  ;;  %v4379_v36 = vmul.f32 %v8404_v25, %v8398_v30  ;;  %v7783_v46 = vpack.c.bf16 %v4524_v57, %v4523_v4  ;;  %v4433_v30 = vrot.slane %v10723_v18, 1  ;;  %v4881_v25 = vld [vmem:[%s11138_s10 + $0x88] sm:$0xff]  ;;  %v4883_v53 = vld [vmem:[%s11138_s10 + $0x98] sm:$0xff]  ;;  %v7809_v57 = vpack.c.bf16 %v4893_v43, %v4892_v51 }
 0xa83   :  { %v4381_v41 = vmul.f32 %v8406_v26, %v8400_v35  ;;  %v10733_v62 = vsel %vm4412_vm8, %v10411_v14, %v4380_v2  ;;  %v7785_v2 = vpack.c.bf16 %v4881_v25, %v4880_v48  ;;  %v4865_v26 = vld [vmem:[%s11138_s10 + $0x8] sm:$0xff]  ;;  %v4895_v48 = vld [vmem:[%s11138_s10 + $0xf8] sm:$0xff]  ;;  %v4910_v25 = vld [vmem:[%s11138_s10 + $0x170] sm:$0xff] }
 0xa84   :  { %v4414_v63 = vsel %vm4412_vm8, %v10418_v28, %v4379_v36  ;;  %v4511_v28 = vld [vmem:[%s11132_s4 + $0x210] sm:$0xff]  ;;  %v4423_v42 = vrot.slane %v10733_v62, 7  ;;  %v4435_v35 = vrot.slane %v10733_v62, 1  ;;  %v4896_v36 = vld [vmem:[%s11138_s10 + $0x100] sm:$0xff] }
 0xa85   :  { %v4422_v20 = vrot.slane %v4414_v63, 7  ;;  %4680 = vmatprep.mubr.f32.mxu1 %v4414_v63  ;;  %v10750_v14 = vsel %vm4412_vm8, %v10422_v6, %v4381_v41  ;;  %v7759_v31 = vpack.c.bf16 %v4512_v39, %v4511_v28  ;;  %v4434_v34 = vrot.slane %v4414_v63, 1  ;;  %7786 = vmatprep.subr.bf16.mxu1 %v7785_v2  ;;  %v4884_v28 = vld [vmem:[%s11138_s10 + $0xa0] sm:$0xff]  ;;  %v4885_v39 = vld [vmem:[%s11138_s10 + $0xa8] sm:$0xff] }
 0xa86   :  { %4681 = vmatmul.mubr.f32.vlgmr.msra.gmra.mrb[36].mxu1 %v10723_v18  ;;  %v4424_v6 = vrot.slane %v10750_v14, 7  ;;  %v4436_v33 = vrot.slane %v10750_v14, 1  ;;  %v4864_v18 = vld [vmem:[%s11138_s10] sm:$0xff]  ;;  %v7817_v41 = vpack.c.bf16 %v4897_v1, %v4896_v36  ;;  %v7793_v47 = vpack.c.bf16 %v4885_v39, %v4884_v28  ;;  %v4878_v36 = vld [vmem:[%s11138_s10 + $0x70] sm:$0xff]  ;;  %v4879_v1 = vld [vmem:[%s11138_s10 + $0x78] sm:$0xff] }
 0xa87   :  { %5391 = vmatprep.mubr.msk.f32.mxu0 %vm10744_vm9, %v4422_v20  ;;  %4685 = vmatprep.mubr.f32.mxu1 %v10750_v14  ;;  %v7787_v19 = vpack.c.bf16 %v4865_v26, %v4864_v18  ;;  %v4867_v20 = vld [vmem:[%s11138_s10 + $0x18] sm:$0xff]  ;;  %v4898_v14 = vld [vmem:[%s11138_s10 + $0x110] sm:$0xff] }
 0xa88   :  { %5393 = vmatmul.mubr.msk.f32.vlgmr.msra.gmra.mrb[44].mxu0 %vm10744_vm9, %v4421_v55  ;;  %v7791_v55 = vpack.c.bf16 %v4867_v20, %v4866_v37  ;;  %v4911_v18 = vld [vmem:[%s11138_s10 + $0x178] sm:$0xff] }
 0xa89   :  { %7756 = vmatpush3.bf16.msra.mxu0 %v7755_v21  ;;  %5395 = vmatprep.mubr.msk.f32.mxu0 %vm10744_vm9, %v4424_v6  ;;  %v4899_v21 = vld [vmem:[%s11138_s10 + $0x118] sm:$0xff]  ;;  %v4868_v6 = vld [vmem:[%s11138_s10 + $0x20] sm:$0xff] }
 0xa8a   :  { %4686 = vmatmul.mubr.f32.gmra.mrb[38].mxu1 %v10733_v62  ;;  %7758 = vmatprep.subr.bf16.mxu0 %v7757_v11  ;;  %v4882_v62 = vld [vmem:[%s11138_s10 + $0x90] sm:$0xff]  ;;  %v7821_v11 = vpack.c.bf16 %v4899_v21, %v4898_v14  ;;  %v7795_v54 = vpack.c.bf16 %v4869_v27, %v4868_v6 }
 0xa8b   :  { %v7789_v63 = vpack.c.bf16 %v4883_v53, %v4882_v62  ;;  %7788 = vmatpush3.bf16.msra.mxu1 %v7787_v19  ;;  %v7845_v19 = vpack.c.bf16 %v4911_v18, %v4910_v25  ;;  %v5405_v18 = vld [vmem:[%s11136_s8] ss:$0 sm:$0xff]  ;;  %s12331_s8 = sld [smem:[#allocation164_spill]] }
 0xa8c   :  { %5397 = vmatmul.mubr.msk.f32.gmra.mrb[46].mxu0 %vm10744_vm9, %v4423_v42  ;;  %v4901_v42 = vld [vmem:[%s11138_s10 + $0x128] sm:$0xff] }
 0xa8d   :  { %7760 = vmatpush3.bf16.msra.mxu0 %v7759_v31  ;;  %5398 = vmatprep.mubr.msk.f32.mxu0 %vm4412_vm8, %v4434_v34  ;;  %v4900_v31 = vld [vmem:[%s11138_s10 + $0x120] sm:$0xff]  ;;  %v4902_v34 = vld [vmem:[%s11138_s10 + $0x130] sm:$0xff] }
 0xa8e   :  { %7762 = vmatprep.subr.bf16.mxu0 %v7761_v24  ;;  %7790 = vmatprep.subr.bf16.mxu1 %v7789_v63  ;;  %v7825_v24 = vpack.c.bf16 %v4901_v42, %v4900_v31  ;;  %v7829_v0 = vpack.c.bf16 %v4903_v3, %v4902_v34  ;;  %v12329_v34 = vld [vmem:[#allocation142_spill] sm:$0xff]  ;;  %v5403_v3 = vld [vmem:[%s11134_s6] ss:$0 sm:$0xff] }
 0xa8f   :  { %7792 = vmatpush3.bf16.msra.mxu1 %v7791_v55  ;;  %vm4777_vm10 = vcmp.eq.s32.totalorder %v12329_v34, 0  ;;  %vm4788_vm11 = vcmp.eq.s32.totalorder %v12329_v34, 7  ;;  %v5154_v34 = vld [vmem:[%s11142_s14 + $0x30] sm:$0xff] }
 0xa90   :  { %7794 = vmatprep.subr.bf16.mxu1 %v7793_v47 }
 0xa91   :  { %7764 = vmatpush3.bf16.msra.mxu0 %v7763_v59  ;;  %v7797_v59 = vpack.c.bf16 %v4887_v50, %v4886_v40  ;;  %v5402_v40 = vld [vmem:[%s11133_s5] ss:$0 sm:$0xff]  ;;  %s4842_s5 = sld [smem:[#allocation8]] }
 0xa92   :  { %7766 = vmatprep.subr.bf16.mxu0 %v7765_v23  ;;  %v4870_v23 = vld [vmem:[%s11138_s10 + $0x30] sm:$0xff] }
 0xa93   :  { %7796 = vmatpush3.bf16.msra.mxu1 %v7795_v54  ;;  %v7799_v13 = vpack.c.bf16 %v4871_v8, %v4870_v23 }
 0xa94   :  { %7798 = vmatprep.subr.bf16.mxu1 %v7797_v59 }
 0xa95   :  { %7768 = vmatpush3.bf16.msra.mxu0 %v7767_v16  ;;  %v4904_v16 = vld [vmem:[%s11138_s10 + $0x140] sm:$0xff] }
 0xa96   :  { %7770 = vmatprep.subr.bf16.mxu0 %v7769_v32  ;;  %v4905_v32 = vld [vmem:[%s11138_s10 + $0x148] sm:$0xff] }
 0xa97   :  { %7800 = vmatpush3.bf16.msra.mxu1 %v7799_v13  ;;  %v4796_v13 = vsel %vm4788_vm11, %v5404_v9, 0.0  ;;  %v5159_v9 = vld [vmem:[%s11142_s14 + $0x58] sm:$0xff] }
 0xa98   :  { %7802 = vmatprep.subr.bf16.mxu1 %v7801_v60 }
 0xa99   :  { %7772 = vmatpush3.bf16.msra.mxu0 %v7771_v5  ;;  %v7833_v5 = vpack.c.bf16 %v4905_v32, %v4904_v16 }
 0xa9a   :  { %7774 = vmatprep.subr.bf16.mxu0 %v7773_v58  ;;  %v4890_v58 = vld [vmem:[%s11138_s10 + $0xd0] sm:$0xff] }
 0xa9b   :  { %7804 = vmatpush3.bf16.msra.mxu1 %v7803_v61 }
 0xa9d   :  { %7776 = vmatpush3.bf16.msra.mxu0 %v7775_v10  ;;  %v7805_v10 = vpack.c.bf16 %v4891_v17, %v4890_v58 }
 0xa9e   :  { %7778 = vmatprep.subr.bf16.mxu0 %v7777_v52  ;;  %v4874_v52 = vld [vmem:[%s11138_s10 + $0x50] sm:$0xff] }
 0xa9f   :  { %v7807_v4 = vpack.c.bf16 %v4875_v22, %v4874_v52  ;;  %7806 = vmatprep.subr.bf16.mxu1 %v7805_v10 }
 0xaa1   :  { %7780 = vmatpush3.bf16.msra.mxu0 %v7779_v45  ;;  %v4908_v45 = vld [vmem:[%s11138_s10 + $0x160] sm:$0xff]  ;;  %7808 = vmatpush3.bf16.msra.mxu1 %v7807_v4 }
 0xaa2   :  { %7782 = vmatprep.subr.bf16.mxu0 %v7781_v38  ;;  %v4909_v38 = vld [vmem:[%s11138_s10 + $0x168] sm:$0xff]  ;;  %7810 = vmatprep.subr.bf16.mxu1 %v7809_v57 }
 0xaa5   :  { %7784 = vmatpush3.bf16.msra.mxu0 %v7783_v46  ;;  %v4876_v46 = vld [vmem:[%s11138_s10 + $0x60] sm:$0xff] }
 0xaa6   :  { %7818 = vmatprep.subr.bf16.mxu0 %v7817_v41 }
 0xaa8   :  { %5399 = vmatmul.mubr.msk.f32.vlgmr.msra.gmra.mrb[48].mxu0 %vm4412_vm8, %v4433_v30  ;;  %v4877_v30 = vld [vmem:[%s11138_s10 + $0x68] sm:$0xff] }
 0xaa9   :  { %5400 = vmatprep.mubr.msk.f32.mxu0 %vm4412_vm8, %v4436_v33  ;;  %7820 = vmatpush3.bf16.msra.mxu0 %v7817_v41  ;;  %v7841_v33 = vpack.c.bf16 %v4909_v38, %v4908_v45  ;;  %v7811_v2 = vpack.c.bf16 %v4877_v30, %v4876_v46  ;;  %v7815_v41 = vpack.c.bf16 %v4879_v1, %v4878_v36  ;;  %v5406_v36 = vld [vmem:[%s11137_s9] ss:$0 sm:$0xff]  ;;  %s8508_s9 = smov [#allocation9]  }
 0xaaa   :  { %7822 = vmatprep.subr.bf16.mxu0 %v7821_v11  ;;  %s5272_s28 = sshll.u32 %s8508_s9, 4  ;;  %s5273_s28 = int_to_ptr.vmem [resolvable:$true] %s5272_s28 }
 0xaab   :  { %7812 = vmatpush3.bf16.msra.mxu1 %v7811_v2  ;;  %s8471_s17 = scalar_lea.vmem %s5273_s28, 256  ;;  %p8476_p8 = scmp.lt.s32.totalorder %s5273_s28, %s5273_s28 }
 0xaac   :  { %5401 = vmatmul.mubr.msk.f32.gmra.mrb[50].mxu0 %vm4412_vm8, %v4435_v35  ;;  %v4894_v35 = vld [vmem:[%s11138_s10 + $0xf0] sm:$0xff]  ;;  %p8472_p7 = scmp.ne.s32.totalorder %s5273_s28, %s8471_s17  ;;  %p8477_p9 = scmp.lt.s32.totalorder %s8471_s17, %s8471_s17 }
 0xaad   :  { %7824 = vmatpush3.bf16.msra.mxu0 %v7821_v11  ;;  %v7813_v26 = vpack.c.bf16 %v4895_v48, %v4894_v35 }
 0xaae   :  { %7826 = vmatprep.subr.bf16.mxu0 %v7825_v24  ;;  %p8478_p10 = por %p8477_p9, %p8476_p8 }
 0xaaf   :  { %7814 = vmatprep.subr.bf16.mxu1 %v7813_v26 }
 0xab0   :  { %7816 = vmatpush3.bf16.msra.mxu1 %v7815_v41  ;;  %v4845_v41 = vstv %s4842_s5  ;;  %p8479_p11 = pnand %p8478_p10, %p8472_p7 }
 0xab1   :  { %7828 = vmatpush3.bf16.msra.mxu0 %v7825_v24 }
 0xab2   :  { %7830 = vmatprep.subr.bf16.mxu0 %v7829_v0 }
 0xab5   :  { %7832 = vmatpush3.bf16.msra.mxu0 %v7829_v0  ;;  %v4785_v0 = vsel %vm4777_vm10, %v5403_v3, 0.0  ;;  %v5155_v3 = vld [vmem:[%s11142_s14 + $0x38] sm:$0xff] }
 0xab6   :  { %7834 = vmatprep.subr.bf16.mxu0 %v7833_v5 }
 0xab9   :  { %7836 = vmatpush3.bf16.msra.mxu0 %v7833_v5 }
 0xaba   :  { %7838 = vmatprep.subr.bf16.mxu0 %v7837_v7 }
 0xabd   :  { %7840 = vmatpush3.bf16.msra.mxu0 %v7837_v7 }
 0xabe   :  { %7842 = vmatprep.subr.bf16.mxu0 %v7841_v33 }
 0xac1   :  { %7844 = vmatpush3.bf16.msra.mxu0 %v7841_v33 }
 0xac2   :  { %7846 = vmatprep.subr.bf16.mxu0 %v7845_v19 }
 0xac5   :  { %7848 = vmatpush3.bf16.msra.mxu0 %v7845_v19 }
 0xb59   :  { %v5490_v62 = vpop.f32.mrb[36].mxu1 }
 0xb5a   :  { %v5491_v53 = vpop.f32.mrb[37].mxu1 }
 0xb5b   :  { %v5492_v37 = vadd.f32 %v5491_v53, %v5490_v62  ;;  %v5452_v63 = vpop.f32.mrb[44].mxu0 }
 0xb5c   :  { %v5453_v20 = vpop.f32.mrb[45].mxu0 }
 0xb5d   :  { %v5454_v14 = vadd.f32 %v5453_v20, %v5452_v63  ;;  %v5493_v21 = vpop.f32.mrb[38].mxu1 }
 0xb5e   :  { %v5494_v55 = vpop.f32.mrb[39].mxu1 }
 0xb5f   :  { %v4683_v11 = vadd.f32 %v5492_v37, %v5454_v14  ;;  %v5495_v28 = vadd.f32 %v5494_v55, %v5493_v21  ;;  %v5455_v39 = vpop.f32.mrb[46].mxu0 }
 0xb60   :  { %v5456_v6 = vpop.f32.mrb[47].mxu0 }
 0xb61   :  { %v5457_v47 = vadd.f32 %v5456_v6, %v5455_v39  ;;  %v5148_v39 = vld [vmem:[%s11142_s14] sm:$0xff]  ;;  %v5149_v6 = vld [vmem:[%s11142_s14 + $0x8] sm:$0xff] }
 0xb63   :  { %v4688_v27 = vadd.f32 %v5495_v28, %v5457_v47  ;;  %v5150_v47 = vld [vmem:[%s11142_s14 + $0x10] sm:$0xff] }
 0xb7b   :  { %v5528_v31 = vpop.f32.mrb[48].mxu0 }
 0xb7c   :  { %v5529_v42 = vpop.f32.mrb[49].mxu0 }
 0xb7d   :  { %v5530_v24 = vadd.f32 %v5529_v42, %v5528_v31  ;;  %v7850_v31 = vpack.c.bf16 %v5149_v6, %v5148_v39  ;;  %v7853_v42 = vpack.c.bf16 %v5151_v29, %v5150_v47 }
 0xb7f   :  { %v4758_v50 = vadd.f32 %v5530_v24, %v4683_v11  ;;  %v5531_v54 = vpop.f32.mrb[50].mxu0  ;;  %v5152_v24 = vld [vmem:[%s11142_s14 + $0x20] sm:$0xff] }
 0xb80   :  { %v5532_v59 = vpop.f32.mrb[51].mxu0 }
 0xb81   :  { %v4773_v23 = vadd.f32 %v5402_v40, %v4758_v50  ;;  %v5533_v8 = vadd.f32 %v5532_v59, %v5531_v54  ;;  %v7859_v54 = vpack.c.bf16 %v5155_v3, %v5154_v34  ;;  %v5156_v59 = vld [vmem:[%s11142_s14 + $0x40] sm:$0xff] }
 0xb83   :  { %v4763_v12 = vadd.f32 %v5533_v8, %v4688_v27  ;;  %v4786_v16 = vsub.f32 %v4773_v23, %v4785_v0  ;;  %v8507_v27 = vmov 0.0|0.0   ;;  %v5157_v23 = vld [vmem:[%s11142_s14 + $0x48] sm:$0xff] }
 0xb84   :  { %7849 = vmatprep.subr.bf16.mxu1 %v8507_v27  ;;  %v7862_v8 = vpack.c.bf16 %v5157_v23, %v5156_v59 }
 0xb85   :  { %v4774_v32 = vadd.f32 %v5402_v40, %v4763_v12  ;;  %v4797_v44 = vsub.f32 %v4786_v16, %v4796_v13  ;;  %v5153_v40 = vld [vmem:[%s11142_s14 + $0x28] sm:$0xff]  ;;  %v5160_v16 = vld [vmem:[%s11142_s14 + $0x60] sm:$0xff] }
 0xb86   :  { %v7856_v50 = vpack.c.bf16 %v5153_v40, %v5152_v24 }
 0xb87   :  { %v4787_v60 = vsub.f32 %v4774_v32, %v4785_v0  ;;  %v5158_v0 = vld [vmem:[%s11142_s14 + $0x50] sm:$0xff]  ;;  %v5161_v32 = vld [vmem:[%s11142_s14 + $0x68] sm:$0xff] }
 0xb88   :  { %v7865_v12 = vpack.c.bf16 %v5159_v9, %v5158_v0 }
 0xb89   :  { %v4798_v56 = vsub.f32 %v4787_v60, %v4796_v13  ;;  %v7868_v13 = vpack.c.bf16 %v5161_v32, %v5160_v16  ;;  %v5162_v60 = vld [vmem:[%s11142_s14 + $0x70] sm:$0xff] }
 0xb8b   :  { %v4799_v5 = vadd.f32 %v4798_v56, %v4797_v44 }
 0xb8d   :  { %v4800_v58 = vrot.slane %v4799_v5, 4 }
 0xb8f   :  { %v4801_v17 = vadd.f32 %v4800_v58, %v4799_v5  ;;  %v5164_v5 = vld [vmem:[%s11142_s14 + $0x80] sm:$0xff]  ;;  %v5165_v58 = vld [vmem:[%s11142_s14 + $0x88] sm:$0xff] }
 0xb91   :  { %v4802_v49 = vrot.slane %v4801_v17, 2 }
 0xb93   :  { %v4803_v15 = vadd.f32 %v4802_v49, %v4801_v17  ;;  %v7874_v17 = vpack.c.bf16 %v5165_v58, %v5164_v5  ;;  %v5166_v49 = vld [vmem:[%s11142_s14 + $0x90] sm:$0xff] }
 0xb95   :  { %v4804_v61 = vrot.slane %v4803_v15, 1 }
 0xb97   :  { %v4805_v10 = vadd.f32 %v4804_v61, %v4803_v15  ;;  %v5167_v15 = vld [vmem:[%s11142_s14 + $0x98] sm:$0xff] }
 0xb98   :  { %v7877_v61 = vpack.c.bf16 %v5167_v15, %v5166_v49 }
 0xb99   :  { %v4807_v52 = vmul.f32 0.0625, %v4805_v10  ;;  %v5168_v10 = vld [vmem:[%s11142_s14 + $0xa0] sm:$0xff] }
 0xb9b   :  { %v4809_v22 = vsub.f32 %v4798_v56, %v4807_v52  ;;  %v4808_v7 = vsub.f32 %v4797_v44, %v4807_v52  ;;  %v5163_v44 = vld [vmem:[%s11142_s14 + $0x78] sm:$0xff]  ;;  %v5169_v52 = vld [vmem:[%s11142_s14 + $0xa8] sm:$0xff] }
 0xb9c   :  { %v7871_v56 = vpack.c.bf16 %v5163_v44, %v5162_v60 }
 0xb9d   :  { %v4811_v51 = vmul.f32 %v4809_v22, %v4809_v22  ;;  %v4810_v43 = vmul.f32 %v4808_v7, %v4808_v7 }
 0xb9f   :  { %v4812_v45 = vadd.f32 %v4811_v51, %v4810_v43  ;;  %v5171_v51 = vld [vmem:[%s11142_s14 + $0xb8] sm:$0xff] }
 0xba1   :  { %v4813_v38 = vrot.slane %v4812_v45, 4 }
 0xba3   :  { %v4814_v4 = vadd.f32 %v4813_v38, %v4812_v45 }
 0xba5   :  { %v4815_v57 = vrot.slane %v4814_v4, 2 }
 0xba7   :  { %v4816_v46 = vadd.f32 %v4815_v57, %v4814_v4 }
 0xba9   :  { %v4817_v30 = vrot.slane %v4816_v46, 1 }
 0xbab   :  { %v4818_v33 = vadd.f32 %v4817_v30, %v4816_v46 }
 0xbad   :  { %v4819_v35 = vmul.f32 0.0625, %v4818_v33 }
 0xbaf   :  { %v4820_v48 = vadd.f32 1e-05, %v4819_v35  ;;  %v5413_v35 = vld [vmem:[%s11139_s11] ss:$0 sm:$0xff]  ;;  %s5416_s11 = sld [smem:[#allocation8 + $0x1]] }
 0xbb1   :  { %8407 = vrsqrt.f32 %v4820_v48 }
 0xbbb   :  { %v8408_v25 = vpop.eup %8407 }
 0xbbc   :  { %v4822_v2 = vmul.f32 %v8408_v25, %v4808_v7  ;;  %v4823_v26 = vmul.f32 %v8408_v25, %v4809_v22  ;;  %v7880_v22 = vpack.c.bf16 %v5169_v52, %v5168_v10  ;;  %v5170_v7 = vld [vmem:[%s11142_s14 + $0xb0] sm:$0xff] }
 0xbbd   :  { %v7883_v43 = vpack.c.bf16 %v5171_v51, %v5170_v7 }
 0xbbe   :  { %v4831_v1 = vmul.f32 %v5405_v18, %v4822_v2  ;;  %v4832_v19 = vmul.f32 %v5405_v18, %v4823_v26 }
 0xbc0   :  { %v4840_v62 = vadd.f32 %v5406_v36, %v4831_v1  ;;  %v4841_v53 = vadd.f32 %v5406_v36, %v4832_v19 }
 0xbc2   :  { %vm4843_vm12 = vcmp.gt.f32.partialorder %v4840_v62, 0.0  ;;  %v4846_v37 = vmul.f32 %v4845_v41, %v4840_v62  ;;  %vm4844_vm13 = vcmp.gt.f32.partialorder %v4841_v53, 0.0  ;;  %v4847_v63 = vmul.f32 %v4845_v41, %v4841_v53 }
 0xbc4   :  { %v4848_v20 = vsel %vm4843_vm12, %v4840_v62, %v4846_v37  ;;  %v4849_v14 = vsel %vm4844_vm13, %v4841_v53, %v4847_v63 }
 0xbc5   :  { %v4852_v21 = vrot.slane %v4848_v20, 7  ;;  %v4858_v55 = vrot.slane %v4848_v20, 1  ;;  %4976 = vmatprep.mubr.f32.mxu1 %v4848_v20  ;;  %v4859_v11 = vrot.slane %v4849_v14, 1  ;;  %v4853_v28 = vrot.slane %v4849_v14, 7 }
 0xbc7   :  { %5408 = vmatmul.mubr.msk.f32.vlgmr.msra.gmra.mrb[40].mxu1 %vm10744_vm9, %v4852_v21  ;;  %5622 = vmatprep.mubr.msk.f32.mxu0 %vm4412_vm8, %v4858_v55 }
 0xbc8   :  { %4981 = vmatprep.mubr.f32.mxu1 %v4849_v14  ;;  %5623 = vmatmul.mubr.msk.f32.vlgmr.msra.gmra.mrb[52].mxu0 %vm4412_vm8, %v4859_v11 }
 0xbc9   :  { %7851 = vmatpush1.bf16.msra.mxu1 %v7850_v31 }
 0xbca   :  { %7852 = vmatprep.subr.bf16.mxu1 %v8507_v27 }
 0xbcb   :  { %5410 = vmatmul.mubr.msk.f32.gmra.mrb[42].mxu1 %vm10744_vm9, %v4853_v28 }
 0xbcd   :  { %7854 = vmatpush1.bf16.msra.mxu1 %v7853_v42 }
 0xbce   :  { %7855 = vmatprep.subr.bf16.mxu1 %v8507_v27 }
 0xbd1   :  { %7857 = vmatpush1.bf16.msra.mxu1 %v7856_v50 }
 0xbd2   :  { %7858 = vmatprep.subr.bf16.mxu1 %v8507_v27 }
 0xbd5   :  { %7860 = vmatpush1.bf16.msra.mxu1 %v7859_v54  ;;  %v5414_v54 = vld [vmem:[%s11140_s12] ss:$0 sm:$0xff] }
 0xbd6   :  { %7861 = vmatprep.subr.bf16.mxu1 %v8507_v27 }
 0xbd9   :  { %7863 = vmatpush1.bf16.msra.mxu1 %v7862_v8  ;;  %v5415_v8 = vld [vmem:[%s12330_s16] ss:$0 sm:$0xff] }
 0xbda   :  { %7864 = vmatprep.subr.bf16.mxu1 %v8507_v27 }
 0xbdd   :  { %7866 = vmatpush1.bf16.msra.mxu1 %v7865_v12  ;;  %v5121_v12 = vstv %s5416_s11 }
 0xbde   :  { %7867 = vmatprep.subr.bf16.mxu1 %v8507_v27 }
 0xbe1   :  { %7869 = vmatpush1.bf16.msra.mxu1 %v7868_v13 }
 0xbe2   :  { %7870 = vmatprep.subr.bf16.mxu1 %v8507_v27 }
 0xbe5   :  { %7872 = vmatpush1.bf16.msra.mxu1 %v7871_v56 }
 0xbe6   :  { %7873 = vmatprep.subr.bf16.mxu1 %v8507_v27 }
 0xbe9   :  { %7875 = vmatpush1.bf16.msra.mxu1 %v7874_v17 }
 0xbea   :  { %7876 = vmatprep.subr.bf16.mxu1 %v8507_v27 }
 0xbed   :  { %7878 = vmatpush1.bf16.msra.mxu1 %v7877_v61 }
 0xbee   :  { %7879 = vmatprep.subr.bf16.mxu1 %v8507_v27 }
 0xbf1   :  { %7881 = vmatpush1.bf16.msra.mxu1 %v7880_v22 }
 0xbf2   :  { %7882 = vmatprep.subr.bf16.mxu1 %v8507_v27 }
 0xbf5   :  { %7884 = vmatpush1.bf16.msra.mxu1 %v7883_v43 }
 0xc9a   :  { %v5566_v45 = vpop.f32.mrb[40].mxu1 }
 0xc9b   :  { %v5567_v38 = vpop.f32.mrb[41].mxu1  ;;  %v5624_v4 = vpop.f32.mrb[52].mxu0 }
 0xc9c   :  { %v5568_v57 = vadd.f32 %v5567_v38, %v5566_v45  ;;  %v5053_v46 = vpop.f32.mrb[53].mxu0  ;;  %v5419_v45 = vld [vmem:[%s12331_s8] ss:$0 sm:$0xff] }
 0xc9e   :  { %v5054_v30 = vadd.f32 %v5568_v57, %v5053_v46  ;;  %v5569_v33 = vpop.f32.mrb[42].mxu1 }
 0xc9f   :  { %v5570_v48 = vpop.f32.mrb[43].mxu1 }
 0xca0   :  { %v5571_v25 = vadd.f32 %v5570_v48, %v5569_v33  ;;  %v5069_v18 = vadd.f32 %v5413_v35, %v5054_v30 }
 0xca2   :  { %v5059_v2 = vadd.f32 %v5624_v4, %v5571_v25  ;;  %v5072_v36 = vsel %vm5071_vm14, %v5069_v18, 0.0 }
 0xca4   :  { %v5070_v26 = vadd.f32 %v5413_v35, %v5059_v2 }
 0xca6   :  { %v5073_v1 = vsel %vm5071_vm14, %v5070_v26, 0.0 }
 0xca7   :  { %v5074_v19 = vadd.f32 %v5073_v1, %v5072_v36 }
 0xca9   :  { %v5075_v41 = vrot.slane %v5074_v19, 4 }
 0xcab   :  { %v5076_v62 = vadd.f32 %v5075_v41, %v5074_v19 }
 0xcad   :  { %v5077_v53 = vrot.slane %v5076_v62, 2 }
 0xcaf   :  { %v5078_v37 = vadd.f32 %v5077_v53, %v5076_v62 }
 0xcb1   :  { %v5079_v63 = vrot.slane %v5078_v37, 1 }
 0xcb3   :  { %v5080_v20 = vadd.f32 %v5079_v63, %v5078_v37 }
 0xcb5   :  { %v5081_v14 = vmul.f32 0.0625, %v5080_v20 }
 0xcb7   :  { %v5082_v21 = vsub.f32 %v5069_v18, %v5081_v14  ;;  %v5083_v55 = vsub.f32 %v5070_v26, %v5081_v14 }
 0xcb9   :  { %v5084_v11 = vmul.f32 %v5082_v21, %v5082_v21  ;;  %v5085_v28 = vmul.f32 %v5083_v55, %v5083_v55 }
 0xcbb   :  { %v5086_v39 = vsel %vm5071_vm14, %v5084_v11, 0.0  ;;  %v5087_v6 = vsel %vm5071_vm14, %v5085_v28, 0.0 }
 0xcbc   :  { %v5088_v47 = vadd.f32 %v5087_v6, %v5086_v39 }
 0xcbe   :  { %v5089_v27 = vrot.slane %v5088_v47, 4 }
 0xcc0   :  { %v5090_v31 = vadd.f32 %v5089_v27, %v5088_v47 }
 0xcc2   :  { %v5091_v29 = vrot.slane %v5090_v31, 2 }
 0xcc4   :  { %v5092_v42 = vadd.f32 %v5091_v29, %v5090_v31 }
 0xcc6   :  { %v5093_v24 = vrot.slane %v5092_v42, 1 }
 0xcc8   :  { %v5094_v40 = vadd.f32 %v5093_v24, %v5092_v42 }
 0xcca   :  { %v5095_v50 = vmul.f32 0.0625, %v5094_v40 }
 0xccc   :  { %v5096_v34 = vadd.f32 1e-05, %v5095_v50 }
 0xcce   :  { %8409 = vrsqrt.f32 %v5096_v34 }
 0xcd8   :  { %v8410_v3 = vpop.eup %8409 }
 0xcd9   :  { %v5099_v59 = vmul.f32 %v8410_v3, %v5083_v55  ;;  %v5098_v23 = vmul.f32 %v8410_v3, %v5082_v21 }
 0xcdb   :  { %v5107_v0 = vmul.f32 %v5414_v54, %v5098_v23  ;;  %v5108_v9 = vmul.f32 %v5414_v54, %v5099_v59 }
 0xcdd   :  { %v5116_v16 = vadd.f32 %v5415_v8, %v5107_v0  ;;  %v5117_v32 = vadd.f32 %v5415_v8, %v5108_v9 }
 0xcdf   :  { %vm5119_vm15 = vcmp.gt.f32.partialorder %v5116_v16, 0.0  ;;  %v5122_v13 = vmul.f32 %v5121_v12, %v5116_v16  ;;  %v5123_v44 = vmul.f32 %v5121_v12, %v5117_v32  ;;  %vm5120_vm0 = vcmp.gt.f32.partialorder %v5117_v32, 0.0 }
 0xce1   :  { %v5124_v60 = vsel %vm5119_vm15, %v5116_v16, %v5122_v13  ;;  %v5125_v58 = vsel %vm5120_vm0, %v5117_v32, %v5123_v44 }
 0xce2   :  { %5140 = vrot.lane.b32.xlu0 %v5124_v60, %s8503_s21  ;;  %v5134_v56 = vrot.slane %v5124_v60, 1  ;;  %v5128_v17 = vrot.slane %v5124_v60, 7  ;;  %v5135_v49 = vrot.slane %v5125_v58, 1  ;;  %v5129_v15 = vrot.slane %v5125_v58, 7 }
 0xce4   :  { %v5138_v5 = vsel %vm4412_vm8, %v5134_v56, 0.0  ;;  %v5132_v10 = vsel %vm4382_vm2, 0.0, %v5128_v17  ;;  %v5139_v22 = vsel %vm4412_vm8, %v5135_v49, 0.0  ;;  %v5133_v51 = vsel %vm4382_vm2, 0.0, %v5129_v15 }
 0xce5   :  { %5417 = vmatprep.mubr.msk.f32.mxu1 %vm5071_vm14, %v5138_v5 }
 0xce6   :  { %5142 = vrot.lane.b32.xlu0 %v5125_v58, %s8503_s21 }
 0xd54   :  { %v5141_v61 = vpop.permute.xlu0 %5140 }
 0xd55   :  { %v5146_v52 = vsel %vm5071_vm14, %v5132_v10, %v5141_v61 }
 0xd56   :  { %5243 = vmatmul.mubr.f32.vlgmr.msra.gmra.mrb[44].mxu1 %v5146_v52 }
 0xd57   :  { %5418 = vmatprep.mubr.msk.f32.mxu1 %vm5071_vm14, %v5139_v22 }
 0xd58   :  { %v5143_v7 = vpop.permute.xlu0 %5142 }
 0xd59   :  { %v5147_v43 = vsel %vm5071_vm14, %v5133_v51, %v5143_v7 }
 0xd5a   :  { %5248 = vmatmul.mubr.f32.gmra.mrb[46].mxu1 %v5147_v43 }
 0xe29   :  { %v5244_v38 = vpop.f32.mrb[44].mxu1 }
 0xe2a   :  { %v5260_v4 = vadd.f32 %v5419_v45, %v5244_v38  ;;  %v5246_v57 = vpop.f32.mrb[45].mxu1 }
 0xe2c   :  { %8411 = vtanh.f32 %v5260_v4 }
 0xe2d   :  { %v5249_v46 = vpop.f32.mrb[46].mxu1 }
 0xe2e   :  { %v5261_v30 = vadd.f32 %v5419_v45, %v5249_v46  ;;  %v5251_v33 = vpop.f32.mrb[47].mxu1 }
 0xe30   :  { %8413 = vtanh.f32 %v5261_v30 }
 0xe36   :  { %v8412_v35 = vpop.eup %8411 }
 0xe37   :  { %5265 = vst.msk [vmem:[#allocation9] sm:$0xff] %vm5264_vm1, %v8412_v35 }
 0xe3a   :  { %v8414_v48 = vpop.eup %8413 }
 0xe3b   :  { %5266 = vst.msk [vmem:[#allocation9 + $0x8] sm:$0xff] %vm5264_vm1, %v8414_v48 }
 0xe3c   :  { %8482 = shalt.err (!%p8479_p11)
}
 0xe3d   :  { %s12332_s4 = sld [smem:[#allocation165_spill]] }
 0xe43   :  { %s8483_s15 = scalar_lea.hbm %s12332_s4, 256 }
 0xe44   :  { %p8484_p12 = scmp.ne.s32.totalorder %s12332_s4, %s8483_s15  ;;  %p8487_p13 = scmp.lt.u32.totalorder %s8483_s15, %s12332_s4 }
 0xe46   :  { %p8489_p0 = pnand %p8487_p13, %p8484_p12 }
 0xe48   :  { %8492 = shalt.err (!%p8489_p0)
}
 0xe49   :  { %s8509_s26 = smov 128   ;;  %s8510_s3 = smov 8  }
 0xe4a   :  { %5278 = dma.vmem_to_hbm [thread:$0]  %s5273_s28, 256, %s12332_s4, [#allocation4], %s8509_s26, %s8509_s26, %s8510_s3  }
 0xe4b   :  { %8499 = dma.done.wait [#allocation4], 256  }
 0xe4c   :  { %8500 = vsyncadd [#allocation4], 4294967040 }
 0xe4d   :  { %5282 = vsyncpa [#allocation3], 1 }
 0xe4e   :  { %5283 = vsyncpa [#allocation7], 1 }
 0xe4f   :  { %5284 = vsyncpa [#allocation4], 1 }
 0xe50   :  { %5285 = vsyncpa [#allocation5], 1 }

</bundles_post_ra>
